<compile_context>
chip_gen: v7x
topology: tpu7x:2x2x1
jax: 0.10.0
libtpu: 0.0.40
codegen_flags: <defaults>
</compile_context>

<pallas_src>
import functools

import jax
import jax.numpy as jnp
from jax import lax
from jax.experimental import pallas as pl
from jax.experimental.pallas import tpu as pltpu


_VMEM_SPEC = pl.BlockSpec(memory_space=pltpu.MemorySpace.VMEM)
_BN_EPS = 1e-5


# ---------------------------------------------------------------------------
# Kernel 1: fused conv stack (startBlock + ResBlocks + policy/value head convs)
# ---------------------------------------------------------------------------

def _pad1_hw(x):
    """Zero-pad H and W by 1 on each side, built with concatenation (in-kernel)."""
    b, h, w, c = x.shape
    zrow = jnp.zeros((b, 1, w, c), x.dtype)
    x = jnp.concatenate([zrow, x, zrow], axis=1)
    zcol = jnp.zeros((b, h + 2, 1, c), x.dtype)
    return jnp.concatenate([zcol, x, zcol], axis=2)


def _conv3x3_folded(act, w_ref, shift_ref):
    """3x3 conv (padding=1) with BN folded into the weights.

    act:       (B, H, W, Cin)  f32 activation (value, VMEM-resident)
    w_ref:     (9*Cin, Cout)   bf16 folded weights, rows ordered (dy, dx, cin)
    shift_ref: (1, Cout)       f32 folded bias/BN shift
    returns    (B*H*W, Cout)   f32 pre-activation
    """
    b, h, w, c = act.shape
    xp = _pad1_hw(act)                                     # (B, H+2, W+2, Cin)
    # im2col: one MXU matmul with K = 9*Cin instead of 9 per-tap dots.
    windows = [xp[:, dy:dy + h, dx:dx + w, :].reshape(b * h * w, c)
               for dy in range(3) for dx in range(3)]
    patches = jnp.concatenate(windows, axis=-1)            # (B*H*W, 9*Cin) f32
    acc = jnp.dot(patches.astype(w_ref.dtype), w_ref[...],
                  preferred_element_type=jnp.float32)
    return acc + shift_ref[...]


def _make_conv_stack_kernel(num_resblocks, B, H, W):
    n_conv = 1 + 2 * num_resblocks + 2

    def kernel(x_ref, *refs):
        conv = [(refs[2 * i], refs[2 * i + 1]) for i in range(n_conv)]
        pf_ref, vf_ref = refs[2 * n_conv], refs[2 * n_conv + 1]

        def to4d(a2d):  # (B*H*W, C) -> (B, H, W, C)  (layout-trivial f32 reshape)
            return a2d.reshape(B, H, W, a2d.shape[-1])

        # startBlock: Conv + BN + ReLU
        act2d = jnp.maximum(_conv3x3_folded(x_ref[...], *conv[0]), 0.0)

        # backBone: ResBlocks (residual add + ReLU in f32)
        for i in range(num_resblocks):
            w1, s1 = conv[1 + 2 * i]
            w2, s2 = conv[2 + 2 * i]
            h2d = jnp.maximum(_conv3x3_folded(to4d(act2d), w1, s1), 0.0)
            pre2 = _conv3x3_folded(to4d(h2d), w2, s2)
            act2d = jnp.maximum(pre2 + act2d, 0.0)

        # heads: Conv + BN + ReLU, emitted as 2D (B*H*W, C) bf16 feature maps.
        wp, sp = conv[1 + 2 * num_resblocks]
        wv, sv = conv[2 + 2 * num_resblocks]
        act4d = to4d(act2d)
        pf_ref[...] = jnp.maximum(_conv3x3_folded(act4d, wp, sp),
                                  0.0).astype(pf_ref.dtype)
        vf_ref[...] = jnp.maximum(_conv3x3_folded(act4d, wv, sv),
                                  0.0).astype(vf_ref.dtype)

    return kernel


def conv_stack(x_nhwc, conv_ws, conv_shifts, *, num_resblocks):
    """Run the fused conv stack; returns (policy_feat, value_feat) as (B*H*W, C)."""
    B, H, W, _ = x_nhwc.shape
    pc = conv_ws[-2].shape[-1]
    vc = conv_ws[-1].shape[-1]
    args = [x_nhwc]
    for w, s in zip(conv_ws, conv_shifts):
        args.extend((w, s))
    kernel = _make_conv_stack_kernel(num_resblocks, B, H, W)
    return pl.pallas_call(
        kernel,
        out_shape=(jax.ShapeDtypeStruct((B * H * W, pc), jnp.bfloat16),
                   jax.ShapeDtypeStruct((B * H * W, vc), jnp.bfloat16)),
        in_specs=[_VMEM_SPEC] * len(args),
        out_specs=(_VMEM_SPEC, _VMEM_SPEC),
    )(*args)


# ---------------------------------------------------------------------------
# Kernel 2: both head Linears (+ tanh) fused; policy output is lane-dense (2, 128)
# ---------------------------------------------------------------------------

def _heads_fc_kernel(pflat_ref, vflat_ref, wp_ref, bp_ref, wv_ref, bv_ref,
                     policy_ref, value_ref):
    pol = jnp.dot(pflat_ref[...], wp_ref[...], preferred_element_type=jnp.float32)
    policy_ref[...] = pol + bp_ref[...]
    val = jnp.dot(vflat_ref[...], wv_ref[...], preferred_element_type=jnp.float32)
    value_ref[...] = jnp.tanh(val + bv_ref[...])


def heads_fc(p_flat, v_flat, wp, bp, wv, bv):
    B = p_flat.shape[0]
    return pl.pallas_call(
        _heads_fc_kernel,
        out_shape=(jax.ShapeDtypeStruct((B, wp.shape[-1]), jnp.float32),
                   jax.ShapeDtypeStruct((B, wv.shape[-1]), jnp.float32)),
        in_specs=[_VMEM_SPEC] * 6,
        out_specs=(_VMEM_SPEC, _VMEM_SPEC),
    )(p_flat, v_flat, wp, bp, wv, bv)


# ---------------------------------------------------------------------------
# Parameter preparation (folding / permutation; trace-time, outside kernels)
# ---------------------------------------------------------------------------

def _fold_conv_bn(p):
    """Fold conv bias + BN(inference) into the conv weights.

    Returns (9*Cin, Cout) bf16 folded weight and (1, Cout) f32 shift so that
    conv_bn(x) == conv_{w*scale}(x) + (b*scale + shift).
    """
    w = p["w"] * p["scale"]                               # (3,3,Cin,Cout)*(Cout,)
    kh, kw, cin, cout = w.shape
    w_mat = w.reshape(kh * kw * cin, cout).astype(jnp.bfloat16)
    shift = (p["b"] * p["scale"] + p["shift"]).reshape(1, cout).astype(jnp.float32)
    return w_mat, shift


def _permute_fc_nchw_to_nhwc(p, C, HW):
    """Reorder FC weight rows from PyTorch NCHW-flatten order to NHWC order."""
    w, b = p["w"], p["b"]                                 # w: (C*HW, O), rows c*HW+hw
    O = w.shape[-1]
    w_nhwc = (w.reshape(C, HW, O).transpose(1, 0, 2)
               .reshape(HW * C, O).astype(jnp.bfloat16))  # rows hw*C+c
    return w_nhwc, b.reshape(1, O).astype(jnp.float32)


# ---------------------------------------------------------------------------
# Deterministic parameter initialization (synthetic, matches module shapes)
# ---------------------------------------------------------------------------

def _init_conv_bn(key, cin, cout, w_scale=0.1):
    k = jax.random.split(key, 6)
    w = jax.random.normal(k[0], (3, 3, cin, cout), jnp.float32) * w_scale  # HWIO
    b = jax.random.normal(k[1], (cout,), jnp.float32) * 0.1
    gamma = 1.0 + 0.1 * jax.random.normal(k[2], (cout,), jnp.float32)
    beta = 0.1 * jax.random.normal(k[3], (cout,), jnp.float32)
    mean = 0.1 * jax.random.normal(k[4], (cout,), jnp.float32)
    var = jax.random.uniform(k[5], (cout,), jnp.float32, 0.5, 1.5)
    scale = gamma / jnp.sqrt(var + _BN_EPS)
    shift = beta - mean * scale
    return {"w": w, "b": b, "scale": scale, "shift": shift}


def _init_linear(key, fin, fout, w_scale=0.02):
    k1, k2 = jax.random.split(key)
    w = jax.random.normal(k1, (fin, fout), jnp.float32) * w_scale
    b = jax.random.normal(k2, (fout,), jnp.float32) * 0.02
    return {"w": w, "b": b}


def init_resnet_params(key, *, in_ch, num_hidden, num_resblocks, height, width,
                       num_players):
    action_size = height * width
    keys = jax.random.split(key, 3 + 2 * num_resblocks + 2)
    params = {
        "start": _init_conv_bn(keys[0], in_ch, num_hidden),
        "blocks": [],
        "policy_conv": _init_conv_bn(keys[1], num_hidden, 32),
        "value_conv": _init_conv_bn(keys[2], num_hidden, 3),
    }
    for i in range(num_resblocks):
        params["blocks"].append({
            "c1": _init_conv_bn(keys[3 + 2 * i], num_hidden, num_hidden),
            "c2": _init_conv_bn(keys[4 + 2 * i], num_hidden, num_hidden),
        })
    params["policy_fc"] = _init_linear(keys[3 + 2 * num_resblocks],
                                       32 * height * width,
                                       action_size * num_players)
    params["value_fc"] = _init_linear(keys[4 + 2 * num_resblocks],
                                      3 * height * width, num_players)
    return params


# ---------------------------------------------------------------------------
# Forward pass: 2 pallas_calls total (fused conv stack + fused FC heads)
# ---------------------------------------------------------------------------

def resnet_forward(params, x_nchw, *, num_players):
    B, _, H, W = x_nchw.shape
    A = H * W

    x = jnp.transpose(x_nchw, (0, 2, 3, 1)).astype(jnp.float32)   # NCHW -> NHWC

    conv_ps = [params["start"]]
    for blk in params["blocks"]:
        conv_ps.extend((blk["c1"], blk["c2"]))
    conv_ps.extend((params["policy_conv"], params["value_conv"]))
    folded = [_fold_conv_bn(p) for p in conv_ps]
    conv_ws = [f[0] for f in folded]
    conv_shifts = [f[1] for f in folded]

    pf2d, vf2d = conv_stack(x, conv_ws, conv_shifts,
                            num_resblocks=len(params["blocks"]))
    PC, VC = pf2d.shape[-1], vf2d.shape[-1]

    # NHWC flatten is a free row-major reshape; the PyTorch NCHW flatten order is
    # absorbed into the FC weight-row permutation.
    p_flat = pf2d.reshape(B, A * PC)
    v_flat = vf2d.reshape(B, A * VC)
    wp, bp = _permute_fc_nchw_to_nhwc(params["policy_fc"], PC, A)
    wv, bv = _permute_fc_nchw_to_nhwc(params["value_fc"], VC, A)

    policy2d, value = heads_fc(p_flat, v_flat, wp, bp, wv, bv)
    policy = policy2d.reshape(B, num_players, A)
    return policy, value


# ---------------------------------------------------------------------------
# Pure-JAX reference (defines module semantics; f32, HIGHEST precision)
# ---------------------------------------------------------------------------

def _ref_conv_bn(x, p, residual=None, apply_relu=True):
    y = lax.conv_general_dilated(
        x, p["w"], window_strides=(1, 1), padding="SAME",
        dimension_numbers=("NHWC", "HWIO", "NHWC"),
        precision=lax.Precision.HIGHEST)
    y = (y + p["b"]) * p["scale"] + p["shift"]
    if residual is not None:
        y = y + residual
    if apply_relu:
        y = jnp.maximum(y, 0.0)
    return y


def resnet_forward_ref(params, x_nchw, *, num_players):
    B = x_nchw.shape[0]
    H, W = x_nchw.shape[2], x_nchw.shape[3]
    x = jnp.transpose(x_nchw, (0, 2, 3, 1)).astype(jnp.float32)
    x = _ref_conv_bn(x, params["start"])
    for blk in params["blocks"]:
        h = _ref_conv_bn(x, blk["c1"])
        x = _ref_conv_bn(h, blk["c2"], residual=x)
    pf = _ref_conv_bn(x, params["policy_conv"])
    p_flat = jnp.transpose(pf, (0, 3, 1, 2)).reshape(B, -1)   # PyTorch NCHW flatten
    policy = p_flat @ params["policy_fc"]["w"] + params["policy_fc"]["b"]
    policy = policy.reshape(-1, num_players, H * W)
    vf = _ref_conv_bn(x, params["value_conv"])
    v_flat = jnp.transpose(vf, (0, 3, 1, 2)).reshape(B, -1)
    value = jnp.tanh(v_flat @ params["value_fc"]["w"] + params["value_fc"]["b"])
    return policy, value


# ---------------------------------------------------------------------------
# Main
# ---------------------------------------------------------------------------

if __name__ == "__main__":
    # Small, module-consistent config: DummyGame(8, 8), num_players=2,
    # num_resBlocks=2, num_hidden=32 (constructor args of ResNet).
    BATCH = 2
    NUM_PLAYERS = 2
    HEIGHT = WIDTH = 8
    NUM_HIDDEN = 32
    NUM_RESBLOCKS = 2
    IN_CH = NUM_PLAYERS + 2  # 4

    params = init_resnet_params(
        jax.random.PRNGKey(1), in_ch=IN_CH, num_hidden=NUM_HIDDEN,
        num_resblocks=NUM_RESBLOCKS, height=HEIGHT, width=WIDTH,
        num_players=NUM_PLAYERS)

    x = jax.random.normal(jax.random.PRNGKey(0),
                          (BATCH, IN_CH, HEIGHT, WIDTH), jnp.float32)  # NCHW

    fwd = jax.jit(functools.partial(resnet_forward, num_players=NUM_PLAYERS))
    policy, value = fwd(params, x)
    policy, value = jax.block_until_ready((policy, value))

    assert policy.shape == (BATCH, NUM_PLAYERS, HEIGHT * WIDTH), policy.shape
    assert value.shape == (BATCH, NUM_PLAYERS), value.shape

    # Cross-check against the pure-JAX f32 reference (kernel matmuls are bf16).
    p_ref, v_ref = resnet_forward_ref(params, x, num_players=NUM_PLAYERS)
    assert jnp.allclose(policy, p_ref, rtol=2e-2, atol=2e-2), (
        float(jnp.max(jnp.abs(policy - p_ref))))
    assert jnp.allclose(value, v_ref, rtol=2e-2, atol=2e-2), (
        float(jnp.max(jnp.abs(value - v_ref))))

    print("KERNEL_OK")
</pallas_src>

<mosaic_0001>
module attributes {stable_mosaic.version = 11 : i64} {
  func.func @kernel(%arg0: memref<2x8x8x4xf32, #tpu.memory_space<vmem>>, %arg1: memref<36x32xbf16, #tpu.memory_space<vmem>>, %arg2: memref<1x32xf32, #tpu.memory_space<vmem>>, %arg3: memref<288x32xbf16, #tpu.memory_space<vmem>>, %arg4: memref<1x32xf32, #tpu.memory_space<vmem>>, %arg5: memref<288x32xbf16, #tpu.memory_space<vmem>>, %arg6: memref<1x32xf32, #tpu.memory_space<vmem>>, %arg7: memref<288x32xbf16, #tpu.memory_space<vmem>>, %arg8: memref<1x32xf32, #tpu.memory_space<vmem>>, %arg9: memref<288x32xbf16, #tpu.memory_space<vmem>>, %arg10: memref<1x32xf32, #tpu.memory_space<vmem>>, %arg11: memref<288x32xbf16, #tpu.memory_space<vmem>>, %arg12: memref<1x32xf32, #tpu.memory_space<vmem>>, %arg13: memref<288x3xbf16, #tpu.memory_space<vmem>>, %arg14: memref<1x3xf32, #tpu.memory_space<vmem>>, %arg15: memref<128x32xbf16, #tpu.memory_space<vmem>>, %arg16: memref<128x3xbf16, #tpu.memory_space<vmem>>) attributes {dimension_semantics = [], scalar_prefetch = 0 : i64, scratch_operands = 0 : i64, tpu.core_type = #tpu.core_type<tc>} {
    %c0 = arith.constant 0 : index
    %c0_0 = arith.constant 0 : index
    %c0_1 = arith.constant 0 : index
    %c0_2 = arith.constant 0 : index
    %0 = vector.load %arg0[%c0, %c0_0, %c0_1, %c0_2] : memref<2x8x8x4xf32, #tpu.memory_space<vmem>>, vector<2x8x8x4xf32>
    %cst = arith.constant 0.000000e+00 : f32
    %1 = vector.broadcast %cst : f32 to vector<2x1x8x4xf32>
    %2 = tpu.concatenate %1, %0, %1 in 1 : vector<2x1x8x4xf32>, vector<2x8x8x4xf32>, vector<2x1x8x4xf32> -> vector<2x10x8x4xf32>
    %cst_3 = arith.constant 0.000000e+00 : f32
    %3 = vector.broadcast %cst_3 : f32 to vector<2x10x1x4xf32>
    %4 = tpu.concatenate %3, %2, %3 in 2 : vector<2x10x1x4xf32>, vector<2x10x8x4xf32>, vector<2x10x1x4xf32> -> vector<2x10x10x4xf32>
    %5 = vector.extract_strided_slice %4 {offsets = [0, 0, 0, 0], sizes = [2, 8, 8, 4], strides = [1, 1, 1, 1]} : vector<2x10x10x4xf32> to vector<2x8x8x4xf32>
    %6 = vector.shape_cast %5 : vector<2x8x8x4xf32> to vector<128x4xf32>
    %7 = vector.extract_strided_slice %4 {offsets = [0, 0, 1, 0], sizes = [2, 8, 8, 4], strides = [1, 1, 1, 1]} : vector<2x10x10x4xf32> to vector<2x8x8x4xf32>
    %8 = vector.shape_cast %7 : vector<2x8x8x4xf32> to vector<128x4xf32>
    %9 = vector.extract_strided_slice %4 {offsets = [0, 0, 2, 0], sizes = [2, 8, 8, 4], strides = [1, 1, 1, 1]} : vector<2x10x10x4xf32> to vector<2x8x8x4xf32>
    %10 = vector.shape_cast %9 : vector<2x8x8x4xf32> to vector<128x4xf32>
    %11 = vector.extract_strided_slice %4 {offsets = [0, 1, 0, 0], sizes = [2, 8, 8, 4], strides = [1, 1, 1, 1]} : vector<2x10x10x4xf32> to vector<2x8x8x4xf32>
    %12 = vector.shape_cast %11 : vector<2x8x8x4xf32> to vector<128x4xf32>
    %13 = vector.extract_strided_slice %4 {offsets = [0, 1, 1, 0], sizes = [2, 8, 8, 4], strides = [1, 1, 1, 1]} : vector<2x10x10x4xf32> to vector<2x8x8x4xf32>
    %14 = vector.shape_cast %13 : vector<2x8x8x4xf32> to vector<128x4xf32>
    %15 = vector.extract_strided_slice %4 {offsets = [0, 1, 2, 0], sizes = [2, 8, 8, 4], strides = [1, 1, 1, 1]} : vector<2x10x10x4xf32> to vector<2x8x8x4xf32>
    %16 = vector.shape_cast %15 : vector<2x8x8x4xf32> to vector<128x4xf32>
    %17 = vector.extract_strided_slice %4 {offsets = [0, 2, 0, 0], sizes = [2, 8, 8, 4], strides = [1, 1, 1, 1]} : vector<2x10x10x4xf32> to vector<2x8x8x4xf32>
    %18 = vector.shape_cast %17 : vector<2x8x8x4xf32> to vector<128x4xf32>
    %19 = vector.extract_strided_slice %4 {offsets = [0, 2, 1, 0], sizes = [2, 8, 8, 4], strides = [1, 1, 1, 1]} : vector<2x10x10x4xf32> to vector<2x8x8x4xf32>
    %20 = vector.shape_cast %19 : vector<2x8x8x4xf32> to vector<128x4xf32>
    %21 = vector.extract_strided_slice %4 {offsets = [0, 2, 2, 0], sizes = [2, 8, 8, 4], strides = [1, 1, 1, 1]} : vector<2x10x10x4xf32> to vector<2x8x8x4xf32>
    %22 = vector.shape_cast %21 : vector<2x8x8x4xf32> to vector<128x4xf32>
    %23 = tpu.concatenate %6, %8, %10, %12, %14, %16, %18, %20, %22 in 1 : vector<128x4xf32>, vector<128x4xf32>, vector<128x4xf32>, vector<128x4xf32>, vector<128x4xf32>, vector<128x4xf32>, vector<128x4xf32>, vector<128x4xf32>, vector<128x4xf32> -> vector<128x36xf32>
    %24 = arith.truncf %23 : vector<128x36xf32> to vector<128x36xbf16>
    %c0_4 = arith.constant 0 : index
    %c0_5 = arith.constant 0 : index
    %25 = vector.load %arg1[%c0_4, %c0_5] : memref<36x32xbf16, #tpu.memory_space<vmem>>, vector<36x32xbf16>
    %cst_6 = arith.constant dense<0.000000e+00> : vector<128x32xf32>
    %26 = tpu.matmul %24, %25, %cst_6 {dimension_numbers = #tpu.dot_dimension_numbers<[1], [0], [0], [1], [0, 0, 1, 1], [], []>} : vector<128x36xbf16>, vector<36x32xbf16>, vector<128x32xf32> -> vector<128x32xf32>
    %c0_7 = arith.constant 0 : index
    %c0_8 = arith.constant 0 : index
    %27 = vector.load %arg2[%c0_7, %c0_8] : memref<1x32xf32, #tpu.memory_space<vmem>>, vector<1x32xf32>
    %28 = vector.broadcast %27 : vector<1x32xf32> to vector<128x32xf32>
    %29 = arith.addf %26, %28 : vector<128x32xf32>
    %cst_9 = arith.constant 0.000000e+00 : f32
    %30 = vector.broadcast %cst_9 : f32 to vector<128x32xf32>
    %31 = arith.maximumf %29, %30 : vector<128x32xf32>
    %32 = vector.shape_cast %31 : vector<128x32xf32> to vector<2x8x8x32xf32>
    %cst_10 = arith.constant 0.000000e+00 : f32
    %33 = vector.broadcast %cst_10 : f32 to vector<2x1x8x32xf32>
    %34 = tpu.concatenate %33, %32, %33 in 1 : vector<2x1x8x32xf32>, vector<2x8x8x32xf32>, vector<2x1x8x32xf32> -> vector<2x10x8x32xf32>
    %cst_11 = arith.constant 0.000000e+00 : f32
    %35 = vector.broadcast %cst_11 : f32 to vector<2x10x1x32xf32>
    %36 = tpu.concatenate %35, %34, %35 in 2 : vector<2x10x1x32xf32>, vector<2x10x8x32xf32>, vector<2x10x1x32xf32> -> vector<2x10x10x32xf32>
    %37 = vector.extract_strided_slice %36 {offsets = [0, 0, 0, 0], sizes = [2, 8, 8, 32], strides = [1, 1, 1, 1]} : vector<2x10x10x32xf32> to vector<2x8x8x32xf32>
    %38 = vector.shape_cast %37 : vector<2x8x8x32xf32> to vector<128x32xf32>
    %39 = vector.extract_strided_slice %36 {offsets = [0, 0, 1, 0], sizes = [2, 8, 8, 32], strides = [1, 1, 1, 1]} : vector<2x10x10x32xf32> to vector<2x8x8x32xf32>
    %40 = vector.shape_cast %39 : vector<2x8x8x32xf32> to vector<128x32xf32>
    %41 = vector.extract_strided_slice %36 {offsets = [0, 0, 2, 0], sizes = [2, 8, 8, 32], strides = [1, 1, 1, 1]} : vector<2x10x10x32xf32> to vector<2x8x8x32xf32>
    %42 = vector.shape_cast %41 : vector<2x8x8x32xf32> to vector<128x32xf32>
    %43 = vector.extract_strided_slice %36 {offsets = [0, 1, 0, 0], sizes = [2, 8, 8, 32], strides = [1, 1, 1, 1]} : vector<2x10x10x32xf32> to vector<2x8x8x32xf32>
    %44 = vector.shape_cast %43 : vector<2x8x8x32xf32> to vector<128x32xf32>
    %45 = vector.extract_strided_slice %36 {offsets = [0, 1, 1, 0], sizes = [2, 8, 8, 32], strides = [1, 1, 1, 1]} : vector<2x10x10x32xf32> to vector<2x8x8x32xf32>
    %46 = vector.shape_cast %45 : vector<2x8x8x32xf32> to vector<128x32xf32>
    %47 = vector.extract_strided_slice %36 {offsets = [0, 1, 2, 0], sizes = [2, 8, 8, 32], strides = [1, 1, 1, 1]} : vector<2x10x10x32xf32> to vector<2x8x8x32xf32>
    %48 = vector.shape_cast %47 : vector<2x8x8x32xf32> to vector<128x32xf32>
    %49 = vector.extract_strided_slice %36 {offsets = [0, 2, 0, 0], sizes = [2, 8, 8, 32], strides = [1, 1, 1, 1]} : vector<2x10x10x32xf32> to vector<2x8x8x32xf32>
    %50 = vector.shape_cast %49 : vector<2x8x8x32xf32> to vector<128x32xf32>
    %51 = vector.extract_strided_slice %36 {offsets = [0, 2, 1, 0], sizes = [2, 8, 8, 32], strides = [1, 1, 1, 1]} : vector<2x10x10x32xf32> to vector<2x8x8x32xf32>
    %52 = vector.shape_cast %51 : vector<2x8x8x32xf32> to vector<128x32xf32>
    %53 = vector.extract_strided_slice %36 {offsets = [0, 2, 2, 0], sizes = [2, 8, 8, 32], strides = [1, 1, 1, 1]} : vector<2x10x10x32xf32> to vector<2x8x8x32xf32>
    %54 = vector.shape_cast %53 : vector<2x8x8x32xf32> to vector<128x32xf32>
    %55 = tpu.concatenate %38, %40, %42, %44, %46, %48, %50, %52, %54 in 1 : vector<128x32xf32>, vector<128x32xf32>, vector<128x32xf32>, vector<128x32xf32>, vector<128x32xf32>, vector<128x32xf32>, vector<128x32xf32>, vector<128x32xf32>, vector<128x32xf32> -> vector<128x288xf32>
    %56 = arith.truncf %55 : vector<128x288xf32> to vector<128x288xbf16>
    %c0_12 = arith.constant 0 : index
    %c0_13 = arith.constant 0 : index
    %57 = vector.load %arg3[%c0_12, %c0_13] : memref<288x32xbf16, #tpu.memory_space<vmem>>, vector<288x32xbf16>
    %cst_14 = arith.constant dense<0.000000e+00> : vector<128x32xf32>
    %58 = tpu.matmul %56, %57, %cst_14 {dimension_numbers = #tpu.dot_dimension_numbers<[1], [0], [0], [1], [0, 0, 1, 1], [], []>} : vector<128x288xbf16>, vector<288x32xbf16>, vector<128x32xf32> -> vector<128x32xf32>
    %c0_15 = arith.constant 0 : index
    %c0_16 = arith.constant 0 : index
    %59 = vector.load %arg4[%c0_15, %c0_16] : memref<1x32xf32, #tpu.memory_space<vmem>>, vector<1x32xf32>
    %60 = vector.broadcast %59 : vector<1x32xf32> to vector<128x32xf32>
    %61 = arith.addf %58, %60 : vector<128x32xf32>
    %cst_17 = arith.constant 0.000000e+00 : f32
    %62 = vector.broadcast %cst_17 : f32 to vector<128x32xf32>
    %63 = arith.maximumf %61, %62 : vector<128x32xf32>
    %64 = vector.shape_cast %63 : vector<128x32xf32> to vector<2x8x8x32xf32>
    %cst_18 = arith.constant 0.000000e+00 : f32
    %65 = vector.broadcast %cst_18 : f32 to vector<2x1x8x32xf32>
    %66 = tpu.concatenate %65, %64, %65 in 1 : vector<2x1x8x32xf32>, vector<2x8x8x32xf32>, vector<2x1x8x32xf32> -> vector<2x10x8x32xf32>
    %cst_19 = arith.constant 0.000000e+00 : f32
    %67 = vector.broadcast %cst_19 : f32 to vector<2x10x1x32xf32>
    %68 = tpu.concatenate %67, %66, %67 in 2 : vector<2x10x1x32xf32>, vector<2x10x8x32xf32>, vector<2x10x1x32xf32> -> vector<2x10x10x32xf32>
    %69 = vector.extract_strided_slice %68 {offsets = [0, 0, 0, 0], sizes = [2, 8, 8, 32], strides = [1, 1, 1, 1]} : vector<2x10x10x32xf32> to vector<2x8x8x32xf32>
    %70 = vector.shape_cast %69 : vector<2x8x8x32xf32> to vector<128x32xf32>
    %71 = vector.extract_strided_slice %68 {offsets = [0, 0, 1, 0], sizes = [2, 8, 8, 32], strides = [1, 1, 1, 1]} : vector<2x10x10x32xf32> to vector<2x8x8x32xf32>
    %72 = vector.shape_cast %71 : vector<2x8x8x32xf32> to vector<128x32xf32>
    %73 = vector.extract_strided_slice %68 {offsets = [0, 0, 2, 0], sizes = [2, 8, 8, 32], strides = [1, 1, 1, 1]} : vector<2x10x10x32xf32> to vector<2x8x8x32xf32>
    %74 = vector.shape_cast %73 : vector<2x8x8x32xf32> to vector<128x32xf32>
    %75 = vector.extract_strided_slice %68 {offsets = [0, 1, 0, 0], sizes = [2, 8, 8, 32], strides = [1, 1, 1, 1]} : vector<2x10x10x32xf32> to vector<2x8x8x32xf32>
    %76 = vector.shape_cast %75 : vector<2x8x8x32xf32> to vector<128x32xf32>
    %77 = vector.extract_strided_slice %68 {offsets = [0, 1, 1, 0], sizes = [2, 8, 8, 32], strides = [1, 1, 1, 1]} : vector<2x10x10x32xf32> to vector<2x8x8x32xf32>
    %78 = vector.shape_cast %77 : vector<2x8x8x32xf32> to vector<128x32xf32>
    %79 = vector.extract_strided_slice %68 {offsets = [0, 1, 2, 0], sizes = [2, 8, 8, 32], strides = [1, 1, 1, 1]} : vector<2x10x10x32xf32> to vector<2x8x8x32xf32>
    %80 = vector.shape_cast %79 : vector<2x8x8x32xf32> to vector<128x32xf32>
    %81 = vector.extract_strided_slice %68 {offsets = [0, 2, 0, 0], sizes = [2, 8, 8, 32], strides = [1, 1, 1, 1]} : vector<2x10x10x32xf32> to vector<2x8x8x32xf32>
    %82 = vector.shape_cast %81 : vector<2x8x8x32xf32> to vector<128x32xf32>
    %83 = vector.extract_strided_slice %68 {offsets = [0, 2, 1, 0], sizes = [2, 8, 8, 32], strides = [1, 1, 1, 1]} : vector<2x10x10x32xf32> to vector<2x8x8x32xf32>
    %84 = vector.shape_cast %83 : vector<2x8x8x32xf32> to vector<128x32xf32>
    %85 = vector.extract_strided_slice %68 {offsets = [0, 2, 2, 0], sizes = [2, 8, 8, 32], strides = [1, 1, 1, 1]} : vector<2x10x10x32xf32> to vector<2x8x8x32xf32>
    %86 = vector.shape_cast %85 : vector<2x8x8x32xf32> to vector<128x32xf32>
    %87 = tpu.concatenate %70, %72, %74, %76, %78, %80, %82, %84, %86 in 1 : vector<128x32xf32>, vector<128x32xf32>, vector<128x32xf32>, vector<128x32xf32>, vector<128x32xf32>, vector<128x32xf32>, vector<128x32xf32>, vector<128x32xf32>, vector<128x32xf32> -> vector<128x288xf32>
    %88 = arith.truncf %87 : vector<128x288xf32> to vector<128x288xbf16>
    %c0_20 = arith.constant 0 : index
    %c0_21 = arith.constant 0 : index
    %89 = vector.load %arg5[%c0_20, %c0_21] : memref<288x32xbf16, #tpu.memory_space<vmem>>, vector<288x32xbf16>
    %cst_22 = arith.constant dense<0.000000e+00> : vector<128x32xf32>
    %90 = tpu.matmul %88, %89, %cst_22 {dimension_numbers = #tpu.dot_dimension_numbers<[1], [0], [0], [1], [0, 0, 1, 1], [], []>} : vector<128x288xbf16>, vector<288x32xbf16>, vector<128x32xf32> -> vector<128x32xf32>
    %c0_23 = arith.constant 0 : index
    %c0_24 = arith.constant 0 : index
    %91 = vector.load %arg6[%c0_23, %c0_24] : memref<1x32xf32, #tpu.memory_space<vmem>>, vector<1x32xf32>
    %92 = vector.broadcast %91 : vector<1x32xf32> to vector<128x32xf32>
    %93 = arith.addf %90, %92 : vector<128x32xf32>
    %94 = arith.addf %93, %31 : vector<128x32xf32>
    %cst_25 = arith.constant 0.000000e+00 : f32
    %95 = vector.broadcast %cst_25 : f32 to vector<128x32xf32>
    %96 = arith.maximumf %94, %95 : vector<128x32xf32>
    %97 = vector.shape_cast %96 : vector<128x32xf32> to vector<2x8x8x32xf32>
    %cst_26 = arith.constant 0.000000e+00 : f32
    %98 = vector.broadcast %cst_26 : f32 to vector<2x1x8x32xf32>
    %99 = tpu.concatenate %98, %97, %98 in 1 : vector<2x1x8x32xf32>, vector<2x8x8x32xf32>, vector<2x1x8x32xf32> -> vector<2x10x8x32xf32>
    %cst_27 = arith.constant 0.000000e+00 : f32
    %100 = vector.broadcast %cst_27 : f32 to vector<2x10x1x32xf32>
    %101 = tpu.concatenate %100, %99, %100 in 2 : vector<2x10x1x32xf32>, vector<2x10x8x32xf32>, vector<2x10x1x32xf32> -> vector<2x10x10x32xf32>
    %102 = vector.extract_strided_slice %101 {offsets = [0, 0, 0, 0], sizes = [2, 8, 8, 32], strides = [1, 1, 1, 1]} : vector<2x10x10x32xf32> to vector<2x8x8x32xf32>
    %103 = vector.shape_cast %102 : vector<2x8x8x32xf32> to vector<128x32xf32>
    %104 = vector.extract_strided_slice %101 {offsets = [0, 0, 1, 0], sizes = [2, 8, 8, 32], strides = [1, 1, 1, 1]} : vector<2x10x10x32xf32> to vector<2x8x8x32xf32>
    %105 = vector.shape_cast %104 : vector<2x8x8x32xf32> to vector<128x32xf32>
    %106 = vector.extract_strided_slice %101 {offsets = [0, 0, 2, 0], sizes = [2, 8, 8, 32], strides = [1, 1, 1, 1]} : vector<2x10x10x32xf32> to vector<2x8x8x32xf32>
    %107 = vector.shape_cast %106 : vector<2x8x8x32xf32> to vector<128x32xf32>
    %108 = vector.extract_strided_slice %101 {offsets = [0, 1, 0, 0], sizes = [2, 8, 8, 32], strides = [1, 1, 1, 1]} : vector<2x10x10x32xf32> to vector<2x8x8x32xf32>
    %109 = vector.shape_cast %108 : vector<2x8x8x32xf32> to vector<128x32xf32>
    %110 = vector.extract_strided_slice %101 {offsets = [0, 1, 1, 0], sizes = [2, 8, 8, 32], strides = [1, 1, 1, 1]} : vector<2x10x10x32xf32> to vector<2x8x8x32xf32>
    %111 = vector.shape_cast %110 : vector<2x8x8x32xf32> to vector<128x32xf32>
    %112 = vector.extract_strided_slice %101 {offsets = [0, 1, 2, 0], sizes = [2, 8, 8, 32], strides = [1, 1, 1, 1]} : vector<2x10x10x32xf32> to vector<2x8x8x32xf32>
    %113 = vector.shape_cast %112 : vector<2x8x8x32xf32> to vector<128x32xf32>
    %114 = vector.extract_strided_slice %101 {offsets = [0, 2, 0, 0], sizes = [2, 8, 8, 32], strides = [1, 1, 1, 1]} : vector<2x10x10x32xf32> to vector<2x8x8x32xf32>
    %115 = vector.shape_cast %114 : vector<2x8x8x32xf32> to vector<128x32xf32>
    %116 = vector.extract_strided_slice %101 {offsets = [0, 2, 1, 0], sizes = [2, 8, 8, 32], strides = [1, 1, 1, 1]} : vector<2x10x10x32xf32> to vector<2x8x8x32xf32>
    %117 = vector.shape_cast %116 : vector<2x8x8x32xf32> to vector<128x32xf32>
    %118 = vector.extract_strided_slice %101 {offsets = [0, 2, 2, 0], sizes = [2, 8, 8, 32], strides = [1, 1, 1, 1]} : vector<2x10x10x32xf32> to vector<2x8x8x32xf32>
    %119 = vector.shape_cast %118 : vector<2x8x8x32xf32> to vector<128x32xf32>
    %120 = tpu.concatenate %103, %105, %107, %109, %111, %113, %115, %117, %119 in 1 : vector<128x32xf32>, vector<128x32xf32>, vector<128x32xf32>, vector<128x32xf32>, vector<128x32xf32>, vector<128x32xf32>, vector<128x32xf32>, vector<128x32xf32>, vector<128x32xf32> -> vector<128x288xf32>
    %121 = arith.truncf %120 : vector<128x288xf32> to vector<128x288xbf16>
    %c0_28 = arith.constant 0 : index
    %c0_29 = arith.constant 0 : index
    %122 = vector.load %arg7[%c0_28, %c0_29] : memref<288x32xbf16, #tpu.memory_space<vmem>>, vector<288x32xbf16>
    %cst_30 = arith.constant dense<0.000000e+00> : vector<128x32xf32>
    %123 = tpu.matmul %121, %122, %cst_30 {dimension_numbers = #tpu.dot_dimension_numbers<[1], [0], [0], [1], [0, 0, 1, 1], [], []>} : vector<128x288xbf16>, vector<288x32xbf16>, vector<128x32xf32> -> vector<128x32xf32>
    %c0_31 = arith.constant 0 : index
    %c0_32 = arith.constant 0 : index
    %124 = vector.load %arg8[%c0_31, %c0_32] : memref<1x32xf32, #tpu.memory_space<vmem>>, vector<1x32xf32>
    %125 = vector.broadcast %124 : vector<1x32xf32> to vector<128x32xf32>
    %126 = arith.addf %123, %125 : vector<128x32xf32>
    %cst_33 = arith.constant 0.000000e+00 : f32
    %127 = vector.broadcast %cst_33 : f32 to vector<128x32xf32>
    %128 = arith.maximumf %126, %127 : vector<128x32xf32>
    %129 = vector.shape_cast %128 : vector<128x32xf32> to vector<2x8x8x32xf32>
    %cst_34 = arith.constant 0.000000e+00 : f32
    %130 = vector.broadcast %cst_34 : f32 to vector<2x1x8x32xf32>
    %131 = tpu.concatenate %130, %129, %130 in 1 : vector<2x1x8x32xf32>, vector<2x8x8x32xf32>, vector<2x1x8x32xf32> -> vector<2x10x8x32xf32>
    %cst_35 = arith.constant 0.000000e+00 : f32
    %132 = vector.broadcast %cst_35 : f32 to vector<2x10x1x32xf32>
    %133 = tpu.concatenate %132, %131, %132 in 2 : vector<2x10x1x32xf32>, vector<2x10x8x32xf32>, vector<2x10x1x32xf32> -> vector<2x10x10x32xf32>
    %134 = vector.extract_strided_slice %133 {offsets = [0, 0, 0, 0], sizes = [2, 8, 8, 32], strides = [1, 1, 1, 1]} : vector<2x10x10x32xf32> to vector<2x8x8x32xf32>
    %135 = vector.shape_cast %134 : vector<2x8x8x32xf32> to vector<128x32xf32>
    %136 = vector.extract_strided_slice %133 {offsets = [0, 0, 1, 0], sizes = [2, 8, 8, 32], strides = [1, 1, 1, 1]} : vector<2x10x10x32xf32> to vector<2x8x8x32xf32>
    %137 = vector.shape_cast %136 : vector<2x8x8x32xf32> to vector<128x32xf32>
    %138 = vector.extract_strided_slice %133 {offsets = [0, 0, 2, 0], sizes = [2, 8, 8, 32], strides = [1, 1, 1, 1]} : vector<2x10x10x32xf32> to vector<2x8x8x32xf32>
    %139 = vector.shape_cast %138 : vector<2x8x8x32xf32> to vector<128x32xf32>
    %140 = vector.extract_strided_slice %133 {offsets = [0, 1, 0, 0], sizes = [2, 8, 8, 32], strides = [1, 1, 1, 1]} : vector<2x10x10x32xf32> to vector<2x8x8x32xf32>
    %141 = vector.shape_cast %140 : vector<2x8x8x32xf32> to vector<128x32xf32>
    %142 = vector.extract_strided_slice %133 {offsets = [0, 1, 1, 0], sizes = [2, 8, 8, 32], strides = [1, 1, 1, 1]} : vector<2x10x10x32xf32> to vector<2x8x8x32xf32>
    %143 = vector.shape_cast %142 : vector<2x8x8x32xf32> to vector<128x32xf32>
    %144 = vector.extract_strided_slice %133 {offsets = [0, 1, 2, 0], sizes = [2, 8, 8, 32], strides = [1, 1, 1, 1]} : vector<2x10x10x32xf32> to vector<2x8x8x32xf32>
    %145 = vector.shape_cast %144 : vector<2x8x8x32xf32> to vector<128x32xf32>
    %146 = vector.extract_strided_slice %133 {offsets = [0, 2, 0, 0], sizes = [2, 8, 8, 32], strides = [1, 1, 1, 1]} : vector<2x10x10x32xf32> to vector<2x8x8x32xf32>
    %147 = vector.shape_cast %146 : vector<2x8x8x32xf32> to vector<128x32xf32>
    %148 = vector.extract_strided_slice %133 {offsets = [0, 2, 1, 0], sizes = [2, 8, 8, 32], strides = [1, 1, 1, 1]} : vector<2x10x10x32xf32> to vector<2x8x8x32xf32>
    %149 = vector.shape_cast %148 : vector<2x8x8x32xf32> to vector<128x32xf32>
    %150 = vector.extract_strided_slice %133 {offsets = [0, 2, 2, 0], sizes = [2, 8, 8, 32], strides = [1, 1, 1, 1]} : vector<2x10x10x32xf32> to vector<2x8x8x32xf32>
    %151 = vector.shape_cast %150 : vector<2x8x8x32xf32> to vector<128x32xf32>
    %152 = tpu.concatenate %135, %137, %139, %141, %143, %145, %147, %149, %151 in 1 : vector<128x32xf32>, vector<128x32xf32>, vector<128x32xf32>, vector<128x32xf32>, vector<128x32xf32>, vector<128x32xf32>, vector<128x32xf32>, vector<128x32xf32>, vector<128x32xf32> -> vector<128x288xf32>
    %153 = arith.truncf %152 : vector<128x288xf32> to vector<128x288xbf16>
    %c0_36 = arith.constant 0 : index
    %c0_37 = arith.constant 0 : index
    %154 = vector.load %arg9[%c0_36, %c0_37] : memref<288x32xbf16, #tpu.memory_space<vmem>>, vector<288x32xbf16>
    %cst_38 = arith.constant dense<0.000000e+00> : vector<128x32xf32>
    %155 = tpu.matmul %153, %154, %cst_38 {dimension_numbers = #tpu.dot_dimension_numbers<[1], [0], [0], [1], [0, 0, 1, 1], [], []>} : vector<128x288xbf16>, vector<288x32xbf16>, vector<128x32xf32> -> vector<128x32xf32>
    %c0_39 = arith.constant 0 : index
    %c0_40 = arith.constant 0 : index
    %156 = vector.load %arg10[%c0_39, %c0_40] : memref<1x32xf32, #tpu.memory_space<vmem>>, vector<1x32xf32>
    %157 = vector.broadcast %156 : vector<1x32xf32> to vector<128x32xf32>
    %158 = arith.addf %155, %157 : vector<128x32xf32>
    %159 = arith.addf %158, %96 : vector<128x32xf32>
    %cst_41 = arith.constant 0.000000e+00 : f32
    %160 = vector.broadcast %cst_41 : f32 to vector<128x32xf32>
    %161 = arith.maximumf %159, %160 : vector<128x32xf32>
    %162 = vector.shape_cast %161 : vector<128x32xf32> to vector<2x8x8x32xf32>
    %cst_42 = arith.constant 0.000000e+00 : f32
    %163 = vector.broadcast %cst_42 : f32 to vector<2x1x8x32xf32>
    %164 = tpu.concatenate %163, %162, %163 in 1 : vector<2x1x8x32xf32>, vector<2x8x8x32xf32>, vector<2x1x8x32xf32> -> vector<2x10x8x32xf32>
    %cst_43 = arith.constant 0.000000e+00 : f32
    %165 = vector.broadcast %cst_43 : f32 to vector<2x10x1x32xf32>
    %166 = tpu.concatenate %165, %164, %165 in 2 : vector<2x10x1x32xf32>, vector<2x10x8x32xf32>, vector<2x10x1x32xf32> -> vector<2x10x10x32xf32>
    %167 = vector.extract_strided_slice %166 {offsets = [0, 0, 0, 0], sizes = [2, 8, 8, 32], strides = [1, 1, 1, 1]} : vector<2x10x10x32xf32> to vector<2x8x8x32xf32>
    %168 = vector.shape_cast %167 : vector<2x8x8x32xf32> to vector<128x32xf32>
    %169 = vector.extract_strided_slice %166 {offsets = [0, 0, 1, 0], sizes = [2, 8, 8, 32], strides = [1, 1, 1, 1]} : vector<2x10x10x32xf32> to vector<2x8x8x32xf32>
    %170 = vector.shape_cast %169 : vector<2x8x8x32xf32> to vector<128x32xf32>
    %171 = vector.extract_strided_slice %166 {offsets = [0, 0, 2, 0], sizes = [2, 8, 8, 32], strides = [1, 1, 1, 1]} : vector<2x10x10x32xf32> to vector<2x8x8x32xf32>
    %172 = vector.shape_cast %171 : vector<2x8x8x32xf32> to vector<128x32xf32>
    %173 = vector.extract_strided_slice %166 {offsets = [0, 1, 0, 0], sizes = [2, 8, 8, 32], strides = [1, 1, 1, 1]} : vector<2x10x10x32xf32> to vector<2x8x8x32xf32>
    %174 = vector.shape_cast %173 : vector<2x8x8x32xf32> to vector<128x32xf32>
    %175 = vector.extract_strided_slice %166 {offsets = [0, 1, 1, 0], sizes = [2, 8, 8, 32], strides = [1, 1, 1, 1]} : vector<2x10x10x32xf32> to vector<2x8x8x32xf32>
    %176 = vector.shape_cast %175 : vector<2x8x8x32xf32> to vector<128x32xf32>
    %177 = vector.extract_strided_slice %166 {offsets = [0, 1, 2, 0], sizes = [2, 8, 8, 32], strides = [1, 1, 1, 1]} : vector<2x10x10x32xf32> to vector<2x8x8x32xf32>
    %178 = vector.shape_cast %177 : vector<2x8x8x32xf32> to vector<128x32xf32>
    %179 = vector.extract_strided_slice %166 {offsets = [0, 2, 0, 0], sizes = [2, 8, 8, 32], strides = [1, 1, 1, 1]} : vector<2x10x10x32xf32> to vector<2x8x8x32xf32>
    %180 = vector.shape_cast %179 : vector<2x8x8x32xf32> to vector<128x32xf32>
    %181 = vector.extract_strided_slice %166 {offsets = [0, 2, 1, 0], sizes = [2, 8, 8, 32], strides = [1, 1, 1, 1]} : vector<2x10x10x32xf32> to vector<2x8x8x32xf32>
    %182 = vector.shape_cast %181 : vector<2x8x8x32xf32> to vector<128x32xf32>
    %183 = vector.extract_strided_slice %166 {offsets = [0, 2, 2, 0], sizes = [2, 8, 8, 32], strides = [1, 1, 1, 1]} : vector<2x10x10x32xf32> to vector<2x8x8x32xf32>
    %184 = vector.shape_cast %183 : vector<2x8x8x32xf32> to vector<128x32xf32>
    %185 = tpu.concatenate %168, %170, %172, %174, %176, %178, %180, %182, %184 in 1 : vector<128x32xf32>, vector<128x32xf32>, vector<128x32xf32>, vector<128x32xf32>, vector<128x32xf32>, vector<128x32xf32>, vector<128x32xf32>, vector<128x32xf32>, vector<128x32xf32> -> vector<128x288xf32>
    %186 = arith.truncf %185 : vector<128x288xf32> to vector<128x288xbf16>
    %c0_44 = arith.constant 0 : index
    %c0_45 = arith.constant 0 : index
    %187 = vector.load %arg11[%c0_44, %c0_45] : memref<288x32xbf16, #tpu.memory_space<vmem>>, vector<288x32xbf16>
    %cst_46 = arith.constant dense<0.000000e+00> : vector<128x32xf32>
    %188 = tpu.matmul %186, %187, %cst_46 {dimension_numbers = #tpu.dot_dimension_numbers<[1], [0], [0], [1], [0, 0, 1, 1], [], []>} : vector<128x288xbf16>, vector<288x32xbf16>, vector<128x32xf32> -> vector<128x32xf32>
    %c0_47 = arith.constant 0 : index
    %c0_48 = arith.constant 0 : index
    %189 = vector.load %arg12[%c0_47, %c0_48] : memref<1x32xf32, #tpu.memory_space<vmem>>, vector<1x32xf32>
    %190 = vector.broadcast %189 : vector<1x32xf32> to vector<128x32xf32>
    %191 = arith.addf %188, %190 : vector<128x32xf32>
    %cst_49 = arith.constant 0.000000e+00 : f32
    %192 = vector.broadcast %cst_49 : f32 to vector<128x32xf32>
    %193 = arith.maximumf %191, %192 : vector<128x32xf32>
    %194 = arith.truncf %193 : vector<128x32xf32> to vector<128x32xbf16>
    %c0_50 = arith.constant 0 : index
    %c0_51 = arith.constant 0 : index
    %195 = vector.load %arg15[%c0_50, %c0_51] : memref<128x32xbf16, #tpu.memory_space<vmem>>, vector<128x32xbf16>
    tpu.vector_store %arg15[%c0_50, %c0_51], %194 {strides = array<i32>} : memref<128x32xbf16, #tpu.memory_space<vmem>>, vector<128x32xbf16>,
    %cst_52 = arith.constant 0.000000e+00 : f32
    %196 = vector.broadcast %cst_52 : f32 to vector<2x1x8x32xf32>
    %197 = tpu.concatenate %196, %162, %196 in 1 : vector<2x1x8x32xf32>, vector<2x8x8x32xf32>, vector<2x1x8x32xf32> -> vector<2x10x8x32xf32>
    %cst_53 = arith.constant 0.000000e+00 : f32
    %198 = vector.broadcast %cst_53 : f32 to vector<2x10x1x32xf32>
    %199 = tpu.concatenate %198, %197, %198 in 2 : vector<2x10x1x32xf32>, vector<2x10x8x32xf32>, vector<2x10x1x32xf32> -> vector<2x10x10x32xf32>
    %200 = vector.extract_strided_slice %199 {offsets = [0, 0, 0, 0], sizes = [2, 8, 8, 32], strides = [1, 1, 1, 1]} : vector<2x10x10x32xf32> to vector<2x8x8x32xf32>
    %201 = vector.shape_cast %200 : vector<2x8x8x32xf32> to vector<128x32xf32>
    %202 = vector.extract_strided_slice %199 {offsets = [0, 0, 1, 0], sizes = [2, 8, 8, 32], strides = [1, 1, 1, 1]} : vector<2x10x10x32xf32> to vector<2x8x8x32xf32>
    %203 = vector.shape_cast %202 : vector<2x8x8x32xf32> to vector<128x32xf32>
    %204 = vector.extract_strided_slice %199 {offsets = [0, 0, 2, 0], sizes = [2, 8, 8, 32], strides = [1, 1, 1, 1]} : vector<2x10x10x32xf32> to vector<2x8x8x32xf32>
    %205 = vector.shape_cast %204 : vector<2x8x8x32xf32> to vector<128x32xf32>
    %206 = vector.extract_strided_slice %199 {offsets = [0, 1, 0, 0], sizes = [2, 8, 8, 32], strides = [1, 1, 1, 1]} : vector<2x10x10x32xf32> to vector<2x8x8x32xf32>
    %207 = vector.shape_cast %206 : vector<2x8x8x32xf32> to vector<128x32xf32>
    %208 = vector.extract_strided_slice %199 {offsets = [0, 1, 1, 0], sizes = [2, 8, 8, 32], strides = [1, 1, 1, 1]} : vector<2x10x10x32xf32> to vector<2x8x8x32xf32>
    %209 = vector.shape_cast %208 : vector<2x8x8x32xf32> to vector<128x32xf32>
    %210 = vector.extract_strided_slice %199 {offsets = [0, 1, 2, 0], sizes = [2, 8, 8, 32], strides = [1, 1, 1, 1]} : vector<2x10x10x32xf32> to vector<2x8x8x32xf32>
    %211 = vector.shape_cast %210 : vector<2x8x8x32xf32> to vector<128x32xf32>
    %212 = vector.extract_strided_slice %199 {offsets = [0, 2, 0, 0], sizes = [2, 8, 8, 32], strides = [1, 1, 1, 1]} : vector<2x10x10x32xf32> to vector<2x8x8x32xf32>
    %213 = vector.shape_cast %212 : vector<2x8x8x32xf32> to vector<128x32xf32>
    %214 = vector.extract_strided_slice %199 {offsets = [0, 2, 1, 0], sizes = [2, 8, 8, 32], strides = [1, 1, 1, 1]} : vector<2x10x10x32xf32> to vector<2x8x8x32xf32>
    %215 = vector.shape_cast %214 : vector<2x8x8x32xf32> to vector<128x32xf32>
    %216 = vector.extract_strided_slice %199 {offsets = [0, 2, 2, 0], sizes = [2, 8, 8, 32], strides = [1, 1, 1, 1]} : vector<2x10x10x32xf32> to vector<2x8x8x32xf32>
    %217 = vector.shape_cast %216 : vector<2x8x8x32xf32> to vector<128x32xf32>
    %218 = tpu.concatenate %201, %203, %205, %207, %209, %211, %213, %215, %217 in 1 : vector<128x32xf32>, vector<128x32xf32>, vector<128x32xf32>, vector<128x32xf32>, vector<128x32xf32>, vector<128x32xf32>, vector<128x32xf32>, vector<128x32xf32>, vector<128x32xf32> -> vector<128x288xf32>
    %219 = arith.truncf %218 : vector<128x288xf32> to vector<128x288xbf16>
    %c0_54 = arith.constant 0 : index
    %c0_55 = arith.constant 0 : index
    %220 = vector.load %arg13[%c0_54, %c0_55] : memref<288x3xbf16, #tpu.memory_space<vmem>>, vector<288x3xbf16>
    %cst_56 = arith.constant dense<0.000000e+00> : vector<128x3xf32>
    %221 = tpu.matmul %219, %220, %cst_56 {dimension_numbers = #tpu.dot_dimension_numbers<[1], [0], [0], [1], [0, 0, 1, 1], [], []>} : vector<128x288xbf16>, vector<288x3xbf16>, vector<128x3xf32> -> vector<128x3xf32>
    %c0_57 = arith.constant 0 : index
    %c0_58 = arith.constant 0 : index
    %222 = vector.load %arg14[%c0_57, %c0_58] : memref<1x3xf32, #tpu.memory_space<vmem>>, vector<1x3xf32>
    %223 = vector.broadcast %222 : vector<1x3xf32> to vector<128x3xf32>
    %224 = arith.addf %221, %223 : vector<128x3xf32>
    %cst_59 = arith.constant 0.000000e+00 : f32
    %225 = vector.broadcast %cst_59 : f32 to vector<128x3xf32>
    %226 = arith.maximumf %224, %225 : vector<128x3xf32>
    %227 = arith.truncf %226 : vector<128x3xf32> to vector<128x3xbf16>
    %c0_60 = arith.constant 0 : index
    %c0_61 = arith.constant 0 : index
    %228 = vector.load %arg16[%c0_60, %c0_61] : memref<128x3xbf16, #tpu.memory_space<vmem>>, vector<128x3xbf16>
    tpu.vector_store %arg16[%c0_60, %c0_61], %227 {strides = array<i32>} : memref<128x3xbf16, #tpu.memory_space<vmem>>, vector<128x3xbf16>,
    return
  }
}

module attributes {stable_mosaic.version = 11 : i64} {
  func.func @_heads_fc_kernel(%arg0: memref<2x2048xbf16, #tpu.memory_space<vmem>>, %arg1: memref<2x192xbf16, #tpu.memory_space<vmem>>, %arg2: memref<2048x128xbf16, #tpu.memory_space<vmem>>, %arg3: memref<1x128xf32, #tpu.memory_space<vmem>>, %arg4: memref<192x2xbf16, #tpu.memory_space<vmem>>, %arg5: memref<1x2xf32, #tpu.memory_space<vmem>>, %arg6: memref<2x128xf32, #tpu.memory_space<vmem>>, %arg7: memref<2x2xf32, #tpu.memory_space<vmem>>) attributes {dimension_semantics = [], scalar_prefetch = 0 : i64, scratch_operands = 0 : i64, tpu.core_type = #tpu.core_type<tc>} {
    %c0 = arith.constant 0 : index
    %c0_0 = arith.constant 0 : index
    %0 = vector.load %arg0[%c0, %c0_0] : memref<2x2048xbf16, #tpu.memory_space<vmem>>, vector<2x2048xbf16>
    %c0_1 = arith.constant 0 : index
    %c0_2 = arith.constant 0 : index
    %1 = vector.load %arg2[%c0_1, %c0_2] : memref<2048x128xbf16, #tpu.memory_space<vmem>>, vector<2048x128xbf16>
    %cst = arith.constant dense<0.000000e+00> : vector<2x128xf32>
    %2 = tpu.matmul %0, %1, %cst {dimension_numbers = #tpu.dot_dimension_numbers<[1], [0], [0], [1], [0, 0, 1, 1], [], []>} : vector<2x2048xbf16>, vector<2048x128xbf16>, vector<2x128xf32> -> vector<2x128xf32>
    %c0_3 = arith.constant 0 : index
    %c0_4 = arith.constant 0 : index
    %3 = vector.load %arg3[%c0_3, %c0_4] : memref<1x128xf32, #tpu.memory_space<vmem>>, vector<1x128xf32>
    %4 = vector.broadcast %3 : vector<1x128xf32> to vector<2x128xf32>
    %5 = arith.addf %2, %4 : vector<2x128xf32>
    %c0_5 = arith.constant 0 : index
    %c0_6 = arith.constant 0 : index
    %6 = vector.load %arg6[%c0_5, %c0_6] : memref<2x128xf32, #tpu.memory_space<vmem>>, vector<2x128xf32>
    tpu.vector_store %arg6[%c0_5, %c0_6], %5 {strides = array<i32>} : memref<2x128xf32, #tpu.memory_space<vmem>>, vector<2x128xf32>,
    %c0_7 = arith.constant 0 : index
    %c0_8 = arith.constant 0 : index
    %7 = vector.load %arg1[%c0_7, %c0_8] : memref<2x192xbf16, #tpu.memory_space<vmem>>, vector<2x192xbf16>
    %c0_9 = arith.constant 0 : index
    %c0_10 = arith.constant 0 : index
    %8 = vector.load %arg4[%c0_9, %c0_10] : memref<192x2xbf16, #tpu.memory_space<vmem>>, vector<192x2xbf16>
    %cst_11 = arith.constant dense<0.000000e+00> : vector<2x2xf32>
    %9 = tpu.matmul %7, %8, %cst_11 {dimension_numbers = #tpu.dot_dimension_numbers<[1], [0], [0], [1], [0, 0, 1, 1], [], []>} : vector<2x192xbf16>, vector<192x2xbf16>, vector<2x2xf32> -> vector<2x2xf32>
    %c0_12 = arith.constant 0 : index
    %c0_13 = arith.constant 0 : index
    %10 = vector.load %arg5[%c0_12, %c0_13] : memref<1x2xf32, #tpu.memory_space<vmem>>, vector<1x2xf32>
    %11 = vector.broadcast %10 : vector<1x2xf32> to vector<2x2xf32>
    %12 = arith.addf %9, %11 : vector<2x2xf32>
    %13 = math.tanh %12 : vector<2x2xf32>
    %c0_14 = arith.constant 0 : index
    %c0_15 = arith.constant 0 : index
    %14 = vector.load %arg7[%c0_14, %c0_15] : memref<2x2xf32, #tpu.memory_space<vmem>>, vector<2x2xf32>
    tpu.vector_store %arg7[%c0_14, %c0_15], %13 {strides = array<i32>} : memref<2x2xf32, #tpu.memory_space<vmem>>, vector<2x2xf32>,
    return
  }
}

</mosaic_0001>

<bundles_post_ra>
// kernel: resnet_forward.3
= control target key start
LH: loop header
LB: loop body
LE: loop exit
PB: predicated region body
PF: predicated region fallthrough
CT: control target
= control target key end

     0   :  { %v298_v26 = vlaneseq  ;;  %v2181_v34 = vmov 1966171168   ;;  %vm1625_vm0 = vcmask 523264   ;;  %s2742_s0 = inlined_call_operand.vmem [shape: bf16[2,2048], index: 0, kind: input, shape index: {}]   ;;  %s2743_s1 = inlined_call_operand.vmem [shape: bf16[2,192], index: 1, kind: input, shape index: {}]   ;;  %s2744_s2 = inlined_call_operand.vmem [shape: bf16[2048,128], index: 2, kind: input, shape index: {}]   ;;  %s2745_s3 = inlined_call_operand.vmem [shape: f32[1,128], index: 3, kind: input, shape index: {}]   ;;  %s2746_s4 = inlined_call_operand.vmem [shape: bf16[192,2], index: 4, kind: input, shape index: {}]   ;;  %s2747_s5 = inlined_call_operand.vmem [shape: f32[1,2], index: 5, kind: input, shape index: {}]   ;;  %s2748_s6 = inlined_call_operand.vmem [shape: f32[2,128], index: 6, kind: output, shape index: {0}]   ;;  %s2749_s7 = inlined_call_operand.hbm [shape: f32[2,2], index: 7, kind: output, shape index: {1}]  }
   0x1   :  { %v2013_v0 = vld [vmem:[%s2744_s2 + $0x40] sm:$0xff]   ;;  %v2015_v2 = vld [vmem:[%s2744_s2 + $0x48] sm:$0xff]   ;;  %v2019_v6 = vld [vmem:[%s2744_s2 + $0x50] sm:$0xff]   ;;  %v296_v35 = vunpack.c.l.s4 %v2181_v34 }
   0x2   :  { %v2014_v1 = vld [vmem:[%s2744_s2] sm:$0xff]   ;;  %1834 = vmatprep.subr.bf16.mxu1 %v2013_v0  ;;  %v2017_v4 = vld [vmem:[%s2744_s2 + $0x8] sm:$0xff]   ;;  %v2021_v8 = vld [vmem:[%s2744_s2 + $0x10] sm:$0xff]   ;;  %v299_v31 = vshrl.u32 %v298_v26, 7 }
   0x3   :  { %1835 = vmatpush3.bf16.msra.mxu1 %v2014_v1  ;;  %v2016_v3 = vld [vmem:[%s2744_s2 + $0x140] sm:$0xff]   ;;  %v2020_v7 = vld [vmem:[%s2744_s2 + $0x148] sm:$0xff]   ;;  %v2023_v10 = vld [vmem:[%s2744_s2 + $0x58] sm:$0xff]   ;;  %v297_v37 = vunpack.c.0.s8 %v296_v35 }
   0x4   :  { %1836 = vmatprep.subr.bf16.mxu1 %v2015_v2  ;;  %1878 = vmatprep.subr.bf16.mxu0 %v2016_v3  ;;  %v2018_v5 = vld [vmem:[%s2744_s2 + $0x100] sm:$0xff]   ;;  %v2022_v9 = vld [vmem:[%s2744_s2 + $0x108] sm:$0xff]   ;;  %v2024_v11 = vld [vmem:[%s2744_s2 + $0x150] sm:$0xff]  }
   0x5   :  { %1879 = vmatpush3.bf16.msra.mxu0 %v2018_v5  ;;  %v2025_v12 = vld [vmem:[%s2744_s2 + $0x18] sm:$0xff]   ;;  %v2026_v13 = vld [vmem:[%s2744_s2 + $0x110] sm:$0xff]   ;;  %v2027_v14 = vld [vmem:[%s2744_s2 + $0x60] sm:$0xff]   ;;  %v2326_v40 = vsub.s32 %v297_v37, %v299_v31 }
   0x6   :  { %1880 = vmatprep.subr.bf16.mxu0 %v2020_v7  ;;  %v2028_v15 = vld [vmem:[%s2744_s2 + $0x158] sm:$0xff]   ;;  %v2029_v16 = vld [vmem:[%s2744_s2 + $0x20] sm:$0xff]   ;;  %v2031_v18 = vld [vmem:[%s2744_s2 + $0x68] sm:$0xff]  }
   0x7   :  { %1837 = vmatpush3.bf16.msra.mxu1 %v2017_v4  ;;  %v2030_v17 = vld [vmem:[%s2744_s2 + $0x118] sm:$0xff]   ;;  %v2032_v19 = vld [vmem:[%s2744_s2 + $0x160] sm:$0xff]   ;;  %v2033_v20 = vld [vmem:[%s2744_s2 + $0x28] sm:$0xff]  }
   0x8   :  { %1838 = vmatprep.subr.bf16.mxu1 %v2019_v6  ;;  %v2034_v21 = vld [vmem:[%s2744_s2 + $0x120] sm:$0xff]   ;;  %v2035_v22 = vld [vmem:[%s2744_s2 + $0x70] sm:$0xff]   ;;  %v2036_v23 = vld [vmem:[%s2744_s2 + $0x168] sm:$0xff]  }
   0x9   :  { %1881 = vmatpush3.bf16.msra.mxu0 %v2022_v9  ;;  %v2037_v24 = vld [vmem:[%s2744_s2 + $0x30] sm:$0xff]   ;;  %v2038_v25 = vld [vmem:[%s2744_s2 + $0x128] sm:$0xff]   ;;  %v2039_v27 = vld [vmem:[%s2744_s2 + $0x78] sm:$0xff]  }
   0xa   :  { %1882 = vmatprep.subr.bf16.mxu0 %v2024_v11  ;;  %v2040_v28 = vld [vmem:[%s2744_s2 + $0x170] sm:$0xff]   ;;  %v2041_v29 = vld [vmem:[%s2744_s2 + $0x38] sm:$0xff]   ;;  %v27_v32 = vld [vmem:[%s2742_s0] sm:$0xff] }
   0xb   :  { %1839 = vmatpush3.bf16.msra.mxu1 %v2021_v8  ;;  %v2042_v30 = vld [vmem:[%s2744_s2 + $0x130] sm:$0xff]   ;;  %v2043_v33 = vld [vmem:[%s2744_s2 + $0xc0] sm:$0xff]   ;;  %v2044_v36 = vld [vmem:[%s2744_s2 + $0x178] sm:$0xff]   ;;  %v294_v38 = vcombine.high %v27_v32, %v27_v32  ;;  %v301_v42 = vrot.slane %v27_v32, %v2326_v40 }
   0xc   :  { %1840 = vmatprep.subr.bf16.mxu1 %v2023_v10  ;;  %v2046_v39 = vld [vmem:[%s2744_s2 + $0x138] sm:$0xff]   ;;  %v2049_v41 = vld [vmem:[%s2744_s2 + $0x240] sm:$0xff]   ;;  %v2047_v48 = vld [vmem:[%s2744_s2 + $0xc8] sm:$0xff]  }
   0xd   :  { %1883 = vmatpush3.bf16.msra.mxu0 %v2026_v13  ;;  %v308_v43 = vrot.slane %v294_v38, %v2326_v40  ;;  %v309_v44 = vcombine.high %v301_v42, %v301_v42  ;;  %v2045_v45 = vld [vmem:[%s2744_s2 + $0x80] sm:$0xff]   ;;  %v2337_v47 = vrot.slane %v301_v42, %v2326_v40  ;;  %v2053_v53 = vld [vmem:[%s2744_s2 + $0x248] sm:$0xff]   ;;  %v2052_v56 = vld [vmem:[%s2744_s2 + $0xd0] sm:$0xff]  }
   0xe   :  { %1884 = vmatprep.subr.bf16.mxu0 %v2028_v15  ;;  %v2051_v52 = vld [vmem:[%s2744_s2 + $0x200] sm:$0xff]   ;;  %v2050_v55 = vld [vmem:[%s2744_s2 + $0x88] sm:$0xff]   ;;  %v2057_v58 = vld [vmem:[%s2744_s2 + $0x250] sm:$0xff]  }
   0xf   :  { %1841 = vmatpush3.bf16.msra.mxu1 %v2025_v12  ;;  %v310_v46 = vcombine.high %v308_v43, %v308_v43  ;;  %v2343_v49 = vrot.slane %v308_v43, %v2326_v40  ;;  %v331_v50 = vrot.slane %v309_v44, %v2326_v40  ;;  %v2055_v57 = vld [vmem:[%s2744_s2 + $0x208] sm:$0xff]   ;;  %v2054_v59 = vld [vmem:[%s2744_s2 + $0x90] sm:$0xff]   ;;  %v2056_v60 = vld [vmem:[%s2744_s2 + $0xd8] sm:$0xff]  }
  0x10   :  { %1842 = vmatprep.subr.bf16.mxu1 %v2027_v14  ;;  %v2059_v61 = vld [vmem:[%s2744_s2 + $0x210] sm:$0xff]   ;;  %v2061_v62 = vld [vmem:[%s2744_s2 + $0x258] sm:$0xff]   ;;  %v2060_v0 = vld [vmem:[%s2744_s2 + $0xe0] sm:$0xff]  }
  0x11   :  { %1885 = vmatpush3.bf16.msra.mxu0 %v2030_v17  ;;  %v2347_v51 = vrot.slane %v310_v46, %v2326_v40  ;;  %v341_v54 = vcombine.high %v331_v50, %v331_v50  ;;  %1208 = vmatprep.mubr.bf16.mxu1 %v331_v50  ;;  %v2058_v63 = vld [vmem:[%s2744_s2 + $0x98] sm:$0xff]   ;;  %v2065_v2 = vld [vmem:[%s2744_s2 + $0x260] sm:$0xff]   ;;  %v2064_v4 = vld [vmem:[%s2744_s2 + $0xe8] sm:$0xff]  }
  0x12   :  { %1886 = vmatprep.subr.bf16.mxu0 %v2032_v19  ;;  %v2063_v1 = vld [vmem:[%s2744_s2 + $0x218] sm:$0xff]   ;;  %v2062_v3 = vld [vmem:[%s2744_s2 + $0xa0] sm:$0xff]   ;;  %v2069_v6 = vld [vmem:[%s2744_s2 + $0x268] sm:$0xff]  }
  0x13   :  { %1843 = vmatpush3.bf16.msra.mxu1 %v2029_v16  ;;  %1288 = vmatprep.mubr.bf16.mxu0 %v2347_v51  ;;  %v2067_v5 = vld [vmem:[%s2744_s2 + $0x220] sm:$0xff]   ;;  %v2066_v7 = vld [vmem:[%s2744_s2 + $0xa8] sm:$0xff]   ;;  %v2068_v8 = vld [vmem:[%s2744_s2 + $0xf0] sm:$0xff]   ;;  %v342_v32 = vcombine.high %v2347_v51, %v2347_v51 }
  0x14   :  { %1844 = vmatprep.subr.bf16.mxu1 %v2031_v18  ;;  %v2071_v9 = vld [vmem:[%s2744_s2 + $0x228] sm:$0xff]   ;;  %v2073_v10 = vld [vmem:[%s2744_s2 + $0x270] sm:$0xff]   ;;  %v2072_v12 = vld [vmem:[%s2744_s2 + $0xf8] sm:$0xff]  }
  0x15   :  { %1887 = vmatpush3.bf16.msra.mxu0 %v2034_v21  ;;  %v2070_v11 = vld [vmem:[%s2744_s2 + $0xb0] sm:$0xff]   ;;  %v2077_v14 = vld [vmem:[%s2744_s2 + $0x278] sm:$0xff]   ;;  %v28_v15 = vld [vmem:[%s2742_s0 + $0x8] sm:$0xff] }
  0x16   :  { %1888 = vmatprep.subr.bf16.mxu0 %v2036_v23  ;;  %v2075_v13 = vld [vmem:[%s2744_s2 + $0x230] sm:$0xff]   ;;  %v2074_v16 = vld [vmem:[%s2744_s2 + $0xb8] sm:$0xff]   ;;  %v350_v17 = vrot.slane %v28_v15, %v2326_v40  ;;  %v343_v18 = vcombine.high %v28_v15, %v28_v15  ;;  %v2078_v23 = vld [vmem:[%s2744_s2 + $0x180] sm:$0xff]  }
  0x17   :  { %1845 = vmatpush3.bf16.msra.mxu1 %v2033_v20  ;;  %v2079_v19 = vld [vmem:[%s2744_s2 + $0x238] sm:$0xff]   ;;  %v2076_v20 = vld [vmem:[%s2744_s2 + $0x1c0] sm:$0xff]   ;;  %v2080_v26 = vld [vmem:[%s2744_s2 + $0x1c8] sm:$0xff]  }
  0x18   :  { %1846 = vmatprep.subr.bf16.mxu1 %v2035_v22  ;;  %v358_v21 = vcombine.high %v350_v17, %v350_v17  ;;  %v2444_v22 = vrot.slane %v343_v18, %v2326_v40  ;;  %v2085_v31 = vld [vmem:[%s2744_s2 + $0x348] sm:$0xff]   ;;  %v2084_v35 = vld [vmem:[%s2744_s2 + $0x1d0] sm:$0xff]   ;;  %v2093_v42 = vld [vmem:[%s2744_s2 + $0x358] sm:$0xff]  }
  0x19   :  { %1889 = vmatpush3.bf16.msra.mxu0 %v2038_v25  ;;  %v339_v25 = vcombine.high %v2337_v47, %v2337_v47  ;;  %v2089_v37 = vld [vmem:[%s2744_s2 + $0x350] sm:$0xff]   ;;  %v2090_v43 = vld [vmem:[%s2744_s2 + $0x198] sm:$0xff]   ;;  %v2092_v44 = vld [vmem:[%s2744_s2 + $0x1e0] sm:$0xff]  }
  0x1a   :  { %1890 = vmatprep.subr.bf16.mxu0 %v2040_v28  ;;  %v2461_v28 = vrot.slane %v350_v17, %v2326_v40  ;;  %v2086_v38 = vld [vmem:[%s2744_s2 + $0x190] sm:$0xff]   ;;  %v2097_v46 = vld [vmem:[%s2744_s2 + $0x360] sm:$0xff]   ;;  %v2101_v51 = vld [vmem:[%s2744_s2 + $0x368] sm:$0xff]  }
  0x1b   :  { %1847 = vmatpush3.bf16.msra.mxu1 %v2037_v24  ;;  %v2081_v24 = vld [vmem:[%s2744_s2 + $0x340] sm:$0xff]   ;;  %v2126_v17 = vld [vmem:[%s2744_s2 + $0x2a8] sm:$0xff]  }
  0x1c   :  { %1848 = vmatprep.subr.bf16.mxu1 %v2039_v27  ;;  %v2458_v27 = vrot.slane %v358_v21, %v2326_v40  ;;  %v2099_v50 = vld [vmem:[%s2744_s2 + $0x320] sm:$0xff]   ;;  %v2130_v18 = vld [vmem:[%s2746_s4 + $0x28] sm:$0xff]   ;;  %v2133_v21 = vld [vmem:[%s2746_s4 + $0x30] sm:$0xff]  }
  0x1d   :  { %1891 = vmatpush3.bf16.msra.mxu0 %v2042_v30  ;;  %v2083_v30 = vld [vmem:[%s2744_s2 + $0x300] sm:$0xff]  }
  0x1e   :  { %1892 = vmatprep.subr.bf16.mxu0 %v2044_v36  ;;  %v2087_v36 = vld [vmem:[%s2744_s2 + $0x308] sm:$0xff]   ;;  %v2127_v15 = vld [vmem:[%s2746_s4 + $0x20] sm:$0xff]  }
  0x1f   :  { %1849 = vmatpush3.bf16.msra.mxu1 %v2041_v29  ;;  %v359_v29 = vcombine.high %v2444_v22, %v2444_v22 }
  0x20   :  { %1856 = vmatprep.subr.bf16.mxu1 %v2043_v33  ;;  %v2082_v33 = vld [vmem:[%s2744_s2 + $0x188] sm:$0xff]  }
  0x21   :  { %1893 = vmatpush3.bf16.msra.mxu0 %v2046_v39  ;;  %v2478_v34 = vrot.slane %v359_v29, %v2326_v40  ;;  %v2088_v39 = vld [vmem:[%s2744_s2 + $0x1d8] sm:$0xff]   ;;  %v2135_v29 = vld [vmem:[%s2744_s2 + $0x380] sm:$0xff]  }
  0x22   :  { %1922 = vmatprep.subr.bf16.mxu0 %v2049_v41  ;;  %1209 = vmatmul.mubr.bf16.vlgmr.msra.gmra.mrb[0].mxu1 %v2337_v47  ;;  %v2091_v41 = vld [vmem:[%s2744_s2 + $0x310] sm:$0xff]   ;;  %v2094_v47 = vld [vmem:[%s2744_s2 + $0x1a0] sm:$0xff]  }
  0x23   :  { %1857 = vmatpush3.bf16.msra.mxu1 %v2045_v45  ;;  %1248 = vmatprep.mubr.bf16.mxu1 %v341_v54  ;;  %v2095_v45 = vld [vmem:[%s2744_s2 + $0x318] sm:$0xff]   ;;  %v2103_v54 = vld [vmem:[%s2744_s2 + $0x328] sm:$0xff]  }
  0x24   :  { %1289 = vmatmul.mubr.bf16.vlgmr.msra.gmra.mrb[0].mxu0 %v2343_v49  ;;  %1858 = vmatprep.subr.bf16.mxu1 %v2047_v48  ;;  %v2096_v48 = vld [vmem:[%s2744_s2 + $0x1e8] sm:$0xff]  }
  0x25   :  { %1923 = vmatpush3.bf16.msra.mxu0 %v2051_v52  ;;  %1368 = vmatprep.mubr.bf16.mxu0 %v2458_v27  ;;  %v2098_v52 = vld [vmem:[%s2744_s2 + $0x1a8] sm:$0xff]  }
  0x26   :  { %1924 = vmatprep.subr.bf16.mxu0 %v2053_v53  ;;  %v2100_v53 = vld [vmem:[%s2744_s2 + $0x1f0] sm:$0xff]  }
  0x27   :  { %1859 = vmatpush3.bf16.msra.mxu1 %v2050_v55  ;;  %v2105_v55 = vld [vmem:[%s2744_s2 + $0x370] sm:$0xff]  }
  0x28   :  { %1860 = vmatprep.subr.bf16.mxu1 %v2052_v56  ;;  %v2102_v56 = vld [vmem:[%s2744_s2 + $0x1b0] sm:$0xff]  }
  0x29   :  { %1925 = vmatpush3.bf16.msra.mxu0 %v2055_v57  ;;  %v2104_v57 = vld [vmem:[%s2744_s2 + $0x1f8] sm:$0xff]  }
  0x2a   :  { %1926 = vmatprep.subr.bf16.mxu0 %v2057_v58  ;;  %v2107_v58 = vld [vmem:[%s2744_s2 + $0x330] sm:$0xff]  }
  0x2b   :  { %1861 = vmatpush3.bf16.msra.mxu1 %v2054_v59  ;;  %v2109_v59 = vld [vmem:[%s2744_s2 + $0x378] sm:$0xff]  }
  0x2c   :  { %1862 = vmatprep.subr.bf16.mxu1 %v2056_v60  ;;  %v2106_v60 = vld [vmem:[%s2744_s2 + $0x1b8] sm:$0xff]  }
  0x2d   :  { %1927 = vmatpush3.bf16.msra.mxu0 %v2059_v61  ;;  %v2111_v61 = vld [vmem:[%s2744_s2 + $0x338] sm:$0xff]  }
  0x2e   :  { %1928 = vmatprep.subr.bf16.mxu0 %v2061_v62  ;;  %v2108_v62 = vld [vmem:[%s2744_s2 + $0x2c0] sm:$0xff]  }
  0x2f   :  { %1863 = vmatpush3.bf16.msra.mxu1 %v2058_v63  ;;  %v340_v63 = vcombine.high %v2343_v49, %v2343_v49  ;;  %v2182_v49 = vmov 0  }
  0x30   :  { %1864 = vmatprep.subr.bf16.mxu1 %v2060_v0  ;;  %v2110_v0 = vld [vmem:[%s2744_s2 + $0x280] sm:$0xff]  }
  0x31   :  { %1929 = vmatpush3.bf16.msra.mxu0 %v2063_v1  ;;  %v2567_v1 = vrot.slane %v2444_v22, %v2326_v40  ;;  %v2131_v22 = vld [vmem:[%s2744_s2 + $0x2f8] sm:$0xff]  }
  0x32   :  { %1930 = vmatprep.subr.bf16.mxu0 %v2065_v2  ;;  %v2115_v2 = vld [vmem:[%s2746_s4] sm:$0xff]  }
  0x33   :  { %1865 = vmatpush3.bf16.msra.mxu1 %v2062_v3  ;;  %v2112_v3 = vld [vmem:[%s2744_s2 + $0x2c8] sm:$0xff]  }
  0x34   :  { %1866 = vmatprep.subr.bf16.mxu1 %v2064_v4  ;;  %v390_v4 = vcombine.high %v2458_v27, %v2458_v27  ;;  %v388_v27 = vcombine.high %v2461_v28, %v2461_v28 }
  0x35   :  { %1931 = vmatpush3.bf16.msra.mxu0 %v2067_v5  ;;  %v2114_v5 = vld [vmem:[%s2744_s2 + $0x288] sm:$0xff]  }
  0x36   :  { %1932 = vmatprep.subr.bf16.mxu0 %v2069_v6  ;;  %v2118_v6 = vld [vmem:[%s2746_s4 + $0x8] sm:$0xff]  }
  0x37   :  { %1867 = vmatpush3.bf16.msra.mxu1 %v2066_v7  ;;  %v2116_v7 = vld [vmem:[%s2744_s2 + $0x2d0] sm:$0xff]  }
  0x38   :  { %1868 = vmatprep.subr.bf16.mxu1 %v2068_v8  ;;  %v2117_v8 = vld [vmem:[%s2744_s2 + $0x290] sm:$0xff]  }
  0x39   :  { %1933 = vmatpush3.bf16.msra.mxu0 %v2071_v9  ;;  %v2121_v9 = vld [vmem:[%s2746_s4 + $0x10] sm:$0xff]  }
  0x3a   :  { %1934 = vmatprep.subr.bf16.mxu0 %v2073_v10  ;;  %v2119_v10 = vld [vmem:[%s2744_s2 + $0x2d8] sm:$0xff]  }
  0x3b   :  { %1869 = vmatpush3.bf16.msra.mxu1 %v2070_v11  ;;  %v2120_v11 = vld [vmem:[%s2744_s2 + $0x298] sm:$0xff]  }
  0x3c   :  { %1870 = vmatprep.subr.bf16.mxu1 %v2072_v12  ;;  %v2124_v12 = vld [vmem:[%s2746_s4 + $0x18] sm:$0xff]  }
  0x3d   :  { %1935 = vmatpush3.bf16.msra.mxu0 %v2075_v13  ;;  %v2122_v13 = vld [vmem:[%s2744_s2 + $0x2e0] sm:$0xff]  }
  0x3e   :  { %1936 = vmatprep.subr.bf16.mxu0 %v2077_v14  ;;  %v2123_v14 = vld [vmem:[%s2744_s2 + $0x2a0] sm:$0xff]  }
  0x3f   :  { %1871 = vmatpush3.bf16.msra.mxu1 %v2074_v16  ;;  %v2125_v16 = vld [vmem:[%s2744_s2 + $0x2e8] sm:$0xff]  }
  0x40   :  { %1900 = vmatprep.subr.bf16.mxu1 %v2076_v20  ;;  %v2129_v20 = vld [vmem:[%s2744_s2 + $0x2b0] sm:$0xff]  }
  0x41   :  { %1937 = vmatpush3.bf16.msra.mxu0 %v2079_v19  ;;  %v2128_v19 = vld [vmem:[%s2744_s2 + $0x2f0] sm:$0xff]  }
  0x42   :  { %1966 = vmatprep.subr.bf16.mxu0 %v2081_v24  ;;  %1249 = vmatmul.mubr.bf16.vlgmr.msra.gmra.mrb[4].mxu1 %v339_v25  ;;  %v2136_v24 = vld [vmem:[%s2746_s4 + $0x38] sm:$0xff]   ;;  %v2134_v25 = vld [vmem:[%s2744_s2 + $0x3c0] sm:$0xff]  }
  0x43   :  { %1901 = vmatpush3.bf16.msra.mxu1 %v2078_v23  ;;  %1328 = vmatprep.mubr.bf16.mxu1 %v342_v32  ;;  %v2132_v23 = vld [vmem:[%s2744_s2 + $0x2b8] sm:$0xff]   ;;  %v2137_v32 = vld [vmem:[%s2744_s2 + $0x3c8] sm:$0xff]  }
  0x44   :  { %1369 = vmatmul.mubr.bf16.vlgmr.msra.gmra.mrb[4].mxu0 %v2461_v28  ;;  %1902 = vmatprep.subr.bf16.mxu1 %v2080_v26  ;;  %v1820_v26 = vld.sshfl [vmem:[%s2743_s1] sm:$0x11 pattern:$0x75316420] }
  0x45   :  { %1967 = vmatpush3.bf16.msra.mxu0 %v2083_v30  ;;  %1448 = vmatprep.mubr.bf16.mxu0 %v2478_v34  ;;  %v1537_v30 = vcombine.high %v1820_v26, %v1820_v26 }
  0x46   :  { %1968 = vmatprep.subr.bf16.mxu0 %v2085_v31  ;;  %v2139_v31 = vld [vmem:[%s2746_s4 + $0x40] sm:$0xff]  }
  0x47   :  { %1903 = vmatpush3.bf16.msra.mxu1 %v2082_v33  ;;  %v1551_v28 = vrot.slane %v1537_v30, %v2326_v40  ;;  %v391_v33 = vcombine.high %v2478_v34, %v2478_v34 }
  0x48   :  { %1904 = vmatprep.subr.bf16.mxu1 %v2084_v35  ;;  %v2138_v35 = vld [vmem:[%s2744_s2 + $0x388] sm:$0xff]  }
  0x49   :  { %1969 = vmatpush3.bf16.msra.mxu0 %v2087_v36  ;;  %v2142_v36 = vld [vmem:[%s2746_s4 + $0x48] sm:$0xff]  }
  0x4a   :  { %1970 = vmatprep.subr.bf16.mxu0 %v2089_v37 }
  0x4b   :  { %1905 = vmatpush3.bf16.msra.mxu1 %v2086_v38 }
  0x4c   :  { %1906 = vmatprep.subr.bf16.mxu1 %v2088_v39 }
  0x4d   :  { %1971 = vmatpush3.bf16.msra.mxu0 %v2091_v41 }
  0x4e   :  { %1972 = vmatprep.subr.bf16.mxu0 %v2093_v42 }
  0x4f   :  { %1907 = vmatpush3.bf16.msra.mxu1 %v2090_v43 }
  0x50   :  { %1908 = vmatprep.subr.bf16.mxu1 %v2092_v44 }
  0x51   :  { %1973 = vmatpush3.bf16.msra.mxu0 %v2095_v45 }
  0x52   :  { %1974 = vmatprep.subr.bf16.mxu0 %v2097_v46 }
  0x53   :  { %1909 = vmatpush3.bf16.msra.mxu1 %v2094_v47 }
  0x54   :  { %1910 = vmatprep.subr.bf16.mxu1 %v2096_v48 }
  0x55   :  { %1975 = vmatpush3.bf16.msra.mxu0 %v2099_v50 }
  0x56   :  { %1976 = vmatprep.subr.bf16.mxu0 %v2101_v51 }
  0x57   :  { %1911 = vmatpush3.bf16.msra.mxu1 %v2098_v52 }
  0x58   :  { %1912 = vmatprep.subr.bf16.mxu1 %v2100_v53 }
  0x59   :  { %1977 = vmatpush3.bf16.msra.mxu0 %v2103_v54 }
  0x5a   :  { %1978 = vmatprep.subr.bf16.mxu0 %v2105_v55 }
  0x5b   :  { %1913 = vmatpush3.bf16.msra.mxu1 %v2102_v56 }
  0x5c   :  { %1914 = vmatprep.subr.bf16.mxu1 %v2104_v57 }
  0x5d   :  { %1979 = vmatpush3.bf16.msra.mxu0 %v2107_v58 }
  0x5e   :  { %1980 = vmatprep.subr.bf16.mxu0 %v2109_v59 }
  0x5f   :  { %1915 = vmatpush3.bf16.msra.mxu1 %v2106_v60 }
  0x60   :  { %1944 = vmatprep.subr.bf16.mxu1 %v2108_v62 }
  0x61   :  { %1981 = vmatpush3.bf16.msra.mxu0 %v2111_v61 }
  0x62   :  { %1629 = vmatprep.subr.bf16.mxu0 %v2182_v49  ;;  %1329 = vmatmul.mubr.bf16.vlgmr.msra.gmra.mrb[8].mxu1 %v340_v63 }
  0x63   :  { %1945 = vmatpush3.bf16.msra.mxu1 %v2110_v0  ;;  %1408 = vmatprep.mubr.bf16.mxu1 %v390_v4 }
  0x64   :  { %1449 = vmatmul.mubr.bf16.vlgmr.msra.gmra.mrb[8].mxu0 %v2567_v1  ;;  %1946 = vmatprep.subr.bf16.mxu1 %v2112_v3 }
  0x65   :  { %1630 = vmatpush1.bf16.msra.mxu0 %v2115_v2  ;;  %1833 = vmatprep.mubr.msk.bf16.mxu0 %vm1625_vm0, %v1551_v28 }
  0x66   :  { %1631 = vmatprep.subr.bf16.mxu0 %v2182_v49 }
  0x67   :  { %1947 = vmatpush3.bf16.msra.mxu1 %v2114_v5 }
  0x68   :  { %1948 = vmatprep.subr.bf16.mxu1 %v2116_v7 }
  0x69   :  { %1632 = vmatpush1.bf16.msra.mxu0 %v2118_v6 }
  0x6a   :  { %1633 = vmatprep.subr.bf16.mxu0 %v2182_v49 }
  0x6b   :  { %1949 = vmatpush3.bf16.msra.mxu1 %v2117_v8 }
  0x6c   :  { %1950 = vmatprep.subr.bf16.mxu1 %v2119_v10 }
  0x6d   :  { %1634 = vmatpush1.bf16.msra.mxu0 %v2121_v9 }
  0x6e   :  { %1635 = vmatprep.subr.bf16.mxu0 %v2182_v49 }
  0x6f   :  { %1951 = vmatpush3.bf16.msra.mxu1 %v2120_v11 }
  0x70   :  { %1952 = vmatprep.subr.bf16.mxu1 %v2122_v13 }
  0x71   :  { %1636 = vmatpush1.bf16.msra.mxu0 %v2124_v12 }
  0x72   :  { %1637 = vmatprep.subr.bf16.mxu0 %v2182_v49 }
  0x73   :  { %1953 = vmatpush3.bf16.msra.mxu1 %v2123_v14 }
  0x74   :  { %1954 = vmatprep.subr.bf16.mxu1 %v2125_v16 }
  0x75   :  { %1638 = vmatpush1.bf16.msra.mxu0 %v2127_v15 }
  0x76   :  { %1639 = vmatprep.subr.bf16.mxu0 %v2182_v49 }
  0x77   :  { %1955 = vmatpush3.bf16.msra.mxu1 %v2126_v17 }
  0x78   :  { %1956 = vmatprep.subr.bf16.mxu1 %v2128_v19 }
  0x79   :  { %1640 = vmatpush1.bf16.msra.mxu0 %v2130_v18 }
  0x7a   :  { %1641 = vmatprep.subr.bf16.mxu0 %v2182_v49 }
  0x7b   :  { %1957 = vmatpush3.bf16.msra.mxu1 %v2129_v20 }
  0x7c   :  { %1958 = vmatprep.subr.bf16.mxu1 %v2131_v22 }
  0x7d   :  { %1642 = vmatpush1.bf16.msra.mxu0 %v2133_v21 }
  0x7e   :  { %1643 = vmatprep.subr.bf16.mxu0 %v2182_v49 }
  0x7f   :  { %1959 = vmatpush3.bf16.msra.mxu1 %v2132_v23 }
  0x80   :  { %1988 = vmatprep.subr.bf16.mxu1 %v2134_v25 }
  0x81   :  { %1644 = vmatpush1.bf16.msra.mxu0 %v2136_v24 }
  0x82   :  { %1645 = vmatprep.subr.bf16.mxu0 %v2182_v49  ;;  %1409 = vmatmul.mubr.bf16.vlgmr.msra.gmra.mrb[12].mxu1 %v388_v27 }
  0x83   :  { %1989 = vmatpush3.bf16.msra.mxu1 %v2135_v29 }
  0x85   :  { %1646 = vmatpush1.bf16.msra.mxu0 %v2139_v31 }
  0x86   :  { %13 = vsyncpa [#allocation3], 0  ;;  %1990 = vmatprep.subr.bf16.mxu1 %v2137_v32  ;;  %v2140_v37 = vld [vmem:[%s2744_s2 + $0x3d0] sm:$0xff]   ;;  %1647 = vmatprep.subr.bf16.mxu0 %v2182_v49  ;;  %v2143_v39 = vld [vmem:[%s2744_s2 + $0x3d8] sm:$0xff]   ;;  %v1544_v44 = vrot.slane %v1820_v26, %v2326_v40  ;;  %v389_v52 = vcombine.high %v2567_v1, %v2567_v1  ;;  %s2183_s26 = smov [#allocation2]   ;;  %vm1670_vm1 = vcmask 9216  }
  0x87   :  { %1488 = vmatprep.mubr.bf16.mxu1 %v391_v33  ;;  %1991 = vmatpush3.bf16.msra.mxu1 %v2138_v35  ;;  %v2141_v34 = vld [vmem:[%s2744_s2 + $0x390] sm:$0xff]   ;;  %v2144_v41 = vld [vmem:[%s2744_s2 + $0x398] sm:$0xff]   ;;  %v2146_v43 = vld [vmem:[%s2744_s2 + $0x3e0] sm:$0xff]   ;;  %s1680_s27 = sshll.u32 %s2183_s26, 4  ;;  %s1681_s27 = int_to_ptr.vmem [resolvable:$true] %s1680_s27 }
  0x88   :  { %v2145_v38 = vld [vmem:[%s2746_s4 + $0x50] sm:$0xff]   ;;  %1992 = vmatprep.subr.bf16.mxu1 %v2140_v37  ;;  %v2148_v42 = vld [vmem:[%s2746_s4 + $0x58] sm:$0xff]   ;;  %v2147_v45 = vld [vmem:[%s2744_s2 + $0x3a0] sm:$0xff]   ;;  %s2157_s28 = scalar_lea.vmem %s1681_s27, 32  ;;  %p2162_p1 = scmp.lt.s32.totalorder %s1681_s27, %s1681_s27 }
  0x89   :  { %1648 = vmatpush1.bf16.msra.mxu0 %v2142_v36  ;;  %v2149_v46 = vld [vmem:[%s2744_s2 + $0x3e8] sm:$0xff]   ;;  %v2151_v40 = vld [vmem:[%s2744_s2 + $0x3f0] sm:$0xff]   ;;  %v2153_v50 = vld [vmem:[%s2744_s2 + $0x3f8] sm:$0xff]   ;;  %p2158_p0 = scmp.ne.s32.totalorder %s1681_s27, %s2157_s28  ;;  %p2163_p2 = scmp.lt.s32.totalorder %s2157_s28, %s2157_s28 }
  0x8a   :  { %1649 = vmatprep.subr.bf16.mxu0 %v2182_v49  ;;  %v2150_v47 = vld [vmem:[%s2744_s2 + $0x3a8] sm:$0xff]   ;;  %v2152_v48 = vld [vmem:[%s2744_s2 + $0x3b0] sm:$0xff]   ;;  %v2154_v51 = vld [vmem:[%s2744_s2 + $0x3b8] sm:$0xff]  }
  0x8b   :  { %1993 = vmatpush3.bf16.msra.mxu1 %v2141_v34  ;;  %v1690_v63 = vld [vmem:[%s2745_s3] ss:$0 sm:$0xff]  ;;  %p2164_p3 = por %p2163_p2, %p2162_p1 }
  0x8c   :  { %1994 = vmatprep.subr.bf16.mxu1 %v2143_v39  ;;  %v1819_v32 = vld [vmem:[%s2747_s5] ss:$0 sm:$0xff] }
  0x8d   :  { %1650 = vmatpush1.bf16.msra.mxu0 %v2145_v38  ;;  %p2165_p4 = pnand %p2164_p3, %p2158_p0 }
  0x8e   :  { %1651 = vmatprep.subr.bf16.mxu0 %v2182_v49 }
  0x8f   :  { %1995 = vmatpush3.bf16.msra.mxu1 %v2144_v41 }
  0x90   :  { %1996 = vmatprep.subr.bf16.mxu1 %v2146_v43 }
  0x91   :  { %1652 = vmatpush1.bf16.msra.mxu0 %v2148_v42 }
  0x93   :  { %1997 = vmatpush3.bf16.msra.mxu1 %v2147_v45 }
  0x94   :  { %1662 = vmatmul.mubr.bf16.vlgmr.msra.gmra.mrb[12].mxu0 %v1544_v44  ;;  %1998 = vmatprep.subr.bf16.mxu1 %v2149_v46 }
  0x97   :  { %1999 = vmatpush3.bf16.msra.mxu1 %v2150_v47 }
  0x98   :  { %2000 = vmatprep.subr.bf16.mxu1 %v2151_v40 }
  0x9b   :  { %2001 = vmatpush3.bf16.msra.mxu1 %v2152_v48 }
  0x9c   :  { %2002 = vmatprep.subr.bf16.mxu1 %v2153_v50 }
  0x9f   :  { %2003 = vmatpush3.bf16.msra.mxu1 %v2154_v51 }
  0xa2   :  { %1489 = vmatmul.mubr.bf16.vlgmr.msra.gmra.mrb[16].mxu1 %v389_v52 }
  0xf5   :  { %v1850_v53 = vpop.f32.mrb[0].mxu1 }
  0xf6   :  { %v1851_v55 = vpop.f32.mrb[1].mxu1 }
  0xf7   :  { %v1894_v54 = vpop.f32.mrb[0].mxu0  ;;  %v1852_v57 = vadd.f32 %v1851_v55, %v1850_v53  ;;  %v1853_v58 = vpop.f32.mrb[2].mxu1 }
  0xf8   :  { %v1895_v56 = vpop.f32.mrb[1].mxu0  ;;  %v1854_v61 = vpop.f32.mrb[3].mxu1 }
  0xf9   :  { %v1896_v59 = vadd.f32 %v1895_v56, %v1894_v54  ;;  %v1897_v60 = vpop.f32.mrb[2].mxu0  ;;  %v1211_v49 = vadd.f32 %v1852_v57, %v1690_v63 }
  0xfa   :  { %v1898_v62 = vpop.f32.mrb[3].mxu0 }
 0x115   :  { %v1872_v0 = vpop.f32.mrb[4].mxu1 }
 0x116   :  { %v1873_v3 = vpop.f32.mrb[5].mxu1 }
 0x117   :  { %v1938_v2 = vpop.f32.mrb[4].mxu0  ;;  %v1874_v4 = vadd.f32 %v1873_v3, %v1872_v0  ;;  %v1875_v5 = vpop.f32.mrb[6].mxu1 }
 0x118   :  { %v1939_v1 = vpop.f32.mrb[5].mxu0  ;;  %v1876_v8 = vpop.f32.mrb[7].mxu1 }
 0x119   :  { %v1940_v6 = vadd.f32 %v1939_v1, %v1938_v2  ;;  %v1941_v7 = vpop.f32.mrb[6].mxu0  ;;  %v1251_v10 = vadd.f32 %v1874_v4, %v1211_v49 }
 0x11a   :  { %v1942_v9 = vpop.f32.mrb[7].mxu0 }
 0x11b   :  { %v1291_v11 = vadd.f32 %v1896_v59, %v1251_v10 }
 0x135   :  { %v1916_v12 = vpop.f32.mrb[8].mxu1 }
 0x136   :  { %v1917_v14 = vpop.f32.mrb[9].mxu1 }
 0x137   :  { %v1982_v13 = vpop.f32.mrb[8].mxu0  ;;  %v1918_v16 = vadd.f32 %v1917_v14, %v1916_v12  ;;  %v1919_v17 = vpop.f32.mrb[10].mxu1 }
 0x138   :  { %v1983_v15 = vpop.f32.mrb[9].mxu0  ;;  %v1920_v20 = vpop.f32.mrb[11].mxu1 }
 0x139   :  { %v1984_v18 = vadd.f32 %v1983_v15, %v1982_v13  ;;  %v1985_v19 = vpop.f32.mrb[10].mxu0  ;;  %v1331_v22 = vadd.f32 %v1918_v16, %v1291_v11 }
 0x13a   :  { %v1986_v21 = vpop.f32.mrb[11].mxu0 }
 0x13b   :  { %v1371_v23 = vadd.f32 %v1940_v6, %v1331_v22 }
 0x155   :  { %v1960_v24 = vpop.f32.mrb[12].mxu1 }
 0x156   :  { %v1961_v25 = vpop.f32.mrb[13].mxu1 }
 0x157   :  { %v1962_v26 = vadd.f32 %v1961_v25, %v1960_v24  ;;  %v1963_v27 = vpop.f32.mrb[14].mxu1 }
 0x158   :  { %v1964_v29 = vpop.f32.mrb[15].mxu1 }
 0x159   :  { %v1411_v30 = vadd.f32 %v1962_v26, %v1371_v23 }
 0x15b   :  { %v1451_v31 = vadd.f32 %v1984_v18, %v1411_v30 }
 0x167   :  { %v1663_v28 = vpop.f32.mrb[12].mxu0 }
 0x168   :  { %v1664_v33 = vadd.f32 %v1819_v32, %v1663_v28  ;;  %v1665_v35 = vpop.f32.mrb[13].mxu0 }
 0x169   :  { %v1666_v36 = vpop.f32.mrb[14].mxu0 }
 0x16a   :  { %2155 = vtanh.f32 %v1664_v33  ;;  %v1667_v37 = vpop.f32.mrb[15].mxu0 }
 0x174   :  { %v2156_v34 = vpop.eup %2155 }
 0x175   :  { %1671 = vst.msk [vmem:[#allocation2] sm:$0x3] %vm1670_vm1, %v2156_v34 }
 0x176   :  { %2168 = shalt.err (!%p2165_p4)
}
 0x177   :  { %s2169_s30 = scalar_lea.hbm %s2749_s7, 32 }
 0x178   :  { %p2170_p5 = scmp.ne.s32.totalorder %s2749_s7, %s2169_s30  ;;  %p2173_p6 = scmp.lt.u32.totalorder %s2169_s30, %s2749_s7 }
 0x17a   :  { %p2175_p7 = pnand %p2173_p6, %p2170_p5 }
 0x17c   :  { %2178 = shalt.err (!%p2175_p7)
}
 0x17d   :  { %1683 = dma.vmem_to_hbm [thread:$0]  %s1681_s27, 32, %s2749_s7, [#allocation3]   ;;  %v2004_v38 = vpop.f32.mrb[16].mxu1 }
 0x17e   :  { %v2005_v39 = vpop.f32.mrb[17].mxu1 }
 0x17f   :  { %v2006_v41 = vadd.f32 %v2005_v39, %v2004_v38  ;;  %v2007_v42 = vpop.f32.mrb[18].mxu1 }
 0x180   :  { %v2008_v43 = vpop.f32.mrb[19].mxu1 }
 0x181   :  { %v1491_v44 = vadd.f32 %v2006_v41, %v1451_v31 }
 0x183   :  { %1496 = vst [vmem:[%s2748_s6] sm:$0x3] %v1491_v44 }
 0x184   :  { %2179 = dma.done.wait [#allocation3], 32  }
 0x185   :  { %2180 = vsyncadd [#allocation3], 4294967264 }
 0x186   :  { %1689 = vsyncpa [#allocation3], 1 }

// kernel: resnet_forward.2
= control target key start
LH: loop header
LB: loop body
LE: loop exit
PB: predicated region body
PF: predicated region fallthrough
CT: control target
= control target key end

     0   :  { %vm120_vm0 = vcmask 1040384   ;;  %v8906_v3 = vmov 0.0   ;;  %vm231_vm1 = vcmask 1045504   ;;  %vm185_vm2 = vcmask 1046528   ;;  %s12861_s17 = smov 12   ;;  %s12859_s18 = smov 8   ;;  %s12841_s0 = inlined_call_operand.vmem [shape: f32[2,8,8,4], index: 0, kind: input, shape index: {}]   ;;  %s12842_s1 = inlined_call_operand.vmem [shape: bf16[36,32], index: 1, kind: input, shape index: {}]   ;;  %s12843_s3 = inlined_call_operand.vmem [shape: bf16[288,32], index: 3, kind: input, shape index: {}]   ;;  %s12844_s2 = inlined_call_operand.vmem [shape: f32[1,32], index: 2, kind: input, shape index: {}]   ;;  %s12845_s5 = inlined_call_operand.vmem [shape: bf16[288,32], index: 5, kind: input, shape index: {}]   ;;  %s12846_s4 = inlined_call_operand.vmem [shape: f32[1,32], index: 4, kind: input, shape index: {}]   ;;  %s12847_s7 = inlined_call_operand.vmem [shape: bf16[288,32], index: 7, kind: input, shape index: {}]   ;;  %s12848_s6 = inlined_call_operand.vmem [shape: f32[1,32], index: 6, kind: input, shape index: {}]   ;;  %s12849_s9 = inlined_call_operand.vmem [shape: bf16[288,32], index: 9, kind: input, shape index: {}]   ;;  %s12850_s8 = inlined_call_operand.vmem [shape: f32[1,32], index: 8, kind: input, shape index: {}]   ;;  %s12851_s11 = inlined_call_operand.vmem [shape: bf16[288,32], index: 11, kind: input, shape index: {}]   ;;  %s12852_s13 = inlined_call_operand.vmem [shape: bf16[288,3], index: 13, kind: input, shape index: {}]   ;;  %s12853_s10 = inlined_call_operand.vmem [shape: f32[1,32], index: 10, kind: input, shape index: {}]   ;;  %s12854_s12 = inlined_call_operand.vmem [shape: f32[1,32], index: 12, kind: input, shape index: {}]   ;;  %s12855_s15 = inlined_call_operand.vmem [shape: bf16[128,32], index: 15, kind: output, shape index: {0}]   ;;  %s12856_s14 = inlined_call_operand.vmem [shape: f32[1,3], index: 14, kind: input, shape index: {}]   ;;  %s12857_s16 = inlined_call_operand.vmem [shape: bf16[128,3], index: 16, kind: output, shape index: {1}]  }
   0x1   :  { %12909 = sst [smem:[#allocation10_spill]] %s12841_s0  ;;  %v86_v4 = vrot.slane %v8906_v3, 7  ;;  %s8909_s19 = smov 4   ;;  %v8795_v60 = vld [vmem:[%s12842_s1] sm:$0xff]   ;;  %vm856_vm3 = vcmask 1041408   ;;  %vm662_vm4 = vcmask 31744  }
   0x2   :  { %s12910_s23 = sld [smem:[#allocation10_spill]]  ;;  %7261 = vmatprep.subr.bf16.mxu0 %v8795_v60  ;;  %s8910_s27 = smov 16   ;;  %vm678_vm5 = vcmask 64512   ;;  %vm694_vm6 = vcmask 97280   ;;  %vm711_vm7 = vcmask 130048   ;;  %vm728_vm8 = vcmask 162816  }
   0x3   :  { %v9020_v11 = vsel %vm120_vm0, 0.0, %v86_v4  ;;  %v138_v12 = vsel %vm120_vm0, %v86_v4, 0.0  ;;  %7262 = vmatpush3.bf16.msra.mxu0 %v8795_v60  ;;  %s8911_s30 = smov 20   ;;  %s8912_s0 = smov 24   ;;  %vm745_vm9 = vcmask 195584   ;;  %vm762_vm10 = vcmask 228352  }
   0x4   :  { %v232_v20 = vrot.slane %v9020_v11, 2  ;;  %v233_v21 = vrot.slane %v138_v12, 2  ;;  %v186_v25 = vrot.slane %v9020_v11, 1  ;;  %v187_v27 = vrot.slane %v138_v12, 1  ;;  %s8913_s22 = smov 28   ;;  %s8914_s24 = smov 32  }
   0x5   :  { %s12912_s28 = smov 12   ;;  %vm779_vm11 = vcmask 261120   ;;  %vm831_vm12 = vcmask 293888   ;;  %vm1503_vm13 = vcmask 523264   ;;  %vm1519_vm14 = vcmask 785408  }
   0x6   :  { %v9046_v26 = vsel %vm231_vm1, %v232_v20, %v233_v21  ;;  %v9056_v35 = vsel %vm185_vm2, %v186_v25, %v187_v27  ;;  %vm6101_vm15 = vcmask 257024  }
   0x8   :  { %v55_v0 = vld [vmem:[%s12910_s23 + $0x10] sm:$0xff]  ;;  %v56_v1 = vld [vmem:[%s12910_s23 + $0x18] sm:$0xff]  ;;  %v53_v2 = vld [vmem:[%s12910_s23] sm:$0xff] }
   0x9   :  { %v89_v5 = vrot.slane %v55_v0, 7  ;;  %v90_v6 = vrot.slane %v56_v1, 7  ;;  %v54_v7 = vld [vmem:[%s12910_s23 + $0x8] sm:$0xff]  ;;  %v87_v8 = vrot.slane %v53_v2, 7  ;;  %v9017_v9 = vld [vmem:[%s12910_s23 + $0x20] sm:$0xff]  ;;  %v59_v0 = vld [vmem:[%s12910_s23 + $0x30] sm:$0xff] }
   0xa   :  { %v88_v10 = vrot.slane %v54_v7, 7  ;;  %v91_v13 = vrot.slane %v9017_v9, 7  ;;  %v58_v63 = vld [vmem:[%s12910_s23 + $0x28] sm:$0xff]  ;;  %v93_v7 = vrot.slane %v59_v0, 7 }
   0xb   :  { %v9025_v14 = vsel %vm120_vm0, 0.0, %v89_v5  ;;  %v9028_v15 = vsel %vm120_vm0, 0.0, %v90_v6  ;;  %v9031_v16 = vsel %vm120_vm0, 0.0, %v87_v8  ;;  %v139_v17 = vsel %vm120_vm0, %v87_v8, 0.0  ;;  %v8796_v2 = vld [vmem:[%s12842_s1 + $0x8] sm:$0xff]  }
   0xc   :  { %v7420_v18 = vpack.i.bf16 %v9028_v15, %v9025_v14  ;;  %v9037_v19 = vsel %vm120_vm0, 0.0, %v88_v10  ;;  %v235_v23 = vrot.slane %v9031_v16, 2  ;;  %v236_v24 = vrot.slane %v139_v17, 2  ;;  %7263 = vmatprep.subr.bf16.mxu0 %v8796_v2 }
   0xd   :  { %v7415_v22 = vpack.i.bf16 %v9037_v19, %v9031_v16  ;;  %v189_v28 = vrot.slane %v9031_v16, 1  ;;  %v190_v29 = vrot.slane %v139_v17, 1  ;;  %v140_v31 = vsel %vm120_vm0, %v88_v10, 0.0  ;;  %7264 = vmatpush3.bf16.msra.mxu0 %v8796_v2  ;;  %v8797_v2 = vld [vmem:[%s12842_s1 + $0x10] ss:$0 sps:$4 sm:$0x33]  }
   0xe   :  { %7421 = vrot.lane.b32.xlu1 %v7420_v18, %s12861_s17  ;;  %v237_v30 = vsel %vm231_vm1, %v235_v23, %v236_v24  ;;  %v141_v32 = vsel %vm120_vm0, %v89_v5, 0.0  ;;  %v238_v33 = vrot.slane %v9037_v19, 2  ;;  %v239_v37 = vrot.slane %v140_v31, 2  ;;  %7403 = vmatprep.subr.msk.bf16.mxu0 %vm856_vm3, %v8797_v2 }
   0xf   :  { %7416 = vrot.lane.b32.xlu0 %v7415_v22, %s12861_s17  ;;  %v7435_v34 = vpack.i.bf16 %v237_v30, %v9046_v26  ;;  %v191_v36 = vsel %vm185_vm2, %v189_v28, %v190_v29  ;;  %v241_v39 = vrot.slane %v9025_v14, 2  ;;  %v242_v40 = vrot.slane %v141_v32, 2  ;;  %v60_v29 = vld [vmem:[%s12910_s23 + $0x38] sm:$0xff] }
  0x10   :  { %v7425_v38 = vpack.i.bf16 %v191_v36, %v9056_v35  ;;  %v192_v41 = vrot.slane %v9037_v19, 1  ;;  %v240_v42 = vsel %vm231_vm1, %v238_v33, %v239_v37  ;;  %v193_v43 = vrot.slane %v140_v31, 1 }
  0x11   :  { %v195_v44 = vrot.slane %v9025_v14, 1  ;;  %v196_v45 = vrot.slane %v141_v32, 1  ;;  %v243_v46 = vsel %vm231_vm1, %v241_v39, %v242_v40  ;;  %v142_v47 = vsel %vm120_vm0, %v90_v6, 0.0 }
  0x12   :  { %7436 = vrot.lane.b32.xlu1 %v7435_v34, %s12859_s18  ;;  %v198_v48 = vrot.slane %v9028_v15, 1  ;;  %v244_v49 = vrot.slane %v9028_v15, 2  ;;  %v9070_v50 = vpack.i.bf16 %v243_v46, %v240_v42  ;;  %v194_v51 = vsel %vm185_vm2, %v192_v41, %v193_v43 }
  0x13   :  { %7426 = vrot.lane.b32.xlu0 %v7425_v38, %s8909_s19  ;;  %v197_v52 = vsel %vm185_vm2, %v195_v44, %v196_v45  ;;  %v199_v53 = vrot.slane %v142_v47, 1  ;;  %v245_v55 = vrot.slane %v142_v47, 2  ;;  %v7445_v58 = vpack.i.bf16 %v194_v51, %v191_v36 }
  0x14   :  { %v7430_v54 = vpack.i.bf16 %v197_v52, %v194_v51  ;;  %v9083_v61 = vsel %vm120_vm0, 0.0, %v91_v13  ;;  %v143_v62 = vsel %vm120_vm0, %v91_v13, 0.0  ;;  %v7455_v3 = vpack.i.bf16 %v240_v42, %v237_v30 }
  0x15   :  { %v200_v56 = vsel %vm185_vm2, %v198_v48, %v199_v53  ;;  %v246_v59 = vsel %vm231_vm1, %v244_v49, %v245_v55  ;;  %v201_v4 = vrot.slane %v9083_v61, 1  ;;  %v202_v5 = vrot.slane %v143_v62, 1  ;;  %v63_v55 = vld [vmem:[%s12910_s23 + $0x50] sm:$0xff] }
  0x16   :  { %7441 = vrot.lane.b32.xlu1 %v9070_v50, %s12859_s18  ;;  %v7450_v57 = vpack.i.bf16 %v200_v56, %v197_v52  ;;  %v7460_v1 = vpack.i.bf16 %v246_v59, %v243_v46  ;;  %v92_v6 = vrot.slane %v58_v63, 7  ;;  %v7470_v8 = vpack.i.bf16 %v9083_v61, %v9028_v15 }
  0x17   :  { %7431 = vrot.lane.b32.xlu0 %v7430_v54, %s8909_s19  ;;  %v247_v9 = vrot.slane %v9083_v61, 2  ;;  %v248_v10 = vrot.slane %v143_v62, 2  ;;  %v7465_v12 = vpack.i.bf16 %v9025_v14, %v9037_v19  ;;  %v203_v13 = vsel %vm185_vm2, %v201_v4, %v202_v5 }
  0x18   :  { %v9107_v17 = vsel %vm120_vm0, 0.0, %v92_v6  ;;  %v9110_v18 = vsel %vm120_vm0, 0.0, %v93_v7  ;;  %v144_v20 = vsel %vm120_vm0, %v92_v6, 0.0  ;;  %v145_v21 = vsel %vm120_vm0, %v93_v7, 0.0 }
  0x19   :  { %v7480_v22 = vpack.i.bf16 %v203_v13, %v200_v56  ;;  %v249_v23 = vsel %vm231_vm1, %v247_v9, %v248_v10  ;;  %v204_v24 = vrot.slane %v9107_v17, 1  ;;  %v205_v25 = vrot.slane %v144_v20, 1  ;;  %v64_v56 = vld [vmem:[%s12910_s23 + $0x58] sm:$0xff] }
  0x1a   :  { %7451 = vrot.lane.b32.xlu1 %v7450_v57, %s8910_s27  ;;  %v207_v27 = vrot.slane %v9110_v18, 1  ;;  %v208_v28 = vrot.slane %v145_v21, 1  ;;  %v7490_v30 = vpack.i.bf16 %v249_v23, %v246_v59  ;;  %v250_v31 = vrot.slane %v9107_v17, 2  ;;  %v61_v57 = vld [vmem:[%s12910_s23 + $0x40] sm:$0xff]  ;;  %v62_v59 = vld [vmem:[%s12910_s23 + $0x48] sm:$0xff] }
  0x1b   :  { %7446 = vrot.lane.b32.xlu0 %v7445_v58, %s8910_s27  ;;  %v251_v32 = vrot.slane %v144_v20, 2  ;;  %v206_v33 = vsel %vm185_vm2, %v204_v24, %v205_v25  ;;  %v253_v36 = vrot.slane %v9110_v18, 2  ;;  %v254_v37 = vrot.slane %v145_v21, 2 }
  0x1c   :  { %v209_v34 = vsel %vm185_vm2, %v207_v27, %v208_v28  ;;  %v94_v38 = vrot.slane %v60_v29, 7  ;;  %v7515_v48 = vpack.i.bf16 %v9107_v17, %v9083_v61  ;;  %v7525_v53 = vpack.i.bf16 %v206_v33, %v203_v13 }
  0x1d   :  { %v9129_v39 = vpack.i.bf16 %v209_v34, %v206_v33  ;;  %v252_v40 = vsel %vm231_vm1, %v250_v31, %v251_v32  ;;  %v255_v41 = vsel %vm231_vm1, %v253_v36, %v254_v37  ;;  %v97_v62 = vrot.slane %v63_v55, 7 }
  0x1e   :  { %7461 = vrot.lane.b32.xlu1 %v7460_v1, %s8911_s30  ;;  %v129_v42 = vsel %vm120_vm0, 0.0, %v94_v38  ;;  %v146_v43 = vsel %vm120_vm0, %v94_v38, 0.0  ;;  %v9139_v44 = vpack.i.bf16 %v255_v41, %v252_v40  ;;  %v7535_v60 = vpack.i.bf16 %v252_v40, %v249_v23 }
  0x1f   :  { %7456 = vrot.lane.b32.xlu0 %v7455_v3, %s8911_s30  ;;  %v281_v45 = vrot.slane %v129_v42, 1  ;;  %v282_v46 = vrot.slane %v146_v43, 1  ;;  %v7520_v47 = vpack.i.bf16 %v129_v42, %v9110_v18  ;;  %v288_v51 = vrot.slane %v146_v43, 2 }
  0x20   :  { %v98_v63 = vrot.slane %v64_v56, 7  ;;  %v95_v0 = vrot.slane %v61_v57, 7  ;;  %v96_v1 = vrot.slane %v62_v59, 7  ;;  %v7550_v3 = vpack.i.bf16 %v9020_v11, %v129_v42  ;;  %v66_v59 = vld [vmem:[%s12910_s23 + $0x68] sm:$0xff] }
  0x21   :  { %v283_v49 = vsel %vm185_vm2, %v281_v45, %v282_v46  ;;  %v7545_v4 = vpack.i.bf16 %v9110_v18, %v9107_v17  ;;  %v9175_v5 = vsel %vm120_vm0, 0.0, %v97_v62  ;;  %v149_v6 = vsel %vm120_vm0, %v97_v62, 0.0 }
  0x22   :  { %7471 = vrot.lane.b32.xlu1 %v7470_v8, %s8912_s0  ;;  %v7530_v52 = vpack.i.bf16 %v283_v49, %v209_v34  ;;  %v9179_v7 = vsel %vm120_vm0, 0.0, %v98_v63  ;;  %v150_v8 = vsel %vm120_vm0, %v98_v63, 0.0  ;;  %v9183_v9 = vsel %vm120_vm0, 0.0, %v95_v0  ;;  %v67_v63 = vld [vmem:[%s12910_s23 + $0x70] sm:$0xff] }
  0x23   :  { %7466 = vrot.lane.b32.xlu0 %v7465_v12, %s8912_s0  ;;  %v9186_v10 = vsel %vm120_vm0, 0.0, %v96_v1  ;;  %v147_v12 = vsel %vm120_vm0, %v95_v0, 0.0  ;;  %v148_v13 = vsel %vm120_vm0, %v96_v1, 0.0  ;;  %v858_v20 = vsel %vm856_vm3, %v8797_v2, 0 }
  0x24   :  { %v7560_v21 = vpack.i.bf16 %v9056_v35, %v283_v49  ;;  %v217_v23 = vrot.slane %v149_v6, 1  ;;  %7266 = vmatpush3.bf16.msra.mxu0 %v858_v20  ;;  %v219_v24 = vrot.slane %v9179_v7, 1  ;;  %v220_v25 = vrot.slane %v150_v8, 1 }
  0x25   :  { %v210_v27 = vrot.slane %v9183_v9, 1  ;;  %v211_v28 = vrot.slane %v147_v12, 1  ;;  %v213_v29 = vrot.slane %v9186_v10, 1  ;;  %v262_v33 = vrot.slane %v9175_v5, 2 }
  0x26   :  { %7481 = vrot.lane.b32.xlu1 %v7480_v22, %s8913_s22  ;;  %v263_v34 = vrot.slane %v149_v6, 2  ;;  %v265_v36 = vrot.slane %v9179_v7, 2  ;;  %v221_v37 = vsel %vm185_vm2, %v219_v24, %v220_v25  ;;  %v266_v38 = vrot.slane %v150_v8, 2 }
  0x27   :  { %7476 = vrot.lane.b32.xlu0 %v7430_v54, %s8913_s22  ;;  %v256_v40 = vrot.slane %v9183_v9, 2  ;;  %v259_v45 = vrot.slane %v9186_v10, 2  ;;  %v260_v46 = vrot.slane %v148_v13, 2  ;;  %v7595_v55 = vpack.i.bf16 %v9186_v10, %v9183_v9 }
  0x28   :  { %v267_v49 = vsel %vm231_vm1, %v265_v36, %v266_v38  ;;  %v100_v0 = vrot.slane %v66_v59, 7  ;;  %v7625_v2 = vpack.i.bf16 %v9175_v5, %v9186_v10  ;;  %v101_v8 = vrot.slane %v67_v63, 7 }
  0x2a   :  { %7491 = vrot.lane.b32.xlu1 %v7490_v30, %s8914_s24  ;;  %v153_v24 = vsel %vm120_vm0, %v101_v8, 0.0 }
  0x2b   :  { %7486 = vrot.lane.b32.xlu0 %v9070_v50, %s8914_s24  ;;  %v287_v50 = vrot.slane %v129_v42, 2  ;;  %v212_v42 = vsel %vm185_vm2, %v210_v27, %v211_v28  ;;  %v68_v28 = vld [vmem:[%s12910_s23 + $0x78] sm:$0xff] }
  0x2d   :  { %v289_v54 = vsel %vm231_vm1, %v287_v50, %v288_v51  ;;  %v261_v51 = vsel %vm231_vm1, %v259_v45, %v260_v46 }
  0x2e   :  { %7501 = vrot.lane.b32.xlu1 %v9129_v39, %s8909_s19  ;;  %v7540_v58 = vpack.i.bf16 %v289_v54, %v255_v41  ;;  %v7570_v31 = vpack.i.bf16 %v9046_v26, %v289_v54  ;;  %v257_v41 = vrot.slane %v147_v12, 2  ;;  %v65_v54 = vld [vmem:[%s12910_s23 + $0x60] sm:$0xff]  ;;  %v9254_v12 = vsel %vm120_vm0, 0.0, %v100_v0 }
  0x2f   :  { %7496 = vrot.lane.b32.xlu0 %v7480_v22, %s8909_s19  ;;  %v216_v22 = vrot.slane %v9175_v5, 1  ;;  %v99_v56 = vrot.slane %v65_v54, 7  ;;  %v225_v25 = vrot.slane %v9254_v12, 1 }
  0x30   :  { %v258_v50 = vsel %vm231_vm1, %v256_v40, %v257_v41 }
  0x31   :  { %v9200_v32 = vsel %vm185_vm2, %v216_v22, %v217_v23  ;;  %v9233_v57 = vsel %vm120_vm0, 0.0, %v99_v56  ;;  %v9262_v23 = vsel %vm120_vm0, 0.0, %v101_v8 }
  0x32   :  { %7511 = vrot.lane.b32.xlu1 %v9139_v44, %s12859_s18  ;;  %v7630_v1 = vpack.i.bf16 %v9233_v57, %v9179_v7  ;;  %v274_v41 = vrot.slane %v9262_v23, 2 }
  0x33   :  { %7506 = vrot.lane.b32.xlu0 %v7490_v30, %s12859_s18  ;;  %v214_v30 = vrot.slane %v148_v13, 1  ;;  %s12911_s18 = smov 8   ;;  %v152_v13 = vsel %vm120_vm0, %v100_v0, 0.0 }
  0x34   :  { %v226_v27 = vrot.slane %v152_v13, 1  ;;  %v272_v36 = vrot.slane %v152_v13, 2 }
  0x35   :  { %v215_v43 = vsel %vm185_vm2, %v213_v29, %v214_v30 }
  0x36   :  { %7521 = vrot.lane.b32.xlu1 %v7520_v47, %s12861_s17  ;;  %v7580_v47 = vpack.i.bf16 %v221_v37, %v9200_v32 }
  0x37   :  { %7516 = vrot.lane.b32.xlu0 %v7515_v48, %s12861_s17  ;;  %v264_v48 = vsel %vm231_vm1, %v262_v33, %v263_v34  ;;  %v227_v33 = vsel %vm185_vm2, %v225_v25, %v226_v27  ;;  %v271_v34 = vrot.slane %v9254_v12, 2 }
  0x38   :  { %v7645_v30 = vpack.i.bf16 %v264_v48, %v261_v51 }
  0x3a   :  { %7531 = vrot.lane.b32.xlu1 %v7530_v52, %s8910_s27  ;;  %v7590_v52 = vpack.i.bf16 %v267_v49, %v264_v48 }
  0x3b   :  { %7526 = vrot.lane.b32.xlu0 %v7525_v53, %s8910_s27  ;;  %v7585_v53 = vpack.i.bf16 %v261_v51, %v258_v50  ;;  %v7665_v51 = vpack.i.bf16 %v9254_v12, %v9233_v57 }
  0x3e   :  { %7541 = vrot.lane.b32.xlu1 %v7540_v58, %s8911_s30  ;;  %v151_v58 = vsel %vm120_vm0, %v99_v56, 0.0 }
  0x3f   :  { %7536 = vrot.lane.b32.xlu0 %v7535_v60, %s8911_s30  ;;  %v222_v60 = vrot.slane %v9233_v57, 1  ;;  %v223_v62 = vrot.slane %v151_v58, 1  ;;  %v269_v6 = vrot.slane %v151_v58, 2  ;;  %v7695_v58 = vpack.i.bf16 %v9262_v23, %v9254_v12 }
  0x42   :  { %7551 = vrot.lane.b32.xlu1 %v7550_v3, %s8912_s0  ;;  %v224_v3 = vsel %vm185_vm2, %v222_v60, %v223_v62 }
  0x43   :  { %7546 = vrot.lane.b32.xlu0 %v7545_v4, %s8912_s0  ;;  %v268_v4 = vrot.slane %v9233_v57, 2  ;;  %v7640_v20 = vpack.i.bf16 %v224_v3, %v221_v37  ;;  %v102_v37 = vrot.slane %v68_v28, 7  ;;  %v7655_v40 = vpack.i.bf16 %v227_v33, %v224_v3 }
  0x45   :  { %v270_v22 = vsel %vm231_vm1, %v268_v4, %v269_v6  ;;  %v137_v45 = vsel %vm120_vm0, 0.0, %v102_v37  ;;  %v154_v46 = vsel %vm120_vm0, %v102_v37, 0.0 }
  0x46   :  { %7561 = vrot.lane.b32.xlu1 %v7560_v21, %s8913_s22  ;;  %v7635_v21 = vpack.i.bf16 %v9200_v32, %v215_v43  ;;  %v7650_v29 = vpack.i.bf16 %v270_v22, %v267_v49  ;;  %v229_v32 = vrot.slane %v153_v24, 1  ;;  %v284_v48 = vrot.slane %v137_v45, 1 }
  0x47   :  { %7556 = vrot.lane.b32.xlu0 %v9129_v39, %s8913_s22  ;;  %v7575_v39 = vpack.i.bf16 %v215_v43, %v212_v42  ;;  %v275_v42 = vrot.slane %v153_v24, 2  ;;  %v273_v43 = vsel %vm231_vm1, %v271_v34, %v272_v36  ;;  %v285_v49 = vrot.slane %v154_v46, 1 }
  0x48   :  { %v7670_v50 = vpack.i.bf16 %v137_v45, %v9262_v23  ;;  %v291_v54 = vrot.slane %v154_v46, 2 }
  0x4a   :  { %7571 = vrot.lane.b32.xlu1 %v7570_v31, %s8914_s24  ;;  %v228_v31 = vrot.slane %v9262_v23, 1 }
  0x4b   :  { %7566 = vrot.lane.b32.xlu0 %v9139_v44, %s8914_s24  ;;  %v7600_v44 = vpack.i.bf16 %v9179_v7, %v9175_v5 }
  0x4c   :  { %v230_v38 = vsel %vm185_vm2, %v228_v31, %v229_v32 }
  0x4d   :  { %v7700_v62 = vpack.i.bf16 %v230_v38, %v227_v33 }
  0x4e   :  { %7581 = vrot.lane.b32.xlu1 %v7580_v47, %s8909_s19 }
  0x4f   :  { %7576 = vrot.lane.b32.xlu0 %v7575_v39, %s8909_s19 }
  0x52   :  { %7591 = vrot.lane.b32.xlu1 %v7590_v52, %s12911_s18 }
  0x53   :  { %7586 = vrot.lane.b32.xlu0 %v7585_v53, %s12911_s18 }
  0x56   :  { %7601 = vrot.lane.b32.xlu1 %v7600_v44, %s12912_s28 }
  0x57   :  { %7596 = vrot.lane.b32.xlu0 %v7595_v55, %s12912_s28 }
  0x5a   :  { %7611 = vrot.lane.b32.xlu1 %v7580_v47, %s8910_s27  ;;  %v276_v47 = vsel %vm231_vm1, %v274_v41, %v275_v42 }
  0x5b   :  { %7606 = vrot.lane.b32.xlu0 %v7575_v39, %s8910_s27  ;;  %v7660_v39 = vpack.i.bf16 %v273_v43, %v270_v22 }
  0x5e   :  { %7621 = vrot.lane.b32.xlu1 %v7590_v52, %s8911_s30  ;;  %v286_v52 = vsel %vm185_vm2, %v284_v48, %v285_v49 }
  0x5f   :  { %7616 = vrot.lane.b32.xlu0 %v7585_v53, %s8911_s30  ;;  %v290_v53 = vrot.slane %v137_v45, 2  ;;  %v7680_v44 = vpack.i.bf16 %v286_v52, %v230_v38 }
  0x61   :  { %v292_v55 = vsel %vm231_vm1, %v290_v53, %v291_v54 }
  0x62   :  { %7631 = vrot.lane.b32.xlu1 %v7630_v1, %s8912_s0  ;;  %v7690_v56 = vpack.i.bf16 %v292_v55, %v276_v47  ;;  %v7705_v1 = vpack.i.bf16 %v276_v47, %v273_v43 }
  0x63   :  { %7626 = vrot.lane.b32.xlu0 %v7625_v2, %s8912_s0 }
  0x66   :  { %7641 = vrot.lane.b32.xlu1 %v7640_v20, %s8913_s22 }
  0x67   :  { %7636 = vrot.lane.b32.xlu0 %v7635_v21, %s8913_s22 }
  0x6a   :  { %7651 = vrot.lane.b32.xlu1 %v7650_v29, %s8914_s24 }
  0x6b   :  { %7646 = vrot.lane.b32.xlu0 %v7645_v30, %s8914_s24 }
  0x6e   :  { %321 = vrot.lane.b32.xlu1 %v230_v38, %s8909_s19 }
  0x6f   :  { %7656 = vrot.lane.b32.xlu0 %v7655_v40, %s8909_s19  ;;  %s8915_s19 = smov 96  }
  0x72   :  { %366 = vrot.lane.b32.xlu1 %v276_v47, %s12911_s18 }
  0x73   :  { %7661 = vrot.lane.b32.xlu0 %v7660_v39, %s12911_s18 }
  0x76   :  { %7671 = vrot.lane.b32.xlu1 %v7670_v50, %s12912_s28 }
  0x77   :  { %7666 = vrot.lane.b32.xlu0 %v7665_v51, %s12912_s28 }
  0x7a   :  { %7681 = vrot.lane.b32.xlu1 %v7680_v44, %s8910_s27 }
  0x7b   :  { %7676 = vrot.lane.b32.xlu0 %v7655_v40, %s8910_s27 }
  0x7e   :  { %7691 = vrot.lane.b32.xlu1 %v7690_v56, %s8911_s30 }
  0x7f   :  { %7686 = vrot.lane.b32.xlu0 %v7660_v39, %s8911_s30 }
  0x80   :  { %v7422_v59 = vpop.permute.xlu1 %7421 }
  0x81   :  { %v7417_v60 = vpop.permute.xlu0 %7416 }
  0x82   :  { %555 = vrot.lane.b32.xlu1 %v137_v45, %s8912_s0  ;;  %v7419_v40 = vunpack.i.h.bf16 %v7417_v60  ;;  %v7418_v41 = vunpack.i.l.bf16 %v7417_v60 }
  0x83   :  { %7696 = vrot.lane.b32.xlu0 %v7695_v58, %s8912_s0 }
  0x84   :  { %v7437_v63 = vpop.permute.xlu1 %7436 }
  0x85   :  { %v7427_v0 = vpop.permute.xlu0 %7426  ;;  %v7439_v25 = vunpack.i.h.bf16 %v7437_v63  ;;  %v7438_v27 = vunpack.i.l.bf16 %v7437_v63 }
  0x86   :  { %600 = vrot.lane.b32.xlu1 %v286_v52, %s8913_s22  ;;  %v7429_v13 = vunpack.i.h.bf16 %v7427_v0  ;;  %v7428_v20 = vunpack.i.l.bf16 %v7427_v0 }
  0x87   :  { %7701 = vrot.lane.b32.xlu0 %v7700_v62, %s8913_s22  ;;  %s8916_s22 = smov 64  }
  0x88   :  { %v7442_v2 = vpop.permute.xlu1 %7441  ;;  %v664_v31 = vsel %vm662_vm4, %v9031_v16, %v7429_v13  ;;  %v663_v32 = vsel %vm662_vm4, %v9020_v11, %v7428_v20 }
  0x89   :  { %v7432_v3 = vpop.permute.xlu0 %7431  ;;  %v7444_v22 = vunpack.i.h.bf16 %v7442_v2  ;;  %v7443_v24 = vunpack.i.l.bf16 %v7442_v2  ;;  %v680_v37 = vsel %vm678_vm5, %v664_v31, %v7439_v25  ;;  %v9317_v38 = vsel %vm678_vm5, %v663_v32, %v7438_v27 }
  0x8a   :  { %645 = vrot.lane.b32.xlu1 %v292_v55, %s8914_s24  ;;  %v7434_v4 = vunpack.i.h.bf16 %v7432_v3  ;;  %v7433_v6 = vunpack.i.l.bf16 %v7432_v3  ;;  %v695_v49 = vsel %vm694_vm6, %v9317_v38, %v7418_v41  ;;  %v696_v50 = vsel %vm694_vm6, %v680_v37, %v7419_v40 }
  0x8b   :  { %7706 = vrot.lane.b32.xlu0 %v7705_v1, %s8914_s24 }
  0x8c   :  { %v7452_v8 = vpop.permute.xlu1 %7451  ;;  %v666_v28 = vsel %vm662_vm4, %v9025_v14, %v7434_v4  ;;  %v665_v29 = vsel %vm662_vm4, %v9037_v19, %v7433_v6  ;;  %v7424_v14 = vunpack.i.h.bf16 %v7422_v59  ;;  %v7423_v19 = vunpack.i.l.bf16 %v7422_v59 }
  0x8d   :  { %v7447_v21 = vpop.permute.xlu0 %7446  ;;  %v682_v34 = vsel %vm678_vm5, %v666_v28, %v7444_v22  ;;  %v681_v36 = vsel %vm678_vm5, %v665_v29, %v7443_v24  ;;  %v7454_v42 = vunpack.i.h.bf16 %v7452_v8  ;;  %v7453_v43 = vunpack.i.l.bf16 %v7452_v8 }
  0x8e   :  { %v697_v46 = vsel %vm694_vm6, %v681_v36, %v7423_v19  ;;  %v698_v47 = vsel %vm694_vm6, %v682_v34, %v7424_v14  ;;  %v7449_v39 = vunpack.i.h.bf16 %v7447_v21  ;;  %v7448_v48 = vunpack.i.l.bf16 %v7447_v21 }
  0x8f   :  { %v714_v58 = vsel %vm711_vm7, %v697_v46, %v7453_v43  ;;  %v715_v59 = vsel %vm711_vm7, %v698_v47, %v7454_v42 }
  0x90   :  { %v7462_v30 = vpop.permute.xlu1 %7461  ;;  %v712_v0 = vsel %vm711_vm7, %v695_v49, %v7448_v48  ;;  %v713_v1 = vsel %vm711_vm7, %v696_v50, %v7449_v39 }
  0x91   :  { %v7457_v33 = vpop.permute.xlu0 %7456  ;;  %v7464_v51 = vunpack.i.h.bf16 %v7462_v30  ;;  %v7463_v52 = vunpack.i.l.bf16 %v7462_v30 }
  0x92   :  { %v7459_v53 = vunpack.i.h.bf16 %v7457_v33  ;;  %v7458_v54 = vunpack.i.l.bf16 %v7457_v33 }
  0x93   :  { %v731_v4 = vsel %vm728_vm8, %v714_v58, %v7463_v52  ;;  %v732_v6 = vsel %vm728_vm8, %v715_v59, %v7464_v51 }
  0x94   :  { %v7472_v16 = vpop.permute.xlu1 %7471  ;;  %v729_v20 = vsel %vm728_vm8, %v712_v0, %v7458_v54  ;;  %v730_v21 = vsel %vm728_vm8, %v713_v1, %v7459_v53 }
  0x95   :  { %v7467_v45 = vpop.permute.xlu0 %7466  ;;  %v7474_v44 = vunpack.i.h.bf16 %v7472_v16  ;;  %v7473_v55 = vunpack.i.l.bf16 %v7472_v16 }
  0x96   :  { %v7469_v60 = vunpack.i.h.bf16 %v7467_v45  ;;  %v7468_v62 = vunpack.i.l.bf16 %v7467_v45 }
  0x97   :  { %v748_v22 = vsel %vm745_vm9, %v731_v4, %v7473_v55  ;;  %v749_v24 = vsel %vm745_vm9, %v732_v6, %v7474_v44 }
  0x98   :  { %v7482_v56 = vpop.permute.xlu1 %7481  ;;  %v746_v30 = vsel %vm745_vm9, %v729_v20, %v7468_v62  ;;  %v747_v31 = vsel %vm745_vm9, %v730_v21, %v7469_v60 }
  0x99   :  { %v7477_v63 = vpop.permute.xlu0 %7476  ;;  %v7484_v2 = vunpack.i.h.bf16 %v7482_v56  ;;  %v7483_v3 = vunpack.i.l.bf16 %v7482_v56 }
  0x9a   :  { %v7479_v8 = vunpack.i.h.bf16 %v7477_v63  ;;  %v7478_v13 = vunpack.i.l.bf16 %v7477_v63 }
  0x9b   :  { %v765_v32 = vsel %vm762_vm10, %v748_v22, %v7483_v3  ;;  %v766_v33 = vsel %vm762_vm10, %v749_v24, %v7484_v2 }
  0x9c   :  { %v7492_v25 = vpop.permute.xlu1 %7491  ;;  %v763_v37 = vsel %vm762_vm10, %v746_v30, %v7478_v13  ;;  %v764_v16 = vsel %vm762_vm10, %v747_v31, %v7479_v8 }
  0x9d   :  { %v7494_v27 = vunpack.i.h.bf16 %v7492_v25  ;;  %v7493_v28 = vunpack.i.l.bf16 %v7492_v25  ;;  %v7487_v29 = vpop.permute.xlu0 %7486 }
  0x9e   :  { %v7489_v34 = vunpack.i.h.bf16 %v7487_v29  ;;  %v7488_v36 = vunpack.i.l.bf16 %v7487_v29 }
  0x9f   :  { %v782_v14 = vsel %vm779_vm11, %v765_v32, %v7493_v28  ;;  %v783_v19 = vsel %vm779_vm11, %v766_v33, %v7494_v27 }
  0xa0   :  { %v7502_v40 = vpop.permute.xlu1 %7501  ;;  %v780_v41 = vsel %vm779_vm11, %v763_v37, %v7488_v36  ;;  %v781_v42 = vsel %vm779_vm11, %v764_v16, %v7489_v34  ;;  %v797_v43 = vpack.c.bf16 %v783_v19, %v782_v14 }
  0xa1   :  { %v7497_v45 = vpop.permute.xlu0 %7496  ;;  %v796_v46 = vpack.c.bf16 %v781_v42, %v780_v41  ;;  %v7504_v51 = vunpack.i.h.bf16 %v7502_v40  ;;  %v7503_v52 = vunpack.i.l.bf16 %v7502_v40 }
  0xa2   :  { %v7499_v54 = vunpack.i.h.bf16 %v7497_v45  ;;  %v7498_v44 = vunpack.i.l.bf16 %v7497_v45 }
  0xa3   :  { %7267 = vmatprep.mubr.msk.bf16.mxu0 %vm831_vm12, %v796_v46  ;;  %v670_v59 = vsel %vm662_vm4, %v9110_v18, %v7504_v51  ;;  %v669_v60 = vsel %vm662_vm4, %v9107_v17, %v7503_v52 }
  0xa4   :  { %7268 = vmatmul.mubr.msk.bf16.vlgmr.msra.gmra.mrb[0].mxu0 %vm831_vm12, %v797_v43  ;;  %v7512_v47 = vpop.permute.xlu1 %7511  ;;  %v668_v6 = vsel %vm662_vm4, %v9083_v61, %v7499_v54  ;;  %v667_v8 = vsel %vm662_vm4, %v9028_v15, %v7498_v44 }
  0xa5   :  { %v7507_v39 = vpop.permute.xlu0 %7506  ;;  %v7514_v55 = vunpack.i.h.bf16 %v7512_v47  ;;  %v7513_v56 = vunpack.i.l.bf16 %v7512_v47 }
  0xa6   :  { %v7509_v62 = vunpack.i.h.bf16 %v7507_v39  ;;  %v7508_v63 = vunpack.i.l.bf16 %v7507_v39 }
  0xa7   :  { %v685_v13 = vsel %vm678_vm5, %v669_v60, %v7513_v56  ;;  %v686_v18 = vsel %vm678_vm5, %v670_v59, %v7514_v55 }
  0xa8   :  { %v7522_v48 = vpop.permute.xlu1 %7521  ;;  %v683_v17 = vsel %vm678_vm5, %v667_v8, %v7508_v63  ;;  %v684_v21 = vsel %vm678_vm5, %v668_v6, %v7509_v62 }
  0xa9   :  { %v7517_v49 = vpop.permute.xlu0 %7516  ;;  %v7524_v1 = vunpack.i.h.bf16 %v7522_v48  ;;  %v7523_v2 = vunpack.i.l.bf16 %v7522_v48 }
  0xaa   :  { %v7519_v3 = vunpack.i.h.bf16 %v7517_v49  ;;  %v7518_v4 = vunpack.i.l.bf16 %v7517_v49 }
  0xab   :  { %v701_v27 = vsel %vm694_vm6, %v685_v13, %v7523_v2  ;;  %v702_v61 = vsel %vm694_vm6, %v686_v18, %v7524_v1 }
  0xac   :  { %v7532_v50 = vpop.permute.xlu1 %7531  ;;  %v699_v15 = vsel %vm694_vm6, %v683_v17, %v7518_v4  ;;  %v700_v30 = vsel %vm694_vm6, %v684_v21, %v7519_v3 }
  0xad   :  { %v7527_v53 = vpop.permute.xlu0 %7526  ;;  %v7534_v22 = vunpack.i.h.bf16 %v7532_v50  ;;  %v7533_v24 = vunpack.i.l.bf16 %v7532_v50 }
  0xae   :  { %v7529_v28 = vunpack.i.h.bf16 %v7527_v53  ;;  %v7528_v29 = vunpack.i.l.bf16 %v7527_v53 }
  0xaf   :  { %v718_v37 = vsel %vm711_vm7, %v701_v27, %v7533_v24  ;;  %v719_v16 = vsel %vm711_vm7, %v702_v61, %v7534_v22 }
  0xb0   :  { %v7542_v58 = vpop.permute.xlu1 %7541  ;;  %v716_v43 = vsel %vm711_vm7, %v699_v15, %v7528_v29  ;;  %v717_v45 = vsel %vm711_vm7, %v700_v30, %v7529_v28 }
  0xb1   :  { %v7537_v0 = vpop.permute.xlu0 %7536  ;;  %v7544_v31 = vunpack.i.h.bf16 %v7542_v58  ;;  %v7543_v32 = vunpack.i.l.bf16 %v7542_v58 }
  0xb2   :  { %v7539_v33 = vunpack.i.h.bf16 %v7537_v0  ;;  %v7538_v34 = vunpack.i.l.bf16 %v7537_v0 }
  0xb3   :  { %v735_v39 = vsel %vm728_vm8, %v718_v37, %v7543_v32  ;;  %v736_v48 = vsel %vm728_vm8, %v719_v16, %v7544_v31 }
  0xb4   :  { %v9356_v20 = vpop.permute.xlu1 %7551  ;;  %v733_v51 = vsel %vm728_vm8, %v716_v43, %v7538_v34  ;;  %v734_v52 = vsel %vm728_vm8, %v717_v45, %v7539_v33 }
  0xb5   :  { %v7547_v25 = vpop.permute.xlu0 %7546  ;;  %v7554_v36 = vunpack.i.h.bf16 %v9356_v20  ;;  %v7553_v14 = vunpack.i.l.bf16 %v9356_v20 }
  0xb6   :  { %v7549_v40 = vunpack.i.h.bf16 %v7547_v25  ;;  %v7548_v41 = vunpack.i.l.bf16 %v7547_v25 }
  0xb7   :  { %v752_v53 = vsel %vm745_vm9, %v735_v39, %v7553_v14  ;;  %v753_v54 = vsel %vm745_vm9, %v736_v48, %v7554_v36 }
  0xb8   :  { %v9366_v19 = vpop.permute.xlu1 %7561  ;;  %v750_v55 = vsel %vm745_vm9, %v733_v51, %v7548_v41  ;;  %v751_v56 = vsel %vm745_vm9, %v734_v52, %v7549_v40 }
  0xb9   :  { %v7557_v42 = vpop.permute.xlu0 %7556  ;;  %v7564_v46 = vunpack.i.h.bf16 %v9366_v19  ;;  %v7563_v47 = vunpack.i.l.bf16 %v9366_v19 }
  0xba   :  { %v7559_v49 = vunpack.i.h.bf16 %v7557_v42  ;;  %v7558_v50 = vunpack.i.l.bf16 %v7557_v42 }
  0xbb   :  { %v769_v62 = vsel %vm762_vm10, %v752_v53, %v7563_v47  ;;  %v770_v63 = vsel %vm762_vm10, %v753_v54, %v7564_v46 }
  0xbc   :  { %v9382_v44 = vpop.permute.xlu1 %7571  ;;  %v767_v2 = vsel %vm762_vm10, %v750_v55, %v7558_v50  ;;  %v768_v3 = vsel %vm762_vm10, %v751_v56, %v7559_v49 }
  0xbd   :  { %v7574_v58 = vunpack.i.h.bf16 %v9382_v44  ;;  %v7573_v59 = vunpack.i.l.bf16 %v9382_v44  ;;  %v7567_v60 = vpop.permute.xlu0 %7566 }
  0xbe   :  { %v7569_v0 = vunpack.i.h.bf16 %v7567_v60  ;;  %v7568_v1 = vunpack.i.l.bf16 %v7567_v60 }
  0xbf   :  { %v786_v4 = vsel %vm779_vm11, %v769_v62, %v7573_v59  ;;  %v787_v6 = vsel %vm779_vm11, %v770_v63, %v7574_v58 }
  0xc0   :  { %v784_v8 = vsel %vm779_vm11, %v767_v2, %v7568_v1  ;;  %v785_v13 = vsel %vm779_vm11, %v768_v3, %v7569_v0  ;;  %v9400_v18 = vpop.permute.xlu1 %7581  ;;  %v799_v17 = vpack.c.bf16 %v787_v6, %v786_v4 }
  0xc1   :  { %v7577_v21 = vpop.permute.xlu0 %7576  ;;  %v798_v22 = vpack.c.bf16 %v785_v13, %v784_v8  ;;  %v7583_v29 = vunpack.i.l.bf16 %v9400_v18 }
  0xc2   :  { %v7579_v30 = vunpack.i.h.bf16 %v7577_v21  ;;  %v7578_v31 = vunpack.i.l.bf16 %v7577_v21 }
  0xc3   :  { %7271 = vmatprep.mubr.msk.bf16.mxu0 %vm831_vm12, %v798_v22  ;;  %v673_v34 = vsel %vm662_vm4, %v9175_v5, %v7583_v29 }
  0xc4   :  { %7272 = vmatmul.mubr.msk.bf16.gmra.mrb[4].mxu0 %vm831_vm12, %v799_v17  ;;  %v9404_v24 = vpop.permute.xlu1 %7591  ;;  %v672_v45 = vsel %vm662_vm4, %v9186_v10, %v7579_v30  ;;  %v671_v47 = vsel %vm662_vm4, %v9183_v9, %v7578_v31 }
  0xc5   :  { %v7587_v25 = vpop.permute.xlu0 %7586  ;;  %v7593_v32 = vunpack.i.l.bf16 %v9404_v24 }
  0xc6   :  { %v7589_v14 = vunpack.i.h.bf16 %v7587_v25  ;;  %v7588_v37 = vunpack.i.l.bf16 %v7587_v25 }
  0xc7   :  { %v689_v39 = vsel %vm678_vm5, %v673_v34, %v7593_v32 }
  0xc8   :  { %v7602_v27 = vpop.permute.xlu1 %7601  ;;  %v687_v49 = vsel %vm678_vm5, %v671_v47, %v7588_v37  ;;  %v688_v5 = vsel %vm678_vm5, %v672_v45, %v7589_v14 }
  0xc9   :  { %v7597_v61 = vpop.permute.xlu0 %7596  ;;  %v7604_v40 = vunpack.i.h.bf16 %v7602_v27  ;;  %v7603_v41 = vunpack.i.l.bf16 %v7602_v27 }
  0xca   :  { %v7599_v42 = vunpack.i.h.bf16 %v7597_v61  ;;  %v7598_v43 = vunpack.i.l.bf16 %v7597_v61 }
  0xcb   :  { %v705_v53 = vsel %vm694_vm6, %v688_v5, %v7603_v41  ;;  %v706_v54 = vsel %vm694_vm6, %v689_v39, %v7604_v40 }
  0xcc   :  { %v7612_v28 = vpop.permute.xlu1 %7611  ;;  %v703_v10 = vsel %vm694_vm6, %v9317_v38, %v7598_v43  ;;  %v704_v9 = vsel %vm694_vm6, %v687_v49, %v7599_v42 }
  0xcd   :  { %v7607_v15 = vpop.permute.xlu0 %7606  ;;  %v7614_v50 = vunpack.i.h.bf16 %v7612_v28  ;;  %v7613_v51 = vunpack.i.l.bf16 %v7612_v28 }
  0xce   :  { %v7609_v55 = vunpack.i.h.bf16 %v7607_v15  ;;  %v7608_v56 = vunpack.i.l.bf16 %v7607_v15 }
  0xcf   :  { %v722_v3 = vsel %vm711_vm7, %v705_v53, %v7613_v51  ;;  %v723_v4 = vsel %vm711_vm7, %v706_v54, %v7614_v50 }
  0xd0   :  { %v7622_v33 = vpop.permute.xlu1 %7621  ;;  %v720_v17 = vsel %vm711_vm7, %v703_v10, %v7608_v56  ;;  %v721_v38 = vsel %vm711_vm7, %v704_v9, %v7609_v55 }
  0xd1   :  { %v7617_v16 = vpop.permute.xlu0 %7616  ;;  %v7624_v59 = vunpack.i.h.bf16 %v7622_v33  ;;  %v7623_v60 = vunpack.i.l.bf16 %v7622_v33 }
  0xd2   :  { %v7619_v62 = vunpack.i.h.bf16 %v7617_v16  ;;  %v7618_v63 = vunpack.i.l.bf16 %v7617_v16 }
  0xd3   :  { %v739_v25 = vsel %vm728_vm8, %v722_v3, %v7623_v60  ;;  %v740_v27 = vsel %vm728_vm8, %v723_v4, %v7624_v59 }
  0xd4   :  { %v7632_v48 = vpop.permute.xlu1 %7631  ;;  %v737_v29 = vsel %vm728_vm8, %v720_v17, %v7618_v63  ;;  %v738_v15 = vsel %vm728_vm8, %v721_v38, %v7619_v62 }
  0xd5   :  { %v7627_v52 = vpop.permute.xlu0 %7626  ;;  %v7634_v0 = vunpack.i.h.bf16 %v7632_v48  ;;  %v7633_v1 = vunpack.i.l.bf16 %v7632_v48 }
  0xd6   :  { %v7629_v6 = vunpack.i.h.bf16 %v7627_v52  ;;  %v7628_v8 = vunpack.i.l.bf16 %v7627_v52 }
  0xd7   :  { %v756_v30 = vsel %vm745_vm9, %v739_v25, %v7633_v1  ;;  %v757_v31 = vsel %vm745_vm9, %v740_v27, %v7634_v0  ;;  %v7584_v0 = vunpack.i.h.bf16 %v9400_v18 }
  0xd8   :  { %v7642_v2 = vpop.permute.xlu1 %7641  ;;  %v754_v33 = vsel %vm745_vm9, %v737_v29, %v7628_v8  ;;  %v755_v34 = vsel %vm745_vm9, %v738_v15, %v7629_v6 }
  0xd9   :  { %v7637_v13 = vpop.permute.xlu0 %7636  ;;  %v7644_v21 = vunpack.i.h.bf16 %v7642_v2  ;;  %v7643_v22 = vunpack.i.l.bf16 %v7642_v2 }
  0xda   :  { %v7639_v61 = vunpack.i.h.bf16 %v7637_v13  ;;  %v7638_v28 = vunpack.i.l.bf16 %v7637_v13 }
  0xdb   :  { %v773_v40 = vsel %vm762_vm10, %v756_v30, %v7643_v22  ;;  %v774_v41 = vsel %vm762_vm10, %v757_v31, %v7644_v21  ;;  %v7594_v21 = vunpack.i.h.bf16 %v9404_v24 }
  0xdc   :  { %v7652_v32 = vpop.permute.xlu1 %7651  ;;  %v771_v45 = vsel %vm762_vm10, %v754_v33, %v7638_v28  ;;  %v772_v47 = vsel %vm762_vm10, %v755_v34, %v7639_v61 }
  0xdd   :  { %v7654_v14 = vunpack.i.h.bf16 %v7652_v32  ;;  %v7653_v37 = vunpack.i.l.bf16 %v7652_v32  ;;  %v7647_v16 = vpop.permute.xlu0 %7646 }
  0xde   :  { %v7649_v42 = vunpack.i.h.bf16 %v7647_v16  ;;  %v7648_v43 = vunpack.i.l.bf16 %v7647_v16 }
  0xdf   :  { %v790_v39 = vsel %vm779_vm11, %v773_v40, %v7653_v37  ;;  %v791_v48 = vsel %vm779_vm11, %v774_v41, %v7654_v14 }
  0xe0   :  { %v788_v49 = vsel %vm779_vm11, %v771_v45, %v7648_v43  ;;  %v789_v5 = vsel %vm779_vm11, %v772_v47, %v7649_v42  ;;  %v322_v50 = vpop.permute.xlu1 %321  ;;  %v801_v51 = vpack.c.bf16 %v791_v48, %v790_v39 }
  0xe1   :  { %v7657_v52 = vpop.permute.xlu0 %7656  ;;  %v800_v53 = vpack.c.bf16 %v789_v5, %v788_v49  ;;  %v677_v59 = vsel %vm662_vm4, %v9262_v23, %v322_v50  ;;  %v674_v23 = vsel %vm662_vm4, %v9179_v7, %v7584_v0 }
  0xe2   :  { %v7659_v3 = vunpack.i.h.bf16 %v7657_v52  ;;  %v7658_v61 = vunpack.i.l.bf16 %v7657_v52 }
  0xe3   :  { %7275 = vmatprep.mubr.msk.bf16.mxu0 %vm831_vm12, %v800_v53 }
  0xe4   :  { %7276 = vmatmul.mubr.msk.bf16.gmra.mrb[8].mxu0 %vm831_vm12, %v801_v51  ;;  %v367_v54 = vpop.permute.xlu1 %366  ;;  %v676_v27 = vsel %vm662_vm4, %v9254_v12, %v7659_v3  ;;  %v690_v12 = vsel %vm678_vm5, %v674_v23, %v7594_v21  ;;  %v8799_v3 = vld [vmem:[%s12843_s3 + $0x88] sm:$0xff]   ;;  %v8805_v23 = vld [vmem:[%s12843_s3 + $0x10] sm:$0xff]  }
  0xe5   :  { %v7662_v55 = vpop.permute.xlu0 %7661  ;;  %v693_v1 = vsel %vm678_vm5, %v677_v59, %v367_v54 }
  0xe6   :  { %v7664_v17 = vunpack.i.h.bf16 %v7662_v55  ;;  %v7663_v30 = vunpack.i.l.bf16 %v7662_v55 }
  0xe8   :  { %v7672_v56 = vpop.permute.xlu1 %7671  ;;  %v692_v20 = vsel %vm678_vm5, %v676_v27, %v7664_v17  ;;  %v9511_v17 = vld [vmem:[%s12844_s2] ss:$0 sm:$0xff] }
  0xe9   :  { %v7667_v10 = vpop.permute.xlu0 %7666  ;;  %v7674_v60 = vunpack.i.h.bf16 %v7672_v56  ;;  %v7673_v22 = vunpack.i.l.bf16 %v7672_v56 }
  0xea   :  { %v7668_v7 = vunpack.i.l.bf16 %v7667_v10 }
  0xeb   :  { %v710_v4 = vsel %vm694_vm6, %v693_v1, %v7674_v60  ;;  %v709_v33 = vsel %vm694_vm6, %v692_v20, %v7673_v22 }
  0xec   :  { %v7682_v9 = vpop.permute.xlu1 %7681  ;;  %v707_v41 = vsel %vm694_vm6, %v690_v12, %v7668_v7  ;;  %v8808_v12 = vld [vmem:[%s12843_s3 + $0x60] sm:$0xff]  }
  0xed   :  { %v7677_v62 = vpop.permute.xlu0 %7676  ;;  %v7684_v63 = vunpack.i.h.bf16 %v7682_v9  ;;  %v7683_v28 = vunpack.i.l.bf16 %v7682_v9 }
  0xee   :  { %v7678_v32 = vunpack.i.l.bf16 %v7677_v62  ;;  %v7679_v34 = vunpack.i.h.bf16 %v7677_v62 }
  0xef   :  { %v727_v13 = vsel %vm711_vm7, %v710_v4, %v7684_v63  ;;  %v726_v16 = vsel %vm711_vm7, %v709_v33, %v7683_v28  ;;  %v8800_v4 = vld [vmem:[%s12843_s3 + $0x40] sm:$0xff]   ;;  %v8807_v28 = vld [vmem:[%s12843_s3 + $0x18] sm:$0xff]  }
  0xf0   :  { %v7692_v2 = vpop.permute.xlu1 %7691  ;;  %v724_v47 = vsel %vm711_vm7, %v707_v41, %v7678_v32  ;;  %6817 = vmatprep.subr.bf16.mxu1 %v8800_v4  ;;  %v8809_v33 = vld [vmem:[%s12843_s3 + $0x20] sm:$0xff]   ;;  %v8810_v41 = vld [vmem:[%s12843_s3 + $0x68] sm:$0xff]   ;;  %v8815_v4 = vld [vmem:[%s12843_s3 + $0x38] sm:$0xff]  }
  0xf1   :  { %v7694_v6 = vunpack.i.h.bf16 %v7692_v2  ;;  %v7687_v8 = vpop.permute.xlu0 %7686  ;;  %v7693_v31 = vunpack.i.l.bf16 %v7692_v2  ;;  %v8798_v2 = vld [vmem:[%s12843_s3 + $0x80] sm:$0xff]  }
  0xf2   :  { %v7688_v14 = vunpack.i.l.bf16 %v7687_v8  ;;  %v7689_v37 = vunpack.i.h.bf16 %v7687_v8  ;;  %7283 = vmatprep.subr.bf16.mxu0 %v8798_v2  ;;  %v8802_v8 = vld [vmem:[%s12843_s3 + $0x48] sm:$0xff]  }
  0xf3   :  { %v744_v38 = vsel %vm728_vm8, %v727_v13, %v7694_v6  ;;  %v743_v42 = vsel %vm728_vm8, %v726_v16, %v7693_v31  ;;  %7284 = vmatpush3.bf16.msra.mxu0 %v8798_v2  ;;  %v8801_v6 = vld [vmem:[%s12843_s3] sm:$0xff]   ;;  %v8803_v13 = vld [vmem:[%s12843_s3 + $0x8] sm:$0xff]  }
  0xf4   :  { %v556_v18 = vpop.permute.xlu1 %555  ;;  %v761_v25 = vsel %vm745_vm9, %v744_v38, %v7554_v36  ;;  %v7669_v36 = vunpack.i.h.bf16 %v7667_v10  ;;  %v741_v49 = vsel %vm728_vm8, %v724_v47, %v7688_v14  ;;  %7285 = vmatprep.subr.bf16.mxu0 %v8799_v3  ;;  %6818 = vmatpush3.bf16.msra.mxu1 %v8801_v6  ;;  %v8804_v38 = vld [vmem:[%s12843_s3 + $0x50] sm:$0xff]  }
  0xf5   :  { %v7697_v29 = vpop.permute.xlu0 %7696  ;;  %v778_v15 = vsel %vm762_vm10, %v761_v25, %v7564_v46  ;;  %v675_v46 = vsel %vm662_vm4, %v9233_v57, %v7658_v61  ;;  %v760_v51 = vsel %vm745_vm9, %v743_v42, %v556_v18  ;;  %6819 = vmatprep.subr.bf16.mxu1 %v8802_v8  ;;  %v8806_v61 = vld [vmem:[%s12843_s3 + $0x58] sm:$0xff]   ;;  %v8811_v42 = vld [vmem:[%s12843_s3 + $0x28] sm:$0xff]  }
  0xf6   :  { %v795_v24 = vsel %vm779_vm11, %v778_v15, %v7574_v58  ;;  %v7698_v44 = vunpack.i.l.bf16 %v7697_v29  ;;  %v691_v58 = vsel %vm678_vm5, %v675_v46, %v7663_v30  ;;  %v7699_v43 = vunpack.i.h.bf16 %v7697_v29 }
  0xf7   :  { %v708_v45 = vsel %vm694_vm6, %v691_v58, %v7669_v36  ;;  %7286 = vmatpush3.bf16.msra.mxu0 %v8799_v3 }
  0xf8   :  { %v601_v19 = vpop.permute.xlu1 %600  ;;  %v725_v57 = vsel %vm711_vm7, %v708_v45, %v7679_v34  ;;  %v758_v52 = vsel %vm745_vm9, %v741_v49, %v7698_v44  ;;  %6820 = vmatpush3.bf16.msra.mxu1 %v8803_v13 }
  0xf9   :  { %v7702_v40 = vpop.permute.xlu0 %7701  ;;  %v742_v50 = vsel %vm728_vm8, %v725_v57, %v7689_v37  ;;  %v777_v55 = vsel %vm762_vm10, %v760_v51, %v601_v19  ;;  %6821 = vmatprep.subr.bf16.mxu1 %v8804_v38 }
  0xfa   :  { %v7704_v39 = vunpack.i.h.bf16 %v7702_v40  ;;  %v7703_v48 = vunpack.i.l.bf16 %v7702_v40  ;;  %v759_v54 = vsel %vm745_vm9, %v742_v50, %v7699_v43 }
  0xfc   :  { %v646_v5 = vpop.permute.xlu1 %645  ;;  %v775_v9 = vsel %vm762_vm10, %v758_v52, %v7703_v48  ;;  %v776_v59 = vsel %vm762_vm10, %v759_v54, %v7704_v39  ;;  %6822 = vmatpush3.bf16.msra.mxu1 %v8805_v23  ;;  %v8812_v48 = vld [vmem:[%s12843_s3 + $0x70] sm:$0xff]  }
  0xfd   :  { %v7707_v53 = vpop.permute.xlu0 %7706  ;;  %v794_v60 = vsel %vm779_vm11, %v777_v55, %v646_v5  ;;  %6823 = vmatprep.subr.bf16.mxu1 %v8806_v61  ;;  %v8813_v55 = vld [vmem:[%s12843_s3 + $0x30] sm:$0xff]  }
  0xfe   :  { %v7709_v56 = vunpack.i.h.bf16 %v7707_v53  ;;  %v7708_v10 = vunpack.i.l.bf16 %v7707_v53  ;;  %v803_v1 = vpack.c.bf16 %v795_v24, %v794_v60 }
 0x100   :  { %v792_v62 = vsel %vm779_vm11, %v775_v9, %v7708_v10  ;;  %v793_v63 = vsel %vm779_vm11, %v776_v59, %v7709_v56  ;;  %6824 = vmatpush3.bf16.msra.mxu1 %v8807_v28  ;;  %v8814_v56 = vld [vmem:[%s12843_s3 + $0x78] sm:$0xff]  }
 0x101   :  { %v802_v0 = vpack.c.bf16 %v793_v63, %v792_v62  ;;  %6825 = vmatprep.subr.bf16.mxu1 %v8808_v12 }
 0x103   :  { %7279 = vmatprep.mubr.msk.bf16.mxu0 %vm831_vm12, %v802_v0 }
 0x104   :  { %7280 = vmatmul.mubr.msk.bf16.gmra.mrb[12].mxu0 %vm831_vm12, %v803_v1  ;;  %6826 = vmatpush3.bf16.msra.mxu1 %v8809_v33 }
 0x105   :  { %6827 = vmatprep.subr.bf16.mxu1 %v8810_v41 }
 0x108   :  { %6828 = vmatpush3.bf16.msra.mxu1 %v8811_v42 }
 0x109   :  { %6829 = vmatprep.subr.bf16.mxu1 %v8812_v48 }
 0x10c   :  { %6830 = vmatpush3.bf16.msra.mxu1 %v8813_v55 }
 0x10d   :  { %6831 = vmatprep.subr.bf16.mxu1 %v8814_v56 }
 0x110   :  { %6832 = vmatpush3.bf16.msra.mxu1 %v8815_v4 }
 0x177   :  { %v7269_v21 = vpop.f32.mrb[0].mxu0 }
 0x178   :  { %v9520_v22 = vadd.f32 %v7269_v21, %v9511_v17  ;;  %v894_v18 = vpop.f32.mrb[1].mxu0 }
 0x179   :  { %v9523_v25 = vadd.f32 %v9511_v17, %v894_v18  ;;  %v7270_v27 = vpop.f32.mrb[2].mxu0 }
 0x17a   :  { %v12875_v29 = vmax.f32 %v9520_v22, 0.0  ;;  %v9533_v15 = vadd.f32 %v7270_v27, %v9511_v17  ;;  %v897_v30 = vpop.f32.mrb[3].mxu0 }
 0x17b   :  { %v12877_v7 = vmax.f32 %v9523_v25, 0.0  ;;  %v9537_v31 = vadd.f32 %v9511_v17, %v897_v30 }
 0x17c   :  { %v991_v24 = vrot.slane %v12875_v29, 7  ;;  %v12874_v20 = vmax.f32 %v9533_v15, 0.0 }
 0x17d   :  { %v989_v36 = vrot.slane %v12877_v7, 7  ;;  %v12876_v32 = vmax.f32 %v9537_v31, 0.0 }
 0x17e   :  { %v9552_v34 = vsel %vm120_vm0, 0.0, %v991_v24  ;;  %v992_v14 = vrot.slane %v12874_v20, 7  ;;  %v1039_v19 = vsel %vm120_vm0, %v991_v24, 0.0 }
 0x17f   :  { %v9558_v46 = vsel %vm120_vm0, 0.0, %v989_v36  ;;  %v1037_v37 = vsel %vm120_vm0, %v989_v36, 0.0  ;;  %v1129_v44 = vrot.slane %v9552_v34, 2  ;;  %v990_v58 = vrot.slane %v12876_v32, 7 }
 0x180   :  { %v9562_v16 = vsel %vm120_vm0, 0.0, %v992_v14  ;;  %v9566_v40 = vsel %vm120_vm0, %v992_v14, 0.0  ;;  %v1130_v43 = vrot.slane %v1039_v19, 2  ;;  %v1081_v45 = vrot.slane %v9558_v46, 1 }
 0x181   :  { %v1133_v47 = vrot.slane %v9566_v40, 2  ;;  %v7710_v39 = vpack.i.bf16 %v9562_v16, %v9552_v34  ;;  %v1082_v57 = vrot.slane %v1037_v37, 1  ;;  %v9584_v49 = vsel %vm120_vm0, 0.0, %v990_v58 }
 0x182   :  { %v1038_v5 = vsel %vm120_vm0, %v990_v58, 0.0  ;;  %v1132_v50 = vrot.slane %v9562_v16, 2  ;;  %v1126_v51 = vrot.slane %v9584_v49, 2  ;;  %v7715_v53 = vpack.i.bf16 %v9552_v34, %v9584_v49 }
 0x183   :  { %v1127_v52 = vrot.slane %v1038_v5, 2  ;;  %7711 = vrot.lane.b32.xlu1 %v7710_v39, %s8915_s19  ;;  %v1131_v9 = vsel %vm231_vm1, %v1129_v44, %v1130_v43  ;;  %v7720_v59 = vpack.i.bf16 %v9584_v49, %v9558_v46  ;;  %v1123_v60 = vrot.slane %v9558_v46, 2 }
 0x184   :  { %v9593_v54 = vsel %vm231_vm1, %v1132_v50, %v1133_v47  ;;  %7716 = vrot.lane.b32.xlu0 %v7715_v53, %s8916_s22  ;;  %v1124_v62 = vrot.slane %v1037_v37, 2  ;;  %v9608_v0 = vsel %vm185_vm2, %v1081_v45, %v1082_v57  ;;  %v1085_v2 = vrot.slane %v1038_v5, 1 }
 0x185   :  { %v1128_v10 = vsel %vm231_vm1, %v1126_v51, %v1127_v52  ;;  %v7735_v1 = vpack.i.bf16 %v9593_v54, %v1131_v9  ;;  %v1084_v3 = vrot.slane %v9584_v49, 1  ;;  %v7725_v6 = vpack.i.bf16 %v9608_v0, %v9056_v35 }
 0x186   :  { %v1586_v63 = vpack.c.bf16 %v1131_v9, %v1128_v10  ;;  %v1088_v8 = vrot.slane %v1039_v19, 1  ;;  %v1125_v13 = vsel %vm231_vm1, %v1123_v60, %v1124_v62  ;;  %v1087_v38 = vrot.slane %v9552_v34, 1 }
 0x187   :  { %7721 = vrot.lane.b32.xlu1 %v7720_v59, %s8915_s19  ;;  %v7740_v23 = vpack.i.bf16 %v1128_v10, %v1125_v13  ;;  %v9624_v21 = vsel %vm185_vm2, %v1084_v3, %v1085_v2  ;;  %v7730_v18 = vpack.i.bf16 %v1125_v13, %v9046_v26  ;;  %v7755_v28 = vpack.i.bf16 %v1131_v9, %v1128_v10 }
 0x188   :  { %7287 = vmatprep.mubr.msk.bf16.mxu0 %vm779_vm11, %v1586_v63  ;;  %7736 = vrot.lane.b32.xlu0 %v7735_v1, %s8914_s24  ;;  %v9629_v27 = vsel %vm185_vm2, %v1087_v38, %v1088_v8  ;;  %v1091_v38 = vrot.slane %v9566_v40, 1 }
 0x189   :  { %v7745_v61 = vpack.i.bf16 %v9629_v27, %v9624_v21 }
 0x18b   :  { %7726 = vrot.lane.b32.xlu1 %v7725_v6, %s8914_s24 }
 0x18c   :  { %7741 = vrot.lane.b32.xlu0 %v7740_v23, %s8914_s24 }
 0x18f   :  { %7731 = vrot.lane.b32.xlu1 %v7730_v18, %s8916_s22  ;;  %v1090_v18 = vrot.slane %v9562_v16, 1 }
 0x190   :  { %7746 = vrot.lane.b32.xlu0 %v7745_v61, %s8915_s19 }
 0x193   :  { %7751 = vrot.lane.b32.xlu1 %v7745_v61, %s8914_s24 }
 0x197   :  { %v7273_v30 = vpop.f32.mrb[4].mxu0  ;;  %7756 = vrot.lane.b32.xlu1 %v7755_v28, %s8916_s22 }
 0x198   :  { %v9637_v24 = vadd.f32 %v7273_v30, %v9511_v17  ;;  %v910_v36 = vpop.f32.mrb[5].mxu0 }
 0x199   :  { %v9641_v12 = vadd.f32 %v9511_v17, %v910_v36  ;;  %v7274_v33 = vpop.f32.mrb[6].mxu0 }
 0x19a   :  { %v12871_v14 = vmax.f32 %v9637_v24, 0.0  ;;  %v9645_v19 = vadd.f32 %v7274_v33, %v9511_v17  ;;  %v913_v37 = vpop.f32.mrb[7].mxu0 }
 0x19b   :  { %v12873_v44 = vmax.f32 %v9641_v12, 0.0  ;;  %v9649_v58 = vadd.f32 %v9511_v17, %v913_v37 }
 0x19c   :  { %v995_v41 = vrot.slane %v12871_v14, 7  ;;  %v12870_v42 = vmax.f32 %v9645_v19, 0.0 }
 0x19d   :  { %v993_v43 = vrot.slane %v12873_v44, 7  ;;  %v12872_v47 = vmax.f32 %v9649_v58, 0.0 }
 0x19e   :  { %v996_v45 = vrot.slane %v12870_v42, 7  ;;  %v9660_v39 = vsel %vm120_vm0, 0.0, %v995_v41  ;;  %v1043_v57 = vsel %vm120_vm0, %v995_v41, 0.0  ;;  %v9707_v41 = vsel %vm185_vm2, %v1090_v18, %v1091_v38 }
 0x19f   :  { %v9663_v48 = vsel %vm120_vm0, 0.0, %v993_v43  ;;  %v1041_v5 = vsel %vm120_vm0, %v993_v43, 0.0  ;;  %v1141_v53 = vrot.slane %v9660_v39, 2  ;;  %v994_v56 = vrot.slane %v12872_v47, 7 }
 0x1a0   :  { %v1135_v50 = vrot.slane %v9663_v48, 2  ;;  %v1028_v51 = vsel %vm120_vm0, 0.0, %v996_v45  ;;  %v1136_v52 = vrot.slane %v1041_v5, 2  ;;  %v1044_v55 = vsel %vm120_vm0, %v996_v45, 0.0 }
 0x1a1   :  { %v7760_v10 = vpack.i.bf16 %v9663_v48, %v9562_v16  ;;  %v1142_v9 = vrot.slane %v1043_v57, 2  ;;  %v1094_v59 = vrot.slane %v1041_v5, 1  ;;  %v7770_v62 = vpack.i.bf16 %v1028_v51, %v9660_v39 }
 0x1a2   :  { %v9676_v60 = vsel %vm231_vm1, %v1135_v50, %v1136_v52  ;;  %v9682_v1 = vsel %vm120_vm0, 0.0, %v994_v56  ;;  %v1042_v2 = vsel %vm120_vm0, %v994_v56, 0.0  ;;  %v1093_v3 = vrot.slane %v9663_v48, 1 }
 0x1a3   :  { %v1589_v63 = vpack.c.bf16 %v9676_v60, %v9593_v54  ;;  %7761 = vrot.lane.b32.xlu0 %v7760_v10, %s8916_s22  ;;  %v1191_v4 = vrot.slane %v1028_v51, 2  ;;  %v1192_v6 = vrot.slane %v1044_v55, 2  ;;  %v1138_v8 = vrot.slane %v9682_v1, 2  ;;  %7771 = vrot.lane.b32.xlu1 %v7770_v62, %s8915_s19 }
 0x1a4   :  { %v1139_v13 = vrot.slane %v1042_v2, 2  ;;  %v7765_v23 = vpack.i.bf16 %v9020_v11, %v1028_v51  ;;  %v1143_v28 = vsel %vm231_vm1, %v1141_v53, %v1142_v9  ;;  %v7780_v30 = vpack.i.bf16 %v9682_v1, %v9663_v48 }
 0x1a5   :  { %7288 = vmatmul.mubr.msk.bf16.vlgmr.msra.gmra.mrb[16].mxu0 %vm779_vm11, %v1589_v63  ;;  %v9699_v33 = vsel %vm185_vm2, %v1093_v3, %v1094_v59  ;;  %v1193_v40 = vsel %vm231_vm1, %v1191_v4, %v1192_v6  ;;  %v7775_v37 = vpack.i.bf16 %v9660_v39, %v9682_v1  ;;  %v1097_v45 = vrot.slane %v1042_v2, 1 }
 0x1a6   :  { %v1140_v61 = vsel %vm231_vm1, %v1138_v8, %v1139_v13  ;;  %v7790_v43 = vpack.i.bf16 %v9699_v33, %v9707_v41  ;;  %v1595_v5 = vpack.c.bf16 %v9046_v26, %v1193_v40  ;;  %v1096_v50 = vrot.slane %v9682_v1, 1 }
 0x1a7   :  { %7766 = vrot.lane.b32.xlu0 %v7765_v23, %s8916_s22  ;;  %v1592_v36 = vpack.c.bf16 %v1143_v28, %v1140_v61  ;;  %7781 = vrot.lane.b32.xlu1 %v7780_v30, %s8915_s19  ;;  %v1100_v52 = vrot.slane %v1043_v57, 1  ;;  %v1099_v53 = vrot.slane %v9660_v39, 1  ;;  %v1169_v56 = vrot.slane %v1028_v51, 1 }
 0x1a8   :  { %v1170_v10 = vrot.slane %v1044_v55, 1  ;;  %v7795_v9 = vpack.i.bf16 %v9676_v60, %v9593_v54  ;;  %v9721_v59 = vsel %vm185_vm2, %v1096_v50, %v1097_v45  ;;  %v7800_v62 = vpack.i.bf16 %v1193_v40, %v1143_v28 }
 0x1a9   :  { %7291 = vmatprep.mubr.msk.bf16.mxu0 %vm779_vm11, %v1592_v36  ;;  %v9725_v63 = vsel %vm185_vm2, %v1099_v53, %v1100_v52  ;;  %v7825_v2 = vpack.i.bf16 %v1143_v28, %v1140_v61  ;;  %v7810_v23 = vpack.i.bf16 %v1140_v61, %v9676_v60 }
 0x1aa   :  { %v7820_v57 = vpack.i.bf16 %v9725_v63, %v9721_v59  ;;  %v9730_v51 = vsel %vm185_vm2, %v1169_v56, %v1170_v10 }
 0x1ab   :  { %7776 = vrot.lane.b32.xlu0 %v7775_v37, %s8916_s22  ;;  %7791 = vrot.lane.b32.xlu1 %v7790_v43, %s8914_s24  ;;  %v7805_v54 = vpack.i.bf16 %v9056_v35, %v9730_v51 }
 0x1ad   :  { %7292 = vmatmul.mubr.msk.bf16.gmra.mrb[20].mxu0 %vm779_vm11, %v1595_v5 }
 0x1af   :  { %7786 = vrot.lane.b32.xlu0 %v7790_v43, %s8915_s19  ;;  %7796 = vrot.lane.b32.xlu1 %v7795_v9, %s8916_s22 }
 0x1b3   :  { %7801 = vrot.lane.b32.xlu0 %v7800_v62, %s8914_s24  ;;  %7821 = vrot.lane.b32.xlu1 %v7820_v57, %s8914_s24 }
 0x1b7   :  { %v7277_v55 = vpop.f32.mrb[8].mxu0  ;;  %7806 = vrot.lane.b32.xlu0 %v7805_v54, %s8915_s19  ;;  %7826 = vrot.lane.b32.xlu1 %v7825_v2, %s8916_s22 }
 0x1b8   :  { %v9738_v3 = vadd.f32 %v7277_v55, %v9511_v17  ;;  %v926_v4 = vpop.f32.mrb[9].mxu0 }
 0x1b9   :  { %v9742_v6 = vadd.f32 %v9511_v17, %v926_v4  ;;  %v7278_v8 = vpop.f32.mrb[10].mxu0 }
 0x1ba   :  { %12913 = vst [vmem:[#allocation2_spill] sm:$0xff] %v9738_v3  ;;  %v12864_v13 = vmax.f32 %v9738_v3, 0.0  ;;  %v9746_v38 = vadd.f32 %v7278_v8, %v9511_v17  ;;  %v929_v35 = vpop.f32.mrb[11].mxu0 }
 0x1bb   :  { %v12867_v18 = vmax.f32 %v9742_v6, 0.0  ;;  %v9751_v28 = vadd.f32 %v9511_v17, %v929_v35  ;;  %7811 = vrot.lane.b32.xlu0 %v7810_v23, %s8914_s24 }
 0x1bc   :  { %12914 = vst [vmem:[#allocation3_spill] sm:$0xff] %v9746_v38  ;;  %v999_v30 = vrot.slane %v12864_v13, 7  ;;  %v12863_v36 = vmax.f32 %v9746_v38, 0.0 }
 0x1bd   :  { %v997_v40 = vrot.slane %v12867_v18, 7  ;;  %v12865_v60 = vmax.f32 %v9751_v28, 0.0 }
 0x1be   :  { %v1000_v37 = vrot.slane %v12863_v36, 7  ;;  %v9763_v61 = vsel %vm120_vm0, 0.0, %v999_v30  ;;  %v1047_v43 = vsel %vm120_vm0, %v999_v30, 0.0 }
 0x1bf   :  { %v9767_v45 = vsel %vm120_vm0, 0.0, %v997_v40  ;;  %v1045_v5 = vsel %vm120_vm0, %v997_v40, 0.0  ;;  %7816 = vrot.lane.b32.xlu0 %v7820_v57, %s8915_s19  ;;  %v1150_v52 = vrot.slane %v9763_v61, 2  ;;  %v1151_v53 = vrot.slane %v1047_v43, 2 }
 0x1c0   :  { %v9771_v50 = vsel %vm120_vm0, 0.0, %v1000_v37  ;;  %v998_v56 = vrot.slane %v12865_v60, 7  ;;  %v1102_v9 = vrot.slane %v9767_v45, 1  ;;  %v1103_v62 = vrot.slane %v1045_v5, 1 }
 0x1c1   :  { %v7830_v10 = vpack.i.bf16 %v9771_v50, %v9763_v61  ;;  %v1144_v54 = vrot.slane %v9767_v45, 2  ;;  %v1145_v55 = vrot.slane %v1045_v5, 2  ;;  %v9790_v23 = vsel %vm120_vm0, %v1000_v37, 0.0 }
 0x1c2   :  { %v9782_v2 = vsel %vm120_vm0, 0.0, %v998_v56  ;;  %v1046_v57 = vsel %vm120_vm0, %v998_v56, 0.0  ;;  %v9804_v13 = vsel %vm185_vm2, %v1102_v9, %v1103_v62  ;;  %v1109_v37 = vrot.slane %v1047_v43, 1 }
 0x1c3   :  { %7831 = vrot.lane.b32.xlu1 %v7830_v10, %s8915_s19  ;;  %v1147_v4 = vrot.slane %v9782_v2, 2  ;;  %v1148_v8 = vrot.slane %v1046_v57, 2  ;;  %v7835_v35 = vpack.i.bf16 %v9763_v61, %v9782_v2  ;;  %v1106_v30 = vrot.slane %v1046_v57, 1 }
 0x1c4   :  { %v7840_v40 = vpack.i.bf16 %v9782_v2, %v9767_v45  ;;  %v1105_v5 = vrot.slane %v9782_v2, 1  ;;  %v9800_v10 = vsel %vm231_vm1, %v1150_v52, %v1151_v53  ;;  %v1146_v36 = vsel %vm231_vm1, %v1144_v54, %v1145_v55 }
 0x1c5   :  { %7836 = vrot.lane.b32.xlu0 %v7835_v35, %s8916_s22  ;;  %v9797_v56 = vsel %vm231_vm1, %v1147_v4, %v1148_v8  ;;  %v1108_v35 = vrot.slane %v9763_v61, 1  ;;  %v1154_v4 = vrot.slane %v9790_v23, 2  ;;  %v7845_v52 = vpack.i.bf16 %v9800_v10, %v9804_v13 }
 0x1c6   :  { %v1598_v57 = vpack.c.bf16 %v9800_v10, %v9797_v56  ;;  %v7855_v60 = vpack.i.bf16 %v9797_v56, %v1146_v36  ;;  %v9816_v53 = vsel %vm185_vm2, %v1105_v5, %v1106_v30  ;;  %v1153_v43 = vrot.slane %v9771_v50, 2 }
 0x1c7   :  { %7841 = vrot.lane.b32.xlu1 %v7840_v40, %s8915_s19  ;;  %v9822_v9 = vsel %vm185_vm2, %v1108_v35, %v1109_v37  ;;  %v7850_v54 = vpack.i.bf16 %v9771_v50, %v1146_v36 }
 0x1c8   :  { %7295 = vmatprep.mubr.msk.bf16.mxu0 %vm779_vm11, %v1598_v57  ;;  %v7860_v62 = vpack.i.bf16 %v9822_v9, %v9816_v53  ;;  %v1155_v55 = vsel %vm231_vm1, %v1153_v43, %v1154_v4 }
 0x1c9   :  { %7856 = vrot.lane.b32.xlu0 %v7855_v60, %s8914_s24  ;;  %v7865_v8 = vpack.i.bf16 %v9816_v53, %v1155_v55 }
 0x1cb   :  { %7846 = vrot.lane.b32.xlu1 %v7845_v52, %s8914_s24 }
 0x1cd   :  { %7861 = vrot.lane.b32.xlu0 %v7860_v62, %s8915_s19 }
 0x1cf   :  { %7851 = vrot.lane.b32.xlu1 %v7850_v54, %s8916_s22 }
 0x1d1   :  { %7866 = vrot.lane.b32.xlu0 %v7865_v8, %s8914_s24 }
 0x1d7   :  { %v7281_v60 = vpop.f32.mrb[12].mxu0 }
 0x1d8   :  { %v9833_v30 = vadd.f32 %v7281_v60, %v9511_v17  ;;  %v942_v40 = vpop.f32.mrb[13].mxu0 }
 0x1d9   :  { %v9836_v5 = vadd.f32 %v9511_v17, %v942_v40  ;;  %v7282_v37 = vpop.f32.mrb[14].mxu0 }
 0x1da   :  { %12915 = vst [vmem:[#allocation4_spill] sm:$0xff] %v9833_v30  ;;  %v12866_v36 = vmax.f32 %v9833_v30, 0.0  ;;  %v9840_v57 = vadd.f32 %v7282_v37, %v9511_v17  ;;  %v945_v35 = vpop.f32.mrb[15].mxu0 }
 0x1db   :  { %12916 = vst [vmem:[#allocation5_spill] sm:$0xff] %v9836_v5  ;;  %v12868_v4 = vmax.f32 %v9836_v5, 0.0  ;;  %v9844_v52 = vadd.f32 %v9511_v17, %v945_v35 }
 0x1dc   :  { %12917 = vst [vmem:[#allocation6_spill] sm:$0xff] %v9840_v57  ;;  %v1003_v43 = vrot.slane %v12866_v36, 7  ;;  %v12869_v62 = vmax.f32 %v9840_v57, 0.0 }
 0x1dd   :  { %12918 = vst [vmem:[#allocation7_spill] sm:$0xff] %v9844_v52  ;;  %v1001_v54 = vrot.slane %v12868_v4, 7  ;;  %v12879_v60 = vmax.f32 %v9844_v52, 0.0 }
 0x1de   :  { %v1004_v8 = vrot.slane %v12869_v62, 7  ;;  %v9855_v40 = vsel %vm120_vm0, 0.0, %v1003_v43  ;;  %v1051_v35 = vsel %vm120_vm0, %v1003_v43, 0.0 }
 0x1df   :  { %v9858_v37 = vsel %vm120_vm0, 0.0, %v1001_v54  ;;  %v1049_v17 = vsel %vm120_vm0, %v1001_v54, 0.0  ;;  %v1162_v42 = vrot.slane %v9855_v40, 2  ;;  %v1002_v14 = vrot.slane %v12879_v60, 7 }
 0x1e0   :  { %v1156_v36 = vrot.slane %v9858_v37, 2  ;;  %v1157_v18 = vrot.slane %v1049_v17, 2  ;;  %v9864_v4 = vsel %vm120_vm0, 0.0, %v1004_v8  ;;  %v9867_v62 = vsel %vm120_vm0, %v1004_v8, 0.0 }
 0x1e1   :  { %v7870_v47 = vpack.i.bf16 %v1155_v55, %v9855_v40  ;;  %v1163_v44 = vrot.slane %v1051_v35, 2  ;;  %v1114_v43 = vrot.slane %v9858_v37, 1  ;;  %v1115_v20 = vrot.slane %v1049_v17, 1 }
 0x1e2   :  { %v1158_v54 = vsel %vm231_vm1, %v1156_v36, %v1157_v18  ;;  %v1194_v32 = vrot.slane %v9864_v4, 2  ;;  %v1195_v7 = vrot.slane %v9867_v62, 2  ;;  %v9878_v8 = vsel %vm120_vm0, 0.0, %v1002_v14 }
 0x1e3   :  { %v1601_v29 = vpack.c.bf16 %v1158_v54, %v1155_v55  ;;  %v1050_v57 = vsel %vm120_vm0, %v1002_v14, 0.0  ;;  %7871 = vrot.lane.b32.xlu0 %v7870_v47, %s8916_s22  ;;  %v1111_v60 = vrot.slane %v9771_v50, 1  ;;  %v1112_v18 = vrot.slane %v9790_v23, 1 }
 0x1e4   :  { %v1159_v36 = vrot.slane %v9878_v8, 2  ;;  %v1160_v30 = vrot.slane %v1050_v57, 2  ;;  %v7880_v55 = vpack.i.bf16 %v9878_v8, %v9800_v10  ;;  %v7875_v17 = vpack.i.bf16 %v9797_v56, %v9858_v37 }
 0x1e5   :  { %7296 = vmatmul.mubr.msk.bf16.gmra.mrb[24].mxu0 %vm779_vm11, %v1601_v29  ;;  %v1164_v14 = vsel %vm231_vm1, %v1162_v42, %v1163_v44  ;;  %v9893_v47 = vsel %vm185_vm2, %v1114_v43, %v1115_v20  ;;  %v1196_v29 = vsel %vm231_vm1, %v1194_v32, %v1195_v7  ;;  %v9899_v5 = vsel %vm185_vm2, %v1111_v60, %v1112_v18 }
 0x1e6   :  { %v1161_v52 = vsel %vm231_vm1, %v1159_v36, %v1160_v30  ;;  %7881 = vrot.lane.b32.xlu1 %v7880_v55, %s8916_s22  ;;  %v7885_v56 = vpack.i.bf16 %v1158_v54, %v9822_v9  ;;  %v7895_v44 = vpack.i.bf16 %v9893_v47, %v9899_v5  ;;  %v1117_v20 = vrot.slane %v9878_v8, 1 }
 0x1e7   :  { %7876 = vrot.lane.b32.xlu0 %v7875_v17, %s8916_s22  ;;  %v1604_v23 = vpack.c.bf16 %v1164_v14, %v1161_v52  ;;  %v1118_v42 = vrot.slane %v1050_v57, 1  ;;  %v1607_v10 = vpack.c.bf16 %v9046_v26, %v1196_v29  ;;  %v1120_v7 = vrot.slane %v9855_v40, 1 }
 0x1e8   :  { %v1121_v32 = vrot.slane %v1051_v35, 1  ;;  %v7890_v30 = vpack.i.bf16 %v9878_v8, %v9858_v37  ;;  %v7915_v60 = vpack.i.bf16 %v9899_v5, %v1161_v52  ;;  %v7900_v18 = vpack.i.bf16 %v1164_v14, %v9893_v47 }
 0x1e9   :  { %7299 = vmatprep.mubr.msk.bf16.mxu0 %vm779_vm11, %v1604_v23  ;;  %v9915_v43 = vsel %vm185_vm2, %v1117_v20, %v1118_v42  ;;  %v7905_v55 = vpack.i.bf16 %v9864_v4, %v1158_v54  ;;  %v1172_v23 = vrot.slane %v9864_v4, 1  ;;  %v7930_v42 = vpack.i.bf16 %v1164_v14, %v1161_v52 }
 0x1ea   :  { %7886 = vrot.lane.b32.xlu1 %v7885_v56, %s8914_s24  ;;  %v9920_v57 = vsel %vm185_vm2, %v1120_v7, %v1121_v32  ;;  %v7925_v17 = vpack.i.bf16 %v9915_v43, %v1196_v29  ;;  %v1173_v56 = vrot.slane %v9867_v62, 1 }
 0x1eb   :  { %7896 = vrot.lane.b32.xlu0 %v7895_v44, %s8915_s19  ;;  %v7920_v35 = vpack.i.bf16 %v9920_v57, %v9915_v43 }
 0x1ec   :  { %v9938_v7 = vsel %vm185_vm2, %v1172_v23, %v1173_v56 }
 0x1ed   :  { %7300 = vmatmul.mubr.msk.bf16.gmra.mrb[28].mxu0 %vm779_vm11, %v1607_v10  ;;  %v7910_v62 = vpack.i.bf16 %v9855_v40, %v9938_v7 }
 0x1ee   :  { %7891 = vrot.lane.b32.xlu1 %v7890_v30, %s8915_s19 }
 0x1ef   :  { %7916 = vrot.lane.b32.xlu0 %v7915_v60, %s8914_s24 }
 0x1f2   :  { %7901 = vrot.lane.b32.xlu1 %v7900_v18, %s8914_s24 }
 0x1f3   :  { %7921 = vrot.lane.b32.xlu0 %v7920_v35, %s8915_s19 }
 0x1f5   :  { %v9927_v36 = vpop.permute.xlu1 %7711 }
 0x1f6   :  { %v7717_v44 = vpop.permute.xlu0 %7716  ;;  %7906 = vrot.lane.b32.xlu1 %v7905_v55, %s8916_s22 }
 0x1f7   :  { %7926 = vrot.lane.b32.xlu0 %v7925_v17, %s8914_s24  ;;  %v7719_v60 = vunpack.i.h.bf16 %v7717_v44  ;;  %v7718_v18 = vunpack.i.l.bf16 %v7717_v44 }
 0x1f9   :  { %v7722_v20 = vpop.permute.xlu1 %7721 }
 0x1fa   :  { %v9935_v10 = vpop.permute.xlu0 %7736  ;;  %1240 = vrot.lane.b32.xlu1 %v9920_v57, %s8914_s24 }
 0x1fb   :  { %7931 = vrot.lane.b32.xlu0 %v7930_v42, %s8916_s22  ;;  %v7724_v42 = vunpack.i.h.bf16 %v7722_v20 }
 0x1fd   :  { %v7727_v54 = vpop.permute.xlu1 %7726 }
 0x1fe   :  { %v7729_v29 = vunpack.i.h.bf16 %v7727_v54  ;;  %v7728_v32 = vunpack.i.l.bf16 %v7727_v54  ;;  %v7742_v30 = vpop.permute.xlu0 %7741  ;;  %7911 = vrot.lane.b32.xlu1 %v7910_v62, %s8915_s19  ;;  %v7723_v54 = vunpack.i.l.bf16 %v7722_v20 }
 0x1ff   :  { %1332 = vrot.lane.b32.xlu0 %v9864_v4, %s8915_s19  ;;  %v7744_v52 = vunpack.i.h.bf16 %v7742_v30  ;;  %v7743_v14 = vunpack.i.l.bf16 %v7742_v30 }
 0x200   :  { %v1489_v4 = vsel %vm779_vm11, %v9558_v46, %v7729_v29  ;;  %v1488_v62 = vsel %vm779_vm11, %v9020_v11, %v7728_v32 }
 0x201   :  { %v7732_v35 = vpop.permute.xlu1 %7731  ;;  %v1536_v23 = vsel %vm779_vm11, %v9608_v0, %v7743_v14  ;;  %v1537_v56 = vsel %vm779_vm11, %v9624_v21, %v7744_v52 }
 0x202   :  { %v7734_v55 = vunpack.i.h.bf16 %v7732_v35  ;;  %v7733_v17 = vunpack.i.l.bf16 %v7732_v35  ;;  %v7747_v44 = vpop.permute.xlu0 %7746  ;;  %v1552_v0 = vsel %vm1503_vm13, %v1536_v23, %v7718_v18  ;;  %v1553_v21 = vsel %vm1503_vm13, %v1537_v56, %v7719_v60 }
 0x203   :  { %v7749_v38 = vunpack.i.h.bf16 %v7747_v44  ;;  %v7748_v35 = vunpack.i.l.bf16 %v7747_v44 }
 0x204   :  { %v9957_v30 = vsel %vm1503_vm13, %v1488_v62, %v7733_v17  ;;  %v1505_v3 = vsel %vm1503_vm13, %v1489_v4, %v7734_v55  ;;  %v7738_v62 = vunpack.i.l.bf16 %v9935_v10 }
 0x205   :  { %v1520_v20 = vsel %vm1519_vm14, %v9957_v30, %v7723_v54  ;;  %v1521_v46 = vsel %vm1519_vm14, %v1505_v3, %v7724_v42  ;;  %v1568_v29 = vsel %vm1519_vm14, %v1552_v0, %v7748_v35  ;;  %v1569_v11 = vsel %vm1519_vm14, %v1553_v21, %v7749_v38  ;;  %v7752_v14 = vpop.permute.xlu1 %7751 }
 0x206   :  { %v1585_v32 = vpack.c.bf16 %v1569_v11, %v1568_v29  ;;  %v1584_v52 = vpack.c.bf16 %v1521_v46, %v1520_v20  ;;  %v7754_v23 = vunpack.i.h.bf16 %v7752_v14  ;;  %v7753_v56 = vunpack.i.l.bf16 %v7752_v14 }
 0x207   :  { %v7739_v38 = vunpack.i.h.bf16 %v9935_v10  ;;  %v7714_v11 = vunpack.i.h.bf16 %v9927_v36 }
 0x208   :  { %1815 = vmatprep.mubr.bf16.mxu1 %v1585_v32  ;;  %v1491_v35 = vsel %vm779_vm11, %v9552_v34, %v7754_v23  ;;  %v1490_v0 = vsel %vm779_vm11, %v9584_v49, %v7753_v56  ;;  %v7713_v32 = vunpack.i.l.bf16 %v9927_v36  ;;  %v1538_v34 = vsel %vm779_vm11, %v9629_v27, %v7738_v62 }
 0x209   :  { %1816 = vmatmul.mubr.bf16.vlgmr.msra.gmra.mrb[0].mxu1 %v1584_v52  ;;  %v7757_v17 = vpop.permute.xlu1 %7756  ;;  %v1539_v10 = vsel %vm779_vm11, %v9707_v41, %v7739_v38 }
 0x20a   :  { %v7759_v3 = vunpack.i.h.bf16 %v7757_v17  ;;  %v7758_v42 = vunpack.i.l.bf16 %v7757_v17 }
 0x20c   :  { %v1506_v46 = vsel %vm1503_vm13, %v1490_v0, %v7758_v42  ;;  %v1507_v29 = vsel %vm1503_vm13, %v1491_v35, %v7759_v3 }
 0x20d   :  { %v1522_v23 = vsel %vm1519_vm14, %v1506_v46, %v7713_v32  ;;  %v1523_v56 = vsel %vm1519_vm14, %v1507_v29, %v7714_v11 }
 0x20e   :  { %v1587_v38 = vpack.c.bf16 %v1523_v56, %v1522_v23 }
 0x215   :  { %v7762_v55 = vpop.permute.xlu0 %7761  ;;  %v9967_v4 = vpop.permute.xlu1 %7771 }
 0x216   :  { %v7764_v21 = vunpack.i.h.bf16 %v7762_v55  ;;  %v7763_v20 = vunpack.i.l.bf16 %v7762_v55 }
 0x218   :  { %v1554_v49 = vsel %vm1503_vm13, %v1538_v34, %v7763_v20  ;;  %v1555_v55 = vsel %vm1503_vm13, %v1539_v10, %v7764_v21 }
 0x219   :  { %v9969_v18 = vpop.permute.xlu0 %7766  ;;  %v9971_v60 = vpop.permute.xlu1 %7781 }
 0x21a   :  { %v9996_v29 = vunpack.i.h.bf16 %v9969_v18  ;;  %v7768_v11 = vunpack.i.l.bf16 %v9969_v18  ;;  %v7784_v32 = vunpack.i.h.bf16 %v9971_v60  ;;  %v7783_v34 = vunpack.i.l.bf16 %v9971_v60 }
 0x21d   :  { %v9973_v54 = vpop.permute.xlu0 %7776  ;;  %v7792_v44 = vpop.permute.xlu1 %7791 }
 0x21e   :  { %v7794_v27 = vunpack.i.h.bf16 %v7792_v44  ;;  %v7793_v62 = vunpack.i.l.bf16 %v7792_v44  ;;  %v7778_v18 = vunpack.i.l.bf16 %v9973_v54 }
 0x220   :  { %v1492_v44 = vsel %vm779_vm11, %v9562_v16, %v7793_v62 }
 0x221   :  { %v7787_v52 = vpop.permute.xlu0 %7786  ;;  %v7797_v3 = vpop.permute.xlu1 %7796 }
 0x222   :  { %v7789_v14 = vunpack.i.h.bf16 %v7787_v52  ;;  %v7788_v17 = vunpack.i.l.bf16 %v7787_v52  ;;  %v7799_v20 = vunpack.i.h.bf16 %v7797_v3  ;;  %v7798_v52 = vunpack.i.l.bf16 %v7797_v3 }
 0x223   :  { %v7779_v3 = vunpack.i.h.bf16 %v9973_v54 }
 0x224   :  { %v1570_v36 = vsel %vm1519_vm14, %v1554_v49, %v7788_v17  ;;  %v1571_v42 = vsel %vm1519_vm14, %v1555_v55, %v7789_v14  ;;  %v1493_v14 = vsel %vm779_vm11, %v9663_v48, %v7794_v27  ;;  %v1508_v23 = vsel %vm1503_vm13, %v1492_v44, %v7798_v52 }
 0x225   :  { %v7802_v35 = vpop.permute.xlu0 %7801  ;;  %v1588_v41 = vpack.c.bf16 %v1571_v42, %v1570_v36  ;;  %v7822_v21 = vpop.permute.xlu1 %7821  ;;  %v1509_v56 = vsel %vm1503_vm13, %v1493_v14, %v7799_v20  ;;  %v1524_v54 = vsel %vm1519_vm14, %v1508_v23, %v7783_v34 }
 0x226   :  { %v7804_v10 = vunpack.i.h.bf16 %v7802_v35  ;;  %v7803_v46 = vunpack.i.l.bf16 %v7802_v35  ;;  %v7823_v27 = vunpack.i.l.bf16 %v7822_v21 }
 0x227   :  { %1823 = vmatprep.mubr.bf16.mxu1 %v1588_v41 }
 0x228   :  { %1824 = vmatmul.mubr.bf16.gmra.mrb[4].mxu1 %v1587_v38  ;;  %v1543_v60 = vsel %vm779_vm11, %v9730_v51, %v7804_v10  ;;  %v1542_v48 = vsel %vm779_vm11, %v9725_v63, %v7803_v46  ;;  %v7824_v38 = vunpack.i.h.bf16 %v7822_v21  ;;  %v1525_v51 = vsel %vm1519_vm14, %v1509_v56, %v7784_v32 }
 0x229   :  { %v7807_v0 = vpop.permute.xlu0 %7806  ;;  %v7827_v42 = vpop.permute.xlu1 %7826  ;;  %v1558_v63 = vsel %vm1503_vm13, %v1542_v48, %v7768_v11  ;;  %v7773_v48 = vunpack.i.l.bf16 %v9967_v4 }
 0x22a   :  { %v10013_v36 = vunpack.i.h.bf16 %v7807_v0  ;;  %v7808_v16 = vunpack.i.l.bf16 %v7807_v0  ;;  %v1559_v0 = vsel %vm1503_vm13, %v1543_v60, %v9996_v29  ;;  %v7829_v10 = vunpack.i.h.bf16 %v7827_v42 }
 0x22b   :  { %v7828_v46 = vunpack.i.l.bf16 %v7827_v42  ;;  %v7774_v60 = vunpack.i.h.bf16 %v9967_v4 }
 0x22c   :  { %v1574_v34 = vsel %vm1519_vm14, %v1558_v63, %v7808_v16  ;;  %v1575_v32 = vsel %vm1519_vm14, %v1559_v0, %v10013_v36 }
 0x22d   :  { %v7812_v17 = vpop.permute.xlu0 %7811  ;;  %v1594_v23 = vpack.c.bf16 %v1575_v32, %v1574_v34 }
 0x22e   :  { %v7814_v49 = vunpack.i.h.bf16 %v7812_v17  ;;  %v7813_v55 = vunpack.i.l.bf16 %v7812_v17  ;;  %v1590_v17 = vpack.c.bf16 %v1525_v51, %v1524_v54 }
 0x230   :  { %v1541_v35 = vsel %vm779_vm11, %v9721_v59, %v7814_v49  ;;  %v1540_v41 = vsel %vm779_vm11, %v9699_v33, %v7813_v55  ;;  %v1495_v49 = vsel %vm779_vm11, %v9660_v39, %v7824_v38  ;;  %v1494_v55 = vsel %vm779_vm11, %v9682_v1, %v7823_v27 }
 0x231   :  { %v7817_v62 = vpop.permute.xlu0 %7816  ;;  %v1556_v59 = vsel %vm1503_vm13, %v1540_v41, %v7778_v18  ;;  %v1557_v33 = vsel %vm1503_vm13, %v1541_v35, %v7779_v3  ;;  %v1510_v3 = vsel %vm1503_vm13, %v1494_v55, %v7828_v46  ;;  %v1511_v18 = vsel %vm1503_vm13, %v1495_v49, %v7829_v10 }
 0x232   :  { %v7819_v20 = vunpack.i.h.bf16 %v7817_v62  ;;  %v7818_v52 = vunpack.i.l.bf16 %v7817_v62  ;;  %v1526_v42 = vsel %vm1519_vm14, %v1510_v3, %v7773_v48  ;;  %v1527_v39 = vsel %vm1519_vm14, %v1511_v18, %v7774_v60 }
 0x233   :  { %v1593_v27 = vpack.c.bf16 %v1527_v39, %v1526_v42 }
 0x234   :  { %v1572_v21 = vsel %vm1519_vm14, %v1556_v59, %v7818_v52  ;;  %v1573_v14 = vsel %vm1519_vm14, %v1557_v33, %v7819_v20 }
 0x235   :  { %v10031_v44 = vpop.permute.xlu1 %7831  ;;  %v1591_v11 = vpack.c.bf16 %v1573_v14, %v1572_v21 }
 0x237   :  { %1831 = vmatprep.mubr.bf16.mxu1 %v1591_v11  ;;  %v7837_v56 = vpop.permute.xlu0 %7836 }
 0x238   :  { %1832 = vmatmul.mubr.bf16.gmra.mrb[8].mxu1 %v1590_v17  ;;  %v7839_v20 = vunpack.i.h.bf16 %v7837_v56  ;;  %v7838_v4 = vunpack.i.l.bf16 %v7837_v56 }
 0x239   :  { %1839 = vmatprep.mubr.bf16.mxu1 %v1594_v23  ;;  %v7842_v16 = vpop.permute.xlu1 %7841 }
 0x23a   :  { %v7843_v63 = vunpack.i.l.bf16 %v7842_v16  ;;  %v7844_v14 = vunpack.i.h.bf16 %v7842_v16 }
 0x23b   :  { %v7857_v35 = vpop.permute.xlu0 %7856 }
 0x23c   :  { %v7859_v1 = vunpack.i.h.bf16 %v7857_v35  ;;  %v7858_v41 = vunpack.i.l.bf16 %v7857_v35  ;;  %v1528_v17 = vsel %vm1519_vm14, %v9957_v30, %v7843_v63 }
 0x23d   :  { %v7847_v38 = vpop.permute.xlu1 %7846 }
 0x23e   :  { %v1545_v62 = vsel %vm779_vm11, %v9816_v53, %v7859_v1  ;;  %v1544_v54 = vsel %vm779_vm11, %v9804_v13, %v7858_v41  ;;  %v7848_v51 = vunpack.i.l.bf16 %v7847_v38  ;;  %v7849_v3 = vunpack.i.h.bf16 %v7847_v38 }
 0x23f   :  { %v7862_v52 = vpop.permute.xlu0 %7861  ;;  %v1560_v33 = vsel %vm1503_vm13, %v1544_v54, %v7838_v4  ;;  %v1561_v21 = vsel %vm1503_vm13, %v1545_v62, %v7839_v20 }
 0x240   :  { %1840 = vmatmul.mubr.bf16.gmra.mrb[12].mxu1 %v1593_v27  ;;  %v7864_v0 = vunpack.i.h.bf16 %v7862_v52  ;;  %v7863_v10 = vunpack.i.l.bf16 %v7862_v52  ;;  %v1496_v53 = vsel %vm779_vm11, %v9767_v45, %v7848_v51  ;;  %v1546_v35 = vsel %vm779_vm11, %v9822_v9, %v7849_v3 }
 0x241   :  { %v7852_v46 = vpop.permute.xlu1 %7851 }
 0x242   :  { %v7853_v59 = vunpack.i.l.bf16 %v7852_v46  ;;  %v1576_v13 = vsel %vm1519_vm14, %v1560_v33, %v7863_v10  ;;  %v1577_v34 = vsel %vm1519_vm14, %v1561_v21, %v7864_v0  ;;  %v7854_v16 = vunpack.i.h.bf16 %v7852_v46 }
 0x243   :  { %v1597_v32 = vpack.c.bf16 %v1577_v34, %v1576_v13  ;;  %v7867_v23 = vpop.permute.xlu0 %7866  ;;  %v7833_v46 = vunpack.i.l.bf16 %v10031_v44 }
 0x244   :  { %v1512_v11 = vsel %vm1503_vm13, %v1496_v53, %v7853_v59  ;;  %v7869_v18 = vunpack.i.h.bf16 %v7867_v23  ;;  %v7868_v48 = vunpack.i.l.bf16 %v7867_v23  ;;  %v1562_v4 = vsel %vm1503_vm13, %v1546_v35, %v7854_v16 }
 0x245   :  { %v1529_v49 = vsel %vm1519_vm14, %v1512_v11, %v7844_v14  ;;  %1847 = vmatprep.mubr.bf16.mxu1 %v1597_v32 }
 0x246   :  { %v1596_v55 = vpack.c.bf16 %v1529_v49, %v1528_v17  ;;  %v1497_v1 = vsel %vm779_vm11, %v9782_v2, %v7869_v18  ;;  %v1547_v62 = vsel %vm779_vm11, %v9899_v5, %v7868_v48  ;;  %v7834_v5 = vunpack.i.h.bf16 %v10031_v44 }
 0x248   :  { %1848 = vmatmul.mubr.bf16.gmra.mrb[16].mxu1 %v1596_v55 }
 0x255   :  { %v7872_v56 = vpop.permute.xlu0 %7871 }
 0x256   :  { %v7873_v44 = vunpack.i.l.bf16 %v7872_v56 }
 0x258   :  { %v7882_v45 = vpop.permute.xlu1 %7881 }
 0x259   :  { %v7877_v60 = vpop.permute.xlu0 %7876  ;;  %v7883_v20 = vunpack.i.l.bf16 %v7882_v45  ;;  %v7884_v49 = vunpack.i.h.bf16 %v7882_v45 }
 0x25a   :  { %v7879_v42 = vunpack.i.h.bf16 %v7877_v60  ;;  %v7878_v39 = vunpack.i.l.bf16 %v7877_v60 }
 0x25c   :  { %v7887_v41 = vpop.permute.xlu1 %7886  ;;  %v1563_v52 = vsel %vm1503_vm13, %v1547_v62, %v7878_v39  ;;  %v1513_v63 = vsel %vm1503_vm13, %v1497_v1, %v7879_v42 }
 0x25d   :  { %v7897_v27 = vpop.permute.xlu0 %7896  ;;  %v7888_v54 = vunpack.i.l.bf16 %v7887_v41  ;;  %v7889_v0 = vunpack.i.h.bf16 %v7887_v41  ;;  %v1530_v34 = vsel %vm1519_vm14, %v1513_v63, %v7833_v46 }
 0x25e   :  { %v7899_v38 = vunpack.i.h.bf16 %v7897_v27  ;;  %v7898_v51 = vunpack.i.l.bf16 %v7897_v27 }
 0x25f   :  { %v1498_v9 = vsel %vm779_vm11, %v9763_v61, %v7888_v54  ;;  %v1548_v32 = vsel %vm779_vm11, %v9893_v47, %v7889_v0  ;;  %v7874_v47 = vunpack.i.h.bf16 %v7872_v56 }
 0x260   :  { %v1578_v2 = vsel %vm1519_vm14, %v1562_v4, %v7898_v51  ;;  %v1579_v10 = vsel %vm1519_vm14, %v1563_v52, %v7899_v38  ;;  %v7892_v59 = vpop.permute.xlu1 %7891  ;;  %v1514_v14 = vsel %vm1503_vm13, %v1498_v9, %v7883_v20  ;;  %v1564_v16 = vsel %vm1503_vm13, %v1548_v32, %v7884_v49 }
 0x261   :  { %v7917_v33 = vpop.permute.xlu0 %7916  ;;  %v1600_v21 = vpack.c.bf16 %v1579_v10, %v1578_v2  ;;  %v1531_v61 = vsel %vm1519_vm14, %v1514_v14, %v7834_v5  ;;  %v7894_v54 = vunpack.i.h.bf16 %v7892_v59  ;;  %v7893_v38 = vunpack.i.l.bf16 %v7892_v59 }
 0x262   :  { %v7918_v53 = vunpack.i.l.bf16 %v7917_v33  ;;  %v7919_v13 = vunpack.i.h.bf16 %v7917_v33  ;;  %v1599_v17 = vpack.c.bf16 %v1531_v61, %v1530_v34 }
 0x263   :  { %1855 = vmatprep.mubr.bf16.mxu1 %v1600_v21 }
 0x264   :  { %v1549_v11 = vsel %vm779_vm11, %v9915_v43, %v7918_v53  ;;  %v7902_v55 = vpop.permute.xlu1 %7901  ;;  %1856 = vmatmul.mubr.bf16.gmra.mrb[20].mxu1 %v1599_v17  ;;  %v1499_v60 = vsel %vm779_vm11, %v9771_v50, %v7919_v13 }
 0x265   :  { %v7922_v23 = vpop.permute.xlu0 %7921  ;;  %v7903_v48 = vunpack.i.l.bf16 %v7902_v55  ;;  %v1565_v42 = vsel %vm1503_vm13, %v1549_v11, %v7873_v44  ;;  %v1515_v62 = vsel %vm1503_vm13, %v1499_v60, %v7874_v47  ;;  %v7904_v56 = vunpack.i.h.bf16 %v7902_v55  ;;  %v8817_v47 = vld [vmem:[%s12845_s5 + $0x88] sm:$0xff]  }
 0x266   :  { %v7924_v3 = vunpack.i.h.bf16 %v7922_v23  ;;  %v7923_v18 = vunpack.i.l.bf16 %v7922_v23  ;;  %v1532_v52 = vsel %vm1519_vm14, %v1515_v62, %v7893_v38  ;;  %v10146_v38 = vld [vmem:[%s12846_s4] ss:$0 sm:$0xff] }
 0x267   :  { %v1500_v50 = vsel %vm779_vm11, %v9858_v37, %v7903_v48  ;;  %v1550_v33 = vsel %vm779_vm11, %v9920_v57, %v7904_v56 }
 0x268   :  { %v1580_v39 = vsel %vm1519_vm14, %v1564_v16, %v7923_v18  ;;  %v1581_v43 = vsel %vm1519_vm14, %v1565_v42, %v7924_v3  ;;  %v7907_v35 = vpop.permute.xlu1 %7906  ;;  %v8816_v42 = vld [vmem:[%s12845_s5 + $0x80] sm:$0xff]  }
 0x269   :  { %v7927_v45 = vpop.permute.xlu0 %7926  ;;  %v1603_v1 = vpack.c.bf16 %v1581_v43, %v1580_v39  ;;  %v7908_v41 = vunpack.i.l.bf16 %v7907_v35  ;;  %v7909_v5 = vunpack.i.h.bf16 %v7907_v35  ;;  %7303 = vmatprep.subr.bf16.mxu1 %v8816_v42 }
 0x26a   :  { %v7928_v27 = vunpack.i.l.bf16 %v7927_v45  ;;  %v7929_v0 = vunpack.i.h.bf16 %v7927_v45  ;;  %7304 = vmatpush3.bf16.msra.mxu1 %v8816_v42  ;;  %v8824_v42 = vld [vmem:[%s12845_s5 + $0x58] sm:$0xff]  }
 0x26b   :  { %1863 = vmatprep.mubr.bf16.mxu1 %v1603_v1  ;;  %v1516_v51 = vsel %vm1503_vm13, %v1500_v50, %v7908_v41  ;;  %v1566_v32 = vsel %vm1503_vm13, %v1550_v33, %v7909_v5  ;;  %7305 = vmatprep.subr.bf16.mxu1 %v8817_v47 }
 0x26c   :  { %v1241_v20 = vpop.permute.xlu1 %1240  ;;  %v1533_v63 = vsel %vm1519_vm14, %v1516_v51, %v7894_v54  ;;  %v1551_v9 = vsel %vm779_vm11, %v9938_v7, %v7928_v27  ;;  %v1501_v7 = vsel %vm779_vm11, %v9878_v8, %v7929_v0 }
 0x26d   :  { %v7932_v4 = vpop.permute.xlu0 %7931  ;;  %v1602_v10 = vpack.c.bf16 %v1533_v63, %v1532_v52  ;;  %v1502_v37 = vsel %vm779_vm11, %v9855_v40, %v1241_v20  ;;  %v1567_v53 = vsel %vm1503_vm13, %v1551_v9, %v9996_v29 }
 0x26e   :  { %v7934_v2 = vunpack.i.h.bf16 %v7932_v4  ;;  %v7933_v46 = vunpack.i.l.bf16 %v7932_v4  ;;  %v1583_v17 = vsel %vm1519_vm14, %v1567_v53, %v10013_v36  ;;  %7306 = vmatpush3.bf16.msra.mxu1 %v8817_v47 }
 0x26f   :  { %1864 = vmatmul.mubr.bf16.gmra.mrb[24].mxu1 %v1602_v10 }
 0x270   :  { %v1518_v59 = vsel %vm1503_vm13, %v1502_v37, %v7934_v2  ;;  %v7912_v21 = vpop.permute.xlu1 %7911  ;;  %v1517_v40 = vsel %vm1503_vm13, %v1501_v7, %v7933_v46 }
 0x271   :  { %v1333_v14 = vpop.permute.xlu0 %1332  ;;  %v7914_v13 = vunpack.i.h.bf16 %v7912_v21  ;;  %v7913_v34 = vunpack.i.l.bf16 %v7912_v21 }
 0x272   :  { %v1535_v61 = vsel %vm1519_vm14, %v1518_v59, %v1333_v14 }
 0x273   :  { %v1534_v11 = vsel %vm1519_vm14, %v1517_v40, %v7914_v13  ;;  %v1582_v57 = vsel %vm1519_vm14, %v1566_v32, %v7913_v34 }
 0x274   :  { %v1605_v44 = vpack.c.bf16 %v1535_v61, %v1534_v11  ;;  %v1606_v49 = vpack.c.bf16 %v1583_v17, %v1582_v57  ;;  %v8818_v11 = vld [vmem:[%s12845_s5 + $0x40] sm:$0xff]   ;;  %v8820_v17 = vld [vmem:[%s12845_s5 + $0x48] sm:$0xff]  }
 0x275   :  { %v8819_v57 = vld [vmem:[%s12845_s5] sm:$0xff]   ;;  %6891 = vmatprep.subr.bf16.mxu0 %v8818_v11 }
 0x276   :  { %1871 = vmatprep.mubr.bf16.mxu1 %v1606_v49  ;;  %6892 = vmatpush3.bf16.msra.mxu0 %v8819_v57  ;;  %v8822_v49 = vld [vmem:[%s12845_s5 + $0x50] sm:$0xff]  }
 0x277   :  { %1872 = vmatmul.mubr.bf16.gmra.mrb[28].mxu1 %v1605_v44  ;;  %v8821_v44 = vld [vmem:[%s12845_s5 + $0x8] sm:$0xff]   ;;  %6893 = vmatprep.subr.bf16.mxu0 %v8820_v17 }
 0x278   :  { %v10109_v55 = vpop.f32.mrb[16].mxu0 }
 0x279   :  { %v1914_v8 = vpop.f32.mrb[17].mxu0 }
 0x27a   :  { %v10111_v23 = vpop.f32.mrb[18].mxu0  ;;  %6894 = vmatpush3.bf16.msra.mxu0 %v8821_v44  ;;  %v8830_v44 = vld [vmem:[%s12845_s5 + $0x70] sm:$0xff]  }
 0x27b   :  { %v1917_v3 = vpop.f32.mrb[19].mxu0  ;;  %6895 = vmatprep.subr.bf16.mxu0 %v8822_v49 }
 0x280   :  { %v10113_v18 = vpop.f32.mrb[20].mxu0 }
 0x281   :  { %v10115_v60 = vpop.f32.mrb[21].mxu0 }
 0x282   :  { %v10117_v48 = vpop.f32.mrb[22].mxu0 }
 0x283   :  { %v10119_v16 = vpop.f32.mrb[23].mxu0 }
 0x2b8   :  { %v10127_v39 = vpop.f32.mrb[24].mxu0 }
 0x2b9   :  { %v10129_v43 = vpop.f32.mrb[25].mxu0 }
 0x2ba   :  { %v10131_v35 = vpop.f32.mrb[26].mxu0 }
 0x2bb   :  { %v10133_v45 = vpop.f32.mrb[27].mxu0 }
 0x2c0   :  { %v10135_v1 = vpop.f32.mrb[28].mxu0 }
 0x2c1   :  { %v10137_v41 = vpop.f32.mrb[29].mxu0 }
 0x2c2   :  { %v10139_v27 = vpop.f32.mrb[30].mxu0 }
 0x2c3   :  { %v10141_v62 = vpop.f32.mrb[31].mxu0 }
 0x2dc   :  { %v6833_v54 = vpop.f32.mrb[0].mxu1 }
 0x2dd   :  { %v6834_v50 = vpop.f32.mrb[1].mxu1 }
 0x2de   :  { %v6835_v51 = vadd.f32 %v6834_v50, %v6833_v54  ;;  %v6836_v56 = vpop.f32.mrb[2].mxu1 }
 0x2df   :  { %v6837_v20 = vpop.f32.mrb[3].mxu1 }
 0x2e0   :  { %v1818_v4 = vadd.f32 %v6835_v51, %v10146_v38  ;;  %v6838_v52 = vadd.f32 %v6837_v20, %v6836_v56  ;;  %v8825_v56 = vld [vmem:[%s12845_s5 + $0x18] sm:$0xff]  }
 0x2e2   :  { %v1915_v63 = vadd.f32 %v1914_v8, %v1818_v4  ;;  %v1821_v0 = vadd.f32 %v6838_v52, %v10146_v38  ;;  %v8823_v8 = vld [vmem:[%s12845_s5 + $0x10] sm:$0xff]   ;;  %v8826_v52 = vld [vmem:[%s12845_s5 + $0x60] sm:$0xff]  }
 0x2e3   :  { %6896 = vmatpush3.bf16.msra.mxu0 %v8823_v8 }
 0x2e4   :  { %v1977_v9 = vmax.f32 %v1915_v63, 0.0  ;;  %v1918_v2 = vadd.f32 %v1917_v3, %v1821_v0  ;;  %6897 = vmatprep.subr.bf16.mxu0 %v8824_v42 }
 0x2e6   :  { %v2009_v10 = vrot.slane %v1977_v9, 7  ;;  %v1978_v5 = vmax.f32 %v1918_v2, 0.0  ;;  %v8827_v9 = vld [vmem:[%s12845_s5 + $0x20] sm:$0xff]  }
 0x2e7   :  { %6898 = vmatpush3.bf16.msra.mxu0 %v8825_v56 }
 0x2e8   :  { %v10151_v37 = vsel %vm120_vm0, 0.0, %v2009_v10  ;;  %v10154_v46 = vsel %vm120_vm0, %v2009_v10, 0.0  ;;  %v2010_v59 = vrot.slane %v1978_v5, 7  ;;  %6899 = vmatprep.subr.bf16.mxu0 %v8826_v52  ;;  %v8828_v5 = vld [vmem:[%s12845_s5 + $0x68] sm:$0xff]  }
 0x2e9   :  { %v2143_v33 = vrot.slane %v10151_v37, 2  ;;  %v2144_v21 = vrot.slane %v10154_v46, 2 }
 0x2ea   :  { %v10159_v14 = vsel %vm120_vm0, 0.0, %v2010_v59  ;;  %v10162_v53 = vsel %vm120_vm0, %v2010_v59, 0.0 }
 0x2eb   :  { %v2146_v7 = vrot.slane %v10159_v14, 2  ;;  %v2147_v13 = vrot.slane %v10162_v53, 2  ;;  %v7935_v34 = vpack.i.bf16 %v10159_v14, %v10151_v37  ;;  %v10169_v61 = vsel %vm231_vm1, %v2143_v33, %v2144_v21  ;;  %6900 = vmatpush3.bf16.msra.mxu0 %v8827_v9 }
 0x2ec   :  { %v2104_v21 = vrot.slane %v10159_v14, 1  ;;  %6901 = vmatprep.subr.bf16.mxu0 %v8828_v5 }
 0x2ed   :  { %v10172_v40 = vsel %vm231_vm1, %v2146_v7, %v2147_v13  ;;  %7936 = vrot.lane.b32.xlu0 %v7935_v34, %s8915_s19  ;;  %v2105_v7 = vrot.slane %v10162_v53, 1 }
 0x2ee   :  { %v7940_v32 = vpack.i.bf16 %v10172_v40, %v10169_v61 }
 0x2f0   :  { %7941 = vrot.lane.b32.xlu1 %v7940_v32, %s8914_s24 }
 0x2fb   :  { %v6839_v3 = vpop.f32.mrb[4].mxu1 }
 0x2fc   :  { %v6840_v47 = vpop.f32.mrb[5].mxu1 }
 0x2fd   :  { %v6841_v54 = vadd.f32 %v6840_v47, %v6839_v3  ;;  %v6842_v50 = vpop.f32.mrb[6].mxu1 }
 0x2fe   :  { %v6843_v51 = vpop.f32.mrb[7].mxu1 }
 0x2ff   :  { %v1826_v20 = vadd.f32 %v6841_v54, %v10146_v38  ;;  %v6844_v4 = vadd.f32 %v6843_v51, %v6842_v50  ;;  %v10246_v51 = vsel %vm185_vm2, %v2104_v21, %v2105_v7 }
 0x301   :  { %v1923_v63 = vadd.f32 %v10109_v55, %v1826_v20  ;;  %v1829_v0 = vadd.f32 %v6844_v4, %v10146_v38  ;;  %v8829_v55 = vld [vmem:[%s12845_s5 + $0x28] sm:$0xff]  }
 0x302   :  { %6902 = vmatpush3.bf16.msra.mxu0 %v8829_v55 }
 0x303   :  { %v1979_v2 = vmax.f32 %v1923_v63, 0.0  ;;  %v1926_v10 = vadd.f32 %v10111_v23, %v1829_v0  ;;  %6903 = vmatprep.subr.bf16.mxu0 %v8830_v44  ;;  %v8832_v63 = vld [vmem:[%s12845_s5 + $0x78] sm:$0xff]  }
 0x305   :  { %v2011_v59 = vrot.slane %v1979_v2, 7  ;;  %v1980_v33 = vmax.f32 %v1926_v10, 0.0  ;;  %v2101_v2 = vrot.slane %v10151_v37, 1  ;;  %v2102_v10 = vrot.slane %v10154_v46, 1 }
 0x307   :  { %v10221_v13 = vsel %vm120_vm0, 0.0, %v2011_v59  ;;  %v2059_v23 = vsel %vm120_vm0, %v2011_v59, 0.0  ;;  %v2012_v34 = vrot.slane %v1980_v33, 7  ;;  %v8833_v33 = vld [vmem:[%s12845_s5 + $0x38] sm:$0xff]  }
 0x308   :  { %v2107_v32 = vrot.slane %v10221_v13, 1  ;;  %v2108_v11 = vrot.slane %v2059_v23, 1  ;;  %v2149_v57 = vrot.slane %v10221_v13, 2  ;;  %v2150_v17 = vrot.slane %v2059_v23, 2 }
 0x309   :  { %v10230_v49 = vsel %vm120_vm0, 0.0, %v2012_v34  ;;  %v10233_v53 = vsel %vm120_vm0, %v2012_v34, 0.0  ;;  %v7945_v8 = vpack.i.bf16 %v10221_v13, %v10159_v14 }
 0x30a   :  { %v2152_v3 = vrot.slane %v10230_v49, 2  ;;  %v2153_v42 = vrot.slane %v10233_v53, 2  ;;  %v7950_v54 = vpack.i.bf16 %v10230_v49, %v10169_v61  ;;  %v10243_v50 = vsel %vm231_vm1, %v2149_v57, %v2150_v17  ;;  %v8831_v61 = vld [vmem:[%s12845_s5 + $0x30] sm:$0xff]  }
 0x30b   :  { %7946 = vrot.lane.b32.xlu1 %v7945_v8, %s8916_s22  ;;  %v6845_v47 = vpop.f32.mrb[8].mxu1  ;;  %v10249_v56 = vsel %vm185_vm2, %v2107_v32, %v2108_v11  ;;  %v2589_v4 = vpack.c.bf16 %v10243_v50, %v10172_v40  ;;  %6904 = vmatpush3.bf16.msra.mxu0 %v8831_v61  ;;  %v7955_v7 = vpack.i.bf16 %v10230_v49, %v10221_v13 }
 0x30c   :  { %v6846_v20 = vpop.f32.mrb[9].mxu1  ;;  %v7965_v52 = vpack.i.bf16 %v10249_v56, %v10246_v51  ;;  %7951 = vrot.lane.b32.xlu0 %v7950_v54, %s8916_s22  ;;  %v10266_v59 = vsel %vm231_vm1, %v2152_v3, %v2153_v42  ;;  %6905 = vmatprep.subr.bf16.mxu0 %v8832_v63  ;;  %v10281_v32 = vsel %vm185_vm2, %v2101_v2, %v2102_v10  ;;  %v2110_v54 = vrot.slane %v10230_v49, 1 }
 0x30d   :  { %v6847_v0 = vadd.f32 %v6846_v20, %v6845_v47  ;;  %v6848_v9 = vpop.f32.mrb[10].mxu1  ;;  %7307 = vmatprep.mubr.msk.bf16.mxu1 %vm779_vm11, %v2589_v4  ;;  %v7970_v34 = vpack.i.bf16 %v10246_v51, %v10266_v59  ;;  %v2111_v20 = vrot.slane %v10233_v53, 1 }
 0x30e   :  { %v6849_v5 = vpop.f32.mrb[11].mxu1 }
 0x30f   :  { %v1834_v21 = vadd.f32 %v6847_v0, %v10146_v38  ;;  %v6850_v55 = vadd.f32 %v6849_v5, %v6848_v9  ;;  %7966 = vrot.lane.b32.xlu1 %v7965_v52, %s8915_s19  ;;  %6906 = vmatpush3.bf16.msra.mxu0 %v8833_v33 }
 0x310   :  { %7956 = vrot.lane.b32.xlu0 %v7955_v7, %s8915_s19 }
 0x311   :  { %v1931_v46 = vadd.f32 %v10115_v60, %v1834_v21  ;;  %v1837_v23 = vadd.f32 %v6850_v55, %v10146_v38  ;;  %v7960_v60 = vpack.i.bf16 %v10243_v50, %v10281_v32 }
 0x313   :  { %v1981_v11 = vmax.f32 %v1931_v46, 0.0  ;;  %v1934_v57 = vadd.f32 %v10119_v16, %v1837_v23  ;;  %7971 = vrot.lane.b32.xlu1 %v7970_v34, %s8914_s24  ;;  %v6851_v17 = vpop.f32.mrb[12].mxu1 }
 0x314   :  { %v6852_v44 = vpop.f32.mrb[13].mxu1  ;;  %7961 = vrot.lane.b32.xlu0 %v7960_v60, %s8914_s24 }
 0x315   :  { %v2013_v8 = vrot.slane %v1981_v11, 7  ;;  %v1982_v3 = vmax.f32 %v1934_v57, 0.0  ;;  %v6853_v42 = vadd.f32 %v6852_v44, %v6851_v17  ;;  %v6854_v47 = vpop.f32.mrb[14].mxu1  ;;  %v10311_v11 = vsel %vm185_vm2, %v2110_v54, %v2111_v20 }
 0x316   :  { %v6855_v4 = vpop.f32.mrb[15].mxu1 }
 0x317   :  { %v10291_v16 = vsel %vm120_vm0, 0.0, %v2013_v8  ;;  %v2061_v52 = vsel %vm120_vm0, %v2013_v8, 0.0  ;;  %v2014_v61 = vrot.slane %v1982_v3, 7  ;;  %v1842_v63 = vadd.f32 %v6853_v42, %v10146_v38 }
 0x318   :  { %v2113_v0 = vrot.slane %v10291_v16, 1  ;;  %v2114_v9 = vrot.slane %v2061_v52, 1  ;;  %v2155_v2 = vrot.slane %v10291_v16, 2  ;;  %v2156_v10 = vrot.slane %v2061_v52, 2 }
 0x319   :  { %v10298_v5 = vsel %vm120_vm0, 0.0, %v2014_v61  ;;  %v1939_v53 = vadd.f32 %v10113_v18, %v1842_v63  ;;  %v6856_v33 = vadd.f32 %v6855_v4, %v6854_v47  ;;  %v10305_v55 = vsel %vm120_vm0, %v2014_v61, 0.0 }
 0x31a   :  { %v10302_v21 = vsel %vm231_vm1, %v2155_v2, %v2156_v10  ;;  %v2158_v57 = vrot.slane %v10298_v5, 2  ;;  %v7975_v18 = vpack.i.bf16 %v10172_v40, %v10291_v16  ;;  %v7980_v17 = vpack.i.bf16 %v10298_v5, %v10243_v50 }
 0x31b   :  { %v2592_v7 = vpack.c.bf16 %v10302_v21, %v10266_v59  ;;  %v1983_v46 = vmax.f32 %v1939_v53, 0.0  ;;  %v1845_v23 = vadd.f32 %v6856_v33, %v10146_v38  ;;  %v6857_v34 = vpop.f32.mrb[16].mxu1  ;;  %v10319_v44 = vsel %vm185_vm2, %v2113_v0, %v2114_v9 }
 0x31c   :  { %v6858_v60 = vpop.f32.mrb[17].mxu1  ;;  %v2159_v8 = vrot.slane %v10305_v55, 2  ;;  %7976 = vrot.lane.b32.xlu1 %v7975_v18, %s8916_s22  ;;  %7981 = vrot.lane.b32.xlu0 %v7980_v17, %s8916_s22  ;;  %v7995_v40 = vpack.i.bf16 %v10319_v44, %v10311_v11  ;;  %v7985_v0 = vpack.i.bf16 %v10298_v5, %v10291_v16 }
 0x31d   :  { %v2015_v3 = vrot.slane %v1983_v46, 7  ;;  %v1942_v42 = vadd.f32 %v10117_v48, %v1845_v23  ;;  %v6859_v47 = vadd.f32 %v6858_v60, %v6857_v34  ;;  %7308 = vmatmul.mubr.msk.bf16.vlgmr.msra.gmra.mrb[32].mxu1 %vm779_vm11, %v2592_v7  ;;  %v6860_v54 = vpop.f32.mrb[18].mxu1  ;;  %v7990_v7 = vpack.i.bf16 %v10302_v21, %v10249_v56 }
 0x31e   :  { %v6861_v50 = vpop.f32.mrb[19].mxu1  ;;  %v2160_v53 = vsel %vm231_vm1, %v2158_v57, %v2159_v8 }
 0x31f   :  { %v10329_v20 = vsel %vm120_vm0, 0.0, %v2015_v3  ;;  %v2063_v4 = vsel %vm120_vm0, %v2015_v3, 0.0  ;;  %v1984_v52 = vmax.f32 %v1942_v42, 0.0  ;;  %v1850_v48 = vadd.f32 %v6859_v47, %v10146_v38 }
 0x320   :  { %v2161_v61 = vrot.slane %v10329_v20, 2  ;;  %v2162_v63 = vrot.slane %v2063_v4, 2  ;;  %v6862_v10 = vadd.f32 %v6861_v50, %v6860_v54  ;;  %v2119_v33 = vrot.slane %v10329_v20, 1  ;;  %7996 = vrot.lane.b32.xlu1 %v7995_v40, %s8915_s19  ;;  %7986 = vrot.lane.b32.xlu0 %v7985_v0, %s8915_s19 }
 0x321   :  { %v2016_v9 = vrot.slane %v1984_v52, 7  ;;  %v1947_v2 = vadd.f32 %v10129_v43, %v1850_v48  ;;  %v2120_v17 = vrot.slane %v2063_v4, 1  ;;  %v8000_v8 = vpack.i.bf16 %v10311_v11, %v2160_v53 }
 0x322   :  { %v2163_v46 = vsel %vm231_vm1, %v2161_v61, %v2162_v63  ;;  %v1853_v43 = vadd.f32 %v6862_v10, %v10146_v38  ;;  %v2116_v50 = vrot.slane %v10298_v5, 1  ;;  %v2117_v4 = vrot.slane %v10305_v55, 1 }
 0x323   :  { %v2048_v23 = vsel %vm120_vm0, 0.0, %v2016_v9  ;;  %v2064_v34 = vsel %vm120_vm0, %v2016_v9, 0.0  ;;  %v1985_v18 = vmax.f32 %v1947_v2, 0.0  ;;  %v2595_v47 = vpack.c.bf16 %v2163_v46, %v2160_v53 }
 0x324   :  { %v2211_v57 = vrot.slane %v2048_v23, 2  ;;  %v2212_v60 = vrot.slane %v2064_v34, 2  ;;  %v1950_v42 = vadd.f32 %v10133_v45, %v1853_v43  ;;  %v8010_v54 = vpack.i.bf16 %v2048_v23, %v10302_v21  ;;  %8001 = vrot.lane.b32.xlu1 %v8000_v8, %s8914_s24  ;;  %7991 = vrot.lane.b32.xlu0 %v7990_v7, %s8914_s24 }
 0x325   :  { %v2017_v3 = vrot.slane %v1985_v18, 7  ;;  %7311 = vmatprep.mubr.msk.bf16.mxu1 %vm779_vm11, %v2595_v47  ;;  %v2189_v61 = vrot.slane %v2048_v23, 1  ;;  %v8005_v45 = vpack.i.bf16 %v10266_v59, %v10329_v20  ;;  %v10360_v21 = vsel %vm185_vm2, %v2119_v33, %v2120_v17 }
 0x326   :  { %v2213_v40 = vsel %vm231_vm1, %v2211_v57, %v2212_v60  ;;  %v1986_v52 = vmax.f32 %v1950_v42, 0.0  ;;  %v2190_v63 = vrot.slane %v2064_v34, 1  ;;  %v8025_v55 = vpack.i.bf16 %v2163_v46, %v2160_v53 }
 0x327   :  { %v2598_v48 = vpack.c.bf16 %v9046_v26, %v2213_v40  ;;  %v10363_v0 = vsel %vm120_vm0, 0.0, %v2017_v3  ;;  %v2065_v9 = vsel %vm120_vm0, %v2017_v3, 0.0  ;;  %v10370_v10 = vsel %vm185_vm2, %v2116_v50, %v2117_v4 }
 0x328   :  { %v2018_v2 = vrot.slane %v1986_v52, 7  ;;  %8006 = vrot.lane.b32.xlu1 %v8005_v45, %s8916_s22  ;;  %8011 = vrot.lane.b32.xlu0 %v8010_v54, %s8916_s22  ;;  %v2164_v59 = vrot.slane %v10363_v0, 2  ;;  %v2165_v33 = vrot.slane %v2065_v9, 2  ;;  %v8020_v7 = vpack.i.bf16 %v10360_v21, %v10370_v10 }
 0x329   :  { %7312 = vmatmul.mubr.msk.bf16.gmra.mrb[36].mxu1 %vm779_vm11, %v2598_v48  ;;  %v8015_v34 = vpack.i.bf16 %v2163_v46, %v10319_v44  ;;  %v10377_v18 = vsel %vm185_vm2, %v2189_v61, %v2190_v63  ;;  %v2122_v42 = vrot.slane %v10363_v0, 1  ;;  %v2123_v47 = vrot.slane %v2065_v9, 1 }
 0x32a   :  { %v10380_v53 = vsel %vm120_vm0, 0.0, %v2018_v2  ;;  %v2066_v43 = vsel %vm120_vm0, %v2018_v2, 0.0  ;;  %v8035_v17 = vpack.i.bf16 %v10329_v20, %v10377_v18  ;;  %v10388_v57 = vsel %vm231_vm1, %v2164_v59, %v2165_v33 }
 0x32b   :  { %v2125_v46 = vrot.slane %v10380_v53, 1  ;;  %v2126_v60 = vrot.slane %v2066_v43, 1  ;;  %v2167_v8 = vrot.slane %v10380_v53, 2  ;;  %v2168_v3 = vrot.slane %v2066_v43, 2 }
 0x32c   :  { %8021 = vrot.lane.b32.xlu1 %v8020_v7, %s8915_s19  ;;  %8016 = vrot.lane.b32.xlu0 %v8015_v34, %s8914_s24  ;;  %v8030_v54 = vpack.i.bf16 %v10370_v10, %v2213_v40  ;;  %v8040_v50 = vpack.i.bf16 %v10388_v57, %v10360_v21  ;;  %v10407_v48 = vsel %vm185_vm2, %v2122_v42, %v2123_v47 }
 0x32d   :  { %v10399_v4 = vsel %vm185_vm2, %v2125_v46, %v2126_v60  ;;  %v10402_v52 = vsel %vm231_vm1, %v2167_v8, %v2168_v3 }
 0x32e   :  { %v8045_v61 = vpack.i.bf16 %v10399_v4, %v2048_v23  ;;  %v8050_v40 = vpack.i.bf16 %v10407_v48, %v10402_v52 }
 0x330   :  { %8026 = vrot.lane.b32.xlu1 %v8025_v55, %s8916_s22  ;;  %8036 = vrot.lane.b32.xlu0 %v8035_v17, %s8915_s19 }
 0x334   :  { %8031 = vrot.lane.b32.xlu1 %v8030_v54, %s8914_s24  ;;  %8041 = vrot.lane.b32.xlu0 %v8040_v50, %s8914_s24 }
 0x337   :  { %v6863_v45 = vpop.f32.mrb[20].mxu1 }
 0x338   :  { %8046 = vrot.lane.b32.xlu1 %v8045_v61, %s8915_s19  ;;  %8051 = vrot.lane.b32.xlu0 %v8050_v40, %s8914_s24  ;;  %v6864_v63 = vpop.f32.mrb[21].mxu1 }
 0x339   :  { %v6865_v9 = vadd.f32 %v6864_v63, %v6863_v45  ;;  %v6866_v55 = vpop.f32.mrb[22].mxu1 }
 0x33a   :  { %v6867_v2 = vpop.f32.mrb[23].mxu1 }
 0x33b   :  { %v1858_v59 = vadd.f32 %v6865_v9, %v10146_v38  ;;  %v6868_v33 = vadd.f32 %v6867_v2, %v6866_v55 }
 0x33d   :  { %v1955_v7 = vadd.f32 %v10127_v39, %v1858_v59  ;;  %v1861_v34 = vadd.f32 %v6868_v33, %v10146_v38 }
 0x33f   :  { %v1987_v23 = vmax.f32 %v1955_v7, 0.0  ;;  %v1958_v43 = vadd.f32 %v10131_v35, %v1861_v34 }
 0x341   :  { %v2019_v17 = vrot.slane %v1987_v23, 7  ;;  %v1988_v46 = vmax.f32 %v1958_v43, 0.0 }
 0x342   :  { %v6869_v60 = vpop.f32.mrb[24].mxu1 }
 0x343   :  { %v6870_v8 = vpop.f32.mrb[25].mxu1  ;;  %v10419_v3 = vsel %vm120_vm0, 0.0, %v2019_v17  ;;  %v2067_v42 = vsel %vm120_vm0, %v2019_v17, 0.0  ;;  %v2020_v47 = vrot.slane %v1988_v46, 7 }
 0x344   :  { %v6871_v54 = vadd.f32 %v6870_v8, %v6869_v60  ;;  %v6872_v50 = vpop.f32.mrb[26].mxu1  ;;  %v2128_v61 = vrot.slane %v10419_v3, 1  ;;  %v2129_v39 = vrot.slane %v2067_v42, 1  ;;  %v2170_v40 = vrot.slane %v10419_v3, 2 }
 0x345   :  { %v2171_v45 = vrot.slane %v2067_v42, 2  ;;  %v6873_v63 = vpop.f32.mrb[27].mxu1  ;;  %v10425_v35 = vsel %vm120_vm0, 0.0, %v2020_v47  ;;  %v2068_v9 = vsel %vm120_vm0, %v2020_v47, 0.0  ;;  %v8055_v17 = vpack.i.bf16 %v10419_v3, %v10380_v53 }
 0x346   :  { %v1866_v55 = vadd.f32 %v6871_v54, %v10146_v38  ;;  %v6874_v2 = vadd.f32 %v6873_v63, %v6872_v50  ;;  %v2131_v59 = vrot.slane %v10425_v35, 1  ;;  %v2132_v33 = vrot.slane %v2068_v9, 1 }
 0x347   :  { %v2173_v7 = vrot.slane %v10425_v35, 2  ;;  %v2174_v34 = vrot.slane %v2068_v9, 2  ;;  %v8060_v46 = vpack.i.bf16 %v10425_v35, %v10388_v57  ;;  %v2172_v60 = vsel %vm231_vm1, %v2170_v40, %v2171_v45  ;;  %8056 = vrot.lane.b32.xlu1 %v8055_v17, %s8916_s22 }
 0x348   :  { %v1963_v23 = vadd.f32 %v10137_v41, %v1866_v55  ;;  %v1869_v43 = vadd.f32 %v6874_v2, %v10146_v38  ;;  %v10439_v8 = vsel %vm185_vm2, %v2128_v61, %v2129_v39  ;;  %v2601_v41 = vpack.c.bf16 %v2172_v60, %v10402_v52 }
 0x349   :  { %v10442_v42 = vsel %vm231_vm1, %v2173_v7, %v2174_v34  ;;  %8061 = vrot.lane.b32.xlu0 %v8060_v46, %s8916_s22  ;;  %v8065_v57 = vpack.i.bf16 %v10363_v0, %v10439_v8  ;;  %v10452_v39 = vsel %vm185_vm2, %v2131_v59, %v2132_v33  ;;  %v8070_v55 = vpack.i.bf16 %v10439_v8, %v10399_v4 }
 0x34a   :  { %v1989_v47 = vmax.f32 %v1963_v23, 0.0  ;;  %v1966_v54 = vadd.f32 %v10141_v62, %v1869_v43  ;;  %v6875_v50 = vpop.f32.mrb[28].mxu1  ;;  %v8080_v61 = vpack.i.bf16 %v10442_v42, %v2172_v60  ;;  %7315 = vmatprep.mubr.msk.bf16.mxu1 %vm779_vm11, %v2601_v41  ;;  %v8075_v17 = vpack.i.bf16 %v10452_v39, %v10380_v53 }
 0x34b   :  { %v6876_v40 = vpop.f32.mrb[29].mxu1  ;;  %8066 = vrot.lane.b32.xlu1 %v8065_v57, %s8915_s19 }
 0x34c   :  { %v2021_v45 = vrot.slane %v1989_v47, 7  ;;  %v1990_v63 = vmax.f32 %v1966_v54, 0.0  ;;  %v6877_v62 = vadd.f32 %v6876_v40, %v6875_v50  ;;  %v6878_v9 = vpop.f32.mrb[30].mxu1 }
 0x34d   :  { %v6879_v2 = vpop.f32.mrb[31].mxu1  ;;  %8071 = vrot.lane.b32.xlu0 %v8070_v55, %s8914_s24 }
 0x34e   :  { %v10458_v7 = vsel %vm120_vm0, 0.0, %v2021_v45  ;;  %v2069_v34 = vsel %vm120_vm0, %v2021_v45, 0.0  ;;  %v2022_v23 = vrot.slane %v1990_v63, 7  ;;  %v1874_v59 = vadd.f32 %v6877_v62, %v10146_v38 }
 0x34f   :  { %v2176_v33 = vrot.slane %v10458_v7, 2  ;;  %v2177_v43 = vrot.slane %v2069_v34, 2  ;;  %v6880_v41 = vadd.f32 %v6879_v2, %v6878_v9  ;;  %v2134_v50 = vrot.slane %v10458_v7, 1  ;;  %8081 = vrot.lane.b32.xlu1 %v8080_v61, %s8914_s24 }
 0x350   :  { %v10468_v46 = vsel %vm120_vm0, 0.0, %v2022_v23  ;;  %v2070_v47 = vsel %vm120_vm0, %v2022_v23, 0.0  ;;  %v1971_v54 = vadd.f32 %v10135_v1, %v1874_v59  ;;  %v2135_v57 = vrot.slane %v2069_v34, 1 }
 0x351   :  { %v2179_v40 = vrot.slane %v10468_v46, 2  ;;  %v2180_v45 = vrot.slane %v2070_v47, 2  ;;  %v1877_v62 = vadd.f32 %v6880_v41, %v10146_v38  ;;  %8076 = vrot.lane.b32.xlu0 %v8075_v17, %s8915_s19  ;;  %v8085_v55 = vpack.i.bf16 %v10402_v52, %v10458_v7 }
 0x352   :  { %v1991_v63 = vmax.f32 %v1971_v54, 0.0  ;;  %v2178_v23 = vsel %vm231_vm1, %v2176_v33, %v2177_v43  ;;  %v8090_v9 = vpack.i.bf16 %v10468_v46, %v2172_v60  ;;  %v2137_v38 = vrot.slane %v10468_v46, 1 }
 0x353   :  { %v2604_v1 = vpack.c.bf16 %v2178_v23, %v10442_v42  ;;  %v2181_v2 = vsel %vm231_vm1, %v2179_v40, %v2180_v45  ;;  %v1974_v59 = vadd.f32 %v10139_v27, %v1877_v62  ;;  %v2138_v54 = vrot.slane %v2070_v47, 1  ;;  %8086 = vrot.lane.b32.xlu1 %v8085_v55, %s8916_s22 }
 0x354   :  { %v2023_v34 = vrot.slane %v1991_v63, 7  ;;  %v10487_v61 = vsel %vm185_vm2, %v2134_v50, %v2135_v57  ;;  %v8110_v52 = vpack.i.bf16 %v2181_v2, %v2178_v23 }
 0x355   :  { %7316 = vmatmul.mubr.msk.bf16.gmra.mrb[40].mxu1 %vm779_vm11, %v2604_v1  ;;  %v1992_v60 = vmax.f32 %v1974_v59, 0.0  ;;  %8091 = vrot.lane.b32.xlu0 %v8090_v9, %s8916_s22  ;;  %v8095_v41 = vpack.i.bf16 %v10419_v3, %v10487_v61  ;;  %v8100_v50 = vpack.i.bf16 %v10487_v61, %v10452_v39  ;;  %v10502_v40 = vsel %vm185_vm2, %v2137_v38, %v2138_v54 }
 0x356   :  { %v10490_v33 = vsel %vm120_vm0, 0.0, %v2023_v34  ;;  %v2071_v43 = vsel %vm120_vm0, %v2023_v34, 0.0  ;;  %v8105_v9 = vpack.i.bf16 %v10502_v40, %v10425_v35 }
 0x357   :  { %v2182_v27 = vrot.slane %v10490_v33, 2  ;;  %v2183_v17 = vrot.slane %v2071_v43, 2  ;;  %v2024_v47 = vrot.slane %v1992_v60, 7  ;;  %8096 = vrot.lane.b32.xlu1 %v8095_v41, %s8915_s19  ;;  %v2140_v38 = vrot.slane %v10490_v33, 1 }
 0x358   :  { %v2141_v54 = vrot.slane %v2071_v43, 1 }
 0x359   :  { %v2184_v57 = vsel %vm231_vm1, %v2182_v27, %v2183_v17  ;;  %v2056_v45 = vsel %vm120_vm0, 0.0, %v2024_v47  ;;  %v2072_v63 = vsel %vm120_vm0, %v2024_v47, 0.0  ;;  %8101 = vrot.lane.b32.xlu0 %v8100_v50, %s8914_s24  ;;  %v8115_v47 = vpack.i.bf16 %v10442_v42, %v10490_v33 }
 0x35a   :  { %v2607_v62 = vpack.c.bf16 %v2184_v57, %v2181_v2  ;;  %v2214_v55 = vrot.slane %v2056_v45, 2  ;;  %v2215_v1 = vrot.slane %v2072_v63, 2  ;;  %v8120_v34 = vpack.i.bf16 %v2056_v45, %v2178_v23 }
 0x35b   :  { %v8135_v59 = vpack.i.bf16 %v2184_v57, %v2181_v2  ;;  %8111 = vrot.lane.b32.xlu1 %v8110_v52, %s8914_s24  ;;  %v10520_v23 = vsel %vm185_vm2, %v2140_v38, %v2141_v54  ;;  %v2192_v52 = vrot.slane %v2056_v45, 1  ;;  %v2193_v43 = vrot.slane %v2072_v63, 1 }
 0x35c   :  { %7319 = vmatprep.mubr.msk.bf16.mxu1 %vm779_vm11, %v2607_v62  ;;  %v2216_v60 = vsel %vm231_vm1, %v2214_v55, %v2215_v1  ;;  %v8125_v2 = vpack.i.bf16 %v10458_v7, %v10520_v23  ;;  %v8130_v42 = vpack.i.bf16 %v10520_v23, %v10502_v40 }
 0x35d   :  { %8106 = vrot.lane.b32.xlu0 %v8105_v9, %s8915_s19  ;;  %v2610_v27 = vpack.c.bf16 %v9046_v26, %v2216_v60  ;;  %v8140_v17 = vpack.i.bf16 %v2216_v60, %v2184_v57  ;;  %v10532_v41 = vsel %vm185_vm2, %v2192_v52, %v2193_v43 }
 0x35e   :  { %v8145_v50 = vpack.i.bf16 %v10490_v33, %v10532_v41 }
 0x35f   :  { %7320 = vmatmul.mubr.msk.bf16.gmra.mrb[44].mxu1 %vm779_vm11, %v2610_v27  ;;  %8116 = vrot.lane.b32.xlu1 %v8115_v47, %s8916_s22  ;;  %v7937_v63 = vpop.permute.xlu0 %7936 }
 0x361   :  { %2341 = vrot.lane.b32.xlu0 %v10468_v46, %s8915_s19 }
 0x362   :  { %v7942_v57 = vpop.permute.xlu1 %7941 }
 0x363   :  { %8126 = vrot.lane.b32.xlu1 %v8125_v2, %s8915_s19  ;;  %v7944_v55 = vunpack.i.h.bf16 %v7942_v57  ;;  %v7943_v1 = vunpack.i.l.bf16 %v7942_v57  ;;  %v7938_v57 = vunpack.i.l.bf16 %v7937_v63 }
 0x365   :  { %8121 = vrot.lane.b32.xlu0 %v8120_v34, %s8916_s22  ;;  %v2540_v54 = vsel %vm779_vm11, %v10246_v51, %v7944_v55  ;;  %v2539_v60 = vsel %vm779_vm11, %v10281_v32, %v7943_v1  ;;  %v7939_v55 = vunpack.i.h.bf16 %v7937_v63 }
 0x367   :  { %8136 = vrot.lane.b32.xlu1 %v8135_v59, %s8916_s22 }
 0x369   :  { %8131 = vrot.lane.b32.xlu0 %v8130_v42, %s8914_s24 }
 0x36b   :  { %8141 = vrot.lane.b32.xlu1 %v8140_v17, %s8914_s24 }
 0x36d   :  { %8146 = vrot.lane.b32.xlu0 %v8145_v50, %s8915_s19 }
 0x36f   :  { %2345 = vrot.lane.b32.xlu1 %v2056_v45, %s8915_s19 }
 0x37d   :  { %v7947_v62 = vpop.permute.xlu1 %7946 }
 0x37e   :  { %v7949_v9 = vunpack.i.h.bf16 %v7947_v62  ;;  %v7948_v34 = vunpack.i.l.bf16 %v7947_v62  ;;  %v7952_v38 = vpop.permute.xlu0 %7951 }
 0x37f   :  { %v7953_v51 = vunpack.i.l.bf16 %v7952_v38 }
 0x380   :  { %v2555_v45 = vsel %vm1503_vm13, %v2539_v60, %v7948_v34  ;;  %v2556_v2 = vsel %vm1503_vm13, %v2540_v54, %v7949_v9  ;;  %v2523_v34 = vsel %vm1519_vm14, %v9957_v30, %v7938_v57 }
 0x381   :  { %v7967_v59 = vpop.permute.xlu1 %7966 }
 0x382   :  { %v7969_v27 = vunpack.i.h.bf16 %v7967_v59  ;;  %v7968_v17 = vunpack.i.l.bf16 %v7967_v59  ;;  %v7957_v47 = vpop.permute.xlu0 %7956 }
 0x384   :  { %v2571_v52 = vsel %vm1519_vm14, %v2555_v45, %v7968_v17  ;;  %v2572_v43 = vsel %vm1519_vm14, %v2556_v2, %v7969_v27 }
 0x385   :  { %v2588_v42 = vpack.c.bf16 %v2572_v43, %v2571_v52  ;;  %v7972_v9 = vpop.permute.xlu1 %7971  ;;  %v7954_v52 = vunpack.i.h.bf16 %v7952_v38 }
 0x386   :  { %v7962_v50 = vpop.permute.xlu0 %7961  ;;  %v7973_v45 = vunpack.i.l.bf16 %v7972_v9 }
 0x387   :  { %2818 = vmatprep.mubr.bf16.mxu0 %v2588_v42  ;;  %v7963_v62 = vunpack.i.l.bf16 %v7962_v50  ;;  %v7964_v60 = vunpack.i.h.bf16 %v7962_v50 }
 0x388   :  { %v2542_v42 = vsel %vm779_vm11, %v10311_v11, %v7973_v45 }
 0x389   :  { %v2495_v32 = vsel %vm779_vm11, %v10151_v37, %v7963_v62  ;;  %v2541_v63 = vsel %vm779_vm11, %v10249_v56, %v7964_v60 }
 0x38a   :  { %v2509_v1 = vsel %vm1503_vm13, %v2495_v32, %v7953_v51  ;;  %v7974_v51 = vunpack.i.h.bf16 %v7972_v9 }
 0x38b   :  { %v2524_v59 = vsel %vm1519_vm14, %v2509_v1, %v7939_v55  ;;  %v2557_v55 = vsel %vm1503_vm13, %v2541_v63, %v7954_v52  ;;  %v7958_v63 = vunpack.i.l.bf16 %v7957_v47 }
 0x38c   :  { %v2587_v54 = vpack.c.bf16 %v2524_v59, %v2523_v34  ;;  %v2496_v60 = vsel %vm779_vm11, %v10159_v14, %v7974_v51 }
 0x38e   :  { %2819 = vmatmul.mubr.bf16.vlgmr.msra.gmra.mrb[32].mxu0 %v2587_v54  ;;  %v7977_v27 = vpop.permute.xlu1 %7976  ;;  %v7982_v17 = vpop.permute.xlu0 %7981 }
 0x38f   :  { %v7978_v2 = vunpack.i.l.bf16 %v7977_v27  ;;  %v7979_v32 = vunpack.i.h.bf16 %v7977_v27  ;;  %v7983_v11 = vunpack.i.l.bf16 %v7982_v17  ;;  %v7959_v27 = vunpack.i.h.bf16 %v7957_v47 }
 0x391   :  { %v2558_v50 = vsel %vm1503_vm13, %v2542_v42, %v7978_v2  ;;  %v2510_v2 = vsel %vm1503_vm13, %v2496_v60, %v7979_v32 }
 0x392   :  { %v7997_v37 = vpop.permute.xlu1 %7996  ;;  %v7987_v43 = vpop.permute.xlu0 %7986 }
 0x393   :  { %v7999_v57 = vunpack.i.h.bf16 %v7997_v37  ;;  %v7998_v62 = vunpack.i.l.bf16 %v7997_v37 }
 0x395   :  { %v2573_v1 = vsel %vm1519_vm14, %v2557_v55, %v7998_v62  ;;  %v2574_v34 = vsel %vm1519_vm14, %v2558_v50, %v7999_v57  ;;  %v2525_v50 = vsel %vm1519_vm14, %v2510_v2, %v7958_v63  ;;  %v7988_v63 = vunpack.i.l.bf16 %v7987_v43 }
 0x396   :  { %v8002_v59 = vpop.permute.xlu1 %8001  ;;  %v7992_v56 = vpop.permute.xlu0 %7991  ;;  %v2591_v38 = vpack.c.bf16 %v2574_v34, %v2573_v1  ;;  %v7984_v34 = vunpack.i.h.bf16 %v7982_v17 }
 0x397   :  { %v7993_v54 = vunpack.i.l.bf16 %v7992_v56  ;;  %v7994_v45 = vunpack.i.h.bf16 %v7992_v56  ;;  %v8003_v57 = vunpack.i.l.bf16 %v8002_v59  ;;  %v8004_v62 = vunpack.i.h.bf16 %v8002_v59 }
 0x398   :  { %2826 = vmatprep.mubr.bf16.mxu0 %v2591_v38 }
 0x399   :  { %v2497_v9 = vsel %vm779_vm11, %v10221_v13, %v7993_v54  ;;  %v2543_v51 = vsel %vm779_vm11, %v10319_v44, %v7994_v45  ;;  %v2544_v47 = vsel %vm779_vm11, %v10370_v10, %v8003_v57  ;;  %v2498_v59 = vsel %vm779_vm11, %v10230_v49, %v8004_v62 }
 0x39a   :  { %v8007_v52 = vpop.permute.xlu1 %8006  ;;  %v8012_v37 = vpop.permute.xlu0 %8011  ;;  %v2511_v42 = vsel %vm1503_vm13, %v2497_v9, %v7983_v11  ;;  %v2559_v9 = vsel %vm1503_vm13, %v2543_v51, %v7984_v34 }
 0x39b   :  { %v8008_v55 = vunpack.i.l.bf16 %v8007_v52  ;;  %v2526_v14 = vsel %vm1519_vm14, %v2511_v42, %v7959_v27  ;;  %v8009_v1 = vunpack.i.h.bf16 %v8007_v52  ;;  %v8013_v11 = vunpack.i.l.bf16 %v8012_v37 }
 0x39c   :  { %v2590_v13 = vpack.c.bf16 %v2526_v14, %v2525_v50  ;;  %v7989_v27 = vunpack.i.h.bf16 %v7987_v43 }
 0x39d   :  { %v2560_v44 = vsel %vm1503_vm13, %v2544_v47, %v8008_v55  ;;  %v2512_v10 = vsel %vm1503_vm13, %v2498_v59, %v8009_v1 }
 0x39e   :  { %v8022_v32 = vpop.permute.xlu1 %8021  ;;  %v8017_v56 = vpop.permute.xlu0 %8016  ;;  %2827 = vmatmul.mubr.bf16.gmra.mrb[36].mxu0 %v2590_v13  ;;  %v2527_v55 = vsel %vm1519_vm14, %v2512_v10, %v7988_v63 }
 0x39f   :  { %v8024_v38 = vunpack.i.h.bf16 %v8022_v32  ;;  %v8023_v54 = vunpack.i.l.bf16 %v8022_v32  ;;  %v8018_v60 = vunpack.i.l.bf16 %v8017_v56  ;;  %v8019_v62 = vunpack.i.h.bf16 %v8017_v56 }
 0x3a1   :  { %v2499_v17 = vsel %vm779_vm11, %v10291_v16, %v8018_v60  ;;  %v2575_v45 = vsel %vm1519_vm14, %v2559_v9, %v8023_v54  ;;  %v2576_v2 = vsel %vm1519_vm14, %v2560_v44, %v8024_v38  ;;  %v2545_v43 = vsel %vm779_vm11, %v10360_v21, %v8019_v62 }
 0x3a2   :  { %v8027_v52 = vpop.permute.xlu1 %8026  ;;  %v8037_v42 = vpop.permute.xlu0 %8036  ;;  %v2594_v57 = vpack.c.bf16 %v2576_v2, %v2575_v45  ;;  %v2513_v49 = vsel %vm1503_vm13, %v2499_v17, %v8013_v11  ;;  %v8014_v54 = vunpack.i.h.bf16 %v8012_v37 }
 0x3a3   :  { %v2528_v50 = vsel %vm1519_vm14, %v2513_v49, %v7989_v27  ;;  %v8029_v1 = vunpack.i.h.bf16 %v8027_v52  ;;  %v8028_v47 = vunpack.i.l.bf16 %v8027_v52  ;;  %v8038_v38 = vunpack.i.l.bf16 %v8037_v42 }
 0x3a4   :  { %2834 = vmatprep.mubr.bf16.mxu0 %v2594_v57  ;;  %v2593_v16 = vpack.c.bf16 %v2528_v50, %v2527_v55  ;;  %v8039_v17 = vunpack.i.h.bf16 %v8037_v42  ;;  %v2561_v37 = vsel %vm1503_vm13, %v2545_v43, %v8014_v54 }
 0x3a6   :  { %v8032_v14 = vpop.permute.xlu1 %8031  ;;  %v8042_v51 = vpop.permute.xlu0 %8041  ;;  %2835 = vmatmul.mubr.bf16.gmra.mrb[40].mxu0 %v2593_v16 }
 0x3a7   :  { %v8034_v13 = vunpack.i.h.bf16 %v8032_v14  ;;  %v8033_v34 = vunpack.i.l.bf16 %v8032_v14  ;;  %v8043_v32 = vunpack.i.l.bf16 %v8042_v51  ;;  %v8044_v52 = vunpack.i.h.bf16 %v8042_v51 }
 0x3a9   :  { %v2500_v56 = vsel %vm779_vm11, %v10298_v5, %v8034_v13  ;;  %v2546_v60 = vsel %vm779_vm11, %v10377_v18, %v8033_v34  ;;  %v2501_v59 = vsel %vm779_vm11, %v10329_v20, %v8043_v32  ;;  %v2577_v5 = vsel %vm1519_vm14, %v2561_v37, %v8038_v38 }
 0x3aa   :  { %v8047_v11 = vpop.permute.xlu1 %8046  ;;  %v2562_v9 = vsel %vm1503_vm13, %v2546_v60, %v9996_v29  ;;  %v2514_v44 = vsel %vm1503_vm13, %v2500_v56, %v8028_v47  ;;  %v2515_v21 = vsel %vm1503_vm13, %v2501_v59, %v8029_v1  ;;  %v8052_v63 = vpop.permute.xlu0 %8051  ;;  %v2547_v50 = vsel %vm779_vm11, %v10407_v48, %v8044_v52 }
 0x3ab   :  { %v8048_v45 = vunpack.i.l.bf16 %v8047_v11  ;;  %v2578_v18 = vsel %vm1519_vm14, %v2562_v9, %v10013_v36  ;;  %v2529_v20 = vsel %vm1519_vm14, %v2514_v44, %v8039_v17  ;;  %v8053_v49 = vunpack.i.l.bf16 %v8052_v63 }
 0x3ac   :  { %v2597_v2 = vpack.c.bf16 %v2578_v18, %v2577_v5  ;;  %v8049_v34 = vunpack.i.h.bf16 %v8047_v11  ;;  %v8054_v32 = vunpack.i.h.bf16 %v8052_v63 }
 0x3ad   :  { %v2530_v10 = vsel %vm1519_vm14, %v2515_v21, %v8048_v45  ;;  %v2548_v43 = vsel %vm779_vm11, %v10399_v4, %v8053_v49 }
 0x3ae   :  { %v2596_v27 = vpack.c.bf16 %v2530_v10, %v2529_v20  ;;  %2842 = vmatprep.mubr.bf16.mxu0 %v2597_v2  ;;  %v2502_v9 = vsel %vm779_vm11, %v10363_v0, %v8054_v32 }
 0x3b0   :  { %2843 = vmatmul.mubr.bf16.gmra.mrb[44].mxu0 %v2596_v27 }
 0x3b9   :  { %v8057_v57 = vpop.permute.xlu1 %8056 }
 0x3ba   :  { %v8058_v62 = vunpack.i.l.bf16 %v8057_v57  ;;  %v8059_v55 = vunpack.i.h.bf16 %v8057_v57 }
 0x3bb   :  { %v8062_v42 = vpop.permute.xlu0 %8061 }
 0x3bc   :  { %v2563_v13 = vsel %vm1503_vm13, %v2547_v50, %v8058_v62  ;;  %v8063_v47 = vunpack.i.l.bf16 %v8062_v42  ;;  %v2564_v51 = vsel %vm1503_vm13, %v2548_v43, %v8059_v55  ;;  %v8064_v20 = vunpack.i.h.bf16 %v8062_v42 }
 0x3bd   :  { %v8067_v16 = vpop.permute.xlu1 %8066  ;;  %v2579_v54 = vsel %vm1519_vm14, %v2563_v13, %v8049_v34 }
 0x3be   :  { %v8068_v1 = vunpack.i.l.bf16 %v8067_v16  ;;  %v8069_v38 = vunpack.i.h.bf16 %v8067_v16  ;;  %v2516_v4 = vsel %vm1503_vm13, %v2502_v9, %v8063_v47 }
 0x3bf   :  { %v8072_v14 = vpop.permute.xlu0 %8071 }
 0x3c0   :  { %v2580_v56 = vsel %vm1519_vm14, %v2564_v51, %v8068_v1  ;;  %v2531_v21 = vsel %vm1519_vm14, %v9957_v30, %v8069_v38  ;;  %v8074_v57 = vunpack.i.h.bf16 %v8072_v14  ;;  %v8073_v49 = vunpack.i.l.bf16 %v8072_v14 }
 0x3c1   :  { %v8082_v60 = vpop.permute.xlu1 %8081  ;;  %v2600_v59 = vpack.c.bf16 %v2580_v56, %v2579_v54 }
 0x3c2   :  { %v8083_v11 = vunpack.i.l.bf16 %v8082_v60  ;;  %v8084_v18 = vunpack.i.h.bf16 %v8082_v60  ;;  %v2504_v47 = vsel %vm779_vm11, %v10419_v3, %v8074_v57  ;;  %v2503_v14 = vsel %vm779_vm11, %v10380_v53, %v8073_v49 }
 0x3c3   :  { %v8077_v48 = vpop.permute.xlu0 %8076  ;;  %2850 = vmatprep.mubr.bf16.mxu0 %v2600_v59 }
 0x3c4   :  { %v8078_v44 = vunpack.i.l.bf16 %v8077_v48  ;;  %v2549_v2 = vsel %vm779_vm11, %v10439_v8, %v8083_v11  ;;  %v8079_v0 = vunpack.i.h.bf16 %v8077_v48  ;;  %v2550_v62 = vsel %vm779_vm11, %v10452_v39, %v8084_v18 }
 0x3c5   :  { %v8087_v45 = vpop.permute.xlu1 %8086  ;;  %v2565_v52 = vsel %vm1503_vm13, %v2549_v2, %v8064_v20 }
 0x3c6   :  { %v2532_v17 = vsel %vm1519_vm14, %v2516_v4, %v8078_v44  ;;  %v8088_v10 = vunpack.i.l.bf16 %v8087_v45  ;;  %v8089_v50 = vunpack.i.h.bf16 %v8087_v45  ;;  %v2581_v8 = vsel %vm1519_vm14, %v2565_v52, %v8079_v0 }
 0x3c7   :  { %v8092_v37 = vpop.permute.xlu0 %8091  ;;  %v2599_v5 = vpack.c.bf16 %v2532_v17, %v2531_v21 }
 0x3c8   :  { %v8093_v16 = vunpack.i.l.bf16 %v8092_v37  ;;  %v2566_v13 = vsel %vm1503_vm13, %v2550_v62, %v8088_v10  ;;  %v2517_v38 = vsel %vm1503_vm13, %v2503_v14, %v8089_v50  ;;  %v8094_v44 = vunpack.i.h.bf16 %v8092_v37 }
 0x3c9   :  { %2851 = vmatmul.mubr.bf16.gmra.mrb[48].mxu0 %v2599_v5  ;;  %v8097_v27 = vpop.permute.xlu1 %8096 }
 0x3ca   :  { %v8098_v55 = vunpack.i.l.bf16 %v8097_v27  ;;  %v8099_v34 = vunpack.i.h.bf16 %v8097_v27  ;;  %v2518_v54 = vsel %vm1503_vm13, %v2504_v47, %v8093_v16 }
 0x3cb   :  { %v8102_v63 = vpop.permute.xlu0 %8101 }
 0x3cc   :  { %v2582_v42 = vsel %vm1519_vm14, %v2566_v13, %v8098_v55  ;;  %v2533_v56 = vsel %vm1519_vm14, %v2517_v38, %v8099_v34  ;;  %v8104_v53 = vunpack.i.h.bf16 %v8102_v63  ;;  %v8103_v21 = vunpack.i.l.bf16 %v8102_v63 }
 0x3cd   :  { %v8112_v32 = vpop.permute.xlu1 %8111  ;;  %v2603_v1 = vpack.c.bf16 %v2582_v42, %v2581_v8 }
 0x3ce   :  { %v8113_v39 = vunpack.i.l.bf16 %v8112_v32  ;;  %v8114_v11 = vunpack.i.h.bf16 %v8112_v32  ;;  %v2505_v63 = vsel %vm779_vm11, %v10425_v35, %v8103_v21 }
 0x3cf   :  { %v8107_v43 = vpop.permute.xlu0 %8106  ;;  %2858 = vmatprep.mubr.bf16.mxu0 %v2603_v1 }
 0x3d0   :  { %v8108_v51 = vunpack.i.l.bf16 %v8107_v43  ;;  %v2551_v3 = vsel %vm779_vm11, %v10487_v61, %v8113_v39  ;;  %v8109_v17 = vunpack.i.h.bf16 %v8107_v43  ;;  %v2552_v20 = vsel %vm779_vm11, %v10502_v40, %v8114_v11 }
 0x3d1   :  { %v8117_v48 = vpop.permute.xlu1 %8116  ;;  %v2567_v2 = vsel %vm1503_vm13, %v2551_v3, %v8094_v44  ;;  %v2506_v61 = vsel %vm779_vm11, %v10458_v7, %v8104_v53 }
 0x3d2   :  { %v2534_v60 = vsel %vm1519_vm14, %v2518_v54, %v8108_v51  ;;  %v8118_v4 = vunpack.i.l.bf16 %v8117_v48  ;;  %v8119_v45 = vunpack.i.h.bf16 %v8117_v48  ;;  %v2583_v52 = vsel %vm1519_vm14, %v2567_v2, %v8109_v17 }
 0x3d3   :  { %v2342_v59 = vpop.permute.xlu0 %2341  ;;  %v2602_v9 = vpack.c.bf16 %v2534_v60, %v2533_v56 }
 0x3d4   :  { %v2568_v37 = vsel %vm1503_vm13, %v2552_v20, %v8118_v4  ;;  %v2519_v50 = vsel %vm1503_vm13, %v2505_v63, %v8119_v45 }
 0x3d5   :  { %2859 = vmatmul.mubr.bf16.gmra.mrb[52].mxu0 %v2602_v9  ;;  %v8127_v5 = vpop.permute.xlu1 %8126 }
 0x3d6   :  { %v8129_v10 = vunpack.i.h.bf16 %v8127_v5  ;;  %v8128_v0 = vunpack.i.l.bf16 %v8127_v5 }
 0x3d7   :  { %v8122_v18 = vpop.permute.xlu0 %8121 }
 0x3d8   :  { %v8123_v27 = vunpack.i.l.bf16 %v8122_v18  ;;  %v2584_v57 = vsel %vm1519_vm14, %v2568_v37, %v8128_v0  ;;  %v2535_v34 = vsel %vm1519_vm14, %v2519_v50, %v8129_v10  ;;  %v8124_v38 = vunpack.i.h.bf16 %v8122_v18  ;;  %v8834_v10 = vld [vmem:[%s12847_s7 + $0x80] sm:$0xff]   ;;  %v8835_v0 = vld [vmem:[%s12847_s7 + $0x88] sm:$0xff]  }
 0x3d9   :  { %v8137_v62 = vpop.permute.xlu1 %8136  ;;  %v2606_v40 = vpack.c.bf16 %v2584_v57, %v2583_v52  ;;  %7323 = vmatprep.subr.bf16.mxu0 %v8834_v10 }
 0x3da   :  { %v2520_v49 = vsel %vm1503_vm13, %v2506_v61, %v8123_v27  ;;  %v8138_v42 = vunpack.i.l.bf16 %v8137_v62  ;;  %v8139_v54 = vunpack.i.h.bf16 %v8137_v62  ;;  %7324 = vmatpush3.bf16.msra.mxu0 %v8834_v10 }
 0x3db   :  { %v8132_v55 = vpop.permute.xlu0 %8131  ;;  %v2536_v16 = vsel %vm1519_vm14, %v2520_v49, %v2342_v59  ;;  %2866 = vmatprep.mubr.bf16.mxu0 %v2606_v40  ;;  %7325 = vmatprep.subr.bf16.mxu0 %v8835_v0  ;;  %v10706_v40 = vld [vmem:[%s12848_s6] ss:$0 sm:$0xff] }
 0x3dc   :  { %v8134_v13 = vunpack.i.h.bf16 %v8132_v55  ;;  %v8133_v7 = vunpack.i.l.bf16 %v8132_v55  ;;  %v2605_v8 = vpack.c.bf16 %v2536_v16, %v2535_v34 }
 0x3dd   :  { %v8142_v32 = vpop.permute.xlu1 %8141 }
 0x3de   :  { %v2507_v35 = vsel %vm779_vm11, %v10468_v46, %v8133_v7  ;;  %2867 = vmatmul.mubr.bf16.gmra.mrb[56].mxu0 %v2605_v8  ;;  %v2508_v1 = vsel %vm779_vm11, %v10490_v33, %v8134_v13  ;;  %v8144_v47 = vunpack.i.h.bf16 %v8142_v32  ;;  %v8143_v14 = vunpack.i.l.bf16 %v8142_v32 }
 0x3df   :  { %v8147_v43 = vpop.permute.xlu0 %8146  ;;  %v2521_v56 = vsel %vm1503_vm13, %v2507_v35, %v8138_v42  ;;  %v2522_v9 = vsel %vm1503_vm13, %v2508_v1, %v8139_v54  ;;  %7326 = vmatpush3.bf16.msra.mxu0 %v8835_v0  ;;  %v8836_v35 = vld [vmem:[%s12847_s7 + $0x40] sm:$0xff]   ;;  %v8843_v0 = vld [vmem:[%s12847_s7 + $0x18] sm:$0xff]  }
 0x3e0   :  { %v8149_v39 = vunpack.i.h.bf16 %v8147_v43  ;;  %v8148_v51 = vunpack.i.l.bf16 %v8147_v43  ;;  %v2554_v60 = vsel %vm779_vm11, %v10532_v41, %v8144_v47  ;;  %v2553_v46 = vsel %vm779_vm11, %v10520_v23, %v8143_v14  ;;  %6965 = vmatprep.subr.bf16.mxu1 %v8836_v35  ;;  %v8837_v14 = vld [vmem:[%s12847_s7] sm:$0xff]  }
 0x3e1   :  { %v2346_v59 = vpop.permute.xlu1 %2345  ;;  %v2569_v33 = vsel %vm1503_vm13, %v2553_v46, %v8124_v38  ;;  %v2570_v11 = vsel %vm1503_vm13, %v2554_v60, %v9996_v29  ;;  %v12919_v43 = vmax.f32 %v9523_v25, 0.0  ;;  %6966 = vmatpush3.bf16.msra.mxu1 %v8837_v14  ;;  %v8838_v25 = vld [vmem:[%s12847_s7 + $0x48] sm:$0xff]   ;;  %v12921_v14 = vmax.f32 %v9520_v22, 0.0 }
 0x3e2   :  { %v2537_v48 = vsel %vm1519_vm14, %v2521_v56, %v8149_v39  ;;  %v2538_v3 = vsel %vm1519_vm14, %v2522_v9, %v2346_v59  ;;  %v2585_v44 = vsel %vm1519_vm14, %v2569_v33, %v8148_v51  ;;  %v2586_v41 = vsel %vm1519_vm14, %v2570_v11, %v10013_v36  ;;  %v8839_v60 = vld [vmem:[%s12847_s7 + $0x8] sm:$0xff]   ;;  %6967 = vmatprep.subr.bf16.mxu1 %v8838_v25  ;;  %v8841_v9 = vld [vmem:[%s12847_s7 + $0x10] sm:$0xff]  }
 0x3e3   :  { %v2608_v53 = vpack.c.bf16 %v2538_v3, %v2537_v48  ;;  %v2609_v4 = vpack.c.bf16 %v2586_v41, %v2585_v44  ;;  %v12920_v51 = vmax.f32 %v9537_v31, 0.0  ;;  %v8840_v31 = vld [vmem:[%s12847_s7 + $0x50] sm:$0xff]   ;;  %v8842_v41 = vld [vmem:[%s12847_s7 + $0x58] sm:$0xff]   ;;  %v8847_v22 = vld [vmem:[%s12847_s7 + $0x28] sm:$0xff]  }
 0x3e5   :  { %2874 = vmatprep.mubr.bf16.mxu0 %v2609_v4  ;;  %6968 = vmatpush3.bf16.msra.mxu1 %v8839_v60 }
 0x3e6   :  { %2875 = vmatmul.mubr.bf16.gmra.mrb[60].mxu0 %v2608_v53  ;;  %6969 = vmatprep.subr.bf16.mxu1 %v8840_v31 }
 0x3e9   :  { %6970 = vmatpush3.bf16.msra.mxu1 %v8841_v9 }
 0x3ea   :  { %6971 = vmatprep.subr.bf16.mxu1 %v8842_v41 }
 0x3ed   :  { %6972 = vmatpush3.bf16.msra.mxu1 %v8843_v0 }
 0x3f0   :  { %v10669_v23 = vpop.f32.mrb[32].mxu1 }
 0x3f1   :  { %v2917_v21 = vpop.f32.mrb[33].mxu1 }
 0x3f2   :  { %v10671_v17 = vpop.f32.mrb[34].mxu1 }
 0x3f3   :  { %v2920_v45 = vpop.f32.mrb[35].mxu1 }
 0x3fc   :  { %v10673_v5 = vpop.f32.mrb[36].mxu1 }
 0x3fd   :  { %v10675_v18 = vpop.f32.mrb[37].mxu1 }
 0x3fe   :  { %v10677_v2 = vpop.f32.mrb[38].mxu1 }
 0x3ff   :  { %v10679_v20 = vpop.f32.mrb[39].mxu1 }
 0x428   :  { %v10687_v27 = vpop.f32.mrb[40].mxu1 }
 0x429   :  { %v10689_v61 = vpop.f32.mrb[41].mxu1 }
 0x42a   :  { %v10691_v37 = vpop.f32.mrb[42].mxu1 }
 0x42b   :  { %v10693_v63 = vpop.f32.mrb[43].mxu1 }
 0x432   :  { %v10695_v52 = vpop.f32.mrb[44].mxu1 }
 0x433   :  { %v10697_v57 = vpop.f32.mrb[45].mxu1 }
 0x434   :  { %v10699_v49 = vpop.f32.mrb[46].mxu1 }
 0x435   :  { %v10701_v62 = vpop.f32.mrb[47].mxu1 }
 0x461   :  { %v6907_v55 = vpop.f32.mrb[32].mxu0 }
 0x462   :  { %v6908_v50 = vpop.f32.mrb[33].mxu0 }
 0x463   :  { %v6909_v16 = vadd.f32 %v6908_v50, %v6907_v55  ;;  %v6910_v13 = vpop.f32.mrb[34].mxu0 }
 0x464   :  { %v6911_v7 = vpop.f32.mrb[35].mxu0 }
 0x465   :  { %v2821_v34 = vadd.f32 %v6909_v16, %v10706_v40  ;;  %v6912_v8 = vadd.f32 %v6911_v7, %v6910_v13 }
 0x467   :  { %v2918_v42 = vadd.f32 %v2917_v21, %v2821_v34  ;;  %v2824_v32 = vadd.f32 %v6912_v8, %v10706_v40 }
 0x469   :  { %v10715_v1 = vadd.f32 %v2918_v42, %v12919_v43  ;;  %v2921_v47 = vadd.f32 %v2920_v45, %v2824_v32  ;;  %v8844_v42 = vld [vmem:[%s12847_s7 + $0x60] sm:$0xff]  }
 0x46a   :  { %6973 = vmatprep.subr.bf16.mxu1 %v8844_v42 }
 0x46b   :  { %v12897_v39 = vmax.f32 %v10715_v1, 0.0  ;;  %v10723_v38 = vadd.f32 %v2921_v47, %v12920_v51  ;;  %v8845_v47 = vld [vmem:[%s12847_s7 + $0x20] sm:$0xff]  }
 0x46c   :  { %6974 = vmatpush3.bf16.msra.mxu1 %v8845_v47 }
 0x46d   :  { %v3028_v54 = vrot.slane %v12897_v39, 7  ;;  %v12895_v56 = vmax.f32 %v10723_v38, 0.0  ;;  %v12943_v39 = vld [vmem:[#allocation4_spill] sm:$0xff] }
 0x46f   :  { %v10738_v46 = vsel %vm120_vm0, 0.0, %v3028_v54  ;;  %v10741_v48 = vsel %vm120_vm0, %v3028_v54, 0.0  ;;  %v3029_v59 = vrot.slane %v12895_v56, 7 }
 0x470   :  { %v3163_v33 = vrot.slane %v10741_v48, 2  ;;  %v3162_v44 = vrot.slane %v10738_v46, 2 }
 0x471   :  { %v10750_v11 = vsel %vm120_vm0, 0.0, %v3029_v59  ;;  %v10753_v3 = vsel %vm120_vm0, %v3029_v59, 0.0  ;;  %v6913_v21 = vpop.f32.mrb[36].mxu0 }
 0x472   :  { %v3166_v53 = vrot.slane %v10753_v3, 2  ;;  %v8150_v4 = vpack.i.bf16 %v10750_v11, %v10738_v46  ;;  %v3165_v45 = vrot.slane %v10750_v11, 2  ;;  %v6914_v10 = vpop.f32.mrb[37].mxu0  ;;  %v10768_v16 = vsel %vm231_vm1, %v3162_v44, %v3163_v33  ;;  %v8846_v44 = vld [vmem:[%s12847_s7 + $0x68] sm:$0xff]  }
 0x473   :  { %v6915_v55 = vadd.f32 %v6914_v10, %v6913_v21  ;;  %v6916_v50 = vpop.f32.mrb[38].mxu0  ;;  %6975 = vmatprep.subr.bf16.mxu1 %v8846_v44  ;;  %v3124_v21 = vrot.slane %v10753_v3, 1 }
 0x474   :  { %8151 = vrot.lane.b32.xlu1 %v8150_v4, %s8915_s19  ;;  %v10771_v13 = vsel %vm231_vm1, %v3165_v45, %v3166_v53  ;;  %v6917_v7 = vpop.f32.mrb[39].mxu0  ;;  %v3123_v45 = vrot.slane %v10750_v11, 1  ;;  %6976 = vmatpush3.bf16.msra.mxu1 %v8847_v22 }
 0x475   :  { %v8155_v34 = vpack.i.bf16 %v10771_v13, %v10768_v16  ;;  %v2829_v8 = vadd.f32 %v6915_v55, %v10706_v40  ;;  %v6918_v35 = vadd.f32 %v6917_v7, %v6916_v50 }
 0x477   :  { %8156 = vrot.lane.b32.xlu0 %v8155_v34, %s8914_s24  ;;  %v2926_v32 = vadd.f32 %v10669_v23, %v2829_v8  ;;  %v2832_v43 = vadd.f32 %v6918_v35, %v10706_v40  ;;  %v12922_v23 = vmax.f32 %v9533_v15, 0.0 }
 0x479   :  { %v10787_v51 = vadd.f32 %v2926_v32, %v12921_v14  ;;  %v2929_v54 = vadd.f32 %v10671_v17, %v2832_v43  ;;  %v6919_v25 = vpop.f32.mrb[40].mxu0  ;;  %v12923_v32 = vmax.f32 %v9641_v12, 0.0  ;;  %v3121_v14 = vrot.slane %v10741_v48, 1  ;;  %v8850_v48 = vld [vmem:[%s12847_s7 + $0x78] sm:$0xff]  }
 0x47a   :  { %v6920_v60 = vpop.f32.mrb[41].mxu0  ;;  %v3120_v12 = vrot.slane %v10738_v46, 1 }
 0x47b   :  { %v12894_v31 = vmax.f32 %v10787_v51, 0.0  ;;  %v10793_v59 = vadd.f32 %v2929_v54, %v12922_v23  ;;  %v6921_v9 = vadd.f32 %v6920_v60, %v6919_v25  ;;  %v6922_v33 = vpop.f32.mrb[42].mxu0 }
 0x47c   :  { %v6923_v17 = vpop.f32.mrb[43].mxu0 }
 0x47d   :  { %v3030_v41 = vrot.slane %v12894_v31, 7  ;;  %v12893_v53 = vmax.f32 %v10793_v59, 0.0  ;;  %v2837_v15 = vadd.f32 %v6921_v9, %v10706_v40  ;;  %v6924_v4 = vadd.f32 %v6923_v17, %v6922_v33 }
 0x47f   :  { %v10808_v10 = vsel %vm120_vm0, 0.0, %v3030_v41  ;;  %v3078_v0 = vsel %vm120_vm0, %v3030_v41, 0.0  ;;  %v3031_v55 = vrot.slane %v12893_v53, 7  ;;  %v2934_v50 = vadd.f32 %v10675_v18, %v2837_v15  ;;  %v8848_v18 = vld [vmem:[%s12847_s7 + $0x70] sm:$0xff]  }
 0x480   :  { %v3127_v7 = vrot.slane %v3078_v0, 1  ;;  %v3169_v34 = vrot.slane %v3078_v0, 2  ;;  %v2840_v8 = vadd.f32 %v6924_v4, %v10706_v40  ;;  %v8160_v3 = vpack.i.bf16 %v10808_v10, %v10750_v11  ;;  %6977 = vmatprep.subr.bf16.mxu1 %v8848_v18 }
 0x481   :  { %v10818_v35 = vsel %vm120_vm0, 0.0, %v3031_v55  ;;  %v10821_v42 = vsel %vm120_vm0, %v3031_v55, 0.0  ;;  %v10825_v43 = vadd.f32 %v2934_v50, %v12923_v32  ;;  %v3168_v47 = vrot.slane %v10808_v10, 2 }
 0x482   :  { %v2937_v54 = vadd.f32 %v10679_v20, %v2840_v8  ;;  %8161 = vrot.lane.b32.xlu0 %v8160_v3, %s8916_s22  ;;  %v8165_v60 = vpack.i.bf16 %v10818_v35, %v10768_v16  ;;  %v3172_v23 = vrot.slane %v10821_v42, 2  ;;  %v3126_v22 = vrot.slane %v10808_v10, 1  ;;  %v8849_v20 = vld [vmem:[%s12847_s7 + $0x30] sm:$0xff]   ;;  %v8851_v3 = vld [vmem:[%s12847_s7 + $0x38] sm:$0xff]  }
 0x483   :  { %v6925_v25 = vpop.f32.mrb[44].mxu0  ;;  %v12891_v9 = vmax.f32 %v10825_v43, 0.0  ;;  %v3170_v44 = vsel %vm231_vm1, %v3168_v47, %v3169_v34  ;;  %v12924_v16 = vmax.f32 %v9649_v58, 0.0  ;;  %v3171_v0 = vrot.slane %v10818_v35, 2  ;;  %6978 = vmatpush3.bf16.msra.mxu1 %v8849_v20 }
 0x484   :  { %v6926_v33 = vpop.f32.mrb[45].mxu0  ;;  %8166 = vrot.lane.b32.xlu1 %v8165_v60, %s8916_s22  ;;  %v3608_v4 = vpack.c.bf16 %v3170_v44, %v10771_v13  ;;  %v10857_v34 = vsel %vm185_vm2, %v3123_v45, %v3124_v21  ;;  %v10860_v8 = vsel %vm185_vm2, %v3126_v22, %v3127_v7  ;;  %v8170_v58 = vpack.i.bf16 %v10818_v35, %v10808_v10 }
 0x485   :  { %v10849_v17 = vadd.f32 %v2937_v54, %v12924_v16  ;;  %v6927_v41 = vadd.f32 %v6926_v33, %v6925_v25  ;;  %v6928_v15 = vpop.f32.mrb[46].mxu0  ;;  %v3032_v55 = vrot.slane %v12891_v9, 7  ;;  %v8180_v21 = vpack.i.bf16 %v10860_v8, %v10857_v34  ;;  %6979 = vmatprep.subr.bf16.mxu1 %v8850_v48 }
 0x486   :  { %v6929_v50 = vpop.f32.mrb[47].mxu0  ;;  %7327 = vmatprep.mubr.msk.bf16.mxu0 %vm779_vm11, %v3608_v4  ;;  %v10877_v54 = vsel %vm231_vm1, %v3171_v0, %v3172_v23  ;;  %v10885_v22 = vsel %vm185_vm2, %v3120_v12, %v3121_v14  ;;  %v12925_v14 = vmax.f32 %v9637_v24, 0.0  ;;  %v3129_v24 = vrot.slane %v10818_v35, 1 }
 0x487   :  { %v12889_v32 = vmax.f32 %v10849_v17, 0.0  ;;  %v2845_v47 = vadd.f32 %v6927_v41, %v10706_v40  ;;  %v6930_v18 = vadd.f32 %v6929_v50, %v6928_v15  ;;  %v10873_v45 = vsel %vm120_vm0, 0.0, %v3032_v55  ;;  %8181 = vrot.lane.b32.xlu0 %v8180_v21, %s8915_s19  ;;  %6980 = vmatpush3.bf16.msra.mxu1 %v8851_v3 }
 0x488   :  { %v3080_v7 = vsel %vm120_vm0, %v3032_v55, 0.0  ;;  %v3174_v25 = vrot.slane %v10873_v45, 2  ;;  %8171 = vrot.lane.b32.xlu1 %v8170_v58, %s8915_s19  ;;  %v8175_v23 = vpack.i.bf16 %v3170_v44, %v10885_v22  ;;  %v8185_v4 = vpack.i.bf16 %v10857_v34, %v10877_v54 }
 0x489   :  { %v3175_v60 = vrot.slane %v3080_v7, 2  ;;  %v3033_v33 = vrot.slane %v12889_v32, 7  ;;  %v2942_v20 = vadd.f32 %v10673_v5, %v2845_v47  ;;  %v2848_v48 = vadd.f32 %v6930_v18, %v10706_v40  ;;  %v12931_v32 = vld [vmem:[#allocation2_spill] sm:$0xff] }
 0x48a   :  { %v3133_v16 = vrot.slane %v3080_v7, 1  ;;  %v3132_v55 = vrot.slane %v10873_v45, 1  ;;  %v3130_v58 = vrot.slane %v10821_v42, 1  ;;  %v12926_v47 = vmax.f32 %v9645_v19, 0.0 }
 0x48b   :  { %v10891_v41 = vsel %vm120_vm0, 0.0, %v3033_v33  ;;  %v3176_v15 = vsel %vm231_vm1, %v3174_v25, %v3175_v60  ;;  %v3081_v0 = vsel %vm120_vm0, %v3033_v33, 0.0  ;;  %v10899_v12 = vadd.f32 %v2942_v20, %v12925_v14  ;;  %8186 = vrot.lane.b32.xlu0 %v8185_v4, %s8914_s24 }
 0x48c   :  { %v2945_v5 = vadd.f32 %v10677_v2, %v2848_v48  ;;  %v3611_v50 = vpack.c.bf16 %v3176_v15, %v10877_v54  ;;  %8176 = vrot.lane.b32.xlu1 %v8175_v23, %s8914_s24  ;;  %v3178_v21 = vrot.slane %v3081_v0, 2  ;;  %v8190_v2 = vpack.i.bf16 %v10771_v13, %v10873_v45 }
 0x48d   :  { %v12888_v3 = vmax.f32 %v10899_v12, 0.0  ;;  %v8195_v7 = vpack.i.bf16 %v10891_v41, %v3170_v44  ;;  %v10921_v60 = vsel %vm185_vm2, %v3132_v55, %v3133_v16  ;;  %v3177_v19 = vrot.slane %v10891_v41, 2 }
 0x48e   :  { %v10910_v18 = vadd.f32 %v2945_v5, %v12926_v47  ;;  %7328 = vmatmul.mubr.msk.bf16.vlgmr.msra.gmra.mrb[64].mxu0 %vm779_vm11, %v3611_v50  ;;  %v10933_v20 = vsel %vm185_vm2, %v3129_v24, %v3130_v58  ;;  %v8200_v16 = vpack.i.bf16 %v10891_v41, %v10873_v45 }
 0x48f   :  { %v3034_v25 = vrot.slane %v12888_v3, 7  ;;  %8191 = vrot.lane.b32.xlu0 %v8190_v2, %s8916_s22  ;;  %v8210_v23 = vpack.i.bf16 %v10921_v60, %v10933_v20  ;;  %v3179_v55 = vsel %vm231_vm1, %v3177_v19, %v3178_v21 }
 0x490   :  { %v12885_v42 = vmax.f32 %v10910_v18, 0.0  ;;  %8196 = vrot.lane.b32.xlu1 %v8195_v7, %s8916_s22  ;;  %v8215_v2 = vpack.i.bf16 %v10933_v20, %v3179_v55 }
 0x491   :  { %v10927_v33 = vsel %vm120_vm0, 0.0, %v3034_v25  ;;  %v3082_v13 = vsel %vm120_vm0, %v3034_v25, 0.0  ;;  %v8205_v25 = vpack.i.bf16 %v3176_v15, %v10860_v8 }
 0x492   :  { %v3035_v44 = vrot.slane %v12885_v42, 7  ;;  %v3181_v48 = vrot.slane %v3082_v13, 2  ;;  %v3180_v4 = vrot.slane %v10927_v33, 2  ;;  %v3139_v42 = vrot.slane %v3082_v13, 1 }
 0x493   :  { %8211 = vrot.lane.b32.xlu0 %v8210_v23, %s8915_s19  ;;  %v3138_v19 = vrot.slane %v10927_v33, 1  ;;  %v8220_v23 = vpack.i.bf16 %v10877_v54, %v10927_v33 }
 0x494   :  { %v10941_v14 = vsel %vm120_vm0, 0.0, %v3035_v44  ;;  %v3083_v5 = vsel %vm120_vm0, %v3035_v44, 0.0  ;;  %8201 = vrot.lane.b32.xlu1 %v8200_v16, %s8915_s19  ;;  %v3182_v58 = vsel %vm231_vm1, %v3180_v4, %v3181_v48  ;;  %v3136_v44 = vrot.slane %v3081_v0, 1 }
 0x495   :  { %v3231_v50 = vrot.slane %v3083_v5, 2  ;;  %v3230_v47 = vrot.slane %v10941_v14, 2  ;;  %v3614_v24 = vpack.c.bf16 %v3182_v58, %v3179_v55  ;;  %v3135_v48 = vrot.slane %v10891_v41, 1 }
 0x496   :  { %v8225_v13 = vpack.i.bf16 %v10941_v14, %v3176_v15  ;;  %v3209_v16 = vrot.slane %v3083_v5, 1  ;;  %v10963_v4 = vsel %vm185_vm2, %v3138_v19, %v3139_v42  ;;  %v8230_v15 = vpack.i.bf16 %v3182_v58, %v10921_v60 }
 0x497   :  { %v3232_v7 = vsel %vm231_vm1, %v3230_v47, %v3231_v50  ;;  %7331 = vmatprep.mubr.msk.bf16.mxu0 %vm779_vm11, %v3614_v24  ;;  %8216 = vrot.lane.b32.xlu0 %v8215_v2, %s8914_s24  ;;  %v3208_v50 = vrot.slane %v10941_v14, 1  ;;  %v10969_v24 = vsel %vm185_vm2, %v3135_v48, %v3136_v44 }
 0x498   :  { %v3617_v21 = vpack.c.bf16 %v9046_v26, %v3232_v7  ;;  %8206 = vrot.lane.b32.xlu1 %v8205_v25, %s8914_s24  ;;  %v8235_v54 = vpack.i.bf16 %v10963_v4, %v10969_v24 }
 0x499   :  { %v10975_v5 = vsel %vm185_vm2, %v3208_v50, %v3209_v16 }
 0x49a   :  { %7332 = vmatmul.mubr.msk.bf16.gmra.mrb[68].mxu0 %vm779_vm11, %v3617_v21 }
 0x49b   :  { %8221 = vrot.lane.b32.xlu0 %v8220_v23, %s8916_s22  ;;  %v8240_v23 = vpack.i.bf16 %v3182_v58, %v3179_v55  ;;  %v8245_v55 = vpack.i.bf16 %v10969_v24, %v3232_v7 }
 0x49c   :  { %v6931_v47 = vpop.f32.mrb[48].mxu0  ;;  %8226 = vrot.lane.b32.xlu1 %v8225_v13, %s8916_s22  ;;  %v8250_v13 = vpack.i.bf16 %v10927_v33, %v10975_v5 }
 0x49d   :  { %v6932_v0 = vpop.f32.mrb[49].mxu0 }
 0x49e   :  { %v6933_v2 = vadd.f32 %v6932_v0, %v6931_v47  ;;  %v6934_v25 = vpop.f32.mrb[50].mxu0  ;;  %v12927_v47 = vmax.f32 %v9742_v6, 0.0 }
 0x49f   :  { %v6935_v42 = vpop.f32.mrb[51].mxu0  ;;  %8236 = vrot.lane.b32.xlu0 %v8235_v54, %s8915_s19 }
 0x4a0   :  { %v2853_v21 = vadd.f32 %v6933_v2, %v10706_v40  ;;  %v6936_v19 = vadd.f32 %v6935_v42, %v6934_v25  ;;  %8231 = vrot.lane.b32.xlu1 %v8230_v15, %s8914_s24 }
 0x4a2   :  { %v2950_v44 = vadd.f32 %v10689_v61, %v2853_v21  ;;  %v2856_v48 = vadd.f32 %v6936_v19, %v10706_v40  ;;  %v12929_v61 = vmax.f32 %v9751_v28, 0.0 }
 0x4a3   :  { %8241 = vrot.lane.b32.xlu0 %v8240_v23, %s8916_s22 }
 0x4a4   :  { %v10986_v0 = vadd.f32 %v2950_v44, %v12927_v47  ;;  %v2953_v16 = vadd.f32 %v10693_v63, %v2856_v48  ;;  %8251 = vrot.lane.b32.xlu1 %v8250_v13, %s8915_s19 }
 0x4a6   :  { %12928 = vst [vmem:[#allocation8_spill] sm:$0xff] %v10986_v0  ;;  %v12887_v50 = vmax.f32 %v10986_v0, 0.0  ;;  %v10994_v2 = vadd.f32 %v2953_v16, %v12929_v61 }
 0x4a7   :  { %8246 = vrot.lane.b32.xlu0 %v8245_v55, %s8914_s24 }
 0x4a8   :  { %12930 = vst [vmem:[#allocation9_spill] sm:$0xff] %v10994_v2  ;;  %v3036_v58 = vrot.slane %v12887_v50, 7  ;;  %v12886_v6 = vmax.f32 %v10994_v2, 0.0  ;;  %v6937_v25 = vpop.f32.mrb[52].mxu0 }
 0x4a9   :  { %v6938_v63 = vpop.f32.mrb[53].mxu0 }
 0x4aa   :  { %v11002_v54 = vsel %vm120_vm0, 0.0, %v3036_v58  ;;  %v3084_v15 = vsel %vm120_vm0, %v3036_v58, 0.0  ;;  %v3037_v28 = vrot.slane %v12886_v6, 7  ;;  %v6939_v42 = vadd.f32 %v6938_v63, %v6937_v25  ;;  %v6940_v21 = vpop.f32.mrb[54].mxu0 }
 0x4ab   :  { %v3142_v7 = vrot.slane %v3084_v15, 1  ;;  %v3184_v19 = vrot.slane %v3084_v15, 2  ;;  %v6941_v44 = vpop.f32.mrb[55].mxu0  ;;  %v3183_v48 = vrot.slane %v11002_v54, 2  ;;  %v3141_v23 = vrot.slane %v11002_v54, 1 }
 0x4ac   :  { %v11010_v13 = vsel %vm120_vm0, 0.0, %v3037_v28  ;;  %v3085_v47 = vsel %vm120_vm0, %v3037_v28, 0.0  ;;  %v2861_v16 = vadd.f32 %v6939_v42, %v10706_v40  ;;  %v6942_v61 = vadd.f32 %v6941_v44, %v6940_v21 }
 0x4ad   :  { %v3145_v55 = vrot.slane %v3085_v47, 1  ;;  %v3187_v58 = vrot.slane %v3085_v47, 2  ;;  %v3185_v25 = vsel %vm231_vm1, %v3183_v48, %v3184_v19  ;;  %v3144_v63 = vrot.slane %v11010_v13, 1 }
 0x4ae   :  { %v2958_v15 = vadd.f32 %v10687_v27, %v2861_v16  ;;  %v2864_v6 = vadd.f32 %v6942_v61, %v10706_v40  ;;  %v8255_v50 = vpack.i.bf16 %v3185_v25, %v10963_v4  ;;  %v3186_v28 = vrot.slane %v11010_v13, 2  ;;  %v12934_v16 = vld [vmem:[#allocation3_spill] sm:$0xff] }
 0x4af   :  { %v11020_v3 = vsel %vm185_vm2, %v3144_v63, %v3145_v55  ;;  %v12932_v42 = vmax.f32 %v12931_v32, 0.0  ;;  %v11032_v19 = vsel %vm185_vm2, %v3141_v23, %v3142_v7  ;;  %v12935_v61 = vmax.f32 %v12934_v16, 0.0 }
 0x4b0   :  { %v2961_v44 = vadd.f32 %v10691_v37, %v2864_v6  ;;  %8256 = vrot.lane.b32.xlu1 %v8255_v50, %s8914_s24  ;;  %v8260_v27 = vpack.i.bf16 %v11020_v3, %v10941_v14  ;;  %v11035_v48 = vsel %vm231_vm1, %v3186_v28, %v3187_v58 }
 0x4b1   :  { %v11025_v21 = vadd.f32 %v2958_v15, %v12932_v42  ;;  %v6943_v55 = vpop.f32.mrb[56].mxu0  ;;  %v8265_v37 = vpack.i.bf16 %v11032_v19, %v11035_v48 }
 0x4b2   :  { %v11040_v32 = vadd.f32 %v2961_v44, %v12935_v61  ;;  %8261 = vrot.lane.b32.xlu0 %v8260_v27, %s8915_s19  ;;  %v6944_v50 = vpop.f32.mrb[57].mxu0 }
 0x4b3   :  { %12933 = vst [vmem:[#allocation2_spill] sm:$0xff] %v11025_v21  ;;  %v12890_v47 = vmax.f32 %v11025_v21, 0.0  ;;  %v6945_v7 = vadd.f32 %v6944_v50, %v6943_v55  ;;  %v6946_v23 = vpop.f32.mrb[58].mxu0 }
 0x4b4   :  { %12936 = vst [vmem:[#allocation3_spill] sm:$0xff] %v11040_v32  ;;  %v12892_v6 = vmax.f32 %v11040_v32, 0.0  ;;  %8266 = vrot.lane.b32.xlu1 %v8265_v37, %s8914_s24  ;;  %v6947_v58 = vpop.f32.mrb[59].mxu0 }
 0x4b5   :  { %v3038_v14 = vrot.slane %v12890_v47, 7  ;;  %v2869_v42 = vadd.f32 %v6945_v7, %v10706_v40  ;;  %v6948_v16 = vadd.f32 %v6947_v58, %v6946_v23  ;;  %v12937_v23 = vld [vmem:[#allocation5_spill] sm:$0xff] }
 0x4b6   :  { %v3039_v28 = vrot.slane %v12892_v6, 7  ;;  %v12938_v58 = vmax.f32 %v12937_v23, 0.0 }
 0x4b7   :  { %v11050_v63 = vsel %vm120_vm0, 0.0, %v3038_v14  ;;  %v3086_v15 = vsel %vm120_vm0, %v3038_v14, 0.0  ;;  %v2966_v50 = vadd.f32 %v10697_v57, %v2869_v42  ;;  %v2872_v6 = vadd.f32 %v6948_v16, %v10706_v40 }
 0x4b8   :  { %v3148_v44 = vrot.slane %v3086_v15, 1  ;;  %v3190_v27 = vrot.slane %v3086_v15, 2  ;;  %v8270_v61 = vpack.i.bf16 %v11050_v63, %v11010_v13  ;;  %v11059_v55 = vsel %vm120_vm0, 0.0, %v3039_v28 }
 0x4b9   :  { %v3087_v37 = vsel %vm120_vm0, %v3039_v28, 0.0  ;;  %v3189_v14 = vrot.slane %v11050_v63, 2  ;;  %v8275_v7 = vpack.i.bf16 %v11059_v55, %v3185_v25  ;;  %v11069_v15 = vadd.f32 %v2966_v50, %v12938_v58  ;;  %v6949_v31 = vpop.f32.mrb[60].mxu0 }
 0x4ba   :  { %v3151_v47 = vrot.slane %v3087_v37, 1  ;;  %v3193_v9 = vrot.slane %v3087_v37, 2  ;;  %8271 = vrot.lane.b32.xlu0 %v8270_v61, %s8916_s22  ;;  %v3147_v28 = vrot.slane %v11050_v63, 1  ;;  %v3192_v57 = vrot.slane %v11059_v55, 2  ;;  %v6950_v37 = vpop.f32.mrb[61].mxu0 }
 0x4bb   :  { %12939 = vst [vmem:[#allocation5_spill] sm:$0xff] %v11069_v15  ;;  %v3191_v53 = vsel %vm231_vm1, %v3189_v14, %v3190_v27  ;;  %v2969_v42 = vadd.f32 %v10701_v62, %v2872_v6  ;;  %8276 = vrot.lane.b32.xlu1 %v8275_v7, %s8916_s22  ;;  %v3150_v61 = vrot.slane %v11059_v55, 1  ;;  %v12896_v25 = vmax.f32 %v11069_v15, 0.0  ;;  %v12940_v14 = vld [vmem:[#allocation7_spill] sm:$0xff]  ;;  %v6952_v6 = vpop.f32.mrb[62].mxu0  ;;  %v12946_v15 = vld [vmem:[#allocation6_spill] sm:$0xff] }
 0x4bc   :  { %v3620_v16 = vpack.c.bf16 %v3191_v53, %v11035_v48  ;;  %v11080_v50 = vsel %vm185_vm2, %v3147_v28, %v3148_v44  ;;  %v11083_v27 = vsel %vm231_vm1, %v3192_v57, %v3193_v9  ;;  %v12941_v23 = vmax.f32 %v12940_v14, 0.0  ;;  %v6953_v28 = vpop.f32.mrb[63].mxu0 }
 0x4bd   :  { %v6951_v62 = vadd.f32 %v6950_v37, %v6949_v31  ;;  %v8280_v7 = vpack.i.bf16 %v11002_v54, %v11080_v50  ;;  %v8285_v56 = vpack.i.bf16 %v11080_v50, %v11020_v3  ;;  %v3040_v44 = vrot.slane %v12896_v25, 7 }
 0x4be   :  { %v11087_v58 = vadd.f32 %v2969_v42, %v12941_v23  ;;  %7335 = vmatprep.mubr.msk.bf16.mxu0 %vm779_vm11, %v3620_v16  ;;  %v11097_v9 = vsel %vm185_vm2, %v3150_v61, %v3151_v47  ;;  %v6954_v42 = vadd.f32 %v6953_v28, %v6952_v6  ;;  %v8295_v14 = vpack.i.bf16 %v11083_v27, %v3191_v53 }
 0x4bf   :  { %v2877_v31 = vadd.f32 %v6951_v62, %v10706_v40  ;;  %8281 = vrot.lane.b32.xlu0 %v8280_v7, %s8915_s19  ;;  %8286 = vrot.lane.b32.xlu1 %v8285_v56, %s8914_s24  ;;  %v11104_v16 = vsel %vm120_vm0, 0.0, %v3040_v44  ;;  %v3088_v37 = vsel %vm120_vm0, %v3040_v44, 0.0  ;;  %v8290_v62 = vpack.i.bf16 %v11097_v9, %v11010_v13 }
 0x4c0   :  { %12942 = vst [vmem:[#allocation7_spill] sm:$0xff] %v11087_v58  ;;  %v12899_v57 = vmax.f32 %v11087_v58, 0.0  ;;  %v3196_v23 = vrot.slane %v3088_v37, 2  ;;  %v3154_v6 = vrot.slane %v3088_v37, 1  ;;  %v2880_v7 = vadd.f32 %v6954_v42, %v10706_v40 }
 0x4c1   :  { %v2974_v61 = vadd.f32 %v10695_v52, %v2877_v31  ;;  %v3195_v56 = vrot.slane %v11104_v16, 2  ;;  %v3153_v28 = vrot.slane %v11104_v16, 1  ;;  %v12944_v58 = vmax.f32 %v12943_v39, 0.0 }
 0x4c2   :  { %v3041_v47 = vrot.slane %v12899_v57, 7  ;;  %v2977_v52 = vadd.f32 %v10699_v49, %v2880_v7  ;;  %v12947_v39 = vmax.f32 %v12946_v15, 0.0 }
 0x4c3   :  { %v11122_v57 = vadd.f32 %v2974_v61, %v12944_v58  ;;  %8296 = vrot.lane.b32.xlu0 %v8295_v14, %s8914_s24  ;;  %8291 = vrot.lane.b32.xlu1 %v8290_v62, %s8915_s19  ;;  %v3197_v40 = vsel %vm231_vm1, %v3195_v56, %v3196_v23  ;;  %v11138_v61 = vsel %vm185_vm2, %v3153_v28, %v3154_v6 }
 0x4c4   :  { %v11117_v44 = vsel %vm120_vm0, 0.0, %v3041_v47  ;;  %v3089_v25 = vsel %vm120_vm0, %v3041_v47, 0.0  ;;  %v3623_v37 = vpack.c.bf16 %v3197_v40, %v11083_v27  ;;  %v8300_v47 = vpack.i.bf16 %v11035_v48, %v11104_v16 }
 0x4c5   :  { %12945 = vst [vmem:[#allocation4_spill] sm:$0xff] %v11122_v57  ;;  %v3199_v31 = vrot.slane %v3089_v25, 2  ;;  %v12901_v42 = vmax.f32 %v11122_v57, 0.0  ;;  %v11134_v58 = vadd.f32 %v2977_v52, %v12947_v39  ;;  %v8305_v14 = vpack.i.bf16 %v11117_v44, %v3191_v53 }
 0x4c6   :  { %v3198_v49 = vrot.slane %v11117_v44, 2  ;;  %v3157_v23 = vrot.slane %v3089_v25, 1  ;;  %7336 = vmatmul.mubr.msk.bf16.gmra.mrb[72].mxu0 %vm779_vm11, %v3623_v37  ;;  %v3156_v48 = vrot.slane %v11117_v44, 1  ;;  %v8310_v25 = vpack.i.bf16 %v11050_v63, %v11138_v61 }
 0x4c7   :  { %12948 = vst [vmem:[#allocation6_spill] sm:$0xff] %v11134_v58  ;;  %v3042_v62 = vrot.slane %v12901_v42, 7  ;;  %8301 = vrot.lane.b32.xlu0 %v8300_v47, %s8916_s22  ;;  %v12903_v15 = vmax.f32 %v11134_v58, 0.0  ;;  %8306 = vrot.lane.b32.xlu1 %v8305_v14, %s8916_s22  ;;  %v8315_v7 = vpack.i.bf16 %v11138_v61, %v11097_v9 }
 0x4c8   :  { %v3200_v52 = vsel %vm231_vm1, %v3198_v49, %v3199_v31  ;;  %v11162_v47 = vsel %vm185_vm2, %v3156_v48, %v3157_v23 }
 0x4c9   :  { %v11149_v53 = vsel %vm120_vm0, 0.0, %v3042_v62  ;;  %v3090_v6 = vsel %vm120_vm0, %v3042_v62, 0.0  ;;  %v3043_v28 = vrot.slane %v12903_v15, 7  ;;  %v8325_v15 = vpack.i.bf16 %v3200_v52, %v3197_v40 }
 0x4ca   :  { %v3202_v56 = vrot.slane %v3090_v6, 2  ;;  %v3201_v37 = vrot.slane %v11149_v53, 2  ;;  %v3160_v31 = vrot.slane %v3090_v6, 1  ;;  %v8320_v49 = vpack.i.bf16 %v11162_v47, %v11059_v55 }
 0x4cb   :  { %8311 = vrot.lane.b32.xlu0 %v8310_v25, %s8915_s19  ;;  %v3075_v39 = vsel %vm120_vm0, 0.0, %v3043_v28  ;;  %v3091_v14 = vsel %vm120_vm0, %v3043_v28, 0.0  ;;  %8316 = vrot.lane.b32.xlu1 %v8315_v7, %s8914_s24  ;;  %v3159_v25 = vrot.slane %v11149_v53, 1  ;;  %v8330_v7 = vpack.i.bf16 %v11083_v27, %v11149_v53 }
 0x4cc   :  { %v3203_v62 = vsel %vm231_vm1, %v3201_v37, %v3202_v56  ;;  %v3234_v42 = vrot.slane %v3091_v14, 2  ;;  %v3233_v57 = vrot.slane %v3075_v39, 2 }
 0x4cd   :  { %v3626_v58 = vpack.c.bf16 %v3203_v62, %v3200_v52  ;;  %v11180_v6 = vsel %vm185_vm2, %v3159_v25, %v3160_v31  ;;  %v8350_v27 = vpack.i.bf16 %v3203_v62, %v3200_v52 }
 0x4ce   :  { %v3235_v23 = vsel %vm231_vm1, %v3233_v57, %v3234_v42  ;;  %v8340_v57 = vpack.i.bf16 %v11104_v16, %v11180_v6  ;;  %v8335_v42 = vpack.i.bf16 %v3075_v39, %v3197_v40  ;;  %v8345_v56 = vpack.i.bf16 %v11180_v6, %v11162_v47 }
 0x4cf   :  { %7339 = vmatprep.mubr.msk.bf16.mxu0 %vm779_vm11, %v3626_v58  ;;  %8326 = vrot.lane.b32.xlu0 %v8325_v15, %s8914_s24  ;;  %v3629_v48 = vpack.c.bf16 %v9046_v26, %v3235_v23  ;;  %v3212_v58 = vrot.slane %v3091_v14, 1  ;;  %v3211_v15 = vrot.slane %v3075_v39, 1  ;;  %v8355_v37 = vpack.i.bf16 %v3235_v23, %v3203_v62 }
 0x4d0   :  { %8321 = vrot.lane.b32.xlu1 %v8320_v49, %s8915_s19 }
 0x4d1   :  { %7340 = vmatmul.mubr.msk.bf16.gmra.mrb[76].mxu0 %vm779_vm11, %v3629_v48  ;;  %v11193_v28 = vsel %vm185_vm2, %v3211_v15, %v3212_v58 }
 0x4d2   :  { %v8360_v40 = vpack.i.bf16 %v11149_v53, %v11193_v28 }
 0x4d3   :  { %8331 = vrot.lane.b32.xlu0 %v8330_v7, %s8916_s22 }
 0x4d4   :  { %3360 = vrot.lane.b32.xlu1 %v11117_v44, %s8915_s19 }
 0x4d7   :  { %8341 = vrot.lane.b32.xlu0 %v8340_v57, %s8915_s19 }
 0x4d8   :  { %8336 = vrot.lane.b32.xlu1 %v8335_v42, %s8916_s22 }
 0x4db   :  { %8351 = vrot.lane.b32.xlu0 %v8350_v27, %s8916_s22 }
 0x4dc   :  { %8346 = vrot.lane.b32.xlu1 %v8345_v56, %s8914_s24 }
 0x4df   :  { %8356 = vrot.lane.b32.xlu0 %v8355_v37, %s8914_s24 }
 0x4e0   :  { %8361 = vrot.lane.b32.xlu1 %v8360_v40, %s8915_s19 }
 0x4e3   :  { %3364 = vrot.lane.b32.xlu0 %v3075_v39, %s8915_s19 }
 0x4e6   :  { %v8152_v14 = vpop.permute.xlu1 %8151 }
 0x4e7   :  { %v8153_v21 = vunpack.i.l.bf16 %v8152_v14 }
 0x4e9   :  { %v8157_v52 = vpop.permute.xlu0 %8156 }
 0x4ea   :  { %v8159_v25 = vunpack.i.h.bf16 %v8157_v52  ;;  %v8158_v48 = vunpack.i.l.bf16 %v8157_v52 }
 0x4ec   :  { %v3559_v62 = vsel %vm779_vm11, %v10857_v34, %v8159_v25  ;;  %v3558_v23 = vsel %vm779_vm11, %v10885_v22, %v8158_v48  ;;  %v8154_v34 = vunpack.i.h.bf16 %v8152_v14 }
 0x4f4   :  { %v8162_v31 = vpop.permute.xlu0 %8161 }
 0x4f5   :  { %v8164_v7 = vunpack.i.h.bf16 %v8162_v31  ;;  %v8163_v57 = vunpack.i.l.bf16 %v8162_v31 }
 0x4f6   :  { %v8167_v49 = vpop.permute.xlu1 %8166 }
 0x4f7   :  { %v3574_v39 = vsel %vm1503_vm13, %v3558_v23, %v8163_v57  ;;  %v3575_v56 = vsel %vm1503_vm13, %v3559_v62, %v8164_v7  ;;  %v8168_v0 = vunpack.i.l.bf16 %v8167_v49  ;;  %v8169_v14 = vunpack.i.h.bf16 %v8167_v49 }
 0x4f9   :  { %v8182_v42 = vpop.permute.xlu0 %8181 }
 0x4fa   :  { %v8172_v58 = vpop.permute.xlu1 %8171  ;;  %v8184_v15 = vunpack.i.h.bf16 %v8182_v42  ;;  %v8183_v27 = vunpack.i.l.bf16 %v8182_v42  ;;  %v3542_v42 = vsel %vm1519_vm14, %v9957_v30, %v8153_v21 }
 0x4fc   :  { %v3590_v37 = vsel %vm1519_vm14, %v3574_v39, %v8183_v27  ;;  %v3591_v40 = vsel %vm1519_vm14, %v3575_v56, %v8184_v15 }
 0x4fd   :  { %v8187_v52 = vpop.permute.xlu0 %8186  ;;  %v3607_v32 = vpack.c.bf16 %v3591_v40, %v3590_v37 }
 0x4fe   :  { %v8177_v31 = vpop.permute.xlu1 %8176  ;;  %v8188_v62 = vunpack.i.l.bf16 %v8187_v52  ;;  %v8189_v37 = vunpack.i.h.bf16 %v8187_v52 }
 0x4ff   :  { %v8178_v2 = vunpack.i.l.bf16 %v8177_v31  ;;  %3837 = vmatprep.mubr.bf16.mxu1 %v3607_v32  ;;  %v8179_v25 = vunpack.i.h.bf16 %v8177_v31 }
 0x501   :  { %v3514_v22 = vsel %vm779_vm11, %v10738_v46, %v8178_v2  ;;  %v8192_v57 = vpop.permute.xlu0 %8191  ;;  %v3560_v32 = vsel %vm779_vm11, %v10860_v8, %v8179_v25  ;;  %v3561_v46 = vsel %vm779_vm11, %v10933_v20, %v8188_v62 }
 0x502   :  { %v3528_v48 = vsel %vm1503_vm13, %v3514_v22, %v8168_v0  ;;  %v8197_v7 = vpop.permute.xlu1 %8196  ;;  %v8193_v15 = vunpack.i.l.bf16 %v8192_v57  ;;  %v3576_v21 = vsel %vm1503_vm13, %v3560_v32, %v8169_v14  ;;  %v8194_v31 = vunpack.i.h.bf16 %v8192_v57 }
 0x503   :  { %v3543_v23 = vsel %vm1519_vm14, %v3528_v48, %v8154_v34  ;;  %v8198_v20 = vunpack.i.l.bf16 %v8197_v7  ;;  %v8174_v57 = vunpack.i.h.bf16 %v8172_v58 }
 0x504   :  { %v3606_v27 = vpack.c.bf16 %v3543_v23, %v3542_v42  ;;  %v3577_v40 = vsel %vm1503_vm13, %v3561_v46, %v8193_v15  ;;  %v3515_v42 = vsel %vm779_vm11, %v10750_v11, %v8189_v37  ;;  %v8173_v15 = vunpack.i.l.bf16 %v8172_v58 }
 0x505   :  { %v8212_v39 = vpop.permute.xlu0 %8211  ;;  %v3529_v23 = vsel %vm1503_vm13, %v3515_v42, %v8194_v31 }
 0x506   :  { %v8202_v56 = vpop.permute.xlu1 %8201  ;;  %3838 = vmatmul.mubr.bf16.vlgmr.msra.gmra.mrb[48].mxu1 %v3606_v27  ;;  %v8214_v0 = vunpack.i.h.bf16 %v8212_v39  ;;  %v8213_v2 = vunpack.i.l.bf16 %v8212_v39 }
 0x508   :  { %v3592_v34 = vsel %vm1519_vm14, %v3576_v21, %v8213_v2  ;;  %v3593_v22 = vsel %vm1519_vm14, %v3577_v40, %v8214_v0  ;;  %v3544_v2 = vsel %vm1519_vm14, %v3529_v23, %v8173_v15  ;;  %v8199_v40 = vunpack.i.h.bf16 %v8197_v7 }
 0x509   :  { %v8217_v8 = vpop.permute.xlu0 %8216  ;;  %v3610_v25 = vpack.c.bf16 %v3593_v22, %v3592_v34  ;;  %v8203_v23 = vunpack.i.l.bf16 %v8202_v56 }
 0x50a   :  { %v8207_v49 = vpop.permute.xlu1 %8206  ;;  %v8218_v39 = vunpack.i.l.bf16 %v8217_v8  ;;  %v8219_v46 = vunpack.i.h.bf16 %v8217_v8 }
 0x50b   :  { %v8208_v48 = vunpack.i.l.bf16 %v8207_v49  ;;  %3845 = vmatprep.mubr.bf16.mxu1 %v3610_v25  ;;  %v8209_v62 = vunpack.i.h.bf16 %v8207_v49 }
 0x50c   :  { %v3563_v58 = vsel %vm779_vm11, %v10969_v24, %v8218_v39  ;;  %v3517_v8 = vsel %vm779_vm11, %v10818_v35, %v8219_v46 }
 0x50d   :  { %v3516_v52 = vsel %vm779_vm11, %v10808_v10, %v8208_v48  ;;  %v8222_v27 = vpop.permute.xlu0 %8221  ;;  %v3562_v37 = vsel %vm779_vm11, %v10921_v60, %v8209_v62 }
 0x50e   :  { %v8227_v32 = vpop.permute.xlu1 %8226  ;;  %v3530_v14 = vsel %vm1503_vm13, %v3516_v52, %v8198_v20  ;;  %v8223_v0 = vunpack.i.l.bf16 %v8222_v27  ;;  %v8224_v21 = vunpack.i.h.bf16 %v8222_v27  ;;  %v3578_v42 = vsel %vm1503_vm13, %v3562_v37, %v8199_v40 }
 0x50f   :  { %v3545_v11 = vsel %vm1519_vm14, %v3530_v14, %v8174_v57  ;;  %v8228_v48 = vunpack.i.l.bf16 %v8227_v32  ;;  %v8204_v52 = vunpack.i.h.bf16 %v8202_v56  ;;  %v8229_v56 = vunpack.i.h.bf16 %v8227_v32 }
 0x510   :  { %v3609_v10 = vpack.c.bf16 %v3545_v11, %v3544_v2  ;;  %v3579_v60 = vsel %vm1503_vm13, %v3563_v58, %v8223_v0  ;;  %v3531_v24 = vsel %vm1503_vm13, %v3517_v8, %v8224_v21 }
 0x511   :  { %v8237_v31 = vpop.permute.xlu0 %8236  ;;  %v3546_v39 = vsel %vm1519_vm14, %v3531_v24, %v8203_v23 }
 0x512   :  { %v8232_v34 = vpop.permute.xlu1 %8231  ;;  %v8239_v22 = vunpack.i.h.bf16 %v8237_v31  ;;  %v8238_v49 = vunpack.i.l.bf16 %v8237_v31  ;;  %3846 = vmatmul.mubr.bf16.gmra.mrb[52].mxu1 %v3609_v10 }
 0x513   :  { %v8233_v25 = vunpack.i.l.bf16 %v8232_v34  ;;  %v8234_v27 = vunpack.i.h.bf16 %v8232_v34 }
 0x514   :  { %v3594_v20 = vsel %vm1519_vm14, %v3578_v42, %v8238_v49  ;;  %v3595_v62 = vsel %vm1519_vm14, %v3579_v60, %v8239_v22 }
 0x515   :  { %v3518_v7 = vsel %vm779_vm11, %v10873_v45, %v8233_v25  ;;  %v8242_v57 = vpop.permute.xlu0 %8241  ;;  %v3613_v15 = vpack.c.bf16 %v3595_v62, %v3594_v20  ;;  %v3564_v2 = vsel %vm779_vm11, %v10963_v4, %v8234_v27 }
 0x516   :  { %v3532_v35 = vsel %vm1503_vm13, %v3518_v7, %v8228_v48  ;;  %v8252_v14 = vpop.permute.xlu1 %8251  ;;  %v3580_v40 = vsel %vm1503_vm13, %v3564_v2, %v8229_v56  ;;  %v8243_v49 = vunpack.i.l.bf16 %v8242_v57  ;;  %v8244_v8 = vunpack.i.h.bf16 %v8242_v57 }
 0x517   :  { %3853 = vmatprep.mubr.bf16.mxu1 %v3613_v15  ;;  %v3547_v46 = vsel %vm1519_vm14, %v3532_v35, %v8204_v52  ;;  %v8253_v11 = vunpack.i.l.bf16 %v8252_v14  ;;  %v8254_v42 = vunpack.i.h.bf16 %v8252_v14 }
 0x518   :  { %v3612_v45 = vpack.c.bf16 %v3547_v46, %v3546_v39 }
 0x519   :  { %v8247_v0 = vpop.permute.xlu0 %8246  ;;  %v3596_v34 = vsel %vm1519_vm14, %v3580_v40, %v8253_v11 }
 0x51a   :  { %v8248_v37 = vunpack.i.l.bf16 %v8247_v0  ;;  %3854 = vmatmul.mubr.bf16.gmra.mrb[56].mxu1 %v3612_v45  ;;  %v8249_v21 = vunpack.i.h.bf16 %v8247_v0 }
 0x51c   :  { %v3565_v10 = vsel %vm779_vm11, %v10975_v5, %v8248_v37  ;;  %v3519_v4 = vsel %vm779_vm11, %v10891_v41, %v8249_v21 }
 0x51d   :  { %v3581_v31 = vsel %vm1503_vm13, %v3565_v10, %v9996_v29  ;;  %v3533_v48 = vsel %vm1503_vm13, %v3519_v4, %v8243_v49 }
 0x51e   :  { %v3597_v58 = vsel %vm1519_vm14, %v3581_v31, %v10013_v36  ;;  %v3548_v62 = vsel %vm1519_vm14, %v3533_v48, %v8254_v42 }
 0x51f   :  { %v3616_v22 = vpack.c.bf16 %v3597_v58, %v3596_v34 }
 0x521   :  { %3861 = vmatprep.mubr.bf16.mxu1 %v3616_v22 }
 0x522   :  { %v8257_v32 = vpop.permute.xlu1 %8256 }
 0x523   :  { %v8258_v25 = vunpack.i.l.bf16 %v8257_v32  ;;  %v8259_v15 = vunpack.i.h.bf16 %v8257_v32 }
 0x524   :  { %v8262_v5 = vpop.permute.xlu0 %8261 }
 0x525   :  { %v3520_v60 = vsel %vm779_vm11, %v10927_v33, %v8258_v25  ;;  %v8263_v7 = vunpack.i.l.bf16 %v8262_v5  ;;  %v3566_v14 = vsel %vm779_vm11, %v11032_v19, %v8259_v15  ;;  %v8264_v0 = vunpack.i.h.bf16 %v8262_v5 }
 0x526   :  { %v3534_v20 = vsel %vm1503_vm13, %v3520_v60, %v8244_v8  ;;  %v8267_v52 = vpop.permute.xlu1 %8266 }
 0x527   :  { %v3549_v24 = vsel %vm1519_vm14, %v3534_v20, %v8263_v7  ;;  %v8268_v27 = vunpack.i.l.bf16 %v8267_v52  ;;  %v8269_v2 = vunpack.i.h.bf16 %v8267_v52 }
 0x528   :  { %v3615_v41 = vpack.c.bf16 %v3549_v24, %v3548_v62 }
 0x529   :  { %v3567_v11 = vsel %vm779_vm11, %v11020_v3, %v8268_v27  ;;  %v3521_v22 = vsel %vm779_vm11, %v11002_v54, %v8269_v2 }
 0x52a   :  { %3862 = vmatmul.mubr.bf16.gmra.mrb[60].mxu1 %v3615_v41 }
 0x52c   :  { %v8272_v23 = vpop.permute.xlu0 %8271 }
 0x52d   :  { %v8273_v57 = vunpack.i.l.bf16 %v8272_v23  ;;  %v8277_v35 = vpop.permute.xlu1 %8276  ;;  %v8274_v39 = vunpack.i.h.bf16 %v8272_v23 }
 0x52e   :  { %v8278_v56 = vunpack.i.l.bf16 %v8277_v35  ;;  %v8279_v7 = vunpack.i.h.bf16 %v8277_v35 }
 0x52f   :  { %v3582_v45 = vsel %vm1503_vm13, %v3566_v14, %v8273_v57  ;;  %v3583_v21 = vsel %vm1503_vm13, %v3567_v11, %v8274_v39 }
 0x530   :  { %v3598_v40 = vsel %vm1519_vm14, %v3582_v45, %v8264_v0  ;;  %v3535_v3 = vsel %vm1503_vm13, %v3521_v22, %v8278_v56 }
 0x531   :  { %v8282_v33 = vpop.permute.xlu0 %8281  ;;  %v8287_v46 = vpop.permute.xlu1 %8286 }
 0x532   :  { %v8283_v37 = vunpack.i.l.bf16 %v8282_v33  ;;  %v8284_v10 = vunpack.i.h.bf16 %v8282_v33  ;;  %v8289_v15 = vunpack.i.h.bf16 %v8287_v46  ;;  %v8288_v57 = vunpack.i.l.bf16 %v8287_v46 }
 0x534   :  { %v3599_v31 = vsel %vm1519_vm14, %v3583_v21, %v8283_v37  ;;  %v3550_v32 = vsel %vm1519_vm14, %v9957_v30, %v8284_v10  ;;  %v3522_v37 = vsel %vm779_vm11, %v11010_v13, %v8288_v57 }
 0x535   :  { %v8297_v34 = vpop.permute.xlu0 %8296  ;;  %v8292_v19 = vpop.permute.xlu1 %8291  ;;  %v3619_v58 = vpack.c.bf16 %v3599_v31, %v3598_v40 }
 0x536   :  { %v8298_v4 = vunpack.i.l.bf16 %v8297_v34  ;;  %v8293_v49 = vunpack.i.l.bf16 %v8292_v19  ;;  %v8299_v48 = vunpack.i.h.bf16 %v8297_v34  ;;  %v8294_v54 = vunpack.i.h.bf16 %v8292_v19 }
 0x537   :  { %3869 = vmatprep.mubr.bf16.mxu1 %v3619_v58 }
 0x538   :  { %v3551_v25 = vsel %vm1519_vm14, %v3535_v3, %v8293_v49  ;;  %v3568_v42 = vsel %vm779_vm11, %v11080_v50, %v8298_v4  ;;  %v3569_v41 = vsel %vm779_vm11, %v11097_v9, %v8299_v48  ;;  %v3523_v9 = vsel %vm779_vm11, %v11050_v63, %v8289_v15 }
 0x539   :  { %v8302_v8 = vpop.permute.xlu0 %8301  ;;  %v3618_v5 = vpack.c.bf16 %v3551_v25, %v3550_v32  ;;  %v8307_v60 = vpop.permute.xlu1 %8306  ;;  %v3584_v24 = vsel %vm1503_vm13, %v3568_v42, %v8279_v7 }
 0x53a   :  { %v8303_v20 = vunpack.i.l.bf16 %v8302_v8  ;;  %v8304_v39 = vunpack.i.h.bf16 %v8302_v8  ;;  %v8308_v14 = vunpack.i.l.bf16 %v8307_v60  ;;  %v3600_v50 = vsel %vm1519_vm14, %v3584_v24, %v8294_v54 }
 0x53b   :  { %3870 = vmatmul.mubr.bf16.gmra.mrb[64].mxu1 %v3618_v5  ;;  %v8309_v22 = vunpack.i.h.bf16 %v8307_v60 }
 0x53c   :  { %v3585_v27 = vsel %vm1503_vm13, %v3569_v41, %v8303_v20  ;;  %v3536_v56 = vsel %vm1503_vm13, %v3522_v37, %v8304_v39  ;;  %v3537_v21 = vsel %vm1503_vm13, %v3523_v9, %v8308_v14 }
 0x53d   :  { %v8312_v62 = vpop.permute.xlu0 %8311  ;;  %v8317_v23 = vpop.permute.xlu1 %8316 }
 0x53e   :  { %v8313_v52 = vunpack.i.l.bf16 %v8312_v62  ;;  %v8314_v33 = vunpack.i.h.bf16 %v8312_v62  ;;  %v8319_v13 = vunpack.i.h.bf16 %v8317_v23  ;;  %v8318_v49 = vunpack.i.l.bf16 %v8317_v23 }
 0x540   :  { %v3601_v35 = vsel %vm1519_vm14, %v3585_v27, %v8313_v52  ;;  %v3552_v40 = vsel %vm1519_vm14, %v3536_v56, %v8314_v33  ;;  %v3525_v60 = vsel %vm779_vm11, %v11104_v16, %v8319_v13  ;;  %v3524_v54 = vsel %vm779_vm11, %v11059_v55, %v8318_v49 }
 0x541   :  { %v8327_v45 = vpop.permute.xlu0 %8326  ;;  %v3622_v0 = vpack.c.bf16 %v3601_v35, %v3600_v50 }
 0x542   :  { %v8328_v2 = vunpack.i.l.bf16 %v8327_v45  ;;  %v8322_v11 = vpop.permute.xlu1 %8321  ;;  %v8329_v34 = vunpack.i.h.bf16 %v8327_v45 }
 0x543   :  { %v8323_v46 = vunpack.i.l.bf16 %v8322_v11  ;;  %3877 = vmatprep.mubr.bf16.mxu1 %v3622_v0  ;;  %v8324_v3 = vunpack.i.h.bf16 %v8322_v11 }
 0x544   :  { %v3570_v19 = vsel %vm779_vm11, %v11138_v61, %v8328_v2  ;;  %v3571_v5 = vsel %vm779_vm11, %v11162_v47, %v8329_v34 }
 0x545   :  { %v8332_v10 = vpop.permute.xlu0 %8331  ;;  %v3553_v31 = vsel %vm1519_vm14, %v3537_v21, %v8323_v46  ;;  %v3586_v8 = vsel %vm1503_vm13, %v3570_v19, %v8309_v22 }
 0x546   :  { %v3361_v58 = vpop.permute.xlu1 %3360  ;;  %v3621_v63 = vpack.c.bf16 %v3553_v31, %v3552_v40  ;;  %v8333_v4 = vunpack.i.l.bf16 %v8332_v10  ;;  %v8334_v32 = vunpack.i.h.bf16 %v8332_v10  ;;  %v3602_v62 = vsel %vm1519_vm14, %v3586_v8, %v8324_v3 }
 0x548   :  { %3878 = vmatmul.mubr.bf16.gmra.mrb[68].mxu1 %v3621_v63  ;;  %v3587_v61 = vsel %vm1503_vm13, %v3571_v5, %v8333_v4  ;;  %v3538_v23 = vsel %vm1503_vm13, %v3524_v54, %v8334_v32  ;;  %v8852_v5 = vld [vmem:[%s12849_s9 + $0x80] sm:$0xff]  }
 0x549   :  { %v8342_v25 = vpop.permute.xlu0 %8341  ;;  %7343 = vmatprep.subr.bf16.mxu1 %v8852_v5 }
 0x54a   :  { %v8344_v48 = vunpack.i.h.bf16 %v8342_v25  ;;  %v8343_v42 = vunpack.i.l.bf16 %v8342_v25  ;;  %v8337_v7 = vpop.permute.xlu1 %8336  ;;  %7344 = vmatpush3.bf16.msra.mxu1 %v8852_v5 }
 0x54b   :  { %v8338_v20 = vunpack.i.l.bf16 %v8337_v7  ;;  %v8339_v11 = vunpack.i.h.bf16 %v8337_v7 }
 0x54c   :  { %v3603_v24 = vsel %vm1519_vm14, %v3587_v61, %v8343_v42  ;;  %v3554_v57 = vsel %vm1519_vm14, %v3538_v23, %v8344_v48  ;;  %v8853_v48 = vld [vmem:[%s12849_s9 + $0x88] sm:$0xff]  }
 0x54d   :  { %v3539_v41 = vsel %vm1503_vm13, %v3525_v60, %v8338_v20  ;;  %v8352_v52 = vpop.permute.xlu0 %8351  ;;  %v3625_v47 = vpack.c.bf16 %v3603_v24, %v3602_v62  ;;  %7345 = vmatprep.subr.bf16.mxu1 %v8853_v48 }
 0x54e   :  { %v8347_v15 = vpop.permute.xlu1 %8346  ;;  %v3555_v27 = vsel %vm1519_vm14, %v3539_v41, %v3361_v58  ;;  %v8353_v35 = vunpack.i.l.bf16 %v8352_v52  ;;  %v8354_v9 = vunpack.i.h.bf16 %v8352_v52  ;;  %7346 = vmatpush3.bf16.msra.mxu1 %v8853_v48  ;;  %v8854_v41 = vld [vmem:[%s12849_s9 + $0x40] sm:$0xff]  }
 0x54f   :  { %v8349_v39 = vunpack.i.h.bf16 %v8347_v15  ;;  %v8348_v16 = vunpack.i.l.bf16 %v8347_v15  ;;  %3885 = vmatprep.mubr.bf16.mxu1 %v3625_v47  ;;  %v3624_v14 = vpack.c.bf16 %v3555_v27, %v3554_v57  ;;  %v8855_v52 = vld [vmem:[%s12849_s9] sm:$0xff]   ;;  %v8856_v47 = vld [vmem:[%s12849_s9 + $0x48] sm:$0xff]   ;;  %7039 = vmatprep.subr.bf16.mxu0 %v8854_v41 }
 0x550   :  { %7040 = vmatpush3.bf16.msra.mxu0 %v8855_v52  ;;  %v11375_v15 = vld [vmem:[%s12850_s8] ss:$0 sm:$0xff] }
 0x551   :  { %v3526_v55 = vsel %vm779_vm11, %v11117_v44, %v8348_v16  ;;  %v8357_v50 = vpop.permute.xlu0 %8356  ;;  %3886 = vmatmul.mubr.bf16.gmra.mrb[72].mxu1 %v3624_v14  ;;  %v3527_v2 = vsel %vm779_vm11, %v11149_v53, %v8349_v39  ;;  %7041 = vmatprep.subr.bf16.mxu0 %v8856_v47 }
 0x552   :  { %v8359_v33 = vunpack.i.h.bf16 %v8357_v50  ;;  %v8358_v45 = vunpack.i.l.bf16 %v8357_v50  ;;  %v8362_v0 = vpop.permute.xlu1 %8361  ;;  %v3540_v44 = vsel %vm1503_vm13, %v3526_v55, %v8353_v35  ;;  %v3541_v40 = vsel %vm1503_vm13, %v3527_v2, %v8354_v9  ;;  %v8858_v2 = vld [vmem:[%s12849_s9 + $0x50] sm:$0xff]  }
 0x553   :  { %v8364_v37 = vunpack.i.h.bf16 %v8362_v0  ;;  %v8363_v46 = vunpack.i.l.bf16 %v8362_v0 }
 0x554   :  { %v3573_v56 = vsel %vm779_vm11, %v11193_v28, %v8359_v33  ;;  %v3572_v21 = vsel %vm779_vm11, %v11180_v6, %v8358_v45  ;;  %v8857_v33 = vld [vmem:[%s12849_s9 + $0x8] sm:$0xff]  }
 0x555   :  { %v3365_v10 = vpop.permute.xlu0 %3364  ;;  %v3556_v31 = vsel %vm1519_vm14, %v3540_v44, %v8364_v37  ;;  %v3588_v34 = vsel %vm1503_vm13, %v3572_v21, %v8339_v11  ;;  %v3589_v53 = vsel %vm1503_vm13, %v3573_v56, %v9996_v29  ;;  %7042 = vmatpush3.bf16.msra.mxu0 %v8857_v33  ;;  %v8859_v11 = vld [vmem:[%s12849_s9 + $0x10] sm:$0xff]  }
 0x556   :  { %v3557_v19 = vsel %vm1519_vm14, %v3541_v40, %v3365_v10  ;;  %v3604_v58 = vsel %vm1519_vm14, %v3588_v34, %v8363_v46  ;;  %v3605_v28 = vsel %vm1519_vm14, %v3589_v53, %v10013_v36  ;;  %v8860_v46 = vld [vmem:[%s12849_s9 + $0x58] sm:$0xff]   ;;  %7043 = vmatprep.subr.bf16.mxu0 %v8858_v2 }
 0x557   :  { %v3627_v6 = vpack.c.bf16 %v3557_v19, %v3556_v31  ;;  %v3628_v63 = vpack.c.bf16 %v3605_v28, %v3604_v58  ;;  %v8861_v34 = vld [vmem:[%s12849_s9 + $0x18] sm:$0xff]  }
 0x559   :  { %3893 = vmatprep.mubr.bf16.mxu1 %v3628_v63  ;;  %7044 = vmatpush3.bf16.msra.mxu0 %v8859_v11 }
 0x55a   :  { %3894 = vmatmul.mubr.bf16.gmra.mrb[76].mxu1 %v3627_v6  ;;  %7045 = vmatprep.subr.bf16.mxu0 %v8860_v46 }
 0x55d   :  { %7046 = vmatpush3.bf16.msra.mxu0 %v8861_v34 }
 0x561   :  { %v11329_v22 = vpop.f32.mrb[64].mxu0 }
 0x562   :  { %v3936_v4 = vpop.f32.mrb[65].mxu0 }
 0x563   :  { %v11331_v13 = vpop.f32.mrb[66].mxu0 }
 0x564   :  { %v3939_v49 = vpop.f32.mrb[67].mxu0 }
 0x56d   :  { %v11333_v3 = vpop.f32.mrb[68].mxu0 }
 0x56e   :  { %v11335_v32 = vpop.f32.mrb[69].mxu0 }
 0x56f   :  { %v11337_v25 = vpop.f32.mrb[70].mxu0 }
 0x570   :  { %v11339_v8 = vpop.f32.mrb[71].mxu0 }
 0x599   :  { %v11347_v42 = vpop.f32.mrb[72].mxu0 }
 0x59a   :  { %v11349_v7 = vpop.f32.mrb[73].mxu0 }
 0x59b   :  { %v11351_v20 = vpop.f32.mrb[74].mxu0 }
 0x59c   :  { %v11353_v61 = vpop.f32.mrb[75].mxu0 }
 0x5a4   :  { %v11355_v60 = vpop.f32.mrb[76].mxu0 }
 0x5a5   :  { %v11357_v54 = vpop.f32.mrb[77].mxu0 }
 0x5a6   :  { %v11359_v62 = vpop.f32.mrb[78].mxu0 }
 0x5a7   :  { %v11361_v24 = vpop.f32.mrb[79].mxu0 }
 0x5d9   :  { %v6981_v23 = vpop.f32.mrb[48].mxu1 }
 0x5da   :  { %v6982_v57 = vpop.f32.mrb[49].mxu1 }
 0x5db   :  { %v6983_v27 = vadd.f32 %v6982_v57, %v6981_v23  ;;  %v6984_v39 = vpop.f32.mrb[50].mxu1 }
 0x5dc   :  { %v6985_v16 = vpop.f32.mrb[51].mxu1 }
 0x5dd   :  { %v3840_v14 = vadd.f32 %v6983_v27, %v11375_v15  ;;  %v6986_v55 = vadd.f32 %v6985_v16, %v6984_v39 }
 0x5df   :  { %v3937_v50 = vadd.f32 %v3936_v4, %v3840_v14  ;;  %v3843_v35 = vadd.f32 %v6986_v55, %v11375_v15  ;;  %v8862_v14 = vld [vmem:[%s12849_s9 + $0x60] sm:$0xff]  }
 0x5e0   :  { %v8863_v55 = vld [vmem:[%s12849_s9 + $0x20] sm:$0xff]   ;;  %7047 = vmatprep.subr.bf16.mxu0 %v8862_v14 }
 0x5e1   :  { %v3999_v45 = vmax.f32 %v3937_v50, 0.0  ;;  %v3940_v0 = vadd.f32 %v3939_v49, %v3843_v35  ;;  %7048 = vmatpush3.bf16.msra.mxu0 %v8863_v55 }
 0x5e3   :  { %v4031_v9 = vrot.slane %v3999_v45, 7  ;;  %v4000_v37 = vmax.f32 %v3940_v0, 0.0 }
 0x5e5   :  { %v11392_v56 = vsel %vm120_vm0, 0.0, %v4031_v9  ;;  %v11395_v21 = vsel %vm120_vm0, %v4031_v9, 0.0  ;;  %v4032_v44 = vrot.slane %v4000_v37, 7  ;;  %v6987_v31 = vpop.f32.mrb[52].mxu1  ;;  %v8865_v9 = vld [vmem:[%s12849_s9 + $0x28] sm:$0xff]  }
 0x5e6   :  { %v4165_v10 = vrot.slane %v11392_v56, 2  ;;  %v4166_v40 = vrot.slane %v11395_v21, 2  ;;  %v6988_v58 = vpop.f32.mrb[53].mxu1 }
 0x5e7   :  { %v11403_v53 = vsel %vm120_vm0, 0.0, %v4032_v44  ;;  %v4080_v19 = vsel %vm120_vm0, %v4032_v44, 0.0  ;;  %v6990_v63 = vpop.f32.mrb[54].mxu1  ;;  %v6989_v4 = vadd.f32 %v6988_v58, %v6987_v31 }
 0x5e8   :  { %v4168_v28 = vrot.slane %v11403_v53, 2  ;;  %v4169_v6 = vrot.slane %v4080_v19, 2  ;;  %v6991_v49 = vpop.f32.mrb[55].mxu1  ;;  %v8365_v5 = vpack.i.bf16 %v11403_v53, %v11392_v56  ;;  %v4167_v41 = vsel %vm231_vm1, %v4165_v10, %v4166_v40 }
 0x5e9   :  { %v6992_v48 = vadd.f32 %v6991_v49, %v6990_v63  ;;  %v3848_v47 = vadd.f32 %v6989_v4, %v11375_v15  ;;  %v4127_v37 = vrot.slane %v4080_v19, 1 }
 0x5ea   :  { %v11411_v52 = vsel %vm231_vm1, %v4168_v28, %v4169_v6  ;;  %8366 = vrot.lane.b32.xlu0 %v8365_v5, %s8915_s19 }
 0x5eb   :  { %v8370_v23 = vpack.i.bf16 %v11411_v52, %v4167_v41  ;;  %v3851_v57 = vadd.f32 %v6992_v48, %v11375_v15  ;;  %v3945_v27 = vadd.f32 %v11329_v22, %v3848_v47  ;;  %v8864_v22 = vld [vmem:[%s12849_s9 + $0x68] sm:$0xff]   ;;  %v8866_v48 = vld [vmem:[%s12849_s9 + $0x70] sm:$0xff]  }
 0x5ec   :  { %7049 = vmatprep.subr.bf16.mxu0 %v8864_v22  ;;  %v8869_v22 = vld [vmem:[%s12849_s9 + $0x38] sm:$0xff]  }
 0x5ed   :  { %8371 = vrot.lane.b32.xlu1 %v8370_v23, %s8914_s24  ;;  %v3948_v39 = vadd.f32 %v11331_v13, %v3851_v57  ;;  %v6993_v16 = vpop.f32.mrb[56].mxu1  ;;  %v4001_v50 = vmax.f32 %v3945_v27, 0.0  ;;  %v4126_v13 = vrot.slane %v11403_v53, 1  ;;  %7050 = vmatpush3.bf16.msra.mxu0 %v8865_v9 }
 0x5ee   :  { %v6994_v35 = vpop.f32.mrb[57].mxu1  ;;  %7051 = vmatprep.subr.bf16.mxu0 %v8866_v48 }
 0x5ef   :  { %v4002_v33 = vmax.f32 %v3948_v39, 0.0  ;;  %v6995_v45 = vadd.f32 %v6994_v35, %v6993_v16  ;;  %v6996_v0 = vpop.f32.mrb[58].mxu1  ;;  %v4033_v2 = vrot.slane %v4001_v50, 7  ;;  %v11449_v5 = vsel %vm185_vm2, %v4126_v13, %v4127_v37 }
 0x5f0   :  { %v6997_v11 = vpop.f32.mrb[59].mxu1 }
 0x5f1   :  { %v4034_v46 = vrot.slane %v4002_v33, 7  ;;  %v3856_v44 = vadd.f32 %v6995_v45, %v11375_v15  ;;  %v6998_v10 = vadd.f32 %v6997_v11, %v6996_v0  ;;  %v11435_v40 = vsel %vm120_vm0, 0.0, %v4033_v2  ;;  %v8868_v0 = vld [vmem:[%s12849_s9 + $0x78] sm:$0xff]  }
 0x5f2   :  { %v4081_v31 = vsel %vm120_vm0, %v4033_v2, 0.0  ;;  %v4129_v34 = vrot.slane %v11435_v40, 1  ;;  %v4171_v28 = vrot.slane %v11435_v40, 2  ;;  %v8375_v57 = vpack.i.bf16 %v11435_v40, %v11403_v53 }
 0x5f3   :  { %v4130_v58 = vrot.slane %v4081_v31, 1  ;;  %v4172_v6 = vrot.slane %v4081_v31, 2  ;;  %v11441_v63 = vsel %vm120_vm0, 0.0, %v4034_v46  ;;  %v11444_v19 = vsel %vm120_vm0, %v4034_v46, 0.0 }
 0x5f4   :  { %v3953_v4 = vadd.f32 %v11335_v32, %v3856_v44  ;;  %v3859_v49 = vadd.f32 %v6998_v10, %v11375_v15  ;;  %v8380_v27 = vpack.i.bf16 %v11441_v63, %v4167_v41  ;;  %v8867_v32 = vld [vmem:[%s12849_s9 + $0x30] sm:$0xff]   ;;  %v4174_v39 = vrot.slane %v11441_v63, 2  ;;  %8376 = vrot.lane.b32.xlu1 %v8375_v57, %s8916_s22 }
 0x5f5   :  { %v4175_v16 = vrot.slane %v11444_v19, 2  ;;  %v4173_v14 = vsel %vm231_vm1, %v4171_v28, %v4172_v6  ;;  %v11465_v55 = vsel %vm185_vm2, %v4129_v34, %v4130_v58  ;;  %v4123_v33 = vrot.slane %v11392_v56, 1  ;;  %7052 = vmatpush3.bf16.msra.mxu0 %v8867_v32 }
 0x5f6   :  { %v4003_v47 = vmax.f32 %v3953_v4, 0.0  ;;  %v3956_v23 = vadd.f32 %v11339_v8, %v3859_v49  ;;  %8381 = vrot.lane.b32.xlu0 %v8380_v27, %s8916_s22  ;;  %v4611_v41 = vpack.c.bf16 %v4173_v14, %v11411_v52  ;;  %v8395_v35 = vpack.i.bf16 %v11465_v55, %v11449_v5  ;;  %7053 = vmatprep.subr.bf16.mxu0 %v8868_v0 }
 0x5f7   :  { %v4124_v45 = vrot.slane %v11395_v21, 1  ;;  %v8385_v11 = vpack.i.bf16 %v11441_v63, %v11435_v40  ;;  %v11489_v46 = vsel %vm231_vm1, %v4174_v39, %v4175_v16  ;;  %v4132_v16 = vrot.slane %v11441_v63, 1 }
 0x5f8   :  { %v4035_v8 = vrot.slane %v4003_v47, 7  ;;  %v4004_v50 = vmax.f32 %v3956_v23, 0.0  ;;  %7347 = vmatprep.mubr.msk.bf16.mxu1 %vm779_vm11, %v4611_v41  ;;  %8396 = vrot.lane.b32.xlu1 %v8395_v35, %s8915_s19  ;;  %v8400_v6 = vpack.i.bf16 %v11449_v5, %v11489_v46 }
 0x5f9   :  { %v11497_v34 = vsel %vm185_vm2, %v4123_v33, %v4124_v45  ;;  %7054 = vmatpush3.bf16.msra.mxu0 %v8869_v22 }
 0x5fa   :  { %v11481_v13 = vsel %vm120_vm0, 0.0, %v4035_v8  ;;  %v4083_v2 = vsel %vm120_vm0, %v4035_v8, 0.0  ;;  %v4036_v37 = vrot.slane %v4004_v50, 7  ;;  %8386 = vrot.lane.b32.xlu0 %v8385_v11, %s8915_s19  ;;  %v8390_v49 = vpack.i.bf16 %v4173_v14, %v11497_v34 }
 0x5fb   :  { %v4177_v21 = vrot.slane %v11481_v13, 2  ;;  %v4178_v9 = vrot.slane %v4083_v2, 2  ;;  %v4135_v48 = vrot.slane %v11481_v13, 1  ;;  %v4136_v47 = vrot.slane %v4083_v2, 1 }
 0x5fc   :  { %v11506_v23 = vsel %vm120_vm0, 0.0, %v4036_v37  ;;  %v11509_v27 = vsel %vm120_vm0, %v4036_v37, 0.0  ;;  %8401 = vrot.lane.b32.xlu1 %v8400_v6, %s8914_s24  ;;  %v4133_v8 = vrot.slane %v11444_v19, 1  ;;  %v8405_v35 = vpack.i.bf16 %v11411_v52, %v11481_v13 }
 0x5fd   :  { %v6999_v44 = vpop.f32.mrb[60].mxu1  ;;  %v11494_v10 = vsel %vm231_vm1, %v4177_v21, %v4178_v9  ;;  %v8410_v33 = vpack.i.bf16 %v11506_v23, %v4173_v14  ;;  %v4180_v45 = vrot.slane %v11506_v23, 2  ;;  %v4181_v0 = vrot.slane %v11509_v27, 2 }
 0x5fe   :  { %v7000_v31 = vpop.f32.mrb[61].mxu1  ;;  %v4614_v28 = vpack.c.bf16 %v11494_v10, %v11489_v46  ;;  %8391 = vrot.lane.b32.xlu0 %v8390_v49, %s8914_s24  ;;  %v11525_v22 = vsel %vm185_vm2, %v4135_v48, %v4136_v47  ;;  %v8415_v21 = vpack.i.bf16 %v11506_v23, %v11481_v13  ;;  %v8420_v49 = vpack.i.bf16 %v11494_v10, %v11465_v55 }
 0x5ff   :  { %v7001_v58 = vadd.f32 %v7000_v31, %v6999_v44  ;;  %v7002_v4 = vpop.f32.mrb[62].mxu1  ;;  %v4182_v9 = vsel %vm231_vm1, %v4180_v45, %v4181_v0 }
 0x600   :  { %v7003_v57 = vpop.f32.mrb[63].mxu1  ;;  %7348 = vmatmul.mubr.msk.bf16.vlgmr.msra.gmra.mrb[80].mxu1 %vm779_vm11, %v4614_v28  ;;  %8406 = vrot.lane.b32.xlu1 %v8405_v35, %s8916_s22 }
 0x601   :  { %v3864_v32 = vadd.f32 %v7001_v58, %v11375_v15  ;;  %v7004_v39 = vadd.f32 %v7003_v57, %v7002_v4 }
 0x602   :  { %8411 = vrot.lane.b32.xlu0 %v8410_v33, %s8916_s22 }
 0x603   :  { %v3961_v50 = vadd.f32 %v11333_v3, %v3864_v32  ;;  %v3867_v41 = vadd.f32 %v7004_v39, %v11375_v15  ;;  %v11531_v3 = vsel %vm185_vm2, %v4132_v16, %v4133_v8  ;;  %v4138_v8 = vrot.slane %v11506_v23, 1 }
 0x604   :  { %v8425_v14 = vpack.i.bf16 %v11525_v22, %v11531_v3  ;;  %v8430_v4 = vpack.i.bf16 %v11531_v3, %v4182_v9 }
 0x605   :  { %v4005_v2 = vmax.f32 %v3961_v50, 0.0  ;;  %v3964_v19 = vadd.f32 %v11337_v25, %v3867_v41  ;;  %v4139_v50 = vrot.slane %v11509_v27, 1 }
 0x606   :  { %8426 = vrot.lane.b32.xlu1 %v8425_v14, %s8915_s19  ;;  %8416 = vrot.lane.b32.xlu0 %v8415_v21, %s8915_s19 }
 0x607   :  { %v4037_v52 = vrot.slane %v4005_v2, 7  ;;  %v4006_v11 = vmax.f32 %v3964_v19, 0.0 }
 0x609   :  { %v11539_v37 = vsel %vm120_vm0, 0.0, %v4037_v52  ;;  %v4085_v25 = vsel %vm120_vm0, %v4037_v52, 0.0  ;;  %v4038_v44 = vrot.slane %v4006_v11, 7 }
 0x60a   :  { %v4183_v31 = vrot.slane %v11539_v37, 2  ;;  %v4184_v58 = vrot.slane %v4085_v25, 2  ;;  %v4141_v48 = vrot.slane %v11539_v37, 1  ;;  %v4142_v47 = vrot.slane %v4085_v25, 1  ;;  %8431 = vrot.lane.b32.xlu1 %v8430_v4, %s8914_s24  ;;  %8421 = vrot.lane.b32.xlu0 %v8420_v49, %s8914_s24 }
 0x60b   :  { %v11546_v28 = vsel %vm120_vm0, 0.0, %v4038_v44  ;;  %v4086_v6 = vsel %vm120_vm0, %v4038_v44, 0.0  ;;  %v8435_v45 = vpack.i.bf16 %v11489_v46, %v11539_v37 }
 0x60c   :  { %v4233_v57 = vrot.slane %v11546_v28, 2  ;;  %v4234_v32 = vrot.slane %v4086_v6, 2  ;;  %v4185_v39 = vsel %vm231_vm1, %v4183_v31, %v4184_v58  ;;  %v8440_v16 = vpack.i.bf16 %v11546_v28, %v11494_v10 }
 0x60d   :  { %v4617_v35 = vpack.c.bf16 %v4185_v39, %v4182_v9  ;;  %v8455_v19 = vpack.i.bf16 %v4185_v39, %v4182_v9  ;;  %v4211_v52 = vrot.slane %v11546_v28, 1  ;;  %v4212_v11 = vrot.slane %v4086_v6, 1 }
 0x60e   :  { %v7005_v41 = vpop.f32.mrb[64].mxu1  ;;  %v4235_v33 = vsel %vm231_vm1, %v4233_v57, %v4234_v32  ;;  %v11568_v27 = vsel %vm185_vm2, %v4141_v48, %v4142_v47  ;;  %8436 = vrot.lane.b32.xlu1 %v8435_v45, %s8916_s22  ;;  %8441 = vrot.lane.b32.xlu0 %v8440_v16, %s8916_s22  ;;  %v11575_v9 = vsel %vm185_vm2, %v4138_v8, %v4139_v50 }
 0x60f   :  { %v7006_v0 = vpop.f32.mrb[65].mxu1  ;;  %v4620_v2 = vpack.c.bf16 %v9046_v26, %v4235_v33  ;;  %7351 = vmatprep.mubr.msk.bf16.mxu1 %vm779_vm11, %v4617_v35  ;;  %v8450_v44 = vpack.i.bf16 %v11568_v27, %v11575_v9  ;;  %v8445_v31 = vpack.i.bf16 %v4185_v39, %v11525_v22  ;;  %v11583_v4 = vsel %vm185_vm2, %v4211_v52, %v4212_v11 }
 0x610   :  { %v7007_v14 = vadd.f32 %v7006_v0, %v7005_v41  ;;  %v7008_v10 = vpop.f32.mrb[66].mxu1  ;;  %v8465_v47 = vpack.i.bf16 %v11539_v37, %v11583_v4 }
 0x611   :  { %v7009_v21 = vpop.f32.mrb[67].mxu1  ;;  %7352 = vmatmul.mubr.msk.bf16.gmra.mrb[84].mxu1 %vm779_vm11, %v4620_v2 }
 0x612   :  { %v3872_v46 = vadd.f32 %v7007_v14, %v11375_v15  ;;  %v7010_v25 = vadd.f32 %v7009_v21, %v7008_v10  ;;  %8451 = vrot.lane.b32.xlu1 %v8450_v44, %s8915_s19  ;;  %8446 = vrot.lane.b32.xlu0 %v8445_v31, %s8914_s24 }
 0x614   :  { %v3969_v58 = vadd.f32 %v11349_v7, %v3872_v46  ;;  %v3875_v6 = vadd.f32 %v7010_v25, %v11375_v15 }
 0x616   :  { %v4007_v49 = vmax.f32 %v3969_v58, 0.0  ;;  %v3972_v48 = vadd.f32 %v11353_v61, %v3875_v6  ;;  %8456 = vrot.lane.b32.xlu1 %v8455_v19, %s8916_s22  ;;  %8466 = vrot.lane.b32.xlu0 %v8465_v47, %s8915_s19  ;;  %v8460_v61 = vpack.i.bf16 %v11575_v9, %v4235_v33 }
 0x618   :  { %v4039_v57 = vrot.slane %v4007_v49, 7  ;;  %v4008_v32 = vmax.f32 %v3972_v48, 0.0 }
 0x61a   :  { %v11593_v7 = vsel %vm120_vm0, 0.0, %v4039_v57  ;;  %v4087_v39 = vsel %vm120_vm0, %v4039_v57, 0.0  ;;  %v4040_v16 = vrot.slane %v4008_v32, 7  ;;  %8461 = vrot.lane.b32.xlu1 %v8460_v61, %s8914_s24 }
 0x61b   :  { %v4186_v8 = vrot.slane %v11593_v7, 2  ;;  %v4187_v50 = vrot.slane %v4087_v39, 2  ;;  %v7011_v41 = vpop.f32.mrb[68].mxu1  ;;  %v4144_v10 = vrot.slane %v11593_v7, 1  ;;  %v4145_v21 = vrot.slane %v4087_v39, 1 }
 0x61c   :  { %v11599_v35 = vsel %vm120_vm0, 0.0, %v4040_v16  ;;  %v4088_v45 = vsel %vm120_vm0, %v4040_v16, 0.0  ;;  %v7012_v0 = vpop.f32.mrb[69].mxu1 }
 0x61d   :  { %v4147_v2 = vrot.slane %v11599_v35, 1  ;;  %v4148_v19 = vrot.slane %v4088_v45, 1  ;;  %v4189_v52 = vrot.slane %v11599_v35, 2  ;;  %v4190_v11 = vrot.slane %v4088_v45, 2  ;;  %v7014_v14 = vpop.f32.mrb[70].mxu1 }
 0x61e   :  { %v7013_v46 = vadd.f32 %v7012_v0, %v7011_v41  ;;  %v7015_v33 = vpop.f32.mrb[71].mxu1  ;;  %v4188_v25 = vsel %vm231_vm1, %v4186_v8, %v4187_v50  ;;  %v11622_v32 = vsel %vm185_vm2, %v4144_v10, %v4145_v21 }
 0x61f   :  { %v7016_v44 = vadd.f32 %v7015_v33, %v7014_v14  ;;  %v8470_v31 = vpack.i.bf16 %v4188_v25, %v11568_v27  ;;  %v11609_v58 = vsel %vm185_vm2, %v4147_v2, %v4148_v19  ;;  %v11615_v48 = vsel %vm231_vm1, %v4189_v52, %v4190_v11 }
 0x620   :  { %v3880_v6 = vadd.f32 %v7013_v46, %v11375_v15  ;;  %v8475_v49 = vpack.i.bf16 %v11609_v58, %v11546_v28  ;;  %v8480_v16 = vpack.i.bf16 %v11622_v32, %v11615_v48 }
 0x621   :  { %v3883_v47 = vadd.f32 %v7016_v44, %v11375_v15  ;;  %8471 = vrot.lane.b32.xlu0 %v8470_v31, %s8914_s24 }
 0x622   :  { %v3977_v57 = vadd.f32 %v11347_v42, %v3880_v6  ;;  %8476 = vrot.lane.b32.xlu1 %v8475_v49, %s8915_s19 }
 0x623   :  { %v3980_v39 = vadd.f32 %v11351_v20, %v3883_v47 }
 0x624   :  { %v4009_v28 = vmax.f32 %v3977_v57, 0.0  ;;  %v7017_v8 = vpop.f32.mrb[72].mxu1 }
 0x625   :  { %v4010_v50 = vmax.f32 %v3980_v39, 0.0  ;;  %v7018_v41 = vpop.f32.mrb[73].mxu1  ;;  %8481 = vrot.lane.b32.xlu0 %v8480_v16, %s8914_s24 }
 0x626   :  { %v4041_v61 = vrot.slane %v4009_v28, 7  ;;  %v7019_v45 = vadd.f32 %v7018_v41, %v7017_v8  ;;  %v7020_v0 = vpop.f32.mrb[74].mxu1 }
 0x627   :  { %v4042_v42 = vrot.slane %v4010_v50, 7  ;;  %v7021_v2 = vpop.f32.mrb[75].mxu1 }
 0x628   :  { %v11629_v19 = vsel %vm120_vm0, 0.0, %v4041_v61  ;;  %v4089_v52 = vsel %vm120_vm0, %v4041_v61, 0.0  ;;  %v3888_v20 = vadd.f32 %v7019_v45, %v11375_v15  ;;  %v7022_v11 = vadd.f32 %v7021_v2, %v7020_v0 }
 0x629   :  { %v4150_v14 = vrot.slane %v11629_v19, 1  ;;  %v4151_v10 = vrot.slane %v4089_v52, 1  ;;  %v4192_v21 = vrot.slane %v11629_v19, 2  ;;  %v4193_v46 = vrot.slane %v4089_v52, 2 }
 0x62a   :  { %v11636_v33 = vsel %vm120_vm0, 0.0, %v4042_v42  ;;  %v4090_v44 = vsel %vm120_vm0, %v4042_v42, 0.0  ;;  %v3985_v31 = vadd.f32 %v11357_v54, %v3888_v20  ;;  %v3891_v6 = vadd.f32 %v7022_v11, %v11375_v15 }
 0x62b   :  { %v4153_v49 = vrot.slane %v11636_v33, 1  ;;  %v4195_v47 = vrot.slane %v11636_v33, 2  ;;  %v4196_v57 = vrot.slane %v4090_v44, 2  ;;  %v8485_v28 = vpack.i.bf16 %v11629_v19, %v11599_v35 }
 0x62c   :  { %v4011_v39 = vmax.f32 %v3985_v31, 0.0  ;;  %v3988_v16 = vadd.f32 %v11361_v24, %v3891_v6  ;;  %v8490_v8 = vpack.i.bf16 %v11636_v33, %v4188_v25  ;;  %v4154_v50 = vrot.slane %v4090_v44, 1 }
 0x62d   :  { %v7023_v41 = vpop.f32.mrb[76].mxu1  ;;  %v4194_v61 = vsel %vm231_vm1, %v4192_v21, %v4193_v46  ;;  %v11649_v54 = vsel %vm185_vm2, %v4150_v14, %v4151_v10  ;;  %v11652_v45 = vsel %vm231_vm1, %v4195_v47, %v4196_v57  ;;  %8486 = vrot.lane.b32.xlu1 %v8485_v28, %s8916_s22 }
 0x62e   :  { %v4043_v0 = vrot.slane %v4011_v39, 7  ;;  %v4012_v42 = vmax.f32 %v3988_v16, 0.0  ;;  %8491 = vrot.lane.b32.xlu0 %v8490_v8, %s8916_s22  ;;  %v7024_v24 = vpop.f32.mrb[77].mxu1  ;;  %v4623_v2 = vpack.c.bf16 %v4194_v61, %v11615_v48  ;;  %v8495_v25 = vpack.i.bf16 %v11593_v7, %v11649_v54 }
 0x62f   :  { %v7025_v52 = vadd.f32 %v7024_v24, %v7023_v41  ;;  %v7026_v20 = vpop.f32.mrb[78].mxu1  ;;  %v8510_v11 = vpack.i.bf16 %v11652_v45, %v4194_v61  ;;  %v8500_v44 = vpack.i.bf16 %v11649_v54, %v11609_v58  ;;  %v11669_v47 = vsel %vm185_vm2, %v4153_v49, %v4154_v50 }
 0x630   :  { %v11661_v14 = vsel %vm120_vm0, 0.0, %v4043_v0  ;;  %v4091_v10 = vsel %vm120_vm0, %v4043_v0, 0.0  ;;  %v4044_v21 = vrot.slane %v4012_v42, 7  ;;  %7355 = vmatprep.mubr.msk.bf16.mxu1 %vm779_vm11, %v4623_v2  ;;  %v7027_v46 = vpop.f32.mrb[79].mxu1  ;;  %v8505_v50 = vpack.i.bf16 %v11669_v47, %v11599_v35 }
 0x631   :  { %v4198_v31 = vrot.slane %v11661_v14, 2  ;;  %v4199_v6 = vrot.slane %v4091_v10, 2  ;;  %v3896_v16 = vadd.f32 %v7025_v52, %v11375_v15  ;;  %8496 = vrot.lane.b32.xlu1 %v8495_v25, %s8915_s19  ;;  %v7028_v28 = vadd.f32 %v7027_v46, %v7026_v20 }
 0x632   :  { %v11672_v57 = vsel %vm120_vm0, 0.0, %v4044_v21  ;;  %v4092_v39 = vsel %vm120_vm0, %v4044_v21, 0.0  ;;  %8501 = vrot.lane.b32.xlu0 %v8500_v44, %s8914_s24  ;;  %v4156_v24 = vrot.slane %v11661_v14, 1  ;;  %v4157_v2 = vrot.slane %v4091_v10, 1 }
 0x633   :  { %v4201_v8 = vrot.slane %v11672_v57, 2  ;;  %v4202_v41 = vrot.slane %v4092_v39, 2  ;;  %v3993_v0 = vadd.f32 %v11355_v60, %v3896_v16  ;;  %v3899_v49 = vadd.f32 %v7028_v28, %v11375_v15 }
 0x634   :  { %v4200_v42 = vsel %vm231_vm1, %v4198_v31, %v4199_v6  ;;  %v8515_v44 = vpack.i.bf16 %v11615_v48, %v11661_v14  ;;  %v8520_v10 = vpack.i.bf16 %v11672_v57, %v4194_v61  ;;  %v4159_v31 = vrot.slane %v11672_v57, 1 }
 0x635   :  { %v4626_v25 = vpack.c.bf16 %v4200_v42, %v11652_v45  ;;  %v4203_v52 = vsel %vm231_vm1, %v4201_v8, %v4202_v41  ;;  %v4013_v20 = vmax.f32 %v3993_v0, 0.0  ;;  %v3996_v21 = vadd.f32 %v11359_v62, %v3899_v49  ;;  %8511 = vrot.lane.b32.xlu1 %v8510_v11, %s8914_s24 }
 0x636   :  { %8506 = vrot.lane.b32.xlu0 %v8505_v50, %s8915_s19  ;;  %v8540_v60 = vpack.i.bf16 %v4203_v52, %v4200_v42  ;;  %v11696_v6 = vsel %vm185_vm2, %v4156_v24, %v4157_v2  ;;  %v4160_v62 = vrot.slane %v4092_v39, 1 }
 0x637   :  { %7356 = vmatmul.mubr.msk.bf16.gmra.mrb[88].mxu1 %vm779_vm11, %v4626_v25  ;;  %v4045_v15 = vrot.slane %v4013_v20, 7  ;;  %v4014_v46 = vmax.f32 %v3996_v21, 0.0  ;;  %v8525_v39 = vpack.i.bf16 %v11629_v19, %v11696_v6  ;;  %v8530_v0 = vpack.i.bf16 %v11696_v6, %v11669_v47 }
 0x638   :  { %v11715_v2 = vsel %vm185_vm2, %v4159_v31, %v4160_v62 }
 0x639   :  { %v11699_v11 = vsel %vm120_vm0, 0.0, %v4045_v15  ;;  %v4093_v16 = vsel %vm120_vm0, %v4045_v15, 0.0  ;;  %v4046_v28 = vrot.slane %v4014_v46, 7  ;;  %8516 = vrot.lane.b32.xlu1 %v8515_v44, %s8916_s22 }
 0x63a   :  { %8521 = vrot.lane.b32.xlu0 %v8520_v10, %s8916_s22  ;;  %v4204_v48 = vrot.slane %v11699_v11, 2  ;;  %v4205_v8 = vrot.slane %v4093_v16, 2  ;;  %v4162_v10 = vrot.slane %v11699_v11, 1 }
 0x63b   :  { %v4078_v61 = vsel %vm120_vm0, 0.0, %v4046_v28  ;;  %v4094_v41 = vsel %vm120_vm0, %v4046_v28, 0.0  ;;  %v4163_v28 = vrot.slane %v4093_v16, 1 }
 0x63c   :  { %v4236_v49 = vrot.slane %v4078_v61, 2  ;;  %v4237_v50 = vrot.slane %v4094_v41, 2  ;;  %v4206_v24 = vsel %vm231_vm1, %v4204_v48, %v4205_v8  ;;  %v8550_v25 = vpack.i.bf16 %v4078_v61, %v4200_v42 }
 0x63d   :  { %8526 = vrot.lane.b32.xlu1 %v8525_v39, %s8915_s19  ;;  %v4629_v20 = vpack.c.bf16 %v4206_v24, %v4203_v52  ;;  %v8565_v15 = vpack.i.bf16 %v4206_v24, %v4203_v52  ;;  %v8535_v39 = vpack.i.bf16 %v11715_v2, %v11636_v33  ;;  %v8545_v42 = vpack.i.bf16 %v11652_v45, %v11699_v11 }
 0x63e   :  { %8531 = vrot.lane.b32.xlu0 %v8530_v0, %s8914_s24  ;;  %v4238_v21 = vsel %vm231_vm1, %v4236_v49, %v4237_v50  ;;  %v11729_v52 = vsel %vm185_vm2, %v4162_v10, %v4163_v28  ;;  %v4214_v62 = vrot.slane %v4078_v61, 1 }
 0x63f   :  { %v4632_v46 = vpack.c.bf16 %v9046_v26, %v4238_v21  ;;  %v8570_v44 = vpack.i.bf16 %v4238_v21, %v4206_v24  ;;  %7359 = vmatprep.mubr.msk.bf16.mxu1 %vm779_vm11, %v4629_v20  ;;  %v8555_v31 = vpack.i.bf16 %v11661_v14, %v11729_v52  ;;  %v8560_v45 = vpack.i.bf16 %v11729_v52, %v11715_v2 }
 0x641   :  { %8541 = vrot.lane.b32.xlu1 %v8540_v60, %s8914_s24  ;;  %7360 = vmatmul.mubr.msk.bf16.gmra.mrb[92].mxu1 %vm779_vm11, %v4632_v46  ;;  %v4215_v60 = vrot.slane %v4094_v41, 1 }
 0x642   :  { %8536 = vrot.lane.b32.xlu0 %v8535_v39, %s8915_s19 }
 0x643   :  { %v11742_v16 = vsel %vm185_vm2, %v4214_v62, %v4215_v60 }
 0x644   :  { %v8575_v48 = vpack.i.bf16 %v11699_v11, %v11742_v16 }
 0x645   :  { %8546 = vrot.lane.b32.xlu1 %v8545_v42, %s8916_s22 }
 0x646   :  { %4363 = vrot.lane.b32.xlu0 %v11672_v57, %s8915_s19 }
 0x649   :  { %8556 = vrot.lane.b32.xlu1 %v8555_v31, %s8915_s19 }
 0x64a   :  { %8551 = vrot.lane.b32.xlu0 %v8550_v25, %s8916_s22 }
 0x64d   :  { %8566 = vrot.lane.b32.xlu1 %v8565_v15, %s8916_s22 }
 0x64e   :  { %8561 = vrot.lane.b32.xlu0 %v8560_v45, %s8914_s24 }
 0x651   :  { %8571 = vrot.lane.b32.xlu1 %v8570_v44, %s8914_s24 }
 0x652   :  { %8576 = vrot.lane.b32.xlu0 %v8575_v48, %s8915_s19 }
 0x655   :  { %4367 = vrot.lane.b32.xlu1 %v4078_v61, %s8915_s19 }
 0x65c   :  { %v8367_v8 = vpop.permute.xlu0 %8366 }
 0x65d   :  { %v8368_v48 = vunpack.i.l.bf16 %v8367_v8 }
 0x65f   :  { %v8372_v41 = vpop.permute.xlu1 %8371 }
 0x660   :  { %v8374_v50 = vunpack.i.h.bf16 %v8372_v41  ;;  %v8373_v24 = vunpack.i.l.bf16 %v8372_v41 }
 0x662   :  { %v4562_v46 = vsel %vm779_vm11, %v11449_v5, %v8374_v50  ;;  %v4561_v44 = vsel %vm779_vm11, %v11497_v34, %v8373_v24  ;;  %v8369_v5 = vunpack.i.h.bf16 %v8367_v8 }
 0x666   :  { %v8377_v0 = vpop.permute.xlu1 %8376 }
 0x667   :  { %v8379_v25 = vunpack.i.h.bf16 %v8377_v0  ;;  %v8378_v20 = vunpack.i.l.bf16 %v8377_v0 }
 0x668   :  { %v8382_v49 = vpop.permute.xlu0 %8381 }
 0x669   :  { %v4577_v61 = vsel %vm1503_vm13, %v4561_v44, %v8378_v20  ;;  %v4578_v39 = vsel %vm1503_vm13, %v4562_v46, %v8379_v25  ;;  %v8383_v0 = vunpack.i.l.bf16 %v8382_v49  ;;  %v8384_v8 = vunpack.i.h.bf16 %v8382_v49 }
 0x66a   :  { %v8397_v21 = vpop.permute.xlu1 %8396 }
 0x66b   :  { %v8399_v10 = vunpack.i.h.bf16 %v8397_v21  ;;  %v8398_v28 = vunpack.i.l.bf16 %v8397_v21  ;;  %v4545_v21 = vsel %vm1519_vm14, %v9957_v30, %v8368_v48 }
 0x66c   :  { %v8387_v15 = vpop.permute.xlu0 %8386 }
 0x66d   :  { %v4593_v42 = vsel %vm1519_vm14, %v4577_v61, %v8398_v28  ;;  %v4594_v31 = vsel %vm1519_vm14, %v4578_v39, %v8399_v10 }
 0x66e   :  { %v8402_v62 = vpop.permute.xlu1 %8401  ;;  %v4610_v45 = vpack.c.bf16 %v4594_v31, %v4593_v42 }
 0x66f   :  { %v8403_v46 = vunpack.i.l.bf16 %v8402_v62 }
 0x670   :  { %v8392_v60 = vpop.permute.xlu0 %8391  ;;  %4840 = vmatprep.mubr.bf16.mxu0 %v4610_v45  ;;  %v8404_v45 = vunpack.i.h.bf16 %v8402_v62 }
 0x671   :  { %v8393_v41 = vunpack.i.l.bf16 %v8392_v60  ;;  %v8394_v50 = vunpack.i.h.bf16 %v8392_v60 }
 0x672   :  { %v8407_v20 = vpop.permute.xlu1 %8406 }
 0x673   :  { %v4517_v34 = vsel %vm779_vm11, %v11392_v56, %v8393_v41  ;;  %v8408_v28 = vunpack.i.l.bf16 %v8407_v20  ;;  %v4563_v61 = vsel %vm779_vm11, %v11465_v55, %v8394_v50  ;;  %v4564_v56 = vsel %vm779_vm11, %v11531_v3, %v8403_v46 }
 0x674   :  { %v4531_v24 = vsel %vm1503_vm13, %v4517_v34, %v8383_v0  ;;  %v8412_v25 = vpop.permute.xlu0 %8411  ;;  %v4579_v41 = vsel %vm1503_vm13, %v4563_v61, %v8384_v8  ;;  %v8409_v0 = vunpack.i.h.bf16 %v8407_v20  ;;  %v8389_v20 = vunpack.i.h.bf16 %v8387_v15 }
 0x675   :  { %v4546_v44 = vsel %vm1519_vm14, %v4531_v24, %v8369_v5  ;;  %v4580_v48 = vsel %vm1503_vm13, %v4564_v56, %v8408_v28  ;;  %v8413_v3 = vunpack.i.l.bf16 %v8412_v25 }
 0x676   :  { %v4609_v10 = vpack.c.bf16 %v4546_v44, %v4545_v21  ;;  %v4518_v21 = vsel %vm779_vm11, %v11403_v53, %v8404_v45 }
 0x677   :  { %v4532_v62 = vsel %vm1503_vm13, %v4518_v21, %v8409_v0  ;;  %v8414_v0 = vunpack.i.h.bf16 %v8412_v25 }
 0x678   :  { %v8427_v39 = vpop.permute.xlu1 %8426  ;;  %v8417_v42 = vpop.permute.xlu0 %8416  ;;  %4841 = vmatmul.mubr.bf16.vlgmr.msra.gmra.mrb[80].mxu0 %v4609_v10  ;;  %v8388_v10 = vunpack.i.l.bf16 %v8387_v15 }
 0x679   :  { %v8429_v31 = vunpack.i.h.bf16 %v8427_v39  ;;  %v8428_v60 = vunpack.i.l.bf16 %v8427_v39 }
 0x67b   :  { %v4595_v5 = vsel %vm1519_vm14, %v4579_v41, %v8428_v60  ;;  %v4596_v34 = vsel %vm1519_vm14, %v4580_v48, %v8429_v31  ;;  %v4547_v60 = vsel %vm1519_vm14, %v4532_v62, %v8388_v10 }
 0x67c   :  { %v8432_v55 = vpop.permute.xlu1 %8431  ;;  %v8422_v49 = vpop.permute.xlu0 %8421  ;;  %v4613_v50 = vpack.c.bf16 %v4596_v34, %v4595_v5 }
 0x67d   :  { %v8423_v24 = vunpack.i.l.bf16 %v8422_v49  ;;  %v8424_v46 = vunpack.i.h.bf16 %v8422_v49  ;;  %v8433_v39 = vunpack.i.l.bf16 %v8432_v55  ;;  %v8434_v56 = vunpack.i.h.bf16 %v8432_v55 }
 0x67e   :  { %4848 = vmatprep.mubr.bf16.mxu0 %v4613_v50 }
 0x67f   :  { %v4519_v44 = vsel %vm779_vm11, %v11435_v40, %v8423_v24  ;;  %v4565_v45 = vsel %vm779_vm11, %v11525_v22, %v8424_v46  ;;  %v4566_v15 = vsel %vm779_vm11, %v11575_v9, %v8433_v39  ;;  %v4520_v55 = vsel %vm779_vm11, %v11441_v63, %v8434_v56 }
 0x680   :  { %v8437_v28 = vpop.permute.xlu1 %8436  ;;  %v8442_v61 = vpop.permute.xlu0 %8441  ;;  %v4533_v8 = vsel %vm1503_vm13, %v4519_v44, %v8413_v3  ;;  %v4581_v22 = vsel %vm1503_vm13, %v4565_v45, %v8414_v0  ;;  %v8419_v46 = vunpack.i.h.bf16 %v8417_v42  ;;  %v8418_v44 = vunpack.i.l.bf16 %v8417_v42 }
 0x681   :  { %v8438_v31 = vunpack.i.l.bf16 %v8437_v28  ;;  %v4548_v53 = vsel %vm1519_vm14, %v4533_v8, %v8389_v20  ;;  %v8439_v48 = vunpack.i.h.bf16 %v8437_v28  ;;  %v8443_v21 = vunpack.i.l.bf16 %v8442_v61 }
 0x682   :  { %v4612_v41 = vpack.c.bf16 %v4548_v53, %v4547_v60  ;;  %v8444_v42 = vunpack.i.h.bf16 %v8442_v61 }
 0x683   :  { %v4582_v24 = vsel %vm1503_vm13, %v4566_v15, %v8438_v31  ;;  %v4534_v3 = vsel %vm1503_vm13, %v4520_v55, %v8439_v48 }
 0x684   :  { %v8452_v40 = vpop.permute.xlu1 %8451  ;;  %v8447_v5 = vpop.permute.xlu0 %8446  ;;  %4849 = vmatmul.mubr.bf16.gmra.mrb[84].mxu0 %v4612_v41  ;;  %v4549_v39 = vsel %vm1519_vm14, %v4534_v3, %v8418_v44 }
 0x685   :  { %v8454_v34 = vunpack.i.h.bf16 %v8452_v40  ;;  %v8453_v49 = vunpack.i.l.bf16 %v8452_v40  ;;  %v8448_v50 = vunpack.i.l.bf16 %v8447_v5  ;;  %v8449_v28 = vunpack.i.h.bf16 %v8447_v5 }
 0x687   :  { %v4521_v25 = vsel %vm779_vm11, %v11481_v13, %v8448_v50  ;;  %v4597_v62 = vsel %vm1519_vm14, %v4581_v22, %v8453_v49  ;;  %v4598_v9 = vsel %vm1519_vm14, %v4582_v24, %v8454_v34  ;;  %v4567_v13 = vsel %vm779_vm11, %v11568_v27, %v8449_v28 }
 0x688   :  { %v8457_v20 = vpop.permute.xlu1 %8456  ;;  %v4616_v10 = vpack.c.bf16 %v4598_v9, %v4597_v62  ;;  %v4535_v63 = vsel %vm1503_vm13, %v4521_v25, %v8443_v21  ;;  %v8467_v8 = vpop.permute.xlu0 %8466  ;;  %v4583_v15 = vsel %vm1503_vm13, %v4567_v13, %v8444_v42 }
 0x689   :  { %v4550_v56 = vsel %vm1519_vm14, %v4535_v63, %v8419_v46  ;;  %v8468_v53 = vunpack.i.l.bf16 %v8467_v8  ;;  %v8458_v40 = vunpack.i.l.bf16 %v8457_v20  ;;  %v8459_v55 = vunpack.i.h.bf16 %v8457_v20 }
 0x68a   :  { %4856 = vmatprep.mubr.bf16.mxu0 %v4616_v10  ;;  %v4615_v31 = vpack.c.bf16 %v4550_v56, %v4549_v39 }
 0x68b   :  { %v4599_v50 = vsel %vm1519_vm14, %v4583_v15, %v8468_v53 }
 0x68c   :  { %v8462_v60 = vpop.permute.xlu1 %8461  ;;  %4857 = vmatmul.mubr.bf16.gmra.mrb[88].mxu0 %v4615_v31 }
 0x68d   :  { %v8464_v45 = vunpack.i.h.bf16 %v8462_v60  ;;  %v8463_v48 = vunpack.i.l.bf16 %v8462_v60 }
 0x68f   :  { %v4522_v41 = vsel %vm779_vm11, %v11506_v23, %v8464_v45  ;;  %v4568_v0 = vsel %vm779_vm11, %v11583_v4, %v8463_v48  ;;  %v8469_v4 = vunpack.i.h.bf16 %v8467_v8 }
 0x690   :  { %v4584_v34 = vsel %vm1503_vm13, %v4568_v0, %v9996_v29  ;;  %v4536_v21 = vsel %vm1503_vm13, %v4522_v41, %v8458_v40 }
 0x691   :  { %v4600_v61 = vsel %vm1519_vm14, %v4584_v34, %v10013_v36  ;;  %v4551_v25 = vsel %vm1519_vm14, %v4536_v21, %v8469_v4 }
 0x692   :  { %v4619_v23 = vpack.c.bf16 %v4600_v61, %v4599_v50 }
 0x693   :  { %v8472_v5 = vpop.permute.xlu0 %8471 }
 0x694   :  { %v8473_v49 = vunpack.i.l.bf16 %v8472_v5  ;;  %v8477_v27 = vpop.permute.xlu1 %8476  ;;  %4864 = vmatprep.mubr.bf16.mxu0 %v4619_v23  ;;  %v8474_v44 = vunpack.i.h.bf16 %v8472_v5 }
 0x695   :  { %v8478_v24 = vunpack.i.l.bf16 %v8477_v27  ;;  %v8479_v60 = vunpack.i.h.bf16 %v8477_v27 }
 0x696   :  { %v4523_v22 = vsel %vm779_vm11, %v11539_v37, %v8473_v49  ;;  %v4569_v8 = vsel %vm779_vm11, %v11622_v32, %v8474_v44 }
 0x697   :  { %v4537_v3 = vsel %vm1503_vm13, %v4523_v22, %v8459_v55  ;;  %v8482_v46 = vpop.permute.xlu0 %8481 }
 0x698   :  { %v4552_v62 = vsel %vm1519_vm14, %v4537_v3, %v8478_v24  ;;  %v8483_v63 = vunpack.i.l.bf16 %v8482_v46  ;;  %v8484_v13 = vunpack.i.h.bf16 %v8482_v46 }
 0x699   :  { %v4618_v9 = vpack.c.bf16 %v4552_v62, %v4551_v25 }
 0x69a   :  { %v4570_v53 = vsel %vm779_vm11, %v11609_v58, %v8483_v63  ;;  %v4524_v34 = vsel %vm779_vm11, %v11593_v7, %v8484_v13 }
 0x69b   :  { %4865 = vmatmul.mubr.bf16.gmra.mrb[92].mxu0 %v4618_v9 }
 0x69f   :  { %v8487_v20 = vpop.permute.xlu1 %8486 }
 0x6a0   :  { %v8492_v10 = vpop.permute.xlu0 %8491  ;;  %v8488_v28 = vunpack.i.l.bf16 %v8487_v20  ;;  %v8489_v39 = vunpack.i.h.bf16 %v8487_v20 }
 0x6a1   :  { %v8493_v42 = vunpack.i.l.bf16 %v8492_v10  ;;  %v8494_v22 = vunpack.i.h.bf16 %v8492_v10 }
 0x6a2   :  { %v4585_v37 = vsel %vm1503_vm13, %v4569_v8, %v8488_v28  ;;  %v4586_v48 = vsel %vm1503_vm13, %v4570_v53, %v8489_v39 }
 0x6a3   :  { %v8497_v56 = vpop.permute.xlu1 %8496  ;;  %v4601_v0 = vsel %vm1519_vm14, %v4585_v37, %v8479_v60  ;;  %v4538_v50 = vsel %vm1503_vm13, %v4524_v34, %v8493_v42 }
 0x6a4   :  { %v8502_v31 = vpop.permute.xlu0 %8501  ;;  %v8498_v45 = vunpack.i.l.bf16 %v8497_v56  ;;  %v8499_v41 = vunpack.i.h.bf16 %v8497_v56 }
 0x6a5   :  { %v8504_v20 = vunpack.i.h.bf16 %v8502_v31  ;;  %v8503_v63 = vunpack.i.l.bf16 %v8502_v31 }
 0x6a6   :  { %v4602_v40 = vsel %vm1519_vm14, %v4586_v48, %v8498_v45  ;;  %v4553_v58 = vsel %vm1519_vm14, %v9957_v30, %v8499_v41 }
 0x6a7   :  { %v8512_v5 = vpop.permute.xlu1 %8511  ;;  %v4622_v15 = vpack.c.bf16 %v4602_v40, %v4601_v0  ;;  %v4526_v45 = vsel %vm779_vm11, %v11629_v19, %v8504_v20 }
 0x6a8   :  { %v8507_v32 = vpop.permute.xlu0 %8506  ;;  %v8513_v49 = vunpack.i.l.bf16 %v8512_v5  ;;  %v8514_v21 = vunpack.i.h.bf16 %v8512_v5 }
 0x6a9   :  { %v8508_v27 = vunpack.i.l.bf16 %v8507_v32  ;;  %4872 = vmatprep.mubr.bf16.mxu0 %v4622_v15  ;;  %v8509_v7 = vunpack.i.h.bf16 %v8507_v32 }
 0x6aa   :  { %v4571_v4 = vsel %vm779_vm11, %v11649_v54, %v8513_v49  ;;  %v4572_v46 = vsel %vm779_vm11, %v11669_v47, %v8514_v21  ;;  %v4525_v47 = vsel %vm779_vm11, %v11599_v35, %v8503_v63 }
 0x6ab   :  { %v4554_v61 = vsel %vm1519_vm14, %v4538_v50, %v8508_v27  ;;  %v8517_v55 = vpop.permute.xlu1 %8516  ;;  %v4587_v9 = vsel %vm1503_vm13, %v4571_v4, %v8494_v22 }
 0x6ac   :  { %v8522_v24 = vpop.permute.xlu0 %8521  ;;  %v4621_v23 = vpack.c.bf16 %v4554_v61, %v4553_v58  ;;  %v8518_v3 = vunpack.i.l.bf16 %v8517_v55  ;;  %v8519_v39 = vunpack.i.h.bf16 %v8517_v55  ;;  %v4603_v54 = vsel %vm1519_vm14, %v4587_v9, %v8509_v7 }
 0x6ad   :  { %v8523_v8 = vunpack.i.l.bf16 %v8522_v24  ;;  %v8524_v34 = vunpack.i.h.bf16 %v8522_v24 }
 0x6ae   :  { %4873 = vmatmul.mubr.bf16.gmra.mrb[96].mxu0 %v4621_v23  ;;  %v4588_v28 = vsel %vm1503_vm13, %v4572_v46, %v8518_v3  ;;  %v4539_v48 = vsel %vm1503_vm13, %v4525_v47, %v8519_v39 }
 0x6af   :  { %v8527_v25 = vpop.permute.xlu1 %8526  ;;  %v4540_v42 = vsel %vm1503_vm13, %v4526_v45, %v8523_v8 }
 0x6b0   :  { %v8532_v62 = vpop.permute.xlu0 %8531  ;;  %v8528_v44 = vunpack.i.l.bf16 %v8527_v25  ;;  %v8529_v37 = vunpack.i.h.bf16 %v8527_v25 }
 0x6b1   :  { %v8534_v35 = vunpack.i.h.bf16 %v8532_v62  ;;  %v8533_v27 = vunpack.i.l.bf16 %v8532_v62 }
 0x6b2   :  { %v4604_v10 = vsel %vm1519_vm14, %v4588_v28, %v8528_v44  ;;  %v4555_v0 = vsel %vm1519_vm14, %v4539_v48, %v8529_v37 }
 0x6b3   :  { %v8542_v56 = vpop.permute.xlu1 %8541  ;;  %v4625_v60 = vpack.c.bf16 %v4604_v10, %v4603_v54  ;;  %v4528_v24 = vsel %vm779_vm11, %v11661_v14, %v8534_v35  ;;  %v4527_v7 = vsel %vm779_vm11, %v11636_v33, %v8533_v27 }
 0x6b4   :  { %v8543_v13 = vunpack.i.l.bf16 %v8542_v56  ;;  %v8537_v53 = vpop.permute.xlu0 %8536  ;;  %v8544_v5 = vunpack.i.h.bf16 %v8542_v56 }
 0x6b5   :  { %v8538_v31 = vunpack.i.l.bf16 %v8537_v53  ;;  %4880 = vmatprep.mubr.bf16.mxu0 %v4625_v60  ;;  %v8539_v50 = vunpack.i.h.bf16 %v8537_v53 }
 0x6b6   :  { %v4573_v32 = vsel %vm779_vm11, %v11696_v6, %v8543_v13  ;;  %v4574_v23 = vsel %vm779_vm11, %v11715_v2, %v8544_v5 }
 0x6b7   :  { %v8547_v41 = vpop.permute.xlu1 %8546  ;;  %v4556_v40 = vsel %vm1519_vm14, %v4540_v42, %v8538_v31  ;;  %v4589_v55 = vsel %vm1503_vm13, %v4573_v32, %v8524_v34 }
 0x6b8   :  { %v4364_v15 = vpop.permute.xlu0 %4363  ;;  %v4624_v19 = vpack.c.bf16 %v4556_v40, %v4555_v0  ;;  %v8548_v49 = vunpack.i.l.bf16 %v8547_v41  ;;  %v8549_v58 = vunpack.i.h.bf16 %v8547_v41  ;;  %v4605_v25 = vsel %vm1519_vm14, %v4589_v55, %v8539_v50 }
 0x6ba   :  { %4881 = vmatmul.mubr.bf16.gmra.mrb[100].mxu0 %v4624_v19  ;;  %v4590_v6 = vsel %vm1503_vm13, %v4574_v23, %v8548_v49  ;;  %v4541_v9 = vsel %vm1503_vm13, %v4527_v7, %v8549_v58  ;;  %v8870_v23 = vld [vmem:[%s12851_s11 + $0x80] sm:$0xff]  }
 0x6bb   :  { %v8557_v61 = vpop.permute.xlu1 %8556  ;;  %7363 = vmatprep.subr.bf16.mxu0 %v8870_v23 }
 0x6bc   :  { %v8559_v21 = vunpack.i.h.bf16 %v8557_v61  ;;  %v8558_v4 = vunpack.i.l.bf16 %v8557_v61  ;;  %v8552_v22 = vpop.permute.xlu0 %8551  ;;  %7364 = vmatpush3.bf16.msra.mxu0 %v8870_v23 }
 0x6bd   :  { %v8553_v3 = vunpack.i.l.bf16 %v8552_v22  ;;  %v8554_v53 = vunpack.i.h.bf16 %v8552_v22 }
 0x6be   :  { %v4606_v62 = vsel %vm1519_vm14, %v4590_v6, %v8558_v4  ;;  %v4557_v63 = vsel %vm1519_vm14, %v4541_v9, %v8559_v21  ;;  %v8871_v21 = vld [vmem:[%s12851_s11 + $0x88] sm:$0xff]   ;;  %v8872_v9 = vld [vmem:[%s12851_s11 + $0x40] sm:$0xff]  }
 0x6bf   :  { %v4542_v2 = vsel %vm1503_vm13, %v4528_v24, %v8553_v3  ;;  %v8567_v46 = vpop.permute.xlu1 %8566  ;;  %v4628_v44 = vpack.c.bf16 %v4606_v62, %v4605_v25  ;;  %7365 = vmatprep.subr.bf16.mxu0 %v8871_v21  ;;  %7113 = vmatprep.subr.bf16.mxu1 %v8872_v9 }
 0x6c0   :  { %v8562_v20 = vpop.permute.xlu0 %8561  ;;  %v4558_v28 = vsel %vm1519_vm14, %v4542_v2, %v4364_v15  ;;  %v8568_v10 = vunpack.i.l.bf16 %v8567_v46  ;;  %v8569_v45 = vunpack.i.h.bf16 %v8567_v46  ;;  %7366 = vmatpush3.bf16.msra.mxu0 %v8871_v21  ;;  %v8874_v2 = vld [vmem:[%s12851_s11] sm:$0xff]   ;;  %v8876_v46 = vld [vmem:[%s12851_s11 + $0x48] sm:$0xff]  }
 0x6c1   :  { %v8564_v39 = vunpack.i.h.bf16 %v8562_v20  ;;  %v8563_v14 = vunpack.i.l.bf16 %v8562_v20  ;;  %4888 = vmatprep.mubr.bf16.mxu0 %v4628_v44  ;;  %v4627_v8 = vpack.c.bf16 %v4558_v28, %v4557_v63  ;;  %v8873_v44 = vld [vmem:[%s12852_s13 + $0x40] sm:$0xff]   ;;  %7114 = vmatpush3.bf16.msra.mxu1 %v8874_v2 }
 0x6c2   :  { %7187 = vmatprep.subr.bf16.mxu0 %v8873_v44  ;;  %v11927_v20 = vld [vmem:[%s12853_s10] ss:$0 sm:$0xff]  ;;  %7115 = vmatprep.subr.bf16.mxu1 %v8876_v46 }
 0x6c3   :  { %v4529_v33 = vsel %vm779_vm11, %v11672_v57, %v8563_v14  ;;  %v8572_v54 = vpop.permute.xlu1 %8571  ;;  %4889 = vmatmul.mubr.bf16.gmra.mrb[104].mxu0 %v4627_v8  ;;  %v4530_v13 = vsel %vm779_vm11, %v11699_v11, %v8564_v39 }
 0x6c4   :  { %v8574_v37 = vunpack.i.h.bf16 %v8572_v54  ;;  %v8573_v56 = vunpack.i.l.bf16 %v8572_v54  ;;  %v8577_v60 = vpop.permute.xlu0 %8576  ;;  %v4543_v57 = vsel %vm1503_vm13, %v4529_v33, %v8568_v10  ;;  %v4544_v0 = vsel %vm1503_vm13, %v4530_v13, %v8569_v45 }
 0x6c5   :  { %v8579_v47 = vunpack.i.h.bf16 %v8577_v60  ;;  %v8578_v31 = vunpack.i.l.bf16 %v8577_v60 }
 0x6c6   :  { %v4576_v48 = vsel %vm779_vm11, %v11742_v16, %v8574_v37  ;;  %v4575_v42 = vsel %vm779_vm11, %v11729_v52, %v8573_v56  ;;  %v12949_v56 = vmax.f32 %v10715_v1, 0.0  ;;  %v8882_v1 = vld [vmem:[%s12851_s11 + $0x10] sm:$0xff]  }
 0x6c7   :  { %v4368_v41 = vpop.permute.xlu1 %4367  ;;  %v4559_v40 = vsel %vm1519_vm14, %v4543_v57, %v8579_v47  ;;  %v4591_v5 = vsel %vm1503_vm13, %v4575_v42, %v8554_v53  ;;  %v4592_v11 = vsel %vm1503_vm13, %v4576_v48, %v9996_v29  ;;  %v8878_v53 = vld [vmem:[%s12851_s11 + $0x8] sm:$0xff]   ;;  %v12950_v47 = vmax.f32 %v10723_v38, 0.0  ;;  %v8880_v57 = vld [vmem:[%s12851_s11 + $0x50] sm:$0xff]  }
 0x6c8   :  { %v4560_v32 = vsel %vm1519_vm14, %v4544_v0, %v4368_v41  ;;  %v4607_v15 = vsel %vm1519_vm14, %v4591_v5, %v8578_v31  ;;  %v4608_v16 = vsel %vm1519_vm14, %v4592_v11, %v10013_v36  ;;  %7116 = vmatpush3.bf16.msra.mxu1 %v8878_v53  ;;  %v8884_v0 = vld [vmem:[%s12851_s11 + $0x58] sm:$0xff]   ;;  %v12952_v53 = vmax.f32 %v10793_v59, 0.0 }
 0x6c9   :  { %v4630_v52 = vpack.c.bf16 %v4560_v32, %v4559_v40  ;;  %v4631_v19 = vpack.c.bf16 %v4608_v16, %v4607_v15  ;;  %7117 = vmatprep.subr.bf16.mxu1 %v8880_v57  ;;  %v8886_v16 = vld [vmem:[%s12851_s11 + $0x18] sm:$0xff]  }
 0x6cb   :  { %4896 = vmatprep.mubr.bf16.mxu0 %v4631_v19 }
 0x6cc   :  { %4897 = vmatmul.mubr.bf16.gmra.mrb[108].mxu0 %v4630_v52  ;;  %7118 = vmatpush3.bf16.msra.mxu1 %v8882_v1 }
 0x6cd   :  { %7119 = vmatprep.subr.bf16.mxu1 %v8884_v0 }
 0x6d0   :  { %7120 = vmatpush3.bf16.msra.mxu1 %v8886_v16 }
 0x6d3   :  { %v11878_v34 = vpop.f32.mrb[80].mxu1 }
 0x6d4   :  { %v4939_v49 = vpop.f32.mrb[81].mxu1 }
 0x6d5   :  { %v11880_v35 = vpop.f32.mrb[82].mxu1 }
 0x6d6   :  { %v4942_v27 = vpop.f32.mrb[83].mxu1 }
 0x6e4   :  { %v11882_v50 = vpop.f32.mrb[84].mxu1 }
 0x6e5   :  { %v11884_v58 = vpop.f32.mrb[85].mxu1 }
 0x6e6   :  { %v11886_v61 = vpop.f32.mrb[86].mxu1 }
 0x6e7   :  { %v11888_v55 = vpop.f32.mrb[87].mxu1 }
 0x70a   :  { %v11896_v4 = vpop.f32.mrb[88].mxu1 }
 0x70b   :  { %v11898_v22 = vpop.f32.mrb[89].mxu1 }
 0x70c   :  { %v11900_v6 = vpop.f32.mrb[90].mxu1 }
 0x70d   :  { %v11902_v3 = vpop.f32.mrb[91].mxu1 }
 0x714   :  { %v11904_v24 = vpop.f32.mrb[92].mxu1 }
 0x715   :  { %v11906_v7 = vpop.f32.mrb[93].mxu1 }
 0x716   :  { %v11908_v25 = vpop.f32.mrb[94].mxu1 }
 0x717   :  { %v11910_v62 = vpop.f32.mrb[95].mxu1 }
 0x74b   :  { %v7055_v63 = vpop.f32.mrb[80].mxu0 }
 0x74c   :  { %v7056_v28 = vpop.f32.mrb[81].mxu0 }
 0x74d   :  { %v7057_v39 = vadd.f32 %v7056_v28, %v7055_v63  ;;  %v7058_v14 = vpop.f32.mrb[82].mxu0 }
 0x74e   :  { %v7059_v8 = vpop.f32.mrb[83].mxu0 }
 0x74f   :  { %v4843_v33 = vadd.f32 %v7057_v39, %v11927_v20  ;;  %v7060_v54 = vadd.f32 %v7059_v8, %v7058_v14  ;;  %v8888_v39 = vld [vmem:[%s12851_s11 + $0x60] sm:$0xff]  }
 0x750   :  { %v8890_v14 = vld [vmem:[%s12851_s11 + $0x20] sm:$0xff]   ;;  %7121 = vmatprep.subr.bf16.mxu1 %v8888_v39  ;;  %v8898_v39 = vld [vmem:[%s12851_s11 + $0x30] sm:$0xff]  }
 0x751   :  { %v4940_v10 = vadd.f32 %v4939_v49, %v4843_v33  ;;  %v4846_v37 = vadd.f32 %v7060_v54, %v11927_v20  ;;  %7122 = vmatpush3.bf16.msra.mxu1 %v8890_v14 }
 0x753   :  { %v5002_v60 = vadd.f32 %v4940_v10, %v12949_v56  ;;  %v4943_v13 = vadd.f32 %v4942_v27, %v4846_v37 }
 0x755   :  { %v5018_v45 = vmax.f32 %v5002_v60, 0.0  ;;  %v5003_v31 = vadd.f32 %v4943_v13, %v12950_v47 }
 0x757   :  { %v5050_v48 = vrot.slane %v5018_v45, 7  ;;  %v5019_v42 = vmax.f32 %v5003_v31, 0.0  ;;  %v7061_v41 = vpop.f32.mrb[84].mxu0 }
 0x758   :  { %v7062_v11 = vpop.f32.mrb[85].mxu0 }
 0x759   :  { %v11948_v40 = vsel %vm120_vm0, 0.0, %v5050_v48  ;;  %v11951_v38 = vsel %vm120_vm0, %v5050_v48, 0.0  ;;  %v5051_v5 = vrot.slane %v5019_v42, 7  ;;  %v7063_v32 = vadd.f32 %v7062_v11, %v7061_v41  ;;  %v7064_v15 = vpop.f32.mrb[86].mxu0 }
 0x75a   :  { %v5185_v52 = vrot.slane %v11951_v38, 2  ;;  %v7065_v27 = vpop.f32.mrb[87].mxu0  ;;  %v5184_v23 = vrot.slane %v11948_v40, 2 }
 0x75b   :  { %v11958_v19 = vsel %vm120_vm0, 0.0, %v5051_v5  ;;  %v11961_v49 = vsel %vm120_vm0, %v5051_v5, 0.0  ;;  %v4851_v9 = vadd.f32 %v7063_v32, %v11927_v20  ;;  %v7066_v2 = vadd.f32 %v7065_v27, %v7064_v15 }
 0x75c   :  { %v5188_v21 = vrot.slane %v11961_v49, 2  ;;  %v8580_v46 = vpack.i.bf16 %v11958_v19, %v11948_v40  ;;  %v5187_v44 = vrot.slane %v11958_v19, 2  ;;  %v5186_v8 = vsel %vm231_vm1, %v5184_v23, %v5185_v52 }
 0x75d   :  { %v4948_v63 = vadd.f32 %v11878_v34, %v4851_v9  ;;  %v4854_v28 = vadd.f32 %v7066_v2, %v11927_v20  ;;  %v12951_v34 = vmax.f32 %v10787_v51, 0.0  ;;  %v8892_v51 = vld [vmem:[%s12851_s11 + $0x68] sm:$0xff]   ;;  %v5146_v41 = vrot.slane %v11961_v49, 1 }
 0x75e   :  { %8581 = vrot.lane.b32.xlu1 %v8580_v46, %s8915_s19  ;;  %v11980_v33 = vsel %vm231_vm1, %v5187_v44, %v5188_v21  ;;  %7123 = vmatprep.subr.bf16.mxu1 %v8892_v51  ;;  %v5145_v0 = vrot.slane %v11958_v19, 1  ;;  %v12953_v9 = vmax.f32 %v10825_v43, 0.0  ;;  %v5143_v44 = vrot.slane %v11951_v38, 1 }
 0x75f   :  { %v5004_v54 = vadd.f32 %v4948_v63, %v12951_v34  ;;  %v4951_v10 = vadd.f32 %v11880_v35, %v4854_v28  ;;  %v7067_v37 = vpop.f32.mrb[88].mxu0  ;;  %v8585_v56 = vpack.i.bf16 %v11980_v33, %v5186_v8  ;;  %v8894_v35 = vld [vmem:[%s12851_s11 + $0x28] sm:$0xff]   ;;  %v12954_v38 = vmax.f32 %v10849_v17, 0.0 }
 0x760   :  { %v7068_v60 = vpop.f32.mrb[89].mxu0  ;;  %7124 = vmatpush3.bf16.msra.mxu1 %v8894_v35 }
 0x761   :  { %v5020_v13 = vmax.f32 %v5004_v54, 0.0  ;;  %v5005_v45 = vadd.f32 %v4951_v10, %v12952_v53  ;;  %v7069_v47 = vadd.f32 %v7068_v60, %v7067_v37  ;;  %v7070_v31 = vpop.f32.mrb[90].mxu0  ;;  %8586 = vrot.lane.b32.xlu0 %v8585_v56, %s8914_s24  ;;  %v5142_v56 = vrot.slane %v11948_v40, 1 }
 0x762   :  { %v7071_v48 = vpop.f32.mrb[91].mxu0  ;;  %v12040_v53 = vsel %vm185_vm2, %v5145_v0, %v5146_v41 }
 0x763   :  { %v5052_v42 = vrot.slane %v5020_v13, 7  ;;  %v5021_v57 = vmax.f32 %v5005_v45, 0.0  ;;  %v4859_v1 = vadd.f32 %v7069_v47, %v11927_v20  ;;  %v7072_v59 = vadd.f32 %v7071_v48, %v7070_v31  ;;  %v8900_v45 = vld [vmem:[%s12851_s11 + $0x78] sm:$0xff]  }
 0x764   :  { %v8902_v47 = vld [vmem:[%s12851_s11 + $0x38] sm:$0xff]  }
 0x765   :  { %v11999_v5 = vsel %vm120_vm0, 0.0, %v5052_v42  ;;  %v5100_v11 = vsel %vm120_vm0, %v5052_v42, 0.0  ;;  %v5053_v32 = vrot.slane %v5021_v57, 7  ;;  %v4956_v15 = vadd.f32 %v11884_v58, %v4859_v1  ;;  %v8896_v58 = vld [vmem:[%s12851_s11 + $0x70] sm:$0xff]  }
 0x766   :  { %v5149_v16 = vrot.slane %v5100_v11, 1  ;;  %v5191_v52 = vrot.slane %v5100_v11, 2  ;;  %v4862_v27 = vadd.f32 %v7072_v59, %v11927_v20  ;;  %v8590_v23 = vpack.i.bf16 %v11999_v5, %v11958_v19  ;;  %7125 = vmatprep.subr.bf16.mxu1 %v8896_v58 }
 0x767   :  { %v12007_v49 = vsel %vm120_vm0, 0.0, %v5053_v32  ;;  %v12010_v21 = vsel %vm120_vm0, %v5053_v32, 0.0  ;;  %v5006_v2 = vadd.f32 %v4956_v15, %v12953_v9  ;;  %v5190_v46 = vrot.slane %v11999_v5, 2  ;;  %7126 = vmatpush3.bf16.msra.mxu1 %v8898_v39  ;;  %v8875_v39 = vld [vmem:[%s12852_s13] sm:$0xff]  }
 0x768   :  { %v4959_v63 = vadd.f32 %v11888_v55, %v4862_v27  ;;  %8591 = vrot.lane.b32.xlu0 %v8590_v23, %s8916_s22  ;;  %v8595_v28 = vpack.i.bf16 %v12007_v49, %v5186_v8  ;;  %v5194_v43 = vrot.slane %v12010_v21, 2  ;;  %v5148_v54 = vrot.slane %v11999_v5, 1  ;;  %7127 = vmatprep.subr.bf16.mxu1 %v8900_v45 }
 0x769   :  { %v5022_v14 = vmax.f32 %v5006_v2, 0.0  ;;  %v12027_v34 = vsel %vm231_vm1, %v5190_v46, %v5191_v52  ;;  %v5193_v37 = vrot.slane %v12007_v49, 2  ;;  %v8600_v42 = vpack.i.bf16 %v12007_v49, %v11999_v5 }
 0x76a   :  { %v5007_v55 = vadd.f32 %v4959_v63, %v12954_v38  ;;  %8596 = vrot.lane.b32.xlu1 %v8595_v28, %s8916_s22  ;;  %v12035_v8 = vpack.c.bf16 %v12027_v34, %v11980_v33  ;;  %v12043_v17 = vsel %vm185_vm2, %v5148_v54, %v5149_v16  ;;  %v12068_v15 = vsel %vm185_vm2, %v5142_v56, %v5143_v44 }
 0x76b   :  { %v5054_v60 = vrot.slane %v5022_v14, 7  ;;  %v8610_v35 = vpack.i.bf16 %v12043_v17, %v12040_v53  ;;  %v12062_v41 = vsel %vm231_vm1, %v5193_v37, %v5194_v43  ;;  %v8605_v27 = vpack.i.bf16 %v12027_v34, %v12068_v15  ;;  %7128 = vmatpush3.bf16.msra.mxu1 %v8902_v47  ;;  %v8879_v47 = vld [vmem:[%s12852_s13 + $0x8] sm:$0xff]  }
 0x76c   :  { %v5023_v31 = vmax.f32 %v5007_v55, 0.0  ;;  %7367 = vmatprep.mubr.msk.bf16.mxu0 %vm779_vm11, %v12035_v8  ;;  %v8615_v2 = vpack.i.bf16 %v12040_v53, %v12062_v41  ;;  %v5152_v14 = vrot.slane %v12010_v21, 1  ;;  %v12955_v54 = vmax.f32 %v10899_v12, 0.0 }
 0x76d   :  { %v12058_v57 = vsel %vm120_vm0, 0.0, %v5054_v60  ;;  %v5102_v1 = vsel %vm120_vm0, %v5054_v60, 0.0  ;;  %8611 = vrot.lane.b32.xlu0 %v8610_v35, %s8915_s19  ;;  %v5151_v55 = vrot.slane %v12007_v49, 1 }
 0x76e   :  { %v7073_v10 = vpop.f32.mrb[92].mxu0  ;;  %v5196_v0 = vrot.slane %v12058_v57, 2  ;;  %v5197_v11 = vrot.slane %v5102_v1, 2  ;;  %v5055_v32 = vrot.slane %v5023_v31, 7  ;;  %8601 = vrot.lane.b32.xlu1 %v8600_v42, %s8915_s19  ;;  %v5155_v23 = vrot.slane %v5102_v1, 1 }
 0x76f   :  { %v7074_v13 = vpop.f32.mrb[93].mxu0  ;;  %v5154_v46 = vrot.slane %v12058_v57, 1  ;;  %v8620_v56 = vpack.i.bf16 %v11980_v33, %v12058_v57  ;;  %v12123_v31 = vsel %vm185_vm2, %v5151_v55, %v5152_v14 }
 0x770   :  { %v7075_v51 = vadd.f32 %v7074_v13, %v7073_v10  ;;  %v7076_v48 = vpop.f32.mrb[94].mxu0  ;;  %v12074_v9 = vsel %vm231_vm1, %v5196_v0, %v5197_v11  ;;  %v12080_v58 = vsel %vm120_vm0, 0.0, %v5055_v32  ;;  %v12083_v44 = vsel %vm120_vm0, %v5055_v32, 0.0  ;;  %v8877_v10 = vld [vmem:[%s12852_s13 + $0x48] sm:$0xff]   ;;  %v8883_v0 = vld [vmem:[%s12852_s13 + $0x10] sm:$0xff]  }
 0x771   :  { %v7077_v59 = vpop.f32.mrb[95].mxu0  ;;  %v12092_v43 = vpack.c.bf16 %v12074_v9, %v12062_v41  ;;  %8616 = vrot.lane.b32.xlu0 %v8615_v2, %s8914_s24  ;;  %v5200_v37 = vrot.slane %v12083_v44, 2  ;;  %v8625_v12 = vpack.i.bf16 %v12080_v58, %v12027_v34  ;;  %v12114_v13 = vsel %vm185_vm2, %v5154_v46, %v5155_v23  ;;  %v8885_v23 = vld [vmem:[%s12852_s13 + $0x58] sm:$0xff]  }
 0x772   :  { %v4867_v16 = vadd.f32 %v7075_v51, %v11927_v20  ;;  %v7078_v52 = vadd.f32 %v7077_v59, %v7076_v48  ;;  %8606 = vrot.lane.b32.xlu1 %v8605_v27, %s8914_s24  ;;  %v5199_v45 = vrot.slane %v12080_v58, 2  ;;  %v8640_v51 = vpack.i.bf16 %v12114_v13, %v12123_v31 }
 0x773   :  { %7368 = vmatmul.mubr.msk.bf16.vlgmr.msra.gmra.mrb[112].mxu0 %vm779_vm11, %v12092_v43  ;;  %v8630_v35 = vpack.i.bf16 %v12080_v58, %v12058_v57  ;;  %v8635_v27 = vpack.i.bf16 %v12074_v9, %v12043_v17 }
 0x774   :  { %v4964_v63 = vadd.f32 %v11882_v50, %v4867_v16  ;;  %v4870_v28 = vadd.f32 %v7078_v52, %v11927_v20  ;;  %7188 = vmatpush3.bf16.msra.mxu0 %v8875_v39  ;;  %v12137_v59 = vsel %vm231_vm1, %v5199_v45, %v5200_v37 }
 0x775   :  { %8621 = vrot.lane.b32.xlu0 %v8620_v56, %s8916_s22  ;;  %7189 = vmatprep.subr.bf16.mxu0 %v8877_v10  ;;  %v8645_v46 = vpack.i.bf16 %v12123_v31, %v12137_v59  ;;  %v5158_v56 = vrot.slane %v12083_v44, 1 }
 0x776   :  { %v5008_v38 = vadd.f32 %v4964_v63, %v12955_v54  ;;  %v4967_v50 = vadd.f32 %v11886_v61, %v4870_v28  ;;  %v12956_v61 = vmax.f32 %v10910_v18, 0.0  ;;  %8626 = vrot.lane.b32.xlu1 %v8625_v12, %s8916_s22  ;;  %v8881_v18 = vld [vmem:[%s12852_s13 + $0x50] sm:$0xff]  }
 0x778   :  { %v5024_v21 = vmax.f32 %v5008_v38, 0.0  ;;  %v5009_v60 = vadd.f32 %v4967_v50, %v12956_v61  ;;  %7190 = vmatpush3.bf16.msra.mxu0 %v8879_v47  ;;  %v5157_v61 = vrot.slane %v12080_v58, 1 }
 0x779   :  { %8641 = vrot.lane.b32.xlu0 %v8640_v51, %s8915_s19  ;;  %7191 = vmatprep.subr.bf16.mxu0 %v8881_v18 }
 0x77a   :  { %v5056_v33 = vrot.slane %v5024_v21, 7  ;;  %v5025_v34 = vmax.f32 %v5009_v60, 0.0  ;;  %8631 = vrot.lane.b32.xlu1 %v8630_v35, %s8915_s19  ;;  %v8887_v60 = vld [vmem:[%s12852_s13 + $0x18] sm:$0xff]  }
 0x77c   :  { %v12133_v48 = vsel %vm120_vm0, 0.0, %v5056_v33  ;;  %v5104_v42 = vsel %vm120_vm0, %v5056_v33, 0.0  ;;  %v5057_v1 = vrot.slane %v5025_v34, 7  ;;  %7192 = vmatpush3.bf16.msra.mxu0 %v8883_v0  ;;  %v8889_v33 = vld [vmem:[%s12852_s13 + $0x60] sm:$0xff]  }
 0x77d   :  { %v5203_v11 = vrot.slane %v5104_v42, 2  ;;  %v5202_v32 = vrot.slane %v12133_v48, 2  ;;  %v5161_v39 = vrot.slane %v5104_v42, 1  ;;  %v5160_v50 = vrot.slane %v12133_v48, 1  ;;  %8646 = vrot.lane.b32.xlu0 %v8645_v46, %s8914_s24  ;;  %7193 = vmatprep.subr.bf16.mxu0 %v8885_v23  ;;  %v12206_v0 = vld [vmem:[%s12852_s13 + $0x80] sm:$0xff]  }
 0x77e   :  { %v12146_v16 = vsel %vm120_vm0, 0.0, %v5057_v1  ;;  %v5105_v52 = vsel %vm120_vm0, %v5057_v1, 0.0  ;;  %8636 = vrot.lane.b32.xlu1 %v8635_v27, %s8914_s24  ;;  %v8650_v44 = vpack.i.bf16 %v12062_v41, %v12133_v48  ;;  %v12198_v1 = vsel %vm185_vm2, %v5157_v61, %v5158_v56  ;;  %7383 = vmatprep.subr.bf16.mxu1 %v12206_v0 }
 0x77f   :  { %v5253_v2 = vrot.slane %v5105_v52, 2  ;;  %v5204_v63 = vsel %vm231_vm1, %v5202_v32, %v5203_v11  ;;  %v5252_v28 = vrot.slane %v12146_v16, 2  ;;  %v8655_v38 = vpack.i.bf16 %v12146_v16, %v12074_v9  ;;  %v8893_v32 = vld [vmem:[%s12852_s13 + $0x68] sm:$0xff]  }
 0x780   :  { %v12159_v54 = vpack.c.bf16 %v5204_v63, %v12137_v59  ;;  %v8670_v37 = vpack.i.bf16 %v5204_v63, %v12137_v59  ;;  %v5231_v45 = vrot.slane %v5105_v52, 1  ;;  %v12190_v51 = vsel %vm185_vm2, %v5160_v50, %v5161_v39  ;;  %7194 = vmatpush3.bf16.msra.mxu0 %v8887_v60  ;;  %v8891_v59 = vld [vmem:[%s12852_s13 + $0x20] sm:$0xff]   ;;  %v12957_v52 = vld [vmem:[#allocation8_spill] sm:$0xff] }
 0x781   :  { %v7079_v14 = vpop.f32.mrb[96].mxu0  ;;  %v12167_v10 = vsel %vm231_vm1, %v5252_v28, %v5253_v2  ;;  %v5230_v35 = vrot.slane %v12146_v16, 1  ;;  %8651 = vrot.lane.b32.xlu0 %v8650_v44, %s8916_s22  ;;  %v8665_v11 = vpack.i.bf16 %v12190_v51, %v12198_v1  ;;  %7195 = vmatprep.subr.bf16.mxu0 %v8889_v33  ;;  %v12958_v27 = vmax.f32 %v12957_v52, 0.0  ;;  %v12959_v28 = vld [vmem:[#allocation9_spill] sm:$0xff]  ;;  %v8897_v50 = vld [vmem:[%s12852_s13 + $0x70] sm:$0xff]  }
 0x782   :  { %v7080_v55 = vpop.f32.mrb[97].mxu0  ;;  %7371 = vmatprep.mubr.msk.bf16.mxu0 %vm779_vm11, %v12159_v54  ;;  %v12175_v9 = vpack.c.bf16 %v9046_v26, %v12167_v10  ;;  %8656 = vrot.lane.b32.xlu1 %v8655_v38, %s8916_s22  ;;  %v12960_v39 = vmax.f32 %v12959_v28, 0.0  ;;  %v8895_v38 = vld [vmem:[%s12852_s13 + $0x28] sm:$0xff]   ;;  %v8903_v28 = vld [vmem:[%s12852_s13 + $0x38] sm:$0xff]  }
 0x783   :  { %v7081_v12 = vadd.f32 %v7080_v55, %v7079_v14  ;;  %v7082_v21 = vpop.f32.mrb[98].mxu0  ;;  %v12218_v46 = vsel %vm185_vm2, %v5230_v35, %v5231_v45  ;;  %v8901_v35 = vld [vmem:[%s12852_s13 + $0x78] sm:$0xff]  }
 0x784   :  { %v7083_v47 = vpop.f32.mrb[99].mxu0  ;;  %7372 = vmatmul.mubr.msk.bf16.gmra.mrb[116].mxu0 %vm779_vm11, %v12175_v9 }
 0x785   :  { %v4875_v34 = vadd.f32 %v7081_v12, %v11927_v20  ;;  %v7084_v18 = vadd.f32 %v7083_v47, %v7082_v21  ;;  %8666 = vrot.lane.b32.xlu0 %v8665_v11, %s8915_s19  ;;  %7196 = vmatpush3.bf16.msra.mxu0 %v8891_v59  ;;  %v8899_v47 = vld [vmem:[%s12852_s13 + $0x30] sm:$0xff]  }
 0x786   :  { %7197 = vmatprep.subr.bf16.mxu0 %v8893_v32 }
 0x787   :  { %v4972_v41 = vadd.f32 %v11898_v22, %v4875_v34  ;;  %v4878_v42 = vadd.f32 %v7084_v18, %v11927_v20  ;;  %v8660_v22 = vpack.i.bf16 %v5204_v63, %v12114_v13 }
 0x789   :  { %v5010_v23 = vadd.f32 %v4972_v41, %v12958_v27  ;;  %v4975_v2 = vadd.f32 %v11902_v3, %v4878_v42  ;;  %8661 = vrot.lane.b32.xlu1 %v8660_v22, %s8914_s24  ;;  %v8680_v3 = vpack.i.bf16 %v12133_v48, %v12218_v46  ;;  %8671 = vrot.lane.b32.xlu0 %v8670_v37, %s8916_s22 }
 0x78a   :  { %7198 = vmatpush3.bf16.msra.mxu0 %v8895_v38  ;;  %v8675_v37 = vpack.i.bf16 %v12198_v1, %v12167_v10 }
 0x78b   :  { %v5026_v63 = vmax.f32 %v5010_v23, 0.0  ;;  %v5011_v14 = vadd.f32 %v4975_v2, %v12960_v39  ;;  %7199 = vmatprep.subr.bf16.mxu0 %v8897_v50 }
 0x78d   :  { %v5058_v55 = vrot.slane %v5026_v63, 7  ;;  %v5027_v56 = vmax.f32 %v5011_v14, 0.0  ;;  %v7085_v12 = vpop.f32.mrb[100].mxu0  ;;  %8681 = vrot.lane.b32.xlu1 %v8680_v3, %s8915_s19  ;;  %8676 = vrot.lane.b32.xlu0 %v8675_v37, %s8914_s24 }
 0x78e   :  { %v7086_v45 = vpop.f32.mrb[101].mxu0  ;;  %7200 = vmatpush3.bf16.msra.mxu0 %v8899_v47 }
 0x78f   :  { %v12236_v21 = vsel %vm120_vm0, 0.0, %v5058_v55  ;;  %v5106_v61 = vsel %vm120_vm0, %v5058_v55, 0.0  ;;  %v5059_v60 = vrot.slane %v5027_v56, 7  ;;  %v7087_v33 = vadd.f32 %v7086_v45, %v7085_v12  ;;  %v7088_v34 = vpop.f32.mrb[102].mxu0  ;;  %7201 = vmatprep.subr.bf16.mxu0 %v8901_v35  ;;  %v12961_v55 = vld [vmem:[#allocation2_spill] sm:$0xff] }
 0x790   :  { %v5206_v44 = vrot.slane %v5106_v61, 2  ;;  %v5205_v18 = vrot.slane %v12236_v21, 2  ;;  %v5164_v41 = vrot.slane %v5106_v61, 1  ;;  %v7089_v11 = vpop.f32.mrb[103].mxu0  ;;  %v5163_v2 = vrot.slane %v12236_v21, 1 }
 0x791   :  { %v12249_v42 = vsel %vm120_vm0, 0.0, %v5059_v60  ;;  %v5107_v59 = vsel %vm120_vm0, %v5059_v60, 0.0  ;;  %v4883_v52 = vadd.f32 %v7087_v33, %v11927_v20  ;;  %v7090_v27 = vadd.f32 %v7089_v11, %v7088_v34 }
 0x792   :  { %v5167_v22 = vrot.slane %v5107_v59, 1  ;;  %v5209_v32 = vrot.slane %v5107_v59, 2  ;;  %v5207_v10 = vsel %vm231_vm1, %v5205_v18, %v5206_v44  ;;  %v5166_v23 = vrot.slane %v12249_v42, 1  ;;  %7202 = vmatpush3.bf16.msra.mxu0 %v8903_v28  ;;  %v12963_v44 = vld [vmem:[#allocation3_spill] sm:$0xff] }
 0x793   :  { %v5208_v63 = vrot.slane %v12249_v42, 2  ;;  %v4980_v39 = vadd.f32 %v11896_v4, %v4883_v52  ;;  %v4886_v14 = vadd.f32 %v7090_v27, %v11927_v20  ;;  %v8685_v38 = vpack.i.bf16 %v5207_v10, %v12190_v51 }
 0x794   :  { %v12265_v3 = vsel %vm185_vm2, %v5166_v23, %v5167_v22  ;;  %v12962_v56 = vmax.f32 %v12961_v55, 0.0  ;;  %v12277_v45 = vsel %vm185_vm2, %v5163_v2, %v5164_v41  ;;  %v12964_v33 = vmax.f32 %v12963_v44, 0.0 }
 0x795   :  { %v12268_v50 = vsel %vm231_vm1, %v5208_v63, %v5209_v32  ;;  %v4983_v61 = vadd.f32 %v11900_v6, %v4886_v14  ;;  %8686 = vrot.lane.b32.xlu1 %v8685_v38, %s8914_s24  ;;  %v8690_v4 = vpack.i.bf16 %v12265_v3, %v12146_v16 }
 0x796   :  { %v5012_v12 = vadd.f32 %v4980_v39, %v12962_v56  ;;  %v7091_v60 = vpop.f32.mrb[104].mxu0  ;;  %v8695_v6 = vpack.i.bf16 %v12277_v45, %v12268_v50 }
 0x797   :  { %v5013_v34 = vadd.f32 %v4983_v61, %v12964_v33  ;;  %v7092_v37 = vpop.f32.mrb[105].mxu0  ;;  %8691 = vrot.lane.b32.xlu0 %v8690_v4, %s8915_s19  ;;  %v12965_v61 = vld [vmem:[#allocation5_spill] sm:$0xff] }
 0x798   :  { %v5028_v47 = vmax.f32 %v5012_v12, 0.0  ;;  %v7093_v18 = vadd.f32 %v7092_v37, %v7091_v60  ;;  %v7094_v35 = vpop.f32.mrb[106].mxu0  ;;  %v12966_v4 = vmax.f32 %v12965_v61, 0.0 }
 0x799   :  { %v5029_v11 = vmax.f32 %v5013_v34, 0.0  ;;  %v7095_v16 = vpop.f32.mrb[107].mxu0  ;;  %8696 = vrot.lane.b32.xlu1 %v8695_v6, %s8914_s24 }
 0x79a   :  { %v5060_v59 = vrot.slane %v5028_v47, 7  ;;  %v4891_v41 = vadd.f32 %v7093_v18, %v11927_v20  ;;  %v7096_v22 = vadd.f32 %v7095_v16, %v7094_v35  ;;  %v12967_v18 = vld [vmem:[#allocation7_spill] sm:$0xff] }
 0x79b   :  { %v5061_v27 = vrot.slane %v5029_v11, 7  ;;  %v12968_v35 = vmax.f32 %v12967_v18, 0.0 }
 0x79c   :  { %v12287_v32 = vsel %vm120_vm0, 0.0, %v5060_v59  ;;  %v5108_v52 = vsel %vm120_vm0, %v5060_v59, 0.0  ;;  %v4988_v63 = vadd.f32 %v11906_v7, %v4891_v41  ;;  %v4894_v28 = vadd.f32 %v7096_v22, %v11927_v20 }
 0x79d   :  { %v5170_v23 = vrot.slane %v5108_v52, 1  ;;  %v5212_v2 = vrot.slane %v5108_v52, 2  ;;  %v12293_v39 = vsel %vm120_vm0, 0.0, %v5061_v27  ;;  %v5109_v14 = vsel %vm120_vm0, %v5061_v27, 0.0 }
 0x79e   :  { %v8700_v38 = vpack.i.bf16 %v12287_v32, %v12249_v42  ;;  %v5211_v55 = vrot.slane %v12287_v32, 2  ;;  %v5173_v56 = vrot.slane %v5109_v14, 1  ;;  %v5215_v12 = vrot.slane %v5109_v14, 2 }
 0x79f   :  { %v5014_v60 = vadd.f32 %v4988_v63, %v12966_v4  ;;  %v4991_v47 = vadd.f32 %v11910_v62, %v4894_v28  ;;  %v7097_v7 = vpop.f32.mrb[108].mxu0  ;;  %v8705_v44 = vpack.i.bf16 %v12293_v39, %v5207_v10  ;;  %v5169_v34 = vrot.slane %v12287_v32, 1 }
 0x7a0   :  { %8701 = vrot.lane.b32.xlu0 %v8700_v38, %s8916_s22  ;;  %v5213_v33 = vsel %vm231_vm1, %v5211_v55, %v5212_v2  ;;  %v5214_v37 = vrot.slane %v12293_v39, 2  ;;  %v7098_v11 = vpop.f32.mrb[109].mxu0  ;;  %v5172_v62 = vrot.slane %v12293_v39, 1 }
 0x7a1   :  { %v5030_v6 = vmax.f32 %v5014_v60, 0.0  ;;  %v5015_v59 = vadd.f32 %v4991_v47, %v12968_v35  ;;  %v12310_v16 = vpack.c.bf16 %v5213_v33, %v12268_v50  ;;  %v7099_v41 = vadd.f32 %v7098_v11, %v7097_v7  ;;  %v7100_v22 = vpop.f32.mrb[110].mxu0  ;;  %8706 = vrot.lane.b32.xlu1 %v8705_v44, %s8916_s22 }
 0x7a2   :  { %v12315_v10 = vsel %vm185_vm2, %v5169_v34, %v5170_v23  ;;  %v12318_v52 = vsel %vm231_vm1, %v5214_v37, %v5215_v12  ;;  %v7101_v63 = vpop.f32.mrb[111].mxu0  ;;  %v12329_v12 = vsel %vm185_vm2, %v5172_v62, %v5173_v56 }
 0x7a3   :  { %v5062_v27 = vrot.slane %v5030_v6, 7  ;;  %v5031_v2 = vmax.f32 %v5015_v59, 0.0  ;;  %7375 = vmatprep.mubr.msk.bf16.mxu0 %vm779_vm11, %v12310_v16  ;;  %v8710_v28 = vpack.i.bf16 %v12236_v21, %v12315_v10  ;;  %v8715_v14 = vpack.i.bf16 %v12315_v10, %v12265_v3  ;;  %v12969_v59 = vld [vmem:[#allocation4_spill] sm:$0xff] }
 0x7a4   :  { %v4899_v38 = vadd.f32 %v7099_v41, %v11927_v20  ;;  %v7102_v55 = vadd.f32 %v7101_v63, %v7100_v22  ;;  %v8725_v23 = vpack.i.bf16 %v12318_v52, %v5213_v33  ;;  %v8720_v37 = vpack.i.bf16 %v12329_v12, %v12249_v42 }
 0x7a5   :  { %v12332_v61 = vsel %vm120_vm0, 0.0, %v5062_v27  ;;  %v5110_v4 = vsel %vm120_vm0, %v5062_v27, 0.0  ;;  %v5063_v60 = vrot.slane %v5031_v2, 7  ;;  %8711 = vrot.lane.b32.xlu0 %v8710_v28, %s8915_s19  ;;  %8716 = vrot.lane.b32.xlu1 %v8715_v14, %s8914_s24  ;;  %v12970_v11 = vmax.f32 %v12969_v59, 0.0  ;;  %v12971_v2 = vld [vmem:[#allocation6_spill] sm:$0xff] }
 0x7a6   :  { %v5218_v47 = vrot.slane %v5110_v4, 2  ;;  %v4996_v7 = vadd.f32 %v11904_v24, %v4899_v38  ;;  %v4902_v44 = vadd.f32 %v7102_v55, %v11927_v20  ;;  %v5217_v6 = vrot.slane %v12332_v61, 2 }
 0x7a7   :  { %v12340_v34 = vsel %vm120_vm0, 0.0, %v5063_v60  ;;  %v5111_v56 = vsel %vm120_vm0, %v5063_v60, 0.0  ;;  %v5176_v18 = vrot.slane %v5110_v4, 1  ;;  %v5175_v41 = vrot.slane %v12332_v61, 1 }
 0x7a8   :  { %v5221_v35 = vrot.slane %v5111_v56, 2  ;;  %v5016_v62 = vadd.f32 %v4996_v7, %v12970_v11  ;;  %v4999_v24 = vadd.f32 %v11908_v25, %v4902_v44  ;;  %v5219_v20 = vsel %vm231_vm1, %v5217_v6, %v5218_v47 }
 0x7a9   :  { %8726 = vrot.lane.b32.xlu0 %v8725_v23, %s8914_s24  ;;  %v5220_v22 = vrot.slane %v12340_v34, 2  ;;  %v12972_v63 = vmax.f32 %v12971_v2, 0.0  ;;  %8721 = vrot.lane.b32.xlu1 %v8720_v37, %s8915_s19  ;;  %v12357_v14 = vpack.c.bf16 %v5219_v20, %v12318_v52  ;;  %v5179_v38 = vrot.slane %v5111_v56, 1 }
 0x7aa   :  { %v5032_v27 = vmax.f32 %v5016_v62, 0.0  ;;  %v8730_v25 = vpack.i.bf16 %v12268_v50, %v12332_v61  ;;  %v8735_v55 = vpack.i.bf16 %v12340_v34, %v5213_v33  ;;  %v12366_v47 = vsel %vm185_vm2, %v5175_v41, %v5176_v18 }
 0x7ab   :  { %v5017_v28 = vadd.f32 %v4999_v24, %v12972_v63  ;;  %v5222_v23 = vsel %vm231_vm1, %v5220_v22, %v5221_v35  ;;  %7376 = vmatmul.mubr.msk.bf16.gmra.mrb[120].mxu0 %vm779_vm11, %v12357_v14  ;;  %v5178_v7 = vrot.slane %v12340_v34, 1  ;;  %v8740_v6 = vpack.i.bf16 %v12287_v32, %v12366_v47 }
 0x7ac   :  { %v5064_v4 = vrot.slane %v5032_v27, 7  ;;  %v8755_v44 = vpack.i.bf16 %v5222_v23, %v5219_v20  ;;  %v8745_v11 = vpack.i.bf16 %v12366_v47, %v12329_v12 }
 0x7ad   :  { %v5033_v60 = vmax.f32 %v5017_v28, 0.0  ;;  %8731 = vrot.lane.b32.xlu0 %v8730_v25, %s8916_s22  ;;  %8736 = vrot.lane.b32.xlu1 %v8735_v55, %s8916_s22  ;;  %v12383_v62 = vsel %vm185_vm2, %v5178_v7, %v5179_v38 }
 0x7ae   :  { %v12371_v56 = vsel %vm120_vm0, 0.0, %v5064_v4  ;;  %v5112_v50 = vsel %vm120_vm0, %v5064_v4, 0.0  ;;  %v8750_v25 = vpack.i.bf16 %v12383_v62, %v12293_v39 }
 0x7af   :  { %v5065_v33 = vrot.slane %v5033_v60, 7  ;;  %v5224_v37 = vrot.slane %v5112_v50, 2  ;;  %v5223_v18 = vrot.slane %v12371_v56, 2  ;;  %v5182_v55 = vrot.slane %v5112_v50, 1 }
 0x7b0   :  { %v5181_v4 = vrot.slane %v12371_v56, 1 }
 0x7b1   :  { %v5097_v35 = vsel %vm120_vm0, 0.0, %v5065_v33  ;;  %v5113_v59 = vsel %vm120_vm0, %v5065_v33, 0.0  ;;  %8741 = vrot.lane.b32.xlu0 %v8740_v6, %s8915_s19  ;;  %v5225_v41 = vsel %vm231_vm1, %v5223_v18, %v5224_v37  ;;  %8746 = vrot.lane.b32.xlu1 %v8745_v11, %s8914_s24  ;;  %vm6543_vm0 = vcmask 19456  }
 0x7b2   :  { %v5256_v24 = vrot.slane %v5113_v59, 2  ;;  %v5255_v22 = vrot.slane %v5097_v35, 2  ;;  %v12388_v27 = vpack.c.bf16 %v5225_v41, %v5222_v23  ;;  %v8765_v2 = vpack.i.bf16 %v5097_v35, %v5219_v20 }
 0x7b3   :  { %v8780_v63 = vpack.i.bf16 %v5225_v41, %v5222_v23  ;;  %v8760_v20 = vpack.i.bf16 %v12318_v52, %v12371_v56  ;;  %v12406_v23 = vsel %vm185_vm2, %v5181_v4, %v5182_v55  ;;  %v5234_v7 = vrot.slane %v5113_v59, 1 }
 0x7b4   :  { %v5257_v28 = vsel %vm231_vm1, %v5255_v22, %v5256_v24  ;;  %7379 = vmatprep.mubr.msk.bf16.mxu0 %vm779_vm11, %v12388_v27  ;;  %v8775_v52 = vpack.i.bf16 %v12406_v23, %v12383_v62 }
 0x7b5   :  { %v12396_v38 = vpack.c.bf16 %v9046_v26, %v5257_v28  ;;  %v8785_v60 = vpack.i.bf16 %v5257_v28, %v5225_v41  ;;  %8756 = vrot.lane.b32.xlu0 %v8755_v44, %s8914_s24  ;;  %8751 = vrot.lane.b32.xlu1 %v8750_v25, %s8915_s19  ;;  %v8770_v26 = vpack.i.bf16 %v12332_v61, %v12406_v23  ;;  %v5233_v44 = vrot.slane %v5097_v35, 1 }
 0x7b7   :  { %7380 = vmatmul.mubr.msk.bf16.gmra.mrb[124].mxu0 %vm779_vm11, %v12396_v38  ;;  %v12419_v50 = vsel %vm185_vm2, %v5233_v44, %v5234_v7 }
 0x7b8   :  { %v8790_v33 = vpack.i.bf16 %v12371_v56, %v12419_v50 }
 0x7b9   :  { %8761 = vrot.lane.b32.xlu0 %v8760_v20, %s8916_s22  ;;  %5382 = vrot.lane.b32.xlu1 %v12340_v34, %s8915_s19 }
 0x7bd   :  { %8771 = vrot.lane.b32.xlu0 %v8770_v26, %s8915_s19  ;;  %8766 = vrot.lane.b32.xlu1 %v8765_v2, %s8916_s22 }
 0x7c1   :  { %8781 = vrot.lane.b32.xlu0 %v8780_v63, %s8916_s22  ;;  %8776 = vrot.lane.b32.xlu1 %v8775_v52, %s8914_s24 }
 0x7c5   :  { %8786 = vrot.lane.b32.xlu0 %v8785_v60, %s8914_s24  ;;  %8791 = vrot.lane.b32.xlu1 %v8790_v33, %s8915_s19 }
 0x7c9   :  { %5386 = vrot.lane.b32.xlu0 %v5097_v35, %s8915_s19 }
 0x7d0   :  { %v8582_v6 = vpop.permute.xlu1 %8581 }
 0x7d1   :  { %v8583_v33 = vunpack.i.l.bf16 %v8582_v6 }
 0x7d3   :  { %v8587_v37 = vpop.permute.xlu0 %8586 }
 0x7d4   :  { %v8589_v11 = vunpack.i.h.bf16 %v8587_v37  ;;  %v8588_v24 = vunpack.i.l.bf16 %v8587_v37 }
 0x7d6   :  { %v5581_v28 = vsel %vm779_vm11, %v12040_v53, %v8589_v11  ;;  %v5580_v25 = vsel %vm779_vm11, %v12068_v15, %v8588_v24  ;;  %v8584_v53 = vunpack.i.h.bf16 %v8582_v6  ;;  %v8905_v6 = vld [vmem:[%s12852_s13 + $0x88] sm:$0xff]  }
 0x7da   :  { %v8592_v18 = vpop.permute.xlu0 %8591 }
 0x7db   :  { %v8594_v41 = vunpack.i.h.bf16 %v8592_v18  ;;  %v8593_v22 = vunpack.i.l.bf16 %v8592_v18 }
 0x7dc   :  { %v8597_v59 = vpop.permute.xlu1 %8596 }
 0x7dd   :  { %v5596_v35 = vsel %vm1503_vm13, %v5580_v25, %v8593_v22  ;;  %v5597_v60 = vsel %vm1503_vm13, %v5581_v28, %v8594_v41  ;;  %v8598_v18 = vunpack.i.l.bf16 %v8597_v59 }
 0x7df   :  { %v8612_v2 = vpop.permute.xlu0 %8611 }
 0x7e0   :  { %v12427_v63 = vpop.permute.xlu1 %8601  ;;  %v8614_v55 = vunpack.i.h.bf16 %v8612_v2  ;;  %v8613_v4 = vunpack.i.l.bf16 %v8612_v2  ;;  %v5564_v2 = vsel %vm1519_vm14, %v9957_v30, %v8583_v33 }
 0x7e2   :  { %v5612_v20 = vsel %vm1519_vm14, %v5596_v35, %v8613_v4  ;;  %v5613_v26 = vsel %vm1519_vm14, %v5597_v60, %v8614_v55  ;;  %v8599_v35 = vunpack.i.h.bf16 %v8597_v59 }
 0x7e3   :  { %v8617_v7 = vpop.permute.xlu0 %8616  ;;  %v5629_v52 = vpack.c.bf16 %v5613_v26, %v5612_v20 }
 0x7e4   :  { %v8607_v44 = vpop.permute.xlu1 %8606  ;;  %v8618_v28 = vunpack.i.l.bf16 %v8617_v7  ;;  %v8619_v33 = vunpack.i.h.bf16 %v8617_v7 }
 0x7e5   :  { %v8608_v37 = vunpack.i.l.bf16 %v8607_v44  ;;  %5859 = vmatprep.mubr.bf16.mxu1 %v5629_v52  ;;  %6301 = vmatprep.mubr.bf16.mxu0 %v5629_v52  ;;  %v8609_v15 = vunpack.i.h.bf16 %v8607_v44 }
 0x7e6   :  { %v5583_v26 = vsel %vm779_vm11, %v12123_v31, %v8618_v28  ;;  %v5537_v31 = vsel %vm779_vm11, %v11958_v19, %v8619_v33 }
 0x7e7   :  { %v5536_v11 = vsel %vm779_vm11, %v11948_v40, %v8608_v37  ;;  %v8622_v41 = vpop.permute.xlu0 %8621  ;;  %v5582_v40 = vsel %vm779_vm11, %v12043_v17, %v8609_v15 }
 0x7e8   :  { %v5550_v24 = vsel %vm1503_vm13, %v5536_v11, %v8598_v18  ;;  %v12440_v22 = vpop.permute.xlu1 %8626  ;;  %v8623_v4 = vunpack.i.l.bf16 %v8622_v41  ;;  %v5598_v18 = vsel %vm1503_vm13, %v5582_v40, %v8599_v35  ;;  %v8624_v17 = vunpack.i.h.bf16 %v8622_v41 }
 0x7e9   :  { %v5565_v25 = vsel %vm1519_vm14, %v5550_v24, %v8584_v53 }
 0x7ea   :  { %v5628_v55 = vpack.c.bf16 %v5565_v25, %v5564_v2  ;;  %v5599_v37 = vsel %vm1503_vm13, %v5583_v26, %v8623_v4  ;;  %v5551_v7 = vsel %vm1503_vm13, %v5537_v31, %v8624_v17  ;;  %v8604_v25 = vunpack.i.h.bf16 %v12427_v63 }
 0x7eb   :  { %v8642_v60 = vpop.permute.xlu0 %8641 }
 0x7ec   :  { %v12450_v20 = vpop.permute.xlu1 %8631  ;;  %5860 = vmatmul.mubr.bf16.vlgmr.msra.gmra.mrb[96].mxu1 %v5628_v55  ;;  %6302 = vmatmul.mubr.bf16.vlgmr.msra.gmra.mrb[128].mxu0 %v5628_v55  ;;  %v8644_v44 = vunpack.i.h.bf16 %v8642_v60  ;;  %v8643_v52 = vunpack.i.l.bf16 %v8642_v60  ;;  %v8603_v55 = vunpack.i.l.bf16 %v12427_v63 }
 0x7ed   :  { %7384 = vmatpush3.bf16.msra.mxu1 %v12206_v0  ;;  %v8628_v0 = vunpack.i.l.bf16 %v12440_v22 }
 0x7ee   :  { %7385 = vmatprep.subr.bf16.mxu1 %v8905_v6  ;;  %v5614_v59 = vsel %vm1519_vm14, %v5598_v18, %v8643_v52  ;;  %v5615_v53 = vsel %vm1519_vm14, %v5599_v37, %v8644_v44  ;;  %v5566_v26 = vsel %vm1519_vm14, %v5551_v7, %v8603_v55  ;;  %v8629_v37 = vunpack.i.h.bf16 %v12440_v22 }
 0x7ef   :  { %v8647_v15 = vpop.permute.xlu0 %8646  ;;  %v5632_v24 = vpack.c.bf16 %v5615_v53, %v5614_v59  ;;  %v8634_v7 = vunpack.i.h.bf16 %v12450_v20 }
 0x7f0   :  { %v8637_v11 = vpop.permute.xlu1 %8636  ;;  %v8648_v35 = vunpack.i.l.bf16 %v8647_v15  ;;  %v8649_v19 = vunpack.i.h.bf16 %v8647_v15 }
 0x7f1   :  { %v8638_v2 = vunpack.i.l.bf16 %v8637_v11  ;;  %7386 = vmatpush3.bf16.msra.mxu1 %v8905_v6  ;;  %5867 = vmatprep.mubr.bf16.mxu1 %v5632_v24  ;;  %v8639_v28 = vunpack.i.h.bf16 %v8637_v11 }
 0x7f2   :  { %6309 = vmatprep.mubr.bf16.mxu0 %v5632_v24  ;;  %v5585_v17 = vsel %vm779_vm11, %v12198_v1, %v8648_v35  ;;  %v5539_v11 = vsel %vm779_vm11, %v12007_v49, %v8649_v19 }
 0x7f3   :  { %v5538_v41 = vsel %vm779_vm11, %v11999_v5, %v8638_v2  ;;  %v8652_v4 = vpop.permute.xlu0 %8651  ;;  %v5584_v52 = vsel %vm779_vm11, %v12114_v13, %v8639_v28  ;;  %v8633_v28 = vunpack.i.l.bf16 %v12450_v20 }
 0x7f4   :  { %v8657_v40 = vpop.permute.xlu1 %8656  ;;  %v5552_v6 = vsel %vm1503_vm13, %v5538_v41, %v8628_v0  ;;  %v8653_v60 = vunpack.i.l.bf16 %v8652_v4  ;;  %v8654_v33 = vunpack.i.h.bf16 %v8652_v4  ;;  %v5600_v2 = vsel %vm1503_vm13, %v5584_v52, %v8629_v37 }
 0x7f5   :  { %v5567_v44 = vsel %vm1519_vm14, %v5552_v6, %v8604_v25  ;;  %v8658_v13 = vunpack.i.l.bf16 %v8657_v40  ;;  %v8659_v52 = vunpack.i.h.bf16 %v8657_v40 }
 0x7f6   :  { %v5631_v5 = vpack.c.bf16 %v5567_v44, %v5566_v26  ;;  %v5601_v24 = vsel %vm1503_vm13, %v5585_v17, %v8653_v60  ;;  %v5553_v22 = vsel %vm1503_vm13, %v5539_v11, %v8654_v33 }
 0x7f7   :  { %v8667_v18 = vpop.permute.xlu0 %8666  ;;  %v5568_v6 = vsel %vm1519_vm14, %v5553_v22, %v8633_v28 }
 0x7f8   :  { %v8669_v59 = vunpack.i.h.bf16 %v8667_v18  ;;  %v8668_v53 = vunpack.i.l.bf16 %v8667_v18  ;;  %5868 = vmatmul.mubr.bf16.gmra.mrb[100].mxu1 %v5631_v5  ;;  %6310 = vmatmul.mubr.bf16.gmra.mrb[132].mxu0 %v5631_v5 }
 0x7fa   :  { %v5616_v1 = vsel %vm1519_vm14, %v5600_v2, %v8668_v53  ;;  %v5617_v0 = vsel %vm1519_vm14, %v5601_v24, %v8669_v59 }
 0x7fb   :  { %v8662_v63 = vpop.permute.xlu1 %8661  ;;  %v8672_v41 = vpop.permute.xlu0 %8671  ;;  %v5635_v49 = vpack.c.bf16 %v5617_v0, %v5616_v1 }
 0x7fc   :  { %v8663_v15 = vunpack.i.l.bf16 %v8662_v63  ;;  %v8664_v55 = vunpack.i.h.bf16 %v8662_v63  ;;  %v8673_v37 = vunpack.i.l.bf16 %v8672_v41  ;;  %v8674_v40 = vunpack.i.h.bf16 %v8672_v41 }
 0x7fd   :  { %5875 = vmatprep.mubr.bf16.mxu1 %v5635_v49  ;;  %6317 = vmatprep.mubr.bf16.mxu0 %v5635_v49 }
 0x7fe   :  { %v5540_v31 = vsel %vm779_vm11, %v12058_v57, %v8663_v15  ;;  %v5586_v60 = vsel %vm779_vm11, %v12190_v51, %v8664_v55 }
 0x7ff   :  { %v5554_v25 = vsel %vm1503_vm13, %v5540_v31, %v8658_v13  ;;  %v8682_v4 = vpop.permute.xlu1 %8681  ;;  %v8677_v19 = vpop.permute.xlu0 %8676  ;;  %v5602_v63 = vsel %vm1503_vm13, %v5586_v60, %v8659_v52 }
 0x800   :  { %v5569_v57 = vsel %vm1519_vm14, %v5554_v25, %v8634_v7  ;;  %v8683_v26 = vunpack.i.l.bf16 %v8682_v4  ;;  %v8679_v44 = vunpack.i.h.bf16 %v8677_v19  ;;  %v8678_v20 = vunpack.i.l.bf16 %v8677_v19 }
 0x801   :  { %v5634_v35 = vpack.c.bf16 %v5569_v57, %v5568_v6  ;;  %v8684_v24 = vunpack.i.h.bf16 %v8682_v4 }
 0x802   :  { %v5541_v33 = vsel %vm779_vm11, %v12080_v58, %v8679_v44  ;;  %v5587_v5 = vsel %vm779_vm11, %v12218_v46, %v8678_v20  ;;  %v5618_v59 = vsel %vm1519_vm14, %v5602_v63, %v8683_v26 }
 0x803   :  { %5876 = vmatmul.mubr.bf16.gmra.mrb[104].mxu1 %v5634_v35  ;;  %6318 = vmatmul.mubr.bf16.gmra.mrb[136].mxu0 %v5634_v35  ;;  %v5603_v17 = vsel %vm1503_vm13, %v5587_v5, %v9996_v29  ;;  %v5555_v58 = vsel %vm1503_vm13, %v5541_v33, %v8673_v37 }
 0x804   :  { %v5619_v53 = vsel %vm1519_vm14, %v5603_v17, %v10013_v36  ;;  %v5570_v22 = vsel %vm1519_vm14, %v5555_v58, %v8684_v24 }
 0x805   :  { %v5638_v11 = vpack.c.bf16 %v5619_v53, %v5618_v59 }
 0x807   :  { %v8687_v18 = vpop.permute.xlu1 %8686  ;;  %5883 = vmatprep.mubr.bf16.mxu1 %v5638_v11  ;;  %6325 = vmatprep.mubr.bf16.mxu0 %v5638_v11 }
 0x808   :  { %v8688_v51 = vunpack.i.l.bf16 %v8687_v18  ;;  %v8689_v7 = vunpack.i.h.bf16 %v8687_v18 }
 0x809   :  { %v8692_v15 = vpop.permute.xlu0 %8691 }
 0x80a   :  { %v5542_v46 = vsel %vm779_vm11, %v12133_v48, %v8688_v51  ;;  %v8693_v13 = vunpack.i.l.bf16 %v8692_v15  ;;  %v5588_v48 = vsel %vm779_vm11, %v12277_v45, %v8689_v7  ;;  %v8694_v57 = vunpack.i.h.bf16 %v8692_v15 }
 0x80b   :  { %v5556_v2 = vsel %vm1503_vm13, %v5542_v46, %v8674_v40  ;;  %v8697_v0 = vpop.permute.xlu1 %8696 }
 0x80c   :  { %v5571_v31 = vsel %vm1519_vm14, %v5556_v2, %v8693_v13  ;;  %v8698_v49 = vunpack.i.l.bf16 %v8697_v0  ;;  %v8699_v26 = vunpack.i.h.bf16 %v8697_v0 }
 0x80d   :  { %v5637_v1 = vpack.c.bf16 %v5571_v31, %v5570_v22 }
 0x80e   :  { %v5589_v35 = vsel %vm779_vm11, %v12265_v3, %v8698_v49  ;;  %v5543_v17 = vsel %vm779_vm11, %v12236_v21, %v8699_v26 }
 0x80f   :  { %5884 = vmatmul.mubr.bf16.gmra.mrb[108].mxu1 %v5637_v1  ;;  %6326 = vmatmul.mubr.bf16.gmra.mrb[140].mxu0 %v5637_v1 }
 0x812   :  { %v8702_v28 = vpop.permute.xlu0 %8701 }
 0x813   :  { %v8703_v41 = vunpack.i.l.bf16 %v8702_v28  ;;  %v8707_v25 = vpop.permute.xlu1 %8706  ;;  %v8704_v55 = vunpack.i.h.bf16 %v8702_v28 }
 0x814   :  { %v8708_v20 = vunpack.i.l.bf16 %v8707_v25  ;;  %v8709_v46 = vunpack.i.h.bf16 %v8707_v25 }
 0x815   :  { %v5604_v4 = vsel %vm1503_vm13, %v5588_v48, %v8703_v41  ;;  %v5605_v44 = vsel %vm1503_vm13, %v5589_v35, %v8704_v55 }
 0x816   :  { %v5620_v52 = vsel %vm1519_vm14, %v5604_v4, %v8694_v57  ;;  %v5557_v3 = vsel %vm1503_vm13, %v5543_v17, %v8708_v20 }
 0x817   :  { %v8712_v6 = vpop.permute.xlu0 %8711  ;;  %v8717_v60 = vpop.permute.xlu1 %8716 }
 0x818   :  { %v8713_v19 = vunpack.i.l.bf16 %v8712_v6  ;;  %v8714_v5 = vunpack.i.h.bf16 %v8712_v6  ;;  %v8719_v0 = vunpack.i.h.bf16 %v8717_v60  ;;  %v8718_v7 = vunpack.i.l.bf16 %v8717_v60 }
 0x81a   :  { %v5621_v33 = vsel %vm1519_vm14, %v5605_v44, %v8713_v19  ;;  %v5572_v53 = vsel %vm1519_vm14, %v9957_v30, %v8714_v5  ;;  %v5544_v35 = vsel %vm779_vm11, %v12249_v42, %v8718_v7 }
 0x81b   :  { %v8727_v37 = vpop.permute.xlu0 %8726  ;;  %v5641_v45 = vpack.c.bf16 %v5621_v33, %v5620_v52  ;;  %v8722_v63 = vpop.permute.xlu1 %8721 }
 0x81c   :  { %v8728_v18 = vunpack.i.l.bf16 %v8727_v37  ;;  %v8723_v51 = vunpack.i.l.bf16 %v8722_v63  ;;  %v8729_v15 = vunpack.i.h.bf16 %v8727_v37  ;;  %v8724_v21 = vunpack.i.h.bf16 %v8722_v63 }
 0x81d   :  { %5891 = vmatprep.mubr.bf16.mxu1 %v5641_v45  ;;  %6333 = vmatprep.mubr.bf16.mxu0 %v5641_v45 }
 0x81e   :  { %v5573_v40 = vsel %vm1519_vm14, %v5557_v3, %v8723_v51  ;;  %v5590_v11 = vsel %vm779_vm11, %v12315_v10, %v8728_v18  ;;  %v5591_v31 = vsel %vm779_vm11, %v12329_v12, %v8729_v15  ;;  %v5545_v12 = vsel %vm779_vm11, %v12287_v32, %v8719_v0 }
 0x81f   :  { %v8732_v59 = vpop.permute.xlu0 %8731  ;;  %v8737_v58 = vpop.permute.xlu1 %8736  ;;  %v5640_v24 = vpack.c.bf16 %v5573_v40, %v5572_v53  ;;  %v5606_v22 = vsel %vm1503_vm13, %v5590_v11, %v8709_v46 }
 0x820   :  { %v8733_v13 = vunpack.i.l.bf16 %v8732_v59  ;;  %v8734_v10 = vunpack.i.h.bf16 %v8732_v59  ;;  %v8738_v41 = vunpack.i.l.bf16 %v8737_v58  ;;  %v5622_v49 = vsel %vm1519_vm14, %v5606_v22, %v8724_v21 }
 0x821   :  { %5892 = vmatmul.mubr.bf16.gmra.mrb[112].mxu1 %v5640_v24  ;;  %6334 = vmatmul.mubr.bf16.gmra.mrb[144].mxu0 %v5640_v24  ;;  %v8739_v45 = vunpack.i.h.bf16 %v8737_v58 }
 0x822   :  { %v5607_v28 = vsel %vm1503_vm13, %v5591_v31, %v8733_v13  ;;  %v5558_v60 = vsel %vm1503_vm13, %v5544_v35, %v8734_v10  ;;  %v5559_v26 = vsel %vm1503_vm13, %v5545_v12, %v8738_v41 }
 0x823   :  { %v8742_v2 = vpop.permute.xlu0 %8741  ;;  %v8747_v1 = vpop.permute.xlu1 %8746 }
 0x824   :  { %v8743_v30 = vunpack.i.l.bf16 %v8742_v2  ;;  %v8744_v55 = vunpack.i.h.bf16 %v8742_v2  ;;  %v8749_v18 = vunpack.i.h.bf16 %v8747_v1  ;;  %v8748_v63 = vunpack.i.l.bf16 %v8747_v1 }
 0x826   :  { %v5623_v25 = vsel %vm1519_vm14, %v5607_v28, %v8743_v30  ;;  %v5574_v20 = vsel %vm1519_vm14, %v5558_v60, %v8744_v55  ;;  %v5547_v58 = vsel %vm779_vm11, %v12332_v61, %v8749_v18  ;;  %v5546_v46 = vsel %vm779_vm11, %v12293_v39, %v8748_v63 }
 0x827   :  { %v8757_v48 = vpop.permute.xlu0 %8756  ;;  %v5644_v4 = vpack.c.bf16 %v5623_v25, %v5622_v49  ;;  %v8752_v57 = vpop.permute.xlu1 %8751 }
 0x828   :  { %v8758_v6 = vunpack.i.l.bf16 %v8757_v48  ;;  %v8753_v19 = vunpack.i.l.bf16 %v8752_v57  ;;  %v8759_v33 = vunpack.i.h.bf16 %v8757_v48  ;;  %v8754_v17 = vunpack.i.h.bf16 %v8752_v57 }
 0x829   :  { %5899 = vmatprep.mubr.bf16.mxu1 %v5644_v4  ;;  %6341 = vmatprep.mubr.bf16.mxu0 %v5644_v4 }
 0x82a   :  { %v5575_v52 = vsel %vm1519_vm14, %v5559_v26, %v8753_v19  ;;  %v5592_v5 = vsel %vm779_vm11, %v12366_v47, %v8758_v6  ;;  %v5593_v53 = vsel %vm779_vm11, %v12383_v62, %v8759_v33 }
 0x82b   :  { %v8762_v44 = vpop.permute.xlu0 %8761  ;;  %v5383_v32 = vpop.permute.xlu1 %5382  ;;  %v5643_v37 = vpack.c.bf16 %v5575_v52, %v5574_v20  ;;  %v5608_v59 = vsel %vm1503_vm13, %v5592_v5, %v8739_v45 }
 0x82c   :  { %v8763_v42 = vunpack.i.l.bf16 %v8762_v44  ;;  %v8764_v51 = vunpack.i.h.bf16 %v8762_v44  ;;  %v5624_v13 = vsel %vm1519_vm14, %v5608_v59, %v8754_v17 }
 0x82d   :  { %5900 = vmatmul.mubr.bf16.gmra.mrb[116].mxu1 %v5643_v37  ;;  %6342 = vmatmul.mubr.bf16.gmra.mrb[148].mxu0 %v5643_v37 }
 0x82e   :  { %v5609_v47 = vsel %vm1503_vm13, %v5593_v53, %v8763_v42  ;;  %v5560_v2 = vsel %vm1503_vm13, %v5546_v46, %v8764_v51 }
 0x82f   :  { %v8772_v3 = vpop.permute.xlu0 %8771  ;;  %v8767_v11 = vpop.permute.xlu1 %8766 }
 0x830   :  { %v8774_v40 = vunpack.i.h.bf16 %v8772_v3  ;;  %v8773_v15 = vunpack.i.l.bf16 %v8772_v3  ;;  %v8768_v24 = vunpack.i.l.bf16 %v8767_v11  ;;  %v8769_v4 = vunpack.i.h.bf16 %v8767_v11 }
 0x832   :  { %v5625_v21 = vsel %vm1519_vm14, %v5609_v47, %v8773_v15  ;;  %v5561_v62 = vsel %vm1503_vm13, %v5547_v58, %v8768_v24  ;;  %v5576_v1 = vsel %vm1519_vm14, %v5560_v2, %v8774_v40 }
 0x833   :  { %v8782_v22 = vpop.permute.xlu0 %8781  ;;  %v5647_v31 = vpack.c.bf16 %v5625_v21, %v5624_v13  ;;  %v8777_v30 = vpop.permute.xlu1 %8776  ;;  %v5577_v0 = vsel %vm1519_vm14, %v5561_v62, %v5383_v32 }
 0x834   :  { %v8779_v7 = vunpack.i.h.bf16 %v8777_v30  ;;  %v8778_v61 = vunpack.i.l.bf16 %v8777_v30  ;;  %v5646_v39 = vpack.c.bf16 %v5577_v0, %v5576_v1  ;;  %v8783_v41 = vunpack.i.l.bf16 %v8782_v22 }
 0x835   :  { %5907 = vmatprep.mubr.bf16.mxu1 %v5647_v31  ;;  %6349 = vmatprep.mubr.bf16.mxu0 %v5647_v31  ;;  %v8784_v6 = vunpack.i.h.bf16 %v8782_v22 }
 0x836   :  { %v5548_v28 = vsel %vm779_vm11, %v12340_v34, %v8778_v61  ;;  %5908 = vmatmul.mubr.bf16.gmra.mrb[120].mxu1 %v5646_v39  ;;  %6350 = vmatmul.mubr.bf16.gmra.mrb[152].mxu0 %v5646_v39  ;;  %v5549_v48 = vsel %vm779_vm11, %v12371_v56, %v8779_v7 }
 0x837   :  { %v8787_v10 = vpop.permute.xlu0 %8786  ;;  %v8792_v55 = vpop.permute.xlu1 %8791  ;;  %v5562_v19 = vsel %vm1503_vm13, %v5548_v28, %v8783_v41  ;;  %v5563_v26 = vsel %vm1503_vm13, %v5549_v48, %v8784_v6 }
 0x838   :  { %v8789_v49 = vunpack.i.h.bf16 %v8787_v10  ;;  %v8788_v25 = vunpack.i.l.bf16 %v8787_v10  ;;  %v8794_v57 = vunpack.i.h.bf16 %v8792_v55  ;;  %v8793_v12 = vunpack.i.l.bf16 %v8792_v55 }
 0x83a   :  { %v5595_v35 = vsel %vm779_vm11, %v12419_v50, %v8789_v49  ;;  %v5594_v34 = vsel %vm779_vm11, %v12406_v23, %v8788_v25  ;;  %v5578_v44 = vsel %vm1519_vm14, %v5562_v19, %v8794_v57 }
 0x83b   :  { %v5387_v60 = vpop.permute.xlu0 %5386  ;;  %v5610_v20 = vsel %vm1503_vm13, %v5594_v34, %v8769_v4  ;;  %v5611_v56 = vsel %vm1503_vm13, %v5595_v35, %v9996_v29 }
 0x83c   :  { %v5579_v52 = vsel %vm1519_vm14, %v5563_v26, %v5387_v60  ;;  %v5626_v33 = vsel %vm1519_vm14, %v5610_v20, %v8793_v12  ;;  %v5627_v50 = vsel %vm1519_vm14, %v5611_v56, %v10013_v36 }
 0x83d   :  { %v5649_v23 = vpack.c.bf16 %v5579_v52, %v5578_v44  ;;  %v5650_v5 = vpack.c.bf16 %v5627_v50, %v5626_v33 }
 0x83f   :  { %5915 = vmatprep.mubr.bf16.mxu1 %v5650_v5  ;;  %6357 = vmatprep.mubr.bf16.mxu0 %v5650_v5 }
 0x840   :  { %5916 = vmatmul.mubr.bf16.gmra.mrb[124].mxu1 %v5649_v23  ;;  %6358 = vmatmul.mubr.bf16.gmra.mrb[156].mxu0 %v5649_v23 }
 0x841   :  { %7387 = vmatprep.mubr.msk.bf16.mxu1 %vm779_vm11, %v12035_v8 }
 0x846   :  { %v7369_v29 = vpop.f32.mrb[112].mxu0 }
 0x847   :  { %v5958_v32 = vpop.f32.mrb[113].mxu0 }
 0x848   :  { %7388 = vmatmul.mubr.msk.bf16.vlgmr.msra.gmra.mrb[128].mxu1 %vm779_vm11, %v12092_v43  ;;  %v7370_v37 = vpop.f32.mrb[114].mxu0 }
 0x849   :  { %7391 = vmatprep.mubr.msk.bf16.mxu1 %vm779_vm11, %v12159_v54  ;;  %v5961_v45 = vpop.f32.mrb[115].mxu0 }
 0x850   :  { %7392 = vmatmul.mubr.msk.bf16.gmra.mrb[132].mxu1 %vm779_vm11, %v12175_v9 }
 0x851   :  { %7395 = vmatprep.mubr.msk.bf16.mxu1 %vm779_vm11, %v12310_v16 }
 0x857   :  { %v12583_v36 = vpop.f32.mrb[116].mxu0 }
 0x858   :  { %7396 = vmatmul.mubr.msk.bf16.gmra.mrb[136].mxu1 %vm779_vm11, %v12357_v14  ;;  %v12587_v8 = vpop.f32.mrb[117].mxu0 }
 0x859   :  { %7399 = vmatprep.mubr.msk.bf16.mxu1 %vm779_vm11, %v12388_v27  ;;  %v12589_v43 = vpop.f32.mrb[118].mxu0 }
 0x85a   :  { %v12591_v54 = vpop.f32.mrb[119].mxu0 }
 0x860   :  { %7400 = vmatmul.mubr.msk.bf16.gmra.mrb[140].mxu1 %vm779_vm11, %v12396_v38  ;;  %v12614_v38 = vld [vmem:[%s12854_s12] ss:$0 sm:$0xff] }
 0x87e   :  { %v12595_v9 = vpop.f32.mrb[120].mxu0 }
 0x87f   :  { %v12597_v16 = vpop.f32.mrb[121].mxu0 }
 0x880   :  { %v12599_v42 = vpop.f32.mrb[122].mxu0 }
 0x881   :  { %v12601_v14 = vpop.f32.mrb[123].mxu0 }
 0x88a   :  { %v12603_v18 = vpop.f32.mrb[124].mxu0 }
 0x88b   :  { %v12605_v27 = vpop.f32.mrb[125].mxu0 }
 0x88c   :  { %v12607_v63 = vpop.f32.mrb[126].mxu0 }
 0x88d   :  { %v12609_v17 = vpop.f32.mrb[127].mxu0 }
 0x8bf   :  { %v7129_v51 = vpop.f32.mrb[96].mxu1  ;;  %v7203_v3 = vpop.f32.mrb[128].mxu0 }
 0x8c0   :  { %v7130_v59 = vpop.f32.mrb[97].mxu1  ;;  %v7204_v53 = vpop.f32.mrb[129].mxu0 }
 0x8c1   :  { %v7131_v40 = vadd.f32 %v7130_v59, %v7129_v51  ;;  %v12616_v15 = vadd.f32 %v7204_v53, %v7203_v3  ;;  %v7132_v11 = vpop.f32.mrb[98].mxu1  ;;  %v7206_v47 = vpop.f32.mrb[130].mxu0 }
 0x8c2   :  { %v7133_v24 = vpop.f32.mrb[99].mxu1  ;;  %v7207_v58 = vpop.f32.mrb[131].mxu0 }
 0x8c3   :  { %v5862_v46 = vadd.f32 %v7131_v40, %v12614_v38  ;;  %v7134_v13 = vadd.f32 %v7133_v24, %v7132_v11  ;;  %v12619_v21 = vadd.f32 %v7207_v58, %v7206_v47 }
 0x8c5   :  { %v5959_v2 = vadd.f32 %v5958_v32, %v5862_v46  ;;  %v5865_v62 = vadd.f32 %v7134_v13, %v12614_v38 }
 0x8c7   :  { %v6021_v22 = vmax.f32 %v5959_v2, 0.0  ;;  %v5962_v31 = vadd.f32 %v5961_v45, %v5865_v62 }
 0x8c9   :  { %v6774_v30 = vpack.c.bf16 %v6021_v22, %v6021_v22  ;;  %v6022_v1 = vmax.f32 %v5962_v31, 0.0 }
 0x8cb   :  { %6102 = vst.msk [vmem:[%s12855_s15] sm:$0xf] %vm6101_vm15, %v6774_v30  ;;  %v6775_v0 = vpack.c.bf16 %v6022_v1, %v6022_v1  ;;  %v7135_v7 = vpop.f32.mrb[100].mxu1  ;;  %v7209_v61 = vpop.f32.mrb[132].mxu0 }
 0x8cc   :  { %v7136_v39 = vpop.f32.mrb[101].mxu1  ;;  %v7210_v28 = vpop.f32.mrb[133].mxu0 }
 0x8cd   :  { %6103 = vst.msk [vmem:[%s12855_s15 + $0x4] sm:$0xf] %vm6101_vm15, %v6775_v0  ;;  %v7137_v10 = vadd.f32 %v7136_v39, %v7135_v7  ;;  %v12630_v41 = vadd.f32 %v7210_v28, %v7209_v61  ;;  %v7138_v49 = vpop.f32.mrb[102].mxu1  ;;  %v7212_v25 = vpop.f32.mrb[134].mxu0 }
 0x8ce   :  { %v7139_v55 = vpop.f32.mrb[103].mxu1  ;;  %v7213_v48 = vpop.f32.mrb[135].mxu0 }
 0x8cf   :  { %v5870_v4 = vadd.f32 %v7137_v10, %v12614_v38  ;;  %v7140_v6 = vadd.f32 %v7139_v55, %v7138_v49  ;;  %v12633_v57 = vadd.f32 %v7213_v48, %v7212_v25 }
 0x8d1   :  { %v5967_v12 = vadd.f32 %v7369_v29, %v5870_v4  ;;  %v5873_v35 = vadd.f32 %v7140_v6, %v12614_v38 }
 0x8d3   :  { %v6023_v34 = vmax.f32 %v5967_v12, 0.0  ;;  %v5970_v19 = vadd.f32 %v7370_v37, %v5873_v35 }
 0x8d5   :  { %v6776_v56 = vpack.c.bf16 %v6023_v34, %v6023_v34  ;;  %v6024_v52 = vmax.f32 %v5970_v19, 0.0 }
 0x8d6   :  { %v7141_v60 = vpop.f32.mrb[104].mxu1  ;;  %v7215_v26 = vpop.f32.mrb[136].mxu0 }
 0x8d7   :  { %v7142_v44 = vpop.f32.mrb[105].mxu1  ;;  %v7216_v20 = vpop.f32.mrb[137].mxu0  ;;  %6104 = vst.msk [vmem:[%s12855_s15 + $0x8] sm:$0xf] %vm6101_vm15, %v6776_v56  ;;  %v6777_v29 = vpack.c.bf16 %v6024_v52, %v6024_v52 }
 0x8d8   :  { %v7143_v33 = vadd.f32 %v7142_v44, %v7141_v60  ;;  %v12636_v50 = vadd.f32 %v7216_v20, %v7215_v26  ;;  %v7144_v23 = vpop.f32.mrb[106].mxu1  ;;  %v7218_v5 = vpop.f32.mrb[138].mxu0 }
 0x8d9   :  { %v7145_v32 = vpop.f32.mrb[107].mxu1  ;;  %v7219_v45 = vpop.f32.mrb[139].mxu0  ;;  %6105 = vst.msk [vmem:[%s12855_s15 + $0xc] sm:$0xf] %vm6101_vm15, %v6777_v29 }
 0x8da   :  { %v5878_v37 = vadd.f32 %v7143_v33, %v12614_v38  ;;  %v7146_v51 = vadd.f32 %v7145_v32, %v7144_v23  ;;  %v12643_v3 = vadd.f32 %v7219_v45, %v7218_v5 }
 0x8dc   :  { %v5975_v59 = vadd.f32 %v12587_v8, %v5878_v37  ;;  %v5881_v53 = vadd.f32 %v7146_v51, %v12614_v38 }
 0x8de   :  { %v6025_v40 = vmax.f32 %v5975_v59, 0.0  ;;  %v5978_v11 = vadd.f32 %v12591_v54, %v5881_v53 }
 0x8e0   :  { %v6778_v47 = vpack.c.bf16 %v6025_v40, %v6025_v40  ;;  %v6026_v24 = vmax.f32 %v5978_v11, 0.0 }
 0x8e2   :  { %v7147_v58 = vpop.f32.mrb[108].mxu1  ;;  %v7221_v46 = vpop.f32.mrb[140].mxu0  ;;  %6106 = vst.msk [vmem:[%s12855_s15 + $0x10] sm:$0xf] %vm6101_vm15, %v6778_v47  ;;  %v6779_v13 = vpack.c.bf16 %v6026_v24, %v6026_v24 }
 0x8e3   :  { %v7148_v2 = vpop.f32.mrb[109].mxu1  ;;  %v7222_v62 = vpop.f32.mrb[141].mxu0 }
 0x8e4   :  { %v7149_v22 = vadd.f32 %v7148_v2, %v7147_v58  ;;  %v12656_v31 = vadd.f32 %v7222_v62, %v7221_v46  ;;  %v7150_v8 = vpop.f32.mrb[110].mxu1  ;;  %v7224_v30 = vpop.f32.mrb[142].mxu0  ;;  %6107 = vst.msk [vmem:[%s12855_s15 + $0x14] sm:$0xf] %vm6101_vm15, %v6779_v13 }
 0x8e5   :  { %v7151_v54 = vpop.f32.mrb[111].mxu1  ;;  %v7225_v1 = vpop.f32.mrb[143].mxu0 }
 0x8e6   :  { %v5886_v0 = vadd.f32 %v7149_v22, %v12614_v38  ;;  %v7152_v7 = vadd.f32 %v7151_v54, %v7150_v8  ;;  %v12663_v61 = vadd.f32 %v7225_v1, %v7224_v30 }
 0x8e8   :  { %v5983_v39 = vadd.f32 %v12583_v36, %v5886_v0  ;;  %v5889_v28 = vadd.f32 %v7152_v7, %v12614_v38 }
 0x8ea   :  { %v6027_v10 = vmax.f32 %v5983_v39, 0.0  ;;  %v5986_v49 = vadd.f32 %v12589_v43, %v5889_v28 }
 0x8ec   :  { %v6780_v25 = vpack.c.bf16 %v6027_v10, %v6027_v10  ;;  %v6028_v55 = vmax.f32 %v5986_v49, 0.0 }
 0x8ee   :  { %6108 = vst.msk [vmem:[%s12855_s15 + $0x18] sm:$0xf] %vm6101_vm15, %v6780_v25  ;;  %v6781_v48 = vpack.c.bf16 %v6028_v55, %v6028_v55 }
 0x8f0   :  { %6109 = vst.msk [vmem:[%s12855_s15 + $0x1c] sm:$0xf] %vm6101_vm15, %v6781_v48 }
 0x8f4   :  { %v7153_v4 = vpop.f32.mrb[112].mxu1  ;;  %v7227_v36 = vpop.f32.mrb[144].mxu0 }
 0x8f5   :  { %v7154_v6 = vpop.f32.mrb[113].mxu1  ;;  %v7228_v12 = vpop.f32.mrb[145].mxu0 }
 0x8f6   :  { %v7155_v35 = vadd.f32 %v7154_v6, %v7153_v4  ;;  %v12676_v34 = vadd.f32 %v7228_v12, %v7227_v36  ;;  %v7156_v43 = vpop.f32.mrb[114].mxu1  ;;  %v7230_v19 = vpop.f32.mrb[146].mxu0 }
 0x8f7   :  { %v7157_v60 = vpop.f32.mrb[115].mxu1  ;;  %v7231_v26 = vpop.f32.mrb[147].mxu0 }
 0x8f8   :  { %v5894_v44 = vadd.f32 %v7155_v35, %v12614_v38  ;;  %v7158_v20 = vadd.f32 %v7157_v60, %v7156_v43  ;;  %v12679_v56 = vadd.f32 %v7231_v26, %v7230_v19 }
 0x8fa   :  { %v5991_v52 = vadd.f32 %v12597_v16, %v5894_v44  ;;  %v5897_v33 = vadd.f32 %v7158_v20, %v12614_v38 }
 0x8fc   :  { %v6029_v23 = vmax.f32 %v5991_v52, 0.0  ;;  %v5994_v5 = vadd.f32 %v12601_v14, %v5897_v33 }
 0x8fe   :  { %v6782_v32 = vpack.c.bf16 %v6029_v23, %v6029_v23  ;;  %v6030_v45 = vmax.f32 %v5994_v5, 0.0 }
 0x900   :  { %6110 = vst.msk [vmem:[%s12855_s15 + $0x20] sm:$0xf] %vm6101_vm15, %v6782_v32  ;;  %v6783_v29 = vpack.c.bf16 %v6030_v45, %v6030_v45  ;;  %v7159_v37 = vpop.f32.mrb[116].mxu1  ;;  %v7233_v51 = vpop.f32.mrb[148].mxu0 }
 0x901   :  { %v7160_v59 = vpop.f32.mrb[117].mxu1  ;;  %v7234_v53 = vpop.f32.mrb[149].mxu0 }
 0x902   :  { %6111 = vst.msk [vmem:[%s12855_s15 + $0x24] sm:$0xf] %vm6101_vm15, %v6783_v29  ;;  %v7161_v16 = vadd.f32 %v7160_v59, %v7159_v37  ;;  %v12692_v40 = vadd.f32 %v7234_v53, %v7233_v51  ;;  %v7162_v14 = vpop.f32.mrb[118].mxu1  ;;  %v7236_v11 = vpop.f32.mrb[150].mxu0  ;;  %v12732_v59 = vld [vmem:[%s12856_s14] ss:$0 sm:$0xff] }
 0x903   :  { %v7163_v47 = vpop.f32.mrb[119].mxu1  ;;  %v7237_v24 = vpop.f32.mrb[151].mxu0 }
 0x904   :  { %v5902_v58 = vadd.f32 %v7161_v16, %v12614_v38  ;;  %v7164_v46 = vadd.f32 %v7163_v47, %v7162_v14  ;;  %v12695_v13 = vadd.f32 %v7237_v24, %v7236_v11  ;;  %v6312_v14 = vadd.f32 %v12630_v41, %v12732_v59 }
 0x906   :  { %v5999_v2 = vadd.f32 %v12595_v9, %v5902_v58  ;;  %v5905_v62 = vadd.f32 %v7164_v46, %v12614_v38  ;;  %v6304_v58 = vadd.f32 %v12616_v15, %v12732_v59 }
 0x908   :  { %v6031_v22 = vmax.f32 %v5999_v2, 0.0  ;;  %v6002_v8 = vadd.f32 %v12599_v42, %v5905_v62  ;;  %v6315_v62 = vadd.f32 %v12633_v57, %v12732_v59 }
 0x909   :  { %v7165_v30 = vpop.f32.mrb[120].mxu1  ;;  %v7239_v54 = vpop.f32.mrb[152].mxu0 }
 0x90a   :  { %v6784_v1 = vpack.c.bf16 %v6031_v22, %v6031_v22  ;;  %v6032_v0 = vmax.f32 %v6002_v8, 0.0  ;;  %v7166_v7 = vpop.f32.mrb[121].mxu1  ;;  %v7240_v39 = vpop.f32.mrb[153].mxu0 }
 0x90b   :  { %v7167_v28 = vadd.f32 %v7166_v7, %v7165_v30  ;;  %v12700_v10 = vadd.f32 %v7240_v39, %v7239_v54  ;;  %v7168_v49 = vpop.f32.mrb[122].mxu1  ;;  %v7242_v25 = vpop.f32.mrb[154].mxu0 }
 0x90c   :  { %6112 = vst.msk [vmem:[%s12855_s15 + $0x28] sm:$0xf] %vm6101_vm15, %v6784_v1  ;;  %v6785_v9 = vpack.c.bf16 %v6032_v0, %v6032_v0  ;;  %v7169_v55 = vpop.f32.mrb[123].mxu1  ;;  %v7243_v48 = vpop.f32.mrb[155].mxu0 }
 0x90d   :  { %v5910_v42 = vadd.f32 %v7167_v28, %v12614_v38  ;;  %v7170_v4 = vadd.f32 %v7169_v55, %v7168_v49  ;;  %v12707_v36 = vadd.f32 %v7243_v48, %v7242_v25  ;;  %v6328_v49 = vadd.f32 %v12656_v31, %v12732_v59 }
 0x90e   :  { %6113 = vst.msk [vmem:[%s12855_s15 + $0x2c] sm:$0xf] %vm6101_vm15, %v6785_v9  ;;  %v6320_v55 = vadd.f32 %v12636_v50, %v12732_v59  ;;  %v6331_v31 = vadd.f32 %v12663_v61, %v12732_v59  ;;  %v6323_v50 = vadd.f32 %v12643_v3, %v12732_v59 }
 0x90f   :  { %v6007_v6 = vadd.f32 %v12605_v27, %v5910_v42  ;;  %v5913_v12 = vadd.f32 %v7170_v4, %v12614_v38 }
 0x911   :  { %v6033_v35 = vmax.f32 %v6007_v6, 0.0  ;;  %v6010_v43 = vadd.f32 %v12609_v17, %v5913_v12 }
 0x913   :  { %v7171_v19 = vpop.f32.mrb[124].mxu1  ;;  %v7245_v60 = vpop.f32.mrb[156].mxu0  ;;  %v6786_v26 = vpack.c.bf16 %v6033_v35, %v6033_v35  ;;  %v6034_v44 = vmax.f32 %v6010_v43, 0.0 }
 0x914   :  { %v7172_v20 = vpop.f32.mrb[125].mxu1  ;;  %v7246_v52 = vpop.f32.mrb[157].mxu0 }
 0x915   :  { %v7173_v33 = vadd.f32 %v7172_v20, %v7171_v19  ;;  %v12716_v23 = vadd.f32 %v7246_v52, %v7245_v60  ;;  %v7174_v5 = vpop.f32.mrb[126].mxu1  ;;  %v7248_v32 = vpop.f32.mrb[158].mxu0  ;;  %6114 = vst.msk [vmem:[%s12855_s15 + $0x30] sm:$0xf] %vm6101_vm15, %v6786_v26  ;;  %v6787_v27 = vpack.c.bf16 %v6034_v44, %v6034_v44 }
 0x916   :  { %v7175_v45 = vpop.f32.mrb[127].mxu1  ;;  %v7249_v29 = vpop.f32.mrb[159].mxu0 }
 0x917   :  { %v5918_v17 = vadd.f32 %v7173_v33, %v12614_v38  ;;  %v7176_v37 = vadd.f32 %v7175_v45, %v7174_v5  ;;  %v12723_v51 = vadd.f32 %v7249_v29, %v7248_v32  ;;  %6115 = vst.msk [vmem:[%s12855_s15 + $0x34] sm:$0xf] %vm6101_vm15, %v6787_v27  ;;  %v6344_v33 = vadd.f32 %v12692_v40, %v12732_v59 }
 0x918   :  { %v6336_v32 = vadd.f32 %v12676_v34, %v12732_v59  ;;  %v6347_v40 = vadd.f32 %v12695_v13, %v12732_v59  ;;  %v6339_v34 = vadd.f32 %v12679_v56, %v12732_v59 }
 0x919   :  { %v6015_v53 = vadd.f32 %v12603_v18, %v5918_v17  ;;  %v5921_v16 = vadd.f32 %v7176_v37, %v12614_v38  ;;  %v6307_v38 = vadd.f32 %v12619_v21, %v12732_v59 }
 0x91b   :  { %v6035_v11 = vmax.f32 %v6015_v53, 0.0  ;;  %v6018_v47 = vadd.f32 %v12607_v63, %v5921_v16  ;;  %v7389_v24 = vpop.f32.mrb[128].mxu1 }
 0x91c   :  { %v6409_v46 = vadd.f32 %v7389_v24, %v6312_v14  ;;  %v6400_v2 = vpop.f32.mrb[129].mxu1 }
 0x91d   :  { %v6788_v22 = vpack.c.bf16 %v6035_v11, %v6035_v11  ;;  %v6036_v8 = vmax.f32 %v6018_v47, 0.0  ;;  %v6401_v18 = vadd.f32 %v6400_v2, %v6304_v58  ;;  %v7390_v30 = vpop.f32.mrb[130].mxu1  ;;  %v6360_v2 = vadd.f32 %v12716_v23, %v12732_v59 }
 0x91e   :  { %v6465_v41 = vmax.f32 %v6409_v46, 0.0  ;;  %v6412_v54 = vadd.f32 %v7390_v30, %v6315_v62  ;;  %v6403_v1 = vpop.f32.mrb[131].mxu1  ;;  %v6363_v23 = vadd.f32 %v12723_v51, %v12732_v59 }
 0x91f   :  { %6116 = vst.msk [vmem:[%s12855_s15 + $0x38] sm:$0xf] %vm6101_vm15, %v6788_v22  ;;  %v6789_v63 = vpack.c.bf16 %v6036_v8, %v6036_v8  ;;  %v6463_v15 = vmax.f32 %v6401_v18, 0.0  ;;  %v6404_v0 = vadd.f32 %v6403_v1, %v6307_v38  ;;  %v6352_v22 = vadd.f32 %v12700_v10, %v12732_v59 }
 0x920   :  { %v6792_v57 = vpack.c.bf16 %v6465_v41, %v6465_v41  ;;  %v6466_v7 = vmax.f32 %v6412_v54, 0.0  ;;  %v6355_v10 = vadd.f32 %v12707_v36, %v12732_v59 }
 0x921   :  { %6117 = vst.msk [vmem:[%s12855_s15 + $0x3c] sm:$0xf] %vm6101_vm15, %v6789_v63  ;;  %v6790_v21 = vpack.c.bf16 %v6463_v15, %v6463_v15  ;;  %v6464_v39 = vmax.f32 %v6404_v0, 0.0 }
 0x922   :  { %6546 = vst.msk [vmem:[%s12857_s16 + $0x8] sm:$0xf] %vm6543_vm0, %v6792_v57  ;;  %v6793_v28 = vpack.c.bf16 %v6466_v7, %v6466_v7 }
 0x923   :  { %6544 = vst.msk [vmem:[%s12857_s16] sm:$0xf] %vm6543_vm0, %v6790_v21  ;;  %v6791_v25 = vpack.c.bf16 %v6464_v39, %v6464_v39  ;;  %v7393_v9 = vpop.f32.mrb[132].mxu1 }
 0x924   :  { %6547 = vst.msk [vmem:[%s12857_s16 + $0xc] sm:$0xf] %vm6543_vm0, %v6793_v28  ;;  %v6425_v48 = vadd.f32 %v7393_v9, %v6328_v49  ;;  %v6416_v42 = vpop.f32.mrb[133].mxu1 }
 0x925   :  { %6545 = vst.msk [vmem:[%s12857_s16 + $0x4] sm:$0xf] %vm6543_vm0, %v6791_v25  ;;  %v6417_v4 = vadd.f32 %v6416_v42, %v6320_v55  ;;  %v7394_v6 = vpop.f32.mrb[134].mxu1 }
 0x926   :  { %v6469_v12 = vmax.f32 %v6425_v48, 0.0  ;;  %v6428_v35 = vadd.f32 %v7394_v6, %v6331_v31  ;;  %v6419_v43 = vpop.f32.mrb[135].mxu1 }
 0x927   :  { %v6467_v19 = vmax.f32 %v6417_v4, 0.0  ;;  %v6420_v60 = vadd.f32 %v6419_v43, %v6323_v50 }
 0x928   :  { %v6796_v26 = vpack.c.bf16 %v6469_v12, %v6469_v12  ;;  %v6470_v44 = vmax.f32 %v6428_v35, 0.0 }
 0x929   :  { %v6794_v20 = vpack.c.bf16 %v6467_v19, %v6467_v19  ;;  %v6468_v52 = vmax.f32 %v6420_v60, 0.0 }
 0x92a   :  { %6550 = vst.msk [vmem:[%s12857_s16 + $0x18] sm:$0xf] %vm6543_vm0, %v6796_v26  ;;  %v6797_v61 = vpack.c.bf16 %v6470_v44, %v6470_v44 }
 0x92b   :  { %6548 = vst.msk [vmem:[%s12857_s16 + $0x10] sm:$0xf] %vm6543_vm0, %v6794_v20  ;;  %v6795_v3 = vpack.c.bf16 %v6468_v52, %v6468_v52  ;;  %v7397_v5 = vpop.f32.mrb[136].mxu1 }
 0x92c   :  { %6551 = vst.msk [vmem:[%s12857_s16 + $0x1c] sm:$0xf] %vm6543_vm0, %v6797_v61  ;;  %v6441_v27 = vadd.f32 %v7397_v5, %v6344_v33  ;;  %v6432_v45 = vpop.f32.mrb[137].mxu1 }
 0x92d   :  { %6549 = vst.msk [vmem:[%s12857_s16 + $0x14] sm:$0xf] %vm6543_vm0, %v6795_v3  ;;  %v6433_v29 = vadd.f32 %v6432_v45, %v6336_v32  ;;  %v7398_v17 = vpop.f32.mrb[138].mxu1 }
 0x92e   :  { %v6473_v37 = vmax.f32 %v6441_v27, 0.0  ;;  %v6444_v53 = vadd.f32 %v7398_v17, %v6347_v40  ;;  %v6435_v16 = vpop.f32.mrb[139].mxu1 }
 0x92f   :  { %v6471_v14 = vmax.f32 %v6433_v29, 0.0  ;;  %v6436_v11 = vadd.f32 %v6435_v16, %v6339_v34 }
 0x930   :  { %v6800_v47 = vpack.c.bf16 %v6473_v37, %v6473_v37  ;;  %v6474_v24 = vmax.f32 %v6444_v53, 0.0 }
 0x931   :  { %v6798_v58 = vpack.c.bf16 %v6471_v14, %v6471_v14  ;;  %v6472_v46 = vmax.f32 %v6436_v11, 0.0 }
 0x932   :  { %6554 = vst.msk [vmem:[%s12857_s16 + $0x28] sm:$0xf] %vm6543_vm0, %v6800_v47  ;;  %v6801_v13 = vpack.c.bf16 %v6474_v24, %v6474_v24 }
 0x933   :  { %6552 = vst.msk [vmem:[%s12857_s16 + $0x20] sm:$0xf] %vm6543_vm0, %v6798_v58  ;;  %v6799_v56 = vpack.c.bf16 %v6472_v46, %v6472_v46  ;;  %v7401_v62 = vpop.f32.mrb[140].mxu1 }
 0x934   :  { %6555 = vst.msk [vmem:[%s12857_s16 + $0x2c] sm:$0xf] %vm6543_vm0, %v6801_v13  ;;  %v6457_v8 = vadd.f32 %v7401_v62, %v6360_v2  ;;  %v6448_v18 = vpop.f32.mrb[141].mxu1 }
 0x935   :  { %6553 = vst.msk [vmem:[%s12857_s16 + $0x24] sm:$0xf] %vm6543_vm0, %v6799_v56  ;;  %v6449_v30 = vadd.f32 %v6448_v18, %v6352_v22  ;;  %v7402_v38 = vpop.f32.mrb[142].mxu1 }
 0x936   :  { %v6477_v41 = vmax.f32 %v6457_v8, 0.0  ;;  %v6460_v54 = vadd.f32 %v7402_v38, %v6363_v23  ;;  %v6451_v1 = vpop.f32.mrb[143].mxu1 }
 0x937   :  { %v6475_v63 = vmax.f32 %v6449_v30, 0.0  ;;  %v6452_v15 = vadd.f32 %v6451_v1, %v6355_v10 }
 0x938   :  { %v6804_v0 = vpack.c.bf16 %v6477_v41, %v6477_v41  ;;  %v6478_v57 = vmax.f32 %v6460_v54, 0.0 }
 0x939   :  { %v6802_v7 = vpack.c.bf16 %v6475_v63, %v6475_v63  ;;  %v6476_v21 = vmax.f32 %v6452_v15, 0.0 }
 0x93a   :  { %6558 = vst.msk [vmem:[%s12857_s16 + $0x38] sm:$0xf] %vm6543_vm0, %v6804_v0  ;;  %v6805_v51 = vpack.c.bf16 %v6478_v57, %v6478_v57 }
 0x93b   :  { %6556 = vst.msk [vmem:[%s12857_s16 + $0x30] sm:$0xf] %vm6543_vm0, %v6802_v7  ;;  %v6803_v36 = vpack.c.bf16 %v6476_v21, %v6476_v21 }
 0x93c   :  { %6559 = vst.msk [vmem:[%s12857_s16 + $0x3c] sm:$0xf] %vm6543_vm0, %v6805_v51 }
 0x93d   :  { %6557 = vst.msk [vmem:[%s12857_s16 + $0x34] sm:$0xf] %vm6543_vm0, %v6803_v36 }

</bundles_post_ra>
